<compile_context>
chip_gen: v7x
topology: tpu7x:2x2x1
jax: 0.10.0
libtpu: 0.0.40
codegen_flags: <defaults>
</compile_context>

<pallas_src>
import functools

import jax
import jax.numpy as jnp
from jax import lax
from jax.experimental import pallas as pl
from jax.experimental.pallas import tpu as pltpu


def _round_up(x, m):
    return (x + m - 1) // m * m


def _dense_block_kernel(x_ref, w1_ref, w2_ref, w3_ref, w4_ref, w5_ref,
                        b_ref, o_ref, cat_ref, *,
                        B, P_pad, Wp, W, C, L, lead, M_all,
                        res_scale, slope, cdtype):
    """Fused DenseResidualBlock for one block of B batch items.

    x_ref  : (B*P_pad, 3C) f32  horizontal im2col of the zero-padded input:
                                row b*P_pad + lead + q, col dw*C + c holds
                                x_pad[b, q + dw, c].
    w*_ref : (3, 15C, C)        conv i taps; K axis ordered (layer j, dw, c),
                                zero for layers j > i (compute dtype).
    b_ref  : (5, C) f32         biases.
    o_ref  : (1, M_all, C) f32  conv5 * res_scale + x over the fused
                                batch/pixel axis (wrapper unpacks).
    cat_ref: (B*P_pad, 15C)     VMEM im2col concat buffer
                                [x | out1 | out2 | out3 | out4] x 3 dw-taps.
    """
    interior = lead + Wp + 1                     # multiple of 8 by construction

    # Per-step init: zero only the layer-output columns (their halo rows must
    # read as zero padding); the x columns are fully overwritten.
    cat_ref[:, pl.ds(3 * C, 12 * C)] = jnp.zeros((B * P_pad, 12 * C), cdtype)
    cat_ref[:, pl.ds(0, 3 * C)] = x_ref[...].astype(cdtype)

    # Interior-position mask over the fused batch/pixel axis. Float math is
    # exact at these magnitudes and avoids vector integer div/rem.
    j = lax.broadcasted_iota(jnp.int32, (M_all, 1), 0).astype(jnp.float32)
    m = j - jnp.floor((j + 0.5) * (1.0 / P_pad)) * P_pad       # index in image
    col = m - jnp.floor((m + 0.5) * (1.0 / Wp)) * Wp           # flattened column
    valid = jnp.logical_and(m < L - 0.5, col < W - 0.5)        # (M_all, 1)

    w_refs = (w1_ref, w2_ref, w3_ref, w4_ref, w5_ref)

    def conv3x3(i):
        wr = w_refs[i]
        acc = jnp.zeros((M_all, C), jnp.float32)
        # 3 whole-slab matmuls (one per vertical tap dh); the horizontal taps
        # and all dense-concat channels live in the K = 15C contraction axis.
        for dh in range(3):
            xs = cat_ref[pl.ds(lead + dh * Wp, M_all), :]
            acc = acc + jnp.dot(xs, wr[dh],
                                preferred_element_type=jnp.float32)
        return acc + b_ref[pl.ds(i, 1), :]

    # Layers 1-4: conv + LeakyReLU(0.01); write into the im2col buffer once per
    # horizontal tap. jnp.where (not mul) keeps halos exactly zero.
    for i in range(4):
        y = conv3x3(i)
        y = jnp.where(y >= 0, y, y * slope)
        y = jnp.where(valid, y, 0.0).astype(cdtype)
        for dw in range(3):
            cat_ref[pl.ds(interior - dw, M_all),
                    pl.ds((i + 1) * 3 * C + dw * C, C)] = y

    # Layer 5: no activation; residual with the original f32 x (dw=0 copy).
    y5 = conv3x3(4)
    x_res = x_ref[pl.ds(interior, M_all), pl.ds(0, C)]
    o_ref[0] = (y5 * res_scale + x_res).astype(o_ref.dtype)


def dense_residual_block(x_nchw, params, res_scale=0.2,
                         compute_dtype=jnp.bfloat16, batch_block=None):
    """Matches DenseResidualBlock.forward (NCHW in / NCHW out)."""
    N, C, H, W = x_nchw.shape
    Wp, Hp = W + 2, H + 2
    P = Hp * Wp                          # rows of one zero-padded, flattened image
    L = H * Wp - 2                       # rows covering all interior pixels
    L_pad = _round_up(L, 8)
    lead = (-(Wp + 1)) % 8               # makes the interior start 8-aligned
    P_pad = _round_up(max(lead + P, lead + 2 * Wp + L_pad), 8)

    # Batch items folded per grid step; keep >=2 "parallel" steps when possible
    # so both TensorCores of a dual-core chip (v7x) get work.
    if batch_block is None:
        batch_block = 1
        for cand in range(N, 0, -1):
            if N % cand == 0 and N // cand >= 2:
                batch_block = cand
                break
    B = batch_block
    assert N % B == 0
    G = N // B
    M_all = (B - 1) * P_pad + L_pad      # fused batch/pixel matmul M dimension

    # ---- input: horizontal im2col of the zero-padded image (kept f32) ------
    x = jnp.transpose(x_nchw, (0, 2, 3, 1)).astype(jnp.float32)      # NHWC
    x_flat = jnp.pad(x, ((0, 0), (1, 1), (1, 1), (0, 0))).reshape(N, P, C)
    shifted = [jnp.pad(x_flat[:, dw:, :], ((0, 0), (0, dw), (0, 0)))
               for dw in range(3)]
    x_cat = jnp.stack(shifted, axis=2).reshape(N, P, 3 * C)
    x_cat = jnp.pad(x_cat, ((0, 0), (lead, P_pad - lead - P), (0, 0)))
    x_cat = x_cat.reshape(N * P_pad, 3 * C)

    # ---- weights: (3, 15C, C) per conv, K ordered (layer j, dw, c), ---------
    # zero-padded over the not-yet-existing dense channels.
    w_list, b_rows = [], []
    for i, (w, b) in enumerate(params):
        wt = jnp.transpose(w, (2, 3, 1, 0))               # (dh, dw, cin, Cout)
        wt = wt.reshape(3, 3, i + 1, C, C)                # (dh, dw, j, c, o)
        wt = jnp.transpose(wt, (0, 2, 1, 3, 4))           # (dh, j, dw, c, o)
        wt = wt.reshape(3, (i + 1) * 3 * C, C)
        wt = jnp.pad(wt, ((0, 0), (0, (4 - i) * 3 * C), (0, 0)))
        w_list.append(wt.astype(compute_dtype))
        b_rows.append(b.astype(jnp.float32))
    b_all = jnp.stack(b_rows, axis=0)                      # (5, C)

    kernel = functools.partial(
        _dense_block_kernel, B=B, P_pad=P_pad, Wp=Wp, W=W, C=C, L=L,
        lead=lead, M_all=M_all, res_scale=res_scale, slope=0.01,
        cdtype=compute_dtype)

    # VMEM budget from the actual chip (v7x: 64 MiB physical vs 128 MiB on
    # v5e/v6e); trivially small here, but keeps one tile size portable.
    try:
        vmem_cap = int(pltpu.get_tpu_info().vmem_capacity_bytes)
    except Exception:
        vmem_cap = 64 * 1024 * 1024
    vmem_limit = int(min(vmem_cap * 3 // 4, 100 * 1024 * 1024))

    out = pl.pallas_call(
        kernel,
        out_shape=jax.ShapeDtypeStruct((G, M_all, C), jnp.float32),
        grid_spec=pltpu.PrefetchScalarGridSpec(
            num_scalar_prefetch=0,
            grid=(G,),
            in_specs=[
                pl.BlockSpec((B * P_pad, 3 * C), lambda g: (g, 0)),
                *[pl.BlockSpec((3, 15 * C, C), lambda g: (0, 0, 0))
                  for _ in range(5)],
                pl.BlockSpec((5, C), lambda g: (0, 0)),
            ],
            out_specs=pl.BlockSpec((1, M_all, C), lambda g: (g, 0, 0)),
            scratch_shapes=[pltpu.VMEM((B * P_pad, 15 * C), compute_dtype)],
        ),
        compiler_params=pltpu.CompilerParams(
            dimension_semantics=("parallel",),
            vmem_limit_bytes=vmem_limit,
        ),
    )(x_cat, *w_list, b_all)

    # ---- unpack: fused (G, M_all, C) -> NCHW --------------------------------
    slabs = [out[:, bi * P_pad:bi * P_pad + L, :] for bi in range(B)]  # (G,L,C)
    out_nlc = jnp.stack(slabs, axis=1).reshape(N, L, C)
    out_nlc = jnp.pad(out_nlc, ((0, 0), (0, H * Wp - L), (0, 0)))
    out_hwc = out_nlc.reshape(N, H, Wp, C)[:, :, :W, :]
    return jnp.transpose(out_hwc, (0, 3, 1, 2))


def init_params(key, filters):
    """Conv i: (i+1)*filters -> filters, PyTorch-like uniform(-1/sqrt(fan_in))."""
    params = []
    for i in range(5):
        cin = (i + 1) * filters
        key, kw, kb = jax.random.split(key, 3)
        bound = 1.0 / float((cin * 9) ** 0.5)
        w = jax.random.uniform(kw, (filters, cin, 3, 3), jnp.float32, -bound, bound)
        b = jax.random.uniform(kb, (filters,), jnp.float32, -bound, bound)
        params.append((w, b))
    return params


# ---------------- pure-JAX reference (for correctness check) ----------------

def _ref_conv3x3_nhwc(x, w, b, leaky, slope=0.01):
    w_hwio = jnp.transpose(w, (2, 3, 1, 0))
    y = lax.conv_general_dilated(x, w_hwio, (1, 1), ((1, 1), (1, 1)),
                                 dimension_numbers=("NHWC", "HWIO", "NHWC"))
    y = y + b
    if leaky:
        y = jnp.where(y >= 0, y, y * slope)
    return y


def _ref_block(x_nchw, params, res_scale=0.2):
    x = jnp.transpose(x_nchw, (0, 2, 3, 1))
    inputs = x
    out = None
    for i, (w, b) in enumerate(params):
        out = _ref_conv3x3_nhwc(inputs, w, b, leaky=(i < 4))
        inputs = jnp.concatenate([inputs, out], axis=-1)
    return jnp.transpose(out * res_scale + x, (0, 3, 1, 2))


if __name__ == "__main__":
    key = jax.random.PRNGKey(0)
    kx, kp = jax.random.split(key)

    filters = 4
    N, H, W = 2, 16, 16
    x = jax.random.normal(kx, (N, filters, H, W), jnp.float32)   # NCHW like PyTorch
    params = init_params(kp, filters)

    y_ref = _ref_block(x, params, res_scale=0.2)

    # f32 compute path: tight tolerance against the XLA conv reference.
    y32 = jax.block_until_ready(
        dense_residual_block(x, params, 0.2, compute_dtype=jnp.float32))
    assert y32.shape == x.shape
    err32 = float(jnp.max(jnp.abs(y32 - y_ref)))
    assert err32 < 1e-4, err32

    # bf16 MXU path (f32 accumulation, bf16 activations): looser tolerance.
    ybf = jax.block_until_ready(
        dense_residual_block(x, params, 0.2, compute_dtype=jnp.bfloat16))
    errbf = float(jnp.max(jnp.abs(ybf - y_ref)))
    assert errbf < 5e-2, errbf

    print("KERNEL_OK")
</pallas_src>

<mosaic_0001>
module attributes {stable_mosaic.version = 11 : i64} {
  func.func @_dense_block_kernel(%arg0: i32, %arg1: memref<336x12xf32, #tpu.memory_space<vmem>>, %arg2: memref<3x60x4xf32, #tpu.memory_space<vmem>>, %arg3: memref<3x60x4xf32, #tpu.memory_space<vmem>>, %arg4: memref<3x60x4xf32, #tpu.memory_space<vmem>>, %arg5: memref<3x60x4xf32, #tpu.memory_space<vmem>>, %arg6: memref<3x60x4xf32, #tpu.memory_space<vmem>>, %arg7: memref<5x4xf32, #tpu.memory_space<vmem>>, %arg8: memref<1x288x4xf32, #tpu.memory_space<vmem>>, %arg9: memref<336x60xf32, #tpu.memory_space<vmem>>) attributes {dimension_semantics = [#tpu.dimension_semantics<parallel>], iteration_bounds = array<i64: 2>, scalar_prefetch = 0 : i64, scratch_operands = 1 : i64, tpu.core_type = #tpu.core_type<tc>, window_params = [{transform_indices = @transform_0, window_bounds = array<i64: 336, 12>}, {pipeline_mode = #tpu.pipeline_mode<synchronous>, transform_indices = @transform_1, window_bounds = array<i64: 3, 60, 4>}, {pipeline_mode = #tpu.pipeline_mode<synchronous>, transform_indices = @transform_2, window_bounds = array<i64: 3, 60, 4>}, {pipeline_mode = #tpu.pipeline_mode<synchronous>, transform_indices = @transform_3, window_bounds = array<i64: 3, 60, 4>}, {pipeline_mode = #tpu.pipeline_mode<synchronous>, transform_indices = @transform_4, window_bounds = array<i64: 3, 60, 4>}, {pipeline_mode = #tpu.pipeline_mode<synchronous>, transform_indices = @transform_5, window_bounds = array<i64: 3, 60, 4>}, {pipeline_mode = #tpu.pipeline_mode<synchronous>, transform_indices = @transform_6, window_bounds = array<i64: 5, 4>}, {transform_indices = @transform_7, window_bounds = array<i64: 1, 288, 4>}]} {
    %cst = arith.constant 0.000000e+00 : f32
    %0 = vector.broadcast %cst : f32 to vector<336x48xf32>
    %c0 = arith.constant 0 : index
    %c12 = arith.constant 12 : index
    %1 = vector.load %arg9[%c0, %c12] : memref<336x60xf32, #tpu.memory_space<vmem>>, vector<336x48xf32>
    tpu.vector_store %arg9[%c0, %c12], %0 {strides = array<i32>} : memref<336x60xf32, #tpu.memory_space<vmem>>, vector<336x48xf32>,
    %c0_0 = arith.constant 0 : index
    %c0_1 = arith.constant 0 : index
    %2 = vector.load %arg1[%c0_0, %c0_1] : memref<336x12xf32, #tpu.memory_space<vmem>>, vector<336x12xf32>
    %c0_2 = arith.constant 0 : index
    %c0_3 = arith.constant 0 : index
    %3 = vector.load %arg9[%c0_2, %c0_3] : memref<336x60xf32, #tpu.memory_space<vmem>>, vector<336x12xf32>
    tpu.vector_store %arg9[%c0_2, %c0_3], %2 {strides = array<i32>} : memref<336x60xf32, #tpu.memory_space<vmem>>, vector<336x12xf32>,
    %4 = tpu.iota {dimensions = array<i32: 0>} : vector<288x1xi32>
    %5 = arith.sitofp %4 : vector<288x1xi32> to vector<288x1xf32>
    %cst_4 = arith.constant 5.000000e-01 : f32
    %6 = vector.broadcast %cst_4 : f32 to vector<288x1xf32>
    %7 = arith.addf %5, %6 : vector<288x1xf32>
    %cst_5 = arith.constant 0.00297619053 : f32
    %8 = vector.broadcast %cst_5 : f32 to vector<288x1xf32>
    %9 = arith.mulf %7, %8 : vector<288x1xf32>
    %10 = math.floor %9 : vector<288x1xf32>
    %cst_6 = arith.constant 3.360000e+02 : f32
    %11 = vector.broadcast %cst_6 : f32 to vector<288x1xf32>
    %12 = arith.mulf %10, %11 : vector<288x1xf32>
    %13 = arith.subf %5, %12 : vector<288x1xf32>
    %cst_7 = arith.constant 5.000000e-01 : f32
    %14 = vector.broadcast %cst_7 : f32 to vector<288x1xf32>
    %15 = arith.addf %13, %14 : vector<288x1xf32>
    %cst_8 = arith.constant 0.055555556 : f32
    %16 = vector.broadcast %cst_8 : f32 to vector<288x1xf32>
    %17 = arith.mulf %15, %16 : vector<288x1xf32>
    %18 = math.floor %17 : vector<288x1xf32>
    %cst_9 = arith.constant 1.800000e+01 : f32
    %19 = vector.broadcast %cst_9 : f32 to vector<288x1xf32>
    %20 = arith.mulf %18, %19 : vector<288x1xf32>
    %21 = arith.subf %13, %20 : vector<288x1xf32>
    %cst_10 = arith.constant 2.855000e+02 : f32
    %22 = vector.broadcast %cst_10 : f32 to vector<288x1xf32>
    %23 = arith.cmpf olt, %13, %22 : vector<288x1xf32>
    %cst_11 = arith.constant 1.550000e+01 : f32
    %24 = vector.broadcast %cst_11 : f32 to vector<288x1xf32>
    %25 = arith.cmpf olt, %21, %24 : vector<288x1xf32>
    %26 = arith.andi %23, %25 : vector<288x1xi1>
    %cst_12 = arith.constant 0.000000e+00 : f32
    %27 = vector.broadcast %cst_12 : f32 to vector<288x4xf32>
    %c5 = arith.constant 5 : index
    %c0_13 = arith.constant 0 : index
    %28 = vector.load %arg9[%c5, %c0_13] : memref<336x60xf32, #tpu.memory_space<vmem>>, vector<288x60xf32>
    %c0_14 = arith.constant 0 : index
    %c0_15 = arith.constant 0 : index
    %c0_16 = arith.constant 0 : index
    %29 = vector.load %arg2[%c0_14, %c0_15, %c0_16] : memref<3x60x4xf32, #tpu.memory_space<vmem>>, vector<1x60x4xf32>
    %30 = vector.shape_cast %29 : vector<1x60x4xf32> to vector<60x4xf32>
    %cst_17 = arith.constant dense<0.000000e+00> : vector<288x4xf32>
    %31 = tpu.matmul %28, %30, %cst_17 {dimension_numbers = #tpu.dot_dimension_numbers<[1], [0], [0], [1], [0, 0, 1, 1], [], []>} : vector<288x60xf32>, vector<60x4xf32>, vector<288x4xf32> -> vector<288x4xf32>
    %32 = arith.addf %27, %31 : vector<288x4xf32>
    %c23 = arith.constant 23 : index
    %c0_18 = arith.constant 0 : index
    %33 = vector.load %arg9[%c23, %c0_18] : memref<336x60xf32, #tpu.memory_space<vmem>>, vector<288x60xf32>
    %c1 = arith.constant 1 : index
    %c0_19 = arith.constant 0 : index
    %c0_20 = arith.constant 0 : index
    %34 = vector.load %arg2[%c1, %c0_19, %c0_20] : memref<3x60x4xf32, #tpu.memory_space<vmem>>, vector<1x60x4xf32>
    %35 = vector.shape_cast %34 : vector<1x60x4xf32> to vector<60x4xf32>
    %cst_21 = arith.constant dense<0.000000e+00> : vector<288x4xf32>
    %36 = tpu.matmul %33, %35, %cst_21 {dimension_numbers = #tpu.dot_dimension_numbers<[1], [0], [0], [1], [0, 0, 1, 1], [], []>} : vector<288x60xf32>, vector<60x4xf32>, vector<288x4xf32> -> vector<288x4xf32>
    %37 = arith.addf %32, %36 : vector<288x4xf32>
    %c41 = arith.constant 41 : index
    %c0_22 = arith.constant 0 : index
    %38 = vector.load %arg9[%c41, %c0_22] : memref<336x60xf32, #tpu.memory_space<vmem>>, vector<288x60xf32>
    %c2 = arith.constant 2 : index
    %c0_23 = arith.constant 0 : index
    %c0_24 = arith.constant 0 : index
    %39 = vector.load %arg2[%c2, %c0_23, %c0_24] : memref<3x60x4xf32, #tpu.memory_space<vmem>>, vector<1x60x4xf32>
    %40 = vector.shape_cast %39 : vector<1x60x4xf32> to vector<60x4xf32>
    %cst_25 = arith.constant dense<0.000000e+00> : vector<288x4xf32>
    %41 = tpu.matmul %38, %40, %cst_25 {dimension_numbers = #tpu.dot_dimension_numbers<[1], [0], [0], [1], [0, 0, 1, 1], [], []>} : vector<288x60xf32>, vector<60x4xf32>, vector<288x4xf32> -> vector<288x4xf32>
    %42 = arith.addf %37, %41 : vector<288x4xf32>
    %c0_26 = arith.constant 0 : index
    %c0_27 = arith.constant 0 : index
    %43 = vector.load %arg7[%c0_26, %c0_27] : memref<5x4xf32, #tpu.memory_space<vmem>>, vector<1x4xf32>
    %44 = vector.broadcast %43 : vector<1x4xf32> to vector<288x4xf32>
    %45 = arith.addf %42, %44 : vector<288x4xf32>
    %cst_28 = arith.constant 0.000000e+00 : f32
    %46 = vector.broadcast %cst_28 : f32 to vector<288x4xf32>
    %47 = arith.cmpf oge, %45, %46 : vector<288x4xf32>
    %cst_29 = arith.constant 0.00999999977 : f32
    %48 = vector.broadcast %cst_29 : f32 to vector<288x4xf32>
    %49 = arith.mulf %45, %48 : vector<288x4xf32>
    %50 = arith.select %47, %45, %49 : vector<288x4xi1>, vector<288x4xf32>
    %cst_30 = arith.constant 0.000000e+00 : f32
    %51 = vector.shape_cast %26 : vector<288x1xi1> to vector<288x1xi1>
    %52 = vector.broadcast %51 : vector<288x1xi1> to vector<288x4xi1>
    %53 = vector.broadcast %cst_30 : f32 to vector<288x4xf32>
    %54 = arith.select %52, %50, %53 : vector<288x4xi1>, vector<288x4xf32>
    %c24 = arith.constant 24 : index
    %c12_31 = arith.constant 12 : index
    %55 = vector.load %arg9[%c24, %c12_31] : memref<336x60xf32, #tpu.memory_space<vmem>>, vector<288x4xf32>
    tpu.vector_store %arg9[%c24, %c12_31], %54 {strides = array<i32>} : memref<336x60xf32, #tpu.memory_space<vmem>>, vector<288x4xf32>,
    %c23_32 = arith.constant 23 : index
    %c16 = arith.constant 16 : index
    %56 = vector.load %arg9[%c23_32, %c16] : memref<336x60xf32, #tpu.memory_space<vmem>>, vector<288x4xf32>
    tpu.vector_store %arg9[%c23_32, %c16], %54 {strides = array<i32>} : memref<336x60xf32, #tpu.memory_space<vmem>>, vector<288x4xf32>,
    %c22 = arith.constant 22 : index
    %c20 = arith.constant 20 : index
    %57 = vector.load %arg9[%c22, %c20] : memref<336x60xf32, #tpu.memory_space<vmem>>, vector<288x4xf32>
    tpu.vector_store %arg9[%c22, %c20], %54 {strides = array<i32>} : memref<336x60xf32, #tpu.memory_space<vmem>>, vector<288x4xf32>,
    %cst_33 = arith.constant 0.000000e+00 : f32
    %58 = vector.broadcast %cst_33 : f32 to vector<288x4xf32>
    %c5_34 = arith.constant 5 : index
    %c0_35 = arith.constant 0 : index
    %59 = vector.load %arg9[%c5_34, %c0_35] : memref<336x60xf32, #tpu.memory_space<vmem>>, vector<288x60xf32>
    %c0_36 = arith.constant 0 : index
    %c0_37 = arith.constant 0 : index
    %c0_38 = arith.constant 0 : index
    %60 = vector.load %arg3[%c0_36, %c0_37, %c0_38] : memref<3x60x4xf32, #tpu.memory_space<vmem>>, vector<1x60x4xf32>
    %61 = vector.shape_cast %60 : vector<1x60x4xf32> to vector<60x4xf32>
    %cst_39 = arith.constant dense<0.000000e+00> : vector<288x4xf32>
    %62 = tpu.matmul %59, %61, %cst_39 {dimension_numbers = #tpu.dot_dimension_numbers<[1], [0], [0], [1], [0, 0, 1, 1], [], []>} : vector<288x60xf32>, vector<60x4xf32>, vector<288x4xf32> -> vector<288x4xf32>
    %63 = arith.addf %58, %62 : vector<288x4xf32>
    %c23_40 = arith.constant 23 : index
    %c0_41 = arith.constant 0 : index
    %64 = vector.load %arg9[%c23_40, %c0_41] : memref<336x60xf32, #tpu.memory_space<vmem>>, vector<288x60xf32>
    %c1_42 = arith.constant 1 : index
    %c0_43 = arith.constant 0 : index
    %c0_44 = arith.constant 0 : index
    %65 = vector.load %arg3[%c1_42, %c0_43, %c0_44] : memref<3x60x4xf32, #tpu.memory_space<vmem>>, vector<1x60x4xf32>
    %66 = vector.shape_cast %65 : vector<1x60x4xf32> to vector<60x4xf32>
    %cst_45 = arith.constant dense<0.000000e+00> : vector<288x4xf32>
    %67 = tpu.matmul %64, %66, %cst_45 {dimension_numbers = #tpu.dot_dimension_numbers<[1], [0], [0], [1], [0, 0, 1, 1], [], []>} : vector<288x60xf32>, vector<60x4xf32>, vector<288x4xf32> -> vector<288x4xf32>
    %68 = arith.addf %63, %67 : vector<288x4xf32>
    %c41_46 = arith.constant 41 : index
    %c0_47 = arith.constant 0 : index
    %69 = vector.load %arg9[%c41_46, %c0_47] : memref<336x60xf32, #tpu.memory_space<vmem>>, vector<288x60xf32>
    %c2_48 = arith.constant 2 : index
    %c0_49 = arith.constant 0 : index
    %c0_50 = arith.constant 0 : index
    %70 = vector.load %arg3[%c2_48, %c0_49, %c0_50] : memref<3x60x4xf32, #tpu.memory_space<vmem>>, vector<1x60x4xf32>
    %71 = vector.shape_cast %70 : vector<1x60x4xf32> to vector<60x4xf32>
    %cst_51 = arith.constant dense<0.000000e+00> : vector<288x4xf32>
    %72 = tpu.matmul %69, %71, %cst_51 {dimension_numbers = #tpu.dot_dimension_numbers<[1], [0], [0], [1], [0, 0, 1, 1], [], []>} : vector<288x60xf32>, vector<60x4xf32>, vector<288x4xf32> -> vector<288x4xf32>
    %73 = arith.addf %68, %72 : vector<288x4xf32>
    %c1_52 = arith.constant 1 : index
    %c0_53 = arith.constant 0 : index
    %74 = vector.load %arg7[%c1_52, %c0_53] : memref<5x4xf32, #tpu.memory_space<vmem>>, vector<1x4xf32>
    %75 = vector.broadcast %74 : vector<1x4xf32> to vector<288x4xf32>
    %76 = arith.addf %73, %75 : vector<288x4xf32>
    %cst_54 = arith.constant 0.000000e+00 : f32
    %77 = vector.broadcast %cst_54 : f32 to vector<288x4xf32>
    %78 = arith.cmpf oge, %76, %77 : vector<288x4xf32>
    %cst_55 = arith.constant 0.00999999977 : f32
    %79 = vector.broadcast %cst_55 : f32 to vector<288x4xf32>
    %80 = arith.mulf %76, %79 : vector<288x4xf32>
    %81 = arith.select %78, %76, %80 : vector<288x4xi1>, vector<288x4xf32>
    %cst_56 = arith.constant 0.000000e+00 : f32
    %82 = vector.shape_cast %26 : vector<288x1xi1> to vector<288x1xi1>
    %83 = vector.broadcast %82 : vector<288x1xi1> to vector<288x4xi1>
    %84 = vector.broadcast %cst_56 : f32 to vector<288x4xf32>
    %85 = arith.select %83, %81, %84 : vector<288x4xi1>, vector<288x4xf32>
    %c24_57 = arith.constant 24 : index
    %c24_58 = arith.constant 24 : index
    %86 = vector.load %arg9[%c24_57, %c24_58] : memref<336x60xf32, #tpu.memory_space<vmem>>, vector<288x4xf32>
    tpu.vector_store %arg9[%c24_57, %c24_58], %85 {strides = array<i32>} : memref<336x60xf32, #tpu.memory_space<vmem>>, vector<288x4xf32>,
    %c23_59 = arith.constant 23 : index
    %c28 = arith.constant 28 : index
    %87 = vector.load %arg9[%c23_59, %c28] : memref<336x60xf32, #tpu.memory_space<vmem>>, vector<288x4xf32>
    tpu.vector_store %arg9[%c23_59, %c28], %85 {strides = array<i32>} : memref<336x60xf32, #tpu.memory_space<vmem>>, vector<288x4xf32>,
    %c22_60 = arith.constant 22 : index
    %c32 = arith.constant 32 : index
    %88 = vector.load %arg9[%c22_60, %c32] : memref<336x60xf32, #tpu.memory_space<vmem>>, vector<288x4xf32>
    tpu.vector_store %arg9[%c22_60, %c32], %85 {strides = array<i32>} : memref<336x60xf32, #tpu.memory_space<vmem>>, vector<288x4xf32>,
    %cst_61 = arith.constant 0.000000e+00 : f32
    %89 = vector.broadcast %cst_61 : f32 to vector<288x4xf32>
    %c5_62 = arith.constant 5 : index
    %c0_63 = arith.constant 0 : index
    %90 = vector.load %arg9[%c5_62, %c0_63] : memref<336x60xf32, #tpu.memory_space<vmem>>, vector<288x60xf32>
    %c0_64 = arith.constant 0 : index
    %c0_65 = arith.constant 0 : index
    %c0_66 = arith.constant 0 : index
    %91 = vector.load %arg4[%c0_64, %c0_65, %c0_66] : memref<3x60x4xf32, #tpu.memory_space<vmem>>, vector<1x60x4xf32>
    %92 = vector.shape_cast %91 : vector<1x60x4xf32> to vector<60x4xf32>
    %cst_67 = arith.constant dense<0.000000e+00> : vector<288x4xf32>
    %93 = tpu.matmul %90, %92, %cst_67 {dimension_numbers = #tpu.dot_dimension_numbers<[1], [0], [0], [1], [0, 0, 1, 1], [], []>} : vector<288x60xf32>, vector<60x4xf32>, vector<288x4xf32> -> vector<288x4xf32>
    %94 = arith.addf %89, %93 : vector<288x4xf32>
    %c23_68 = arith.constant 23 : index
    %c0_69 = arith.constant 0 : index
    %95 = vector.load %arg9[%c23_68, %c0_69] : memref<336x60xf32, #tpu.memory_space<vmem>>, vector<288x60xf32>
    %c1_70 = arith.constant 1 : index
    %c0_71 = arith.constant 0 : index
    %c0_72 = arith.constant 0 : index
    %96 = vector.load %arg4[%c1_70, %c0_71, %c0_72] : memref<3x60x4xf32, #tpu.memory_space<vmem>>, vector<1x60x4xf32>
    %97 = vector.shape_cast %96 : vector<1x60x4xf32> to vector<60x4xf32>
    %cst_73 = arith.constant dense<0.000000e+00> : vector<288x4xf32>
    %98 = tpu.matmul %95, %97, %cst_73 {dimension_numbers = #tpu.dot_dimension_numbers<[1], [0], [0], [1], [0, 0, 1, 1], [], []>} : vector<288x60xf32>, vector<60x4xf32>, vector<288x4xf32> -> vector<288x4xf32>
    %99 = arith.addf %94, %98 : vector<288x4xf32>
    %c41_74 = arith.constant 41 : index
    %c0_75 = arith.constant 0 : index
    %100 = vector.load %arg9[%c41_74, %c0_75] : memref<336x60xf32, #tpu.memory_space<vmem>>, vector<288x60xf32>
    %c2_76 = arith.constant 2 : index
    %c0_77 = arith.constant 0 : index
    %c0_78 = arith.constant 0 : index
    %101 = vector.load %arg4[%c2_76, %c0_77, %c0_78] : memref<3x60x4xf32, #tpu.memory_space<vmem>>, vector<1x60x4xf32>
    %102 = vector.shape_cast %101 : vector<1x60x4xf32> to vector<60x4xf32>
    %cst_79 = arith.constant dense<0.000000e+00> : vector<288x4xf32>
    %103 = tpu.matmul %100, %102, %cst_79 {dimension_numbers = #tpu.dot_dimension_numbers<[1], [0], [0], [1], [0, 0, 1, 1], [], []>} : vector<288x60xf32>, vector<60x4xf32>, vector<288x4xf32> -> vector<288x4xf32>
    %104 = arith.addf %99, %103 : vector<288x4xf32>
    %c2_80 = arith.constant 2 : index
    %c0_81 = arith.constant 0 : index
    %105 = vector.load %arg7[%c2_80, %c0_81] : memref<5x4xf32, #tpu.memory_space<vmem>>, vector<1x4xf32>
    %106 = vector.broadcast %105 : vector<1x4xf32> to vector<288x4xf32>
    %107 = arith.addf %104, %106 : vector<288x4xf32>
    %cst_82 = arith.constant 0.000000e+00 : f32
    %108 = vector.broadcast %cst_82 : f32 to vector<288x4xf32>
    %109 = arith.cmpf oge, %107, %108 : vector<288x4xf32>
    %cst_83 = arith.constant 0.00999999977 : f32
    %110 = vector.broadcast %cst_83 : f32 to vector<288x4xf32>
    %111 = arith.mulf %107, %110 : vector<288x4xf32>
    %112 = arith.select %109, %107, %111 : vector<288x4xi1>, vector<288x4xf32>
    %cst_84 = arith.constant 0.000000e+00 : f32
    %113 = vector.shape_cast %26 : vector<288x1xi1> to vector<288x1xi1>
    %114 = vector.broadcast %113 : vector<288x1xi1> to vector<288x4xi1>
    %115 = vector.broadcast %cst_84 : f32 to vector<288x4xf32>
    %116 = arith.select %114, %112, %115 : vector<288x4xi1>, vector<288x4xf32>
    %c24_85 = arith.constant 24 : index
    %c36 = arith.constant 36 : index
    %117 = vector.load %arg9[%c24_85, %c36] : memref<336x60xf32, #tpu.memory_space<vmem>>, vector<288x4xf32>
    tpu.vector_store %arg9[%c24_85, %c36], %116 {strides = array<i32>} : memref<336x60xf32, #tpu.memory_space<vmem>>, vector<288x4xf32>,
    %c23_86 = arith.constant 23 : index
    %c40 = arith.constant 40 : index
    %118 = vector.load %arg9[%c23_86, %c40] : memref<336x60xf32, #tpu.memory_space<vmem>>, vector<288x4xf32>
    tpu.vector_store %arg9[%c23_86, %c40], %116 {strides = array<i32>} : memref<336x60xf32, #tpu.memory_space<vmem>>, vector<288x4xf32>,
    %c22_87 = arith.constant 22 : index
    %c44 = arith.constant 44 : index
    %119 = vector.load %arg9[%c22_87, %c44] : memref<336x60xf32, #tpu.memory_space<vmem>>, vector<288x4xf32>
    tpu.vector_store %arg9[%c22_87, %c44], %116 {strides = array<i32>} : memref<336x60xf32, #tpu.memory_space<vmem>>, vector<288x4xf32>,
    %cst_88 = arith.constant 0.000000e+00 : f32
    %120 = vector.broadcast %cst_88 : f32 to vector<288x4xf32>
    %c5_89 = arith.constant 5 : index
    %c0_90 = arith.constant 0 : index
    %121 = vector.load %arg9[%c5_89, %c0_90] : memref<336x60xf32, #tpu.memory_space<vmem>>, vector<288x60xf32>
    %c0_91 = arith.constant 0 : index
    %c0_92 = arith.constant 0 : index
    %c0_93 = arith.constant 0 : index
    %122 = vector.load %arg5[%c0_91, %c0_92, %c0_93] : memref<3x60x4xf32, #tpu.memory_space<vmem>>, vector<1x60x4xf32>
    %123 = vector.shape_cast %122 : vector<1x60x4xf32> to vector<60x4xf32>
    %cst_94 = arith.constant dense<0.000000e+00> : vector<288x4xf32>
    %124 = tpu.matmul %121, %123, %cst_94 {dimension_numbers = #tpu.dot_dimension_numbers<[1], [0], [0], [1], [0, 0, 1, 1], [], []>} : vector<288x60xf32>, vector<60x4xf32>, vector<288x4xf32> -> vector<288x4xf32>
    %125 = arith.addf %120, %124 : vector<288x4xf32>
    %c23_95 = arith.constant 23 : index
    %c0_96 = arith.constant 0 : index
    %126 = vector.load %arg9[%c23_95, %c0_96] : memref<336x60xf32, #tpu.memory_space<vmem>>, vector<288x60xf32>
    %c1_97 = arith.constant 1 : index
    %c0_98 = arith.constant 0 : index
    %c0_99 = arith.constant 0 : index
    %127 = vector.load %arg5[%c1_97, %c0_98, %c0_99] : memref<3x60x4xf32, #tpu.memory_space<vmem>>, vector<1x60x4xf32>
    %128 = vector.shape_cast %127 : vector<1x60x4xf32> to vector<60x4xf32>
    %cst_100 = arith.constant dense<0.000000e+00> : vector<288x4xf32>
    %129 = tpu.matmul %126, %128, %cst_100 {dimension_numbers = #tpu.dot_dimension_numbers<[1], [0], [0], [1], [0, 0, 1, 1], [], []>} : vector<288x60xf32>, vector<60x4xf32>, vector<288x4xf32> -> vector<288x4xf32>
    %130 = arith.addf %125, %129 : vector<288x4xf32>
    %c41_101 = arith.constant 41 : index
    %c0_102 = arith.constant 0 : index
    %131 = vector.load %arg9[%c41_101, %c0_102] : memref<336x60xf32, #tpu.memory_space<vmem>>, vector<288x60xf32>
    %c2_103 = arith.constant 2 : index
    %c0_104 = arith.constant 0 : index
    %c0_105 = arith.constant 0 : index
    %132 = vector.load %arg5[%c2_103, %c0_104, %c0_105] : memref<3x60x4xf32, #tpu.memory_space<vmem>>, vector<1x60x4xf32>
    %133 = vector.shape_cast %132 : vector<1x60x4xf32> to vector<60x4xf32>
    %cst_106 = arith.constant dense<0.000000e+00> : vector<288x4xf32>
    %134 = tpu.matmul %131, %133, %cst_106 {dimension_numbers = #tpu.dot_dimension_numbers<[1], [0], [0], [1], [0, 0, 1, 1], [], []>} : vector<288x60xf32>, vector<60x4xf32>, vector<288x4xf32> -> vector<288x4xf32>
    %135 = arith.addf %130, %134 : vector<288x4xf32>
    %c3 = arith.constant 3 : index
    %c0_107 = arith.constant 0 : index
    %136 = vector.load %arg7[%c3, %c0_107] : memref<5x4xf32, #tpu.memory_space<vmem>>, vector<1x4xf32>
    %137 = vector.broadcast %136 : vector<1x4xf32> to vector<288x4xf32>
    %138 = arith.addf %135, %137 : vector<288x4xf32>
    %cst_108 = arith.constant 0.000000e+00 : f32
    %139 = vector.broadcast %cst_108 : f32 to vector<288x4xf32>
    %140 = arith.cmpf oge, %138, %139 : vector<288x4xf32>
    %cst_109 = arith.constant 0.00999999977 : f32
    %141 = vector.broadcast %cst_109 : f32 to vector<288x4xf32>
    %142 = arith.mulf %138, %141 : vector<288x4xf32>
    %143 = arith.select %140, %138, %142 : vector<288x4xi1>, vector<288x4xf32>
    %cst_110 = arith.constant 0.000000e+00 : f32
    %144 = vector.shape_cast %26 : vector<288x1xi1> to vector<288x1xi1>
    %145 = vector.broadcast %144 : vector<288x1xi1> to vector<288x4xi1>
    %146 = vector.broadcast %cst_110 : f32 to vector<288x4xf32>
    %147 = arith.select %145, %143, %146 : vector<288x4xi1>, vector<288x4xf32>
    %c24_111 = arith.constant 24 : index
    %c48 = arith.constant 48 : index
    %148 = vector.load %arg9[%c24_111, %c48] : memref<336x60xf32, #tpu.memory_space<vmem>>, vector<288x4xf32>
    tpu.vector_store %arg9[%c24_111, %c48], %147 {strides = array<i32>} : memref<336x60xf32, #tpu.memory_space<vmem>>, vector<288x4xf32>,
    %c23_112 = arith.constant 23 : index
    %c52 = arith.constant 52 : index
    %149 = vector.load %arg9[%c23_112, %c52] : memref<336x60xf32, #tpu.memory_space<vmem>>, vector<288x4xf32>
    tpu.vector_store %arg9[%c23_112, %c52], %147 {strides = array<i32>} : memref<336x60xf32, #tpu.memory_space<vmem>>, vector<288x4xf32>,
    %c22_113 = arith.constant 22 : index
    %c56 = arith.constant 56 : index
    %150 = vector.load %arg9[%c22_113, %c56] : memref<336x60xf32, #tpu.memory_space<vmem>>, vector<288x4xf32>
    tpu.vector_store %arg9[%c22_113, %c56], %147 {strides = array<i32>} : memref<336x60xf32, #tpu.memory_space<vmem>>, vector<288x4xf32>,
    %cst_114 = arith.constant 0.000000e+00 : f32
    %151 = vector.broadcast %cst_114 : f32 to vector<288x4xf32>
    %c5_115 = arith.constant 5 : index
    %c0_116 = arith.constant 0 : index
    %152 = vector.load %arg9[%c5_115, %c0_116] : memref<336x60xf32, #tpu.memory_space<vmem>>, vector<288x60xf32>
    %c0_117 = arith.constant 0 : index
    %c0_118 = arith.constant 0 : index
    %c0_119 = arith.constant 0 : index
    %153 = vector.load %arg6[%c0_117, %c0_118, %c0_119] : memref<3x60x4xf32, #tpu.memory_space<vmem>>, vector<1x60x4xf32>
    %154 = vector.shape_cast %153 : vector<1x60x4xf32> to vector<60x4xf32>
    %cst_120 = arith.constant dense<0.000000e+00> : vector<288x4xf32>
    %155 = tpu.matmul %152, %154, %cst_120 {dimension_numbers = #tpu.dot_dimension_numbers<[1], [0], [0], [1], [0, 0, 1, 1], [], []>} : vector<288x60xf32>, vector<60x4xf32>, vector<288x4xf32> -> vector<288x4xf32>
    %156 = arith.addf %151, %155 : vector<288x4xf32>
    %c23_121 = arith.constant 23 : index
    %c0_122 = arith.constant 0 : index
    %157 = vector.load %arg9[%c23_121, %c0_122] : memref<336x60xf32, #tpu.memory_space<vmem>>, vector<288x60xf32>
    %c1_123 = arith.constant 1 : index
    %c0_124 = arith.constant 0 : index
    %c0_125 = arith.constant 0 : index
    %158 = vector.load %arg6[%c1_123, %c0_124, %c0_125] : memref<3x60x4xf32, #tpu.memory_space<vmem>>, vector<1x60x4xf32>
    %159 = vector.shape_cast %158 : vector<1x60x4xf32> to vector<60x4xf32>
    %cst_126 = arith.constant dense<0.000000e+00> : vector<288x4xf32>
    %160 = tpu.matmul %157, %159, %cst_126 {dimension_numbers = #tpu.dot_dimension_numbers<[1], [0], [0], [1], [0, 0, 1, 1], [], []>} : vector<288x60xf32>, vector<60x4xf32>, vector<288x4xf32> -> vector<288x4xf32>
    %161 = arith.addf %156, %160 : vector<288x4xf32>
    %c41_127 = arith.constant 41 : index
    %c0_128 = arith.constant 0 : index
    %162 = vector.load %arg9[%c41_127, %c0_128] : memref<336x60xf32, #tpu.memory_space<vmem>>, vector<288x60xf32>
    %c2_129 = arith.constant 2 : index
    %c0_130 = arith.constant 0 : index
    %c0_131 = arith.constant 0 : index
    %163 = vector.load %arg6[%c2_129, %c0_130, %c0_131] : memref<3x60x4xf32, #tpu.memory_space<vmem>>, vector<1x60x4xf32>
    %164 = vector.shape_cast %163 : vector<1x60x4xf32> to vector<60x4xf32>
    %cst_132 = arith.constant dense<0.000000e+00> : vector<288x4xf32>
    %165 = tpu.matmul %162, %164, %cst_132 {dimension_numbers = #tpu.dot_dimension_numbers<[1], [0], [0], [1], [0, 0, 1, 1], [], []>} : vector<288x60xf32>, vector<60x4xf32>, vector<288x4xf32> -> vector<288x4xf32>
    %166 = arith.addf %161, %165 : vector<288x4xf32>
    %c4 = arith.constant 4 : index
    %c0_133 = arith.constant 0 : index
    %167 = vector.load %arg7[%c4, %c0_133] : memref<5x4xf32, #tpu.memory_space<vmem>>, vector<1x4xf32>
    %168 = vector.broadcast %167 : vector<1x4xf32> to vector<288x4xf32>
    %169 = arith.addf %166, %168 : vector<288x4xf32>
    %c24_134 = arith.constant 24 : index
    %c0_135 = arith.constant 0 : index
    %170 = vector.load %arg1[%c24_134, %c0_135] : memref<336x12xf32, #tpu.memory_space<vmem>>, vector<288x4xf32>
    %cst_136 = arith.constant 2.000000e-01 : f32
    %171 = vector.broadcast %cst_136 : f32 to vector<288x4xf32>
    %172 = arith.mulf %169, %171 : vector<288x4xf32>
    %173 = arith.addf %172, %170 : vector<288x4xf32>
    %c0_137 = arith.constant 0 : index
    %c0_138 = arith.constant 0 : index
    %c0_139 = arith.constant 0 : index
    %174 = vector.load %arg8[%c0_137, %c0_138, %c0_139] : memref<1x288x4xf32, #tpu.memory_space<vmem>>, vector<1x288x4xf32>
    %175 = vector.shape_cast %174 : vector<1x288x4xf32> to vector<288x4xf32>
    %176 = vector.shape_cast %173 : vector<288x4xf32> to vector<1x288x4xf32>
    tpu.vector_store %arg8[%c0_137, %c0_138, %c0_139], %176 {strides = array<i32>} : memref<1x288x4xf32, #tpu.memory_space<vmem>>, vector<1x288x4xf32>,
    return
  }
  func.func @transform_0(%arg0: i32) -> (i32, i32) {
    %c0_i32 = arith.constant 0 : i32
    %c0_i32_0 = arith.constant 0 : i32
    return %arg0, %c0_i32 : i32, i32
  }
  func.func @transform_1(%arg0: i32) -> (i32, i32, i32) {
    %c0_i32 = arith.constant 0 : i32
    %c0_i32_0 = arith.constant 0 : i32
    %c0_i32_1 = arith.constant 0 : i32
    %c0_i32_2 = arith.constant 0 : i32
    return %c0_i32, %c0_i32_0, %c0_i32_1 : i32, i32, i32
  }
  func.func @transform_2(%arg0: i32) -> (i32, i32, i32) {
    %c0_i32 = arith.constant 0 : i32
    %c0_i32_0 = arith.constant 0 : i32
    %c0_i32_1 = arith.constant 0 : i32
    %c0_i32_2 = arith.constant 0 : i32
    return %c0_i32, %c0_i32_0, %c0_i32_1 : i32, i32, i32
  }
  func.func @transform_3(%arg0: i32) -> (i32, i32, i32) {
    %c0_i32 = arith.constant 0 : i32
    %c0_i32_0 = arith.constant 0 : i32
    %c0_i32_1 = arith.constant 0 : i32
    %c0_i32_2 = arith.constant 0 : i32
    return %c0_i32, %c0_i32_0, %c0_i32_1 : i32, i32, i32
  }
  func.func @transform_4(%arg0: i32) -> (i32, i32, i32) {
    %c0_i32 = arith.constant 0 : i32
    %c0_i32_0 = arith.constant 0 : i32
    %c0_i32_1 = arith.constant 0 : i32
    %c0_i32_2 = arith.constant 0 : i32
    return %c0_i32, %c0_i32_0, %c0_i32_1 : i32, i32, i32
  }
  func.func @transform_5(%arg0: i32) -> (i32, i32, i32) {
    %c0_i32 = arith.constant 0 : i32
    %c0_i32_0 = arith.constant 0 : i32
    %c0_i32_1 = arith.constant 0 : i32
    %c0_i32_2 = arith.constant 0 : i32
    return %c0_i32, %c0_i32_0, %c0_i32_1 : i32, i32, i32
  }
  func.func @transform_6(%arg0: i32) -> (i32, i32) {
    %c0_i32 = arith.constant 0 : i32
    %c0_i32_0 = arith.constant 0 : i32
    %c0_i32_1 = arith.constant 0 : i32
    return %c0_i32, %c0_i32_0 : i32, i32
  }
  func.func @transform_7(%arg0: i32) -> (i32, i32, i32) {
    %c0_i32 = arith.constant 0 : i32
    %c0_i32_0 = arith.constant 0 : i32
    %c0_i32_1 = arith.constant 0 : i32
    return %arg0, %c0_i32, %c0_i32_0 : i32, i32, i32
  }
}

</mosaic_0001>

<bundles_post_ra>
// kernel: tpu_custom_call.1
= control target key start
LH: loop header
LB: loop body
LE: loop exit
PB: predicated region body
PF: predicated region fallthrough
CT: control target
= control target key end

     0   :  { %s13162_s24 = smov 0   ;;  %s16997_s0 = inlined_call_operand.vmem [shape: f32[672,12], index: 0, kind: input, shape index: {}]   ;;  %s16998_s1 = inlined_call_operand.vmem [shape: f32[3,60,4], index: 1, kind: input, shape index: {}]   ;;  %s16999_s2 = inlined_call_operand.vmem [shape: f32[3,60,4], index: 2, kind: input, shape index: {}]   ;;  %s17000_s3 = inlined_call_operand.vmem [shape: f32[3,60,4], index: 3, kind: input, shape index: {}]   ;;  %s17001_s4 = inlined_call_operand.vmem [shape: f32[3,60,4], index: 4, kind: input, shape index: {}]   ;;  %s17002_s5 = inlined_call_operand.vmem [shape: f32[3,60,4], index: 5, kind: input, shape index: {}]   ;;  %s17003_s6 = inlined_call_operand.vmem [shape: f32[5,4], index: 6, kind: input, shape index: {}]   ;;  %s17004_s7 = inlined_call_operand.vmem [shape: f32[2,288,4], index: 7, kind: output, shape index: {}]  }
   0x1 LB: > { %s13168_s25 = sadd.s32 4294967295, %s13106_s24   ;;  %p10083_p0 = scmp.ge.s32.totalorder %s13106_s24, 1  ;;  %s13106_s24 = sphi %s13162_s24, %s17_s24  }
   0x2   : > { %p238_p1 = scmp.lt.s32.totalorder %s13106_s24, 3 }
   0x4   : > { %p239_p2 = pnand %p10083_p0, %p238_p1 }
   0x6   : > { %242 = sbr.rel (%p239_p2) target bundleno = 2899 (0xb53), region = 48 }
   0xd   : > { %v986_v0 = vld [vmem:[%s16998_s1] sm:$0xff]  ;;  %v987_v1 = vld [vmem:[%s16998_s1 + $0x8] sm:$0xff]  ;;  %v988_v2 = vld [vmem:[%s16998_s1 + $0x10] sm:$0xff]  ;;  %s270_s9 = smul.u32 42, %s13168_s25  ;;  %vm281_vm0 = vcmask 490592   ;;  %v13108_v8 = vmov 0.0  }
   0xe   : > { %v13182_v3 = vpack.c.bf16 %v987_v1, %v986_v0  ;;  %v989_v4 = vld [vmem:[%s16998_s1 + $0x18] sm:$0xff]  ;;  %v990_v6 = vld [vmem:[%s16998_s1 + $0x20] sm:$0xff]  ;;  %v991_v7 = vld [vmem:[%s16998_s1 + $0x28] sm:$0xff]  ;;  %282 = vst.msk [vmem:[#allocation2] sm:$0xff] %vm281_vm0, %v13108_v8  ;;  %vm1148_vm1 = vcmask 1043456   ;;  %vm366_vm2 = vcmask 97280  }
   0xf   : > { %v13187_v5 = vpack.c.bf16 %v989_v4, %v988_v2  ;;  %p13197_p3 = scmp.lt.s32.totalorder %s270_s9, 83  ;;  %283 = vst.msk [vmem:[#allocation2 + $0x8] sm:$0xff] %vm281_vm0, %v13108_v8  ;;  %284 = vst.msk [vmem:[#allocation2 + $0x10] sm:$0xff] %vm281_vm0, %v13108_v8  ;;  %v10086_v9 = vld [vmem:[%s16998_s1 + $0x40] sm:$0xff]  ;;  %v10087_v10 = vld [vmem:[%s16998_s1 + $0x48] sm:$0xff]  ;;  %v13256_v11 = vpack.c.bf16 %v991_v7, %v990_v6  ;;  %vm13109_vm3 = vmmov 1  }
  0x10   : > { %285 = vst.msk [vmem:[#allocation2 + $0x18] sm:$0xff] %vm281_vm0, %v13108_v8  ;;  %286 = vst.msk [vmem:[#allocation2 + $0x20] sm:$0xff] %vm281_vm0, %v13108_v8  ;;  %12457 = vmatprep.subr.bf16.mxu0 %v13182_v3  ;;  %v992_v12 = vld [vmem:[%s16998_s1 + $0x30] sm:$0xff]  ;;  %v12438_v13 = vpack.c.bf16 %v10087_v10, %v10086_v9  ;;  %v10089_v15 = vld [vmem:[%s16998_s1 + $0x58] sm:$0xff]  ;;  %vm17005_vm5 = vcmask 490496   ;;  %s13110_s18 = smov 20  }
  0x11   : > { %287 = vst.msk [vmem:[#allocation2 + $0x28] sm:$0xff] %vm281_vm0, %v13108_v8  ;;  %288 = vst.msk [vmem:[#allocation2 + $0x30] sm:$0xff] %vm281_vm0, %v13108_v8  ;;  %12459 = vmatpush3.bf16.msra.mxu0 %v13182_v3  ;;  %s17975_s9 = smov (!%p13197_p3, %s270_s9), 83  ;;  %v10088_v14 = vld [vmem:[%s16998_s1 + $0x50] sm:$0xff]  ;;  %v993_v16 = vld [vmem:[%s16998_s1 + $0x38] sm:$0xf] }
  0x12   : > { %289 = vst.msk [vmem:[#allocation2 + $0x38] sm:$0xff] %vm281_vm0, %v13108_v8  ;;  %290 = vst.msk [vmem:[#allocation2 + $0x40] sm:$0xff] %vm281_vm0, %v13108_v8  ;;  %12461 = vmatprep.subr.bf16.mxu0 %v13187_v5  ;;  %s10084_s8 = sshll.u32 %s17975_s9, 3  ;;  %v12442_v17 = vpack.c.bf16 %v10089_v15, %v10088_v14  ;;  %v10090_v18 = vld [vmem:[%s16998_s1 + $0x60] sm:$0xff]  ;;  %v10091_v19 = vld [vmem:[%s16998_s1 + $0x68] sm:$0xff]  ;;  %12439 = vmatprep.subr.bf16.mxu1 %v12438_v13  ;;  %v13297_v26 = vpack.c.bf16 %v993_v16, %v992_v12  ;;  %s13111_s19 = smov 12  }
  0x13   : > { %291 = vst.msk [vmem:[#allocation2 + $0x48] sm:$0xff] %vm281_vm0, %v13108_v8  ;;  %292 = vst.msk [vmem:[#allocation2 + $0x50] sm:$0xff] %vm281_vm0, %v13108_v8  ;;  %s13284_s9 = scalar_lea.vmem %s16997_s0, %s10084_s8  ;;  %v10168_v24 = vld [vmem:[%s16998_s1 + $0x80] sm:$0xff]  ;;  %v10169_v25 = vld [vmem:[%s16998_s1 + $0x88] sm:$0xff]  ;;  %12441 = vmatpush3.bf16.msra.mxu1 %v12438_v13  ;;  %v12446_v30 = vpack.c.bf16 %v10091_v19, %v10090_v18  ;;  %s13112_s26 = smov 16  }
  0x14   : > { %293 = vst.msk [vmem:[#allocation2 + $0x58] sm:$0xff] %vm281_vm0, %v13108_v8  ;;  %294 = vst.msk [vmem:[#allocation2 + $0x60] sm:$0xff] %vm281_vm0, %v13108_v8  ;;  %v324_v21 = vld [vmem:[%s13284_s9] sm:$0xff]  ;;  %v325_v22 = vld [vmem:[%s13284_s9 + $0x8] sm:$0xff]  ;;  %12443 = vmatprep.subr.bf16.mxu1 %v12442_v17  ;;  %v12474_v43 = vpack.c.bf16 %v10169_v25, %v10168_v24  ;;  %s13113_s16 = smov 28   ;;  %s13114_s17 = smov 24  }
  0x15   : > { %295 = vst.msk [vmem:[#allocation2 + $0x68] sm:$0xff] %vm281_vm0, %v13108_v8  ;;  %296 = vst.msk [vmem:[#allocation2 + $0x70] sm:$0xff] %vm281_vm0, %v13108_v8  ;;  %12463 = vmatpush3.bf16.msra.mxu0 %v13187_v5  ;;  %v326_v23 = vld [vmem:[%s13284_s9 + $0x10] sm:$0xff]  ;;  %v327_v27 = vld [vmem:[%s13284_s9 + $0x18] sm:$0xff]  ;;  %s13116_s12 = smov 40   ;;  %s13117_s13 = smov 36  }
  0x16   : > { %297 = vst.msk [vmem:[#allocation2 + $0x78] sm:$0xff] %vm281_vm0, %v13108_v8  ;;  %298 = vst.msk [vmem:[#allocation2 + $0x80] sm:$0xff] %vm281_vm0, %v13108_v8  ;;  %12465 = vmatprep.subr.bf16.mxu0 %v13256_v11  ;;  %v328_v28 = vld [vmem:[%s13284_s9 + $0x20] sm:$0xff]  ;;  %v329_v29 = vld [vmem:[%s13284_s9 + $0x28] sm:$0xff]  ;;  %s13119_s30 = smov 52   ;;  %s13120_s8 = smov 48  }
  0x17   : > { %299 = vst.msk [vmem:[#allocation2 + $0x88] sm:$0xff] %vm281_vm0, %v13108_v8  ;;  %300 = vst.msk [vmem:[#allocation2 + $0x90] sm:$0xff] %vm281_vm0, %v13108_v8  ;;  %v10092_v31 = vld [vmem:[%s16998_s1 + $0x70] sm:$0xff]  ;;  %v10093_v32 = vld [vmem:[%s16998_s1 + $0x78] sm:$0xf]  ;;  %12445 = vmatpush3.bf16.msra.mxu1 %v12442_v17  ;;  %p276_p4 = scmp.lt.s32.totalorder %s13168_s25, 1 }
  0x18   : > { %301 = vst.msk [vmem:[#allocation2 + $0x98] sm:$0xff] %vm281_vm0, %v13108_v8  ;;  %302 = vst.msk [vmem:[#allocation2 + $0xa0] sm:$0xff] %vm281_vm0, %v13108_v8  ;;  %v330_v33 = vld [vmem:[%s13284_s9 + $0x30] sm:$0xff]  ;;  %v331_v34 = vld [vmem:[%s13284_s9 + $0x38] sm:$0xff]  ;;  %12447 = vmatprep.subr.bf16.mxu1 %v12446_v30  ;;  %v12450_v47 = vpack.c.bf16 %v10093_v32, %v10092_v31 }
  0x19   : > { %303 = vst.msk [vmem:[#allocation2 + $0xa8] sm:$0xff] %vm281_vm0, %v13108_v8  ;;  %304 = vst.msk [vmem:[#allocation2 + $0xb0] sm:$0xff] %vm281_vm0, %v13108_v8  ;;  %v332_v35 = vld [vmem:[%s13284_s9 + $0x40] sm:$0xff]  ;;  %v333_v36 = vld [vmem:[%s13284_s9 + $0x48] sm:$0xff]  ;;  %12467 = vmatpush3.bf16.msra.mxu0 %v13256_v11  ;;  %s17977_s25 = smov (!%p276_p4, %s13168_s25), 1 }
  0x1a   : > { %305 = vst.msk [vmem:[#allocation2 + $0xb8] sm:$0xff] %vm281_vm0, %v13108_v8  ;;  %306 = vst.msk [vmem:[#allocation2 + $0xc0] sm:$0xff] %vm281_vm0, %v13108_v8  ;;  %v334_v37 = vld [vmem:[%s13284_s9 + $0x50] sm:$0xff]  ;;  %v335_v38 = vld [vmem:[%s13284_s9 + $0x58] sm:$0xff]  ;;  %s13076_s23 = smul.u32 288, %s17977_s25 }
  0x1b   : > { %307 = vst.msk [vmem:[#allocation2 + $0xc8] sm:$0xff] %vm281_vm0, %v13108_v8  ;;  %308 = vst.msk [vmem:[#allocation2 + $0xd0] sm:$0xff] %vm281_vm0, %v13108_v8  ;;  %v10170_v39 = vld [vmem:[%s16998_s1 + $0x90] sm:$0xff]  ;;  %v336_v40 = vld [vmem:[%s13284_s9 + $0x60] sm:$0xff]  ;;  %12449 = vmatpush3.bf16.msra.mxu1 %v12446_v30 }
  0x1c   : > { %309 = vst.msk [vmem:[#allocation2 + $0xd8] sm:$0xff] %vm281_vm0, %v13108_v8  ;;  %310 = vst.msk [vmem:[#allocation2 + $0xe0] sm:$0xff] %vm281_vm0, %v13108_v8  ;;  %v337_v41 = vld [vmem:[%s13284_s9 + $0x68] sm:$0xff]  ;;  %v338_v42 = vld [vmem:[%s13284_s9 + $0x70] sm:$0xff]  ;;  %s16852_s29 = scalar_lea.vmem %s17004_s7, %s13076_s23 }
  0x1d   : > { %311 = vst.msk [vmem:[#allocation2 + $0xe8] sm:$0xff] %vm281_vm0, %v13108_v8  ;;  %312 = vst.msk [vmem:[#allocation2 + $0xf0] sm:$0xff] %vm281_vm0, %v13108_v8  ;;  %v10171_v44 = vld [vmem:[%s16998_s1 + $0x98] sm:$0xff]  ;;  %v340_v46 = vld [vmem:[%s13284_s9 + $0x80] sm:$0xff] }
  0x1e   : > { %313 = vst.msk [vmem:[#allocation2 + $0xf8] sm:$0xff] %vm281_vm0, %v13108_v8  ;;  %314 = vst.msk [vmem:[#allocation2 + $0x100] sm:$0xff] %vm281_vm0, %v13108_v8  ;;  %v339_v45 = vld [vmem:[%s13284_s9 + $0x78] sm:$0xff]  ;;  %v341_v48 = vld [vmem:[%s13284_s9 + $0x88] sm:$0xff]  ;;  %v12478_v58 = vpack.c.bf16 %v10171_v44, %v10170_v39 }
  0x1f   : > { %315 = vst.msk [vmem:[#allocation2 + $0x108] sm:$0xff] %vm281_vm0, %v13108_v8  ;;  %316 = vst.msk [vmem:[#allocation2 + $0x110] sm:$0xff] %vm281_vm0, %v13108_v8  ;;  %v342_v49 = vld [vmem:[%s13284_s9 + $0x90] sm:$0xff]  ;;  %v343_v50 = vld [vmem:[%s13284_s9 + $0x98] sm:$0xff] }
  0x20   : > { %317 = vst.msk [vmem:[#allocation2 + $0x118] sm:$0xff] %vm281_vm0, %v13108_v8  ;;  %318 = vst.msk [vmem:[#allocation2 + $0x120] sm:$0xff] %vm281_vm0, %v13108_v8  ;;  %v344_v51 = vld [vmem:[%s13284_s9 + $0xa0] sm:$0xff]  ;;  %v345_v52 = vld [vmem:[%s13284_s9 + $0xa8] sm:$0xff] }
  0x21   : > { %319 = vst.msk [vmem:[#allocation2 + $0x128] sm:$0xff] %vm281_vm0, %v13108_v8  ;;  %320 = vst.msk [vmem:[#allocation2 + $0x130] sm:$0xff] %vm281_vm0, %v13108_v8  ;;  %v346_v53 = vld [vmem:[%s13284_s9 + $0xb0] sm:$0xff]  ;;  %v347_v56 = vld [vmem:[%s13284_s9 + $0xb8] sm:$0xff] }
  0x22   : > { %321 = vst.msk [vmem:[#allocation2 + $0x138] sm:$0xff] %vm281_vm0, %v13108_v8  ;;  %322 = vst.msk [vmem:[#allocation2 + $0x140] sm:$0xff] %vm281_vm0, %v13108_v8  ;;  %v10172_v59 = vld [vmem:[%s16998_s1 + $0xa0] sm:$0xff]  ;;  %v10173_v60 = vld [vmem:[%s16998_s1 + $0xa8] sm:$0xff] }
  0x23   : > { %323 = vst.msk [vmem:[#allocation2 + $0x148] sm:$0xff] %vm281_vm0, %v13108_v8  ;;  %vm13277_vm4 = vmpackc.low %vm1148_vm1, %vm13109_vm3  ;;  %v12482_v63 = vpack.c.bf16 %v10173_v60, %v10172_v59  ;;  %v10174_v1 = vld [vmem:[%s16998_s1 + $0xb0] sm:$0xff]  ;;  %v10175_v2 = vld [vmem:[%s16998_s1 + $0xb8] sm:$0xf] }
  0x24   : > { %367 = vst.msk [vmem:[#allocation2] sm:$0xff] %vm366_vm2, %v324_v21  ;;  %368 = vst.msk [vmem:[#allocation2 + $0x8] sm:$0xff] %vm366_vm2, %v325_v22  ;;  %12470 = vmatprep.subr.msk.bf16.mxu0 %vm13277_vm4, %v13297_v26  ;;  %12452 = vmatprep.subr.msk.bf16.mxu1 %vm13277_vm4, %v12450_v47  ;;  %v12486_v9 = vpack.c.bf16 %v10175_v2, %v10174_v1  ;;  %v348_v24 = vld [vmem:[%s13284_s9 + $0xc0] sm:$0xff]  ;;  %v350_v25 = vld [vmem:[%s13284_s9 + $0xd0] sm:$0xff] }
  0x25   : > { %369 = vst.msk [vmem:[#allocation2 + $0x10] sm:$0xff] %vm366_vm2, %v326_v23  ;;  %370 = vst.msk [vmem:[#allocation2 + $0x18] sm:$0xff] %vm366_vm2, %v327_v27  ;;  %12473 = vmatpush3.bf16.msk.msra.mxu0 %vm13277_vm4, %v13297_v26  ;;  %12455 = vmatpush3.bf16.msk.msra.mxu1 %vm13277_vm4, %v12450_v47  ;;  %v353_v30 = vld [vmem:[%s13284_s9 + $0xe8] sm:$0xff]  ;;  %v354_v32 = vld [vmem:[%s13284_s9 + $0xf0] sm:$0xff] }
  0x26   : > { %371 = vst.msk [vmem:[#allocation2 + $0x20] sm:$0xff] %vm366_vm2, %v328_v28  ;;  %372 = vst.msk [vmem:[#allocation2 + $0x28] sm:$0xff] %vm366_vm2, %v329_v29  ;;  %12475 = vmatprep.subr.bf16.mxu0 %v12474_v43  ;;  %12708 = vmatprep.subr.bf16.mxu1 %v13182_v3  ;;  %v351_v28 = vld [vmem:[%s13284_s9 + $0xd8] sm:$0xff]  ;;  %v352_v29 = vld [vmem:[%s13284_s9 + $0xe0] sm:$0xff] }
  0x27   : > { %373 = vst.msk [vmem:[#allocation2 + $0x30] sm:$0xff] %vm366_vm2, %v330_v33  ;;  %374 = vst.msk [vmem:[#allocation2 + $0x38] sm:$0xff] %vm366_vm2, %v331_v34  ;;  %v355_v33 = vld [vmem:[%s13284_s9 + $0xf8] sm:$0xff]  ;;  %v356_v34 = vld [vmem:[%s13284_s9 + $0x100] sm:$0xff] }
  0x28   : > { %375 = vst.msk [vmem:[#allocation2 + $0x40] sm:$0xff] %vm366_vm2, %v332_v35  ;;  %376 = vst.msk [vmem:[#allocation2 + $0x48] sm:$0xff] %vm366_vm2, %v333_v36  ;;  %v358_v36 = vld [vmem:[%s13284_s9 + $0x110] sm:$0xff]  ;;  %v361_v39 = vld [vmem:[%s13284_s9 + $0x128] sm:$0xff] }
  0x29   : > { %377 = vst.msk [vmem:[#allocation2 + $0x50] sm:$0xff] %vm366_vm2, %v334_v37  ;;  %378 = vst.msk [vmem:[#allocation2 + $0x58] sm:$0xff] %vm366_vm2, %v335_v38  ;;  %v359_v37 = vld [vmem:[%s13284_s9 + $0x118] sm:$0xff]  ;;  %v360_v38 = vld [vmem:[%s13284_s9 + $0x120] sm:$0xff] }
  0x2a   : > { %379 = vst.msk [vmem:[#allocation2 + $0x60] sm:$0xff] %vm366_vm2, %v336_v40  ;;  %380 = vst.msk [vmem:[#allocation2 + $0x68] sm:$0xff] %vm366_vm2, %v337_v41  ;;  %v362_v40 = vld [vmem:[%s13284_s9 + $0x130] sm:$0xff]  ;;  %v363_v41 = vld [vmem:[%s13284_s9 + $0x138] sm:$0xff] }
  0x2b   : > { %381 = vst.msk [vmem:[#allocation2 + $0x70] sm:$0xff] %vm366_vm2, %v338_v42  ;;  %382 = vst.msk [vmem:[#allocation2 + $0x78] sm:$0xff] %vm366_vm2, %v339_v45  ;;  %v950_v54 = vld [vmem:[#allocation2 + $0x5] sm:$0xff] }
  0x2c   : > { %383 = vst.msk [vmem:[#allocation2 + $0x80] sm:$0xff] %vm366_vm2, %v340_v46  ;;  %384 = vst.msk [vmem:[#allocation2 + $0x88] sm:$0xff] %vm366_vm2, %v341_v48  ;;  %v951_v55 = vld [vmem:[#allocation2 + $0xd] sm:$0xff]  ;;  %11474 = vmatprep.mubr.msk.f32.mxu0 %vm17005_vm5, %v950_v54  ;;  %v952_v57 = vld [vmem:[#allocation2 + $0x15] sm:$0xff] }
  0x2d   : > { %385 = vst.msk [vmem:[#allocation2 + $0x90] sm:$0xff] %vm366_vm2, %v342_v49  ;;  %386 = vst.msk [vmem:[#allocation2 + $0x98] sm:$0xff] %vm366_vm2, %v343_v50  ;;  %11475 = vmatmul.mubr.msk.f32.vlgmr.msra.gmra.mrb[0].mxu0 %vm17005_vm5, %v951_v55  ;;  %v953_v61 = vld [vmem:[#allocation2 + $0x1d] sm:$0xff]  ;;  %v954_v62 = vld [vmem:[#allocation2 + $0x25] sm:$0xff] }
  0x2e   : > { %387 = vst.msk [vmem:[#allocation2 + $0xa0] sm:$0xff] %vm366_vm2, %v344_v51  ;;  %388 = vst.msk [vmem:[#allocation2 + $0xa8] sm:$0xff] %vm366_vm2, %v345_v52  ;;  %12477 = vmatpush3.bf16.msra.mxu0 %v12474_v43  ;;  %11477 = vmatprep.mubr.msk.f32.mxu0 %vm17005_vm5, %v952_v57  ;;  %v994_v0 = vld [vmem:[#allocation2 + $0x17] sm:$0xff]  ;;  %v995_v4 = vld [vmem:[#allocation2 + $0x1f] sm:$0xff] }
  0x2f   : > { %389 = vst.msk [vmem:[#allocation2 + $0xb0] sm:$0xff] %vm366_vm2, %v346_v53  ;;  %390 = vst.msk [vmem:[#allocation2 + $0xb8] sm:$0xff] %vm366_vm2, %v347_v56  ;;  %12479 = vmatprep.subr.bf16.mxu0 %v12478_v58  ;;  %11404 = vmatprep.mubr.msk.f32.mxu1 %vm17005_vm5, %v994_v0  ;;  %v996_v6 = vld [vmem:[#allocation2 + $0x27] sm:$0xff]  ;;  %v956_v8 = vld [vmem:[#allocation2 + $0x35] sm:$0xff] }
  0x30   : > { %v955_v7 = vld [vmem:[#allocation2 + $0x2d] sm:$0xff]  ;;  %11405 = vmatmul.mubr.msk.f32.vlgmr.msra.gmra.mrb[0].mxu1 %vm17005_vm5, %v995_v4  ;;  %v998_v12 = vld [vmem:[#allocation2 + $0x37] sm:$0xff]  ;;  %v958_v14 = vld [vmem:[#allocation2 + $0x45] sm:$0xff]  ;;  %391 = vst.msk [vmem:[#allocation2 + $0xc0] sm:$0xff] %vm366_vm2, %v348_v24 }
  0x31   : > { %11478 = vmatmul.mubr.msk.f32.gmra.mrb[2].mxu0 %vm17005_vm5, %v953_v61  ;;  %11407 = vmatprep.mubr.msk.f32.mxu1 %vm17005_vm5, %v996_v6  ;;  %v997_v10 = vld [vmem:[#allocation2 + $0x2f] sm:$0xff]  ;;  %v957_v13 = vld [vmem:[#allocation2 + $0x3d] sm:$0xff]  ;;  %v962_v21 = vld [vmem:[#allocation2 + $0x65] sm:$0xff]  ;;  %393 = vst.msk [vmem:[#allocation2 + $0xd0] sm:$0xff] %vm366_vm2, %v350_v25 }
  0x32   : > { %11480 = vmatprep.mubr.msk.f32.mxu0 %vm17005_vm5, %v954_v62  ;;  %12481 = vmatpush3.bf16.msra.mxu0 %v12478_v58  ;;  %v999_v15 = vld [vmem:[#allocation2 + $0x3f] sm:$0xff]  ;;  %v959_v16 = vld [vmem:[#allocation2 + $0x4d] sm:$0xff]  ;;  %v960_v17 = vld [vmem:[#allocation2 + $0x55] sm:$0xff]  ;;  %394 = vst.msk [vmem:[#allocation2 + $0xd8] sm:$0xff] %vm366_vm2, %v351_v28 }
  0x33   : > { %12483 = vmatprep.subr.bf16.mxu0 %v12482_v63  ;;  %12712 = vmatpush3.bf16.msra.mxu1 %v13182_v3  ;;  %v1000_v3 = vld [vmem:[#allocation2 + $0x47] sm:$0xff]  ;;  %v1002_v18 = vld [vmem:[#allocation2 + $0x57] sm:$0xff]  ;;  %v1003_v22 = vld [vmem:[#allocation2 + $0x5f] sm:$0xff]  ;;  %395 = vst.msk [vmem:[#allocation2 + $0xe0] sm:$0xff] %vm366_vm2, %v352_v29 }
  0x34   : > { %12709 = vmatprep.subr.bf16.mxu1 %v13187_v5  ;;  %11408 = vmatmul.mubr.msk.f32.gmra.mrb[2].mxu1 %vm17005_vm5, %v997_v10  ;;  %v961_v19 = vld [vmem:[#allocation2 + $0x5d] sm:$0xff]  ;;  %v1004_v23 = vld [vmem:[#allocation2 + $0x67] sm:$0xff]  ;;  %v964_v31 = vld [vmem:[#allocation2 + $0x75] sm:$0xff]  ;;  %396 = vst.msk [vmem:[#allocation2 + $0xe8] sm:$0xff] %vm366_vm2, %v353_v30 }
  0x35   : > { %11481 = vmatmul.mubr.msk.f32.gmra.mrb[4].mxu0 %vm17005_vm5, %v955_v7  ;;  %11410 = vmatprep.mubr.msk.f32.mxu1 %vm17005_vm5, %v998_v12  ;;  %v963_v27 = vld [vmem:[#allocation2 + $0x6d] sm:$0xff]  ;;  %397 = vst.msk [vmem:[#allocation2 + $0xf0] sm:$0xff] %vm366_vm2, %v354_v32  ;;  %398 = vst.msk [vmem:[#allocation2 + $0xf8] sm:$0xff] %vm366_vm2, %v355_v33  ;;  %v364_v42 = vld [vmem:[%s13284_s9 + $0x140] sm:$0xff] }
  0x36   : > { %11483 = vmatprep.mubr.msk.f32.mxu0 %vm17005_vm5, %v956_v8  ;;  %12485 = vmatpush3.bf16.msra.mxu0 %v12482_v63  ;;  %v1005_v35 = vld [vmem:[#allocation2 + $0x6f] sm:$0xff]  ;;  %399 = vst.msk [vmem:[#allocation2 + $0x100] sm:$0xff] %vm366_vm2, %v356_v34  ;;  %401 = vst.msk [vmem:[#allocation2 + $0x110] sm:$0xff] %vm366_vm2, %v358_v36  ;;  %v1006_v44 = vld [vmem:[#allocation2 + $0x77] sm:$0xff] }
  0x37   : > { %12488 = vmatprep.subr.msk.bf16.mxu0 %vm13277_vm4, %v12486_v9  ;;  %12713 = vmatpush3.bf16.msra.mxu1 %v13187_v5  ;;  %v1001_v5 = vld [vmem:[#allocation2 + $0x4f] sm:$0xff]  ;;  %402 = vst.msk [vmem:[#allocation2 + $0x118] sm:$0xff] %vm366_vm2, %v359_v37  ;;  %403 = vst.msk [vmem:[#allocation2 + $0x120] sm:$0xff] %vm366_vm2, %v360_v38  ;;  %v965_v45 = vld [vmem:[#allocation2 + $0x7d] sm:$0xff] }
  0x38   : > { %12710 = vmatprep.subr.bf16.mxu1 %v13256_v11  ;;  %11411 = vmatmul.mubr.msk.f32.gmra.mrb[4].mxu1 %vm17005_vm5, %v999_v15  ;;  %404 = vst.msk [vmem:[#allocation2 + $0x128] sm:$0xff] %vm366_vm2, %v361_v39  ;;  %405 = vst.msk [vmem:[#allocation2 + $0x130] sm:$0xff] %vm366_vm2, %v362_v40  ;;  %v365_v43 = vld [vmem:[%s13284_s9 + $0x148] sm:$0xff]  ;;  %v1007_v47 = vld [vmem:[#allocation2 + $0x7f] sm:$0xff] }
  0x39   : > { %11484 = vmatmul.mubr.msk.f32.gmra.mrb[6].mxu0 %vm17005_vm5, %v957_v13  ;;  %11413 = vmatprep.mubr.msk.f32.mxu1 %vm17005_vm5, %v1000_v3  ;;  %406 = vst.msk [vmem:[#allocation2 + $0x138] sm:$0xff] %vm366_vm2, %v363_v41  ;;  %407 = vst.msk [vmem:[#allocation2 + $0x140] sm:$0xff] %vm366_vm2, %v364_v42  ;;  %v966_v46 = vld [vmem:[#allocation2 + $0x85] sm:$0xff]  ;;  %v967_v49 = vld [vmem:[#allocation2 + $0x8d] sm:$0xff] }
  0x3a   : > { %11486 = vmatprep.mubr.msk.f32.mxu0 %vm17005_vm5, %v958_v14  ;;  %12491 = vmatpush3.bf16.msk.msra.mxu0 %vm13277_vm4, %v12486_v9  ;;  %408 = vst.msk [vmem:[#allocation2 + $0x148] sm:$0xff] %vm366_vm2, %v365_v43  ;;  %v1008_v48 = vld [vmem:[#allocation2 + $0x87] sm:$0xff]  ;;  %v1009_v51 = vld [vmem:[#allocation2 + $0x8f] sm:$0xff]  ;;  %v1010_v52 = vld [vmem:[#allocation2 + $0x97] sm:$0xff] }
  0x3b   : > { %12714 = vmatpush3.bf16.msra.mxu1 %v13256_v11  ;;  %v349_v11 = vld [vmem:[%s13284_s9 + $0xc8] sm:$0xff]  ;;  %v1754_v53 = vld [vmem:[#allocation2 + $0x31] sm:$0xff]  ;;  %v1755_v54 = vld [vmem:[#allocation2 + $0x39] sm:$0xff] }
  0x3c   : > { %12711 = vmatprep.subr.msk.bf16.mxu1 %vm13277_vm4, %v13297_v26  ;;  %11414 = vmatmul.mubr.msk.f32.gmra.mrb[6].mxu1 %vm17005_vm5, %v1001_v5  ;;  %392 = vst.msk [vmem:[#allocation2 + $0xc8] sm:$0xff] %vm366_vm2, %v349_v11  ;;  %v1753_v50 = vld [vmem:[#allocation2 + $0x29] sm:$0xff]  ;;  %v1011_v55 = vld [vmem:[#allocation2 + $0x9f] sm:$0xff]  ;;  %v1014_v60 = vld [vmem:[#allocation2 + $0xb7] sm:$0xff] }
  0x3d   : > { %11487 = vmatmul.mubr.msk.f32.gmra.mrb[8].mxu0 %vm17005_vm5, %v959_v16  ;;  %11416 = vmatprep.mubr.msk.f32.mxu1 %vm17005_vm5, %v1002_v18  ;;  %v1012_v56 = vld [vmem:[#allocation2 + $0xa7] sm:$0xff]  ;;  %v1013_v59 = vld [vmem:[#allocation2 + $0xaf] sm:$0xff]  ;;  %v1759_v62 = vld [vmem:[#allocation2 + $0x59] sm:$0xff] }
  0x3e   : > { %11489 = vmatprep.mubr.msk.f32.mxu0 %vm17005_vm5, %v960_v17  ;;  %v1756_v57 = vld [vmem:[#allocation2 + $0x41] sm:$0xff]  ;;  %v1757_v58 = vld [vmem:[#allocation2 + $0x49] sm:$0xff]  ;;  %v1758_v61 = vld [vmem:[#allocation2 + $0x51] sm:$0xff] }
  0x3f   : > { %12715 = vmatpush3.bf16.msk.msra.mxu1 %vm13277_vm4, %v13297_v26  ;;  %v357_v26 = vld [vmem:[%s13284_s9 + $0x108] sm:$0xff]  ;;  %v1015_v63 = vld [vmem:[#allocation2 + $0xbf] sm:$0xff]  ;;  %v1018_v6 = vld [vmem:[#allocation2 + $0xd7] sm:$0xff] }
  0x40   : > { %11417 = vmatmul.mubr.msk.f32.gmra.mrb[8].mxu1 %vm17005_vm5, %v1003_v22  ;;  %400 = vst.msk [vmem:[#allocation2 + $0x108] sm:$0xff] %vm366_vm2, %v357_v26  ;;  %v1760_v1 = vld [vmem:[#allocation2 + $0x61] sm:$0xff]  ;;  %v1761_v2 = vld [vmem:[#allocation2 + $0x69] sm:$0xff]  ;;  %v1762_v7 = vld [vmem:[#allocation2 + $0x71] sm:$0xff] }
  0x41   : > { %11490 = vmatmul.mubr.msk.f32.gmra.mrb[10].mxu0 %vm17005_vm5, %v961_v19  ;;  %11419 = vmatprep.mubr.msk.f32.mxu1 %vm17005_vm5, %v1004_v23  ;;  %v1763_v8 = vld [vmem:[#allocation2 + $0x79] sm:$0xff]  ;;  %v1020_v10 = vld [vmem:[#allocation2 + $0xe7] sm:$0xff]  ;;  %v1021_v14 = vld [vmem:[#allocation2 + $0xef] sm:$0xff] }
  0x42   : > { %11492 = vmatprep.mubr.msk.f32.mxu0 %vm17005_vm5, %v962_v21  ;;  %v1019_v9 = vld [vmem:[#allocation2 + $0xdf] sm:$0xff]  ;;  %v1765_v13 = vld [vmem:[#allocation2 + $0x89] sm:$0xff]  ;;  %v1022_v15 = vld [vmem:[#allocation2 + $0xf7] sm:$0xff] }
  0x43   : > { %v1016_v0 = vld [vmem:[#allocation2 + $0xc7] sm:$0xff]  ;;  %v1017_v4 = vld [vmem:[#allocation2 + $0xcf] sm:$0xff]  ;;  %v1767_v16 = vld [vmem:[#allocation2 + $0x99] sm:$0xff] }
  0x44   : > { %11420 = vmatmul.mubr.msk.f32.gmra.mrb[10].mxu1 %vm17005_vm5, %v1005_v35  ;;  %v1764_v12 = vld [vmem:[#allocation2 + $0x81] sm:$0xff]  ;;  %v1766_v3 = vld [vmem:[#allocation2 + $0x91] sm:$0xff]  ;;  %v1769_v19 = vld [vmem:[#allocation2 + $0xa9] sm:$0xff] }
  0x45   : > { %11493 = vmatmul.mubr.msk.f32.gmra.mrb[12].mxu0 %vm17005_vm5, %v963_v27  ;;  %11422 = vmatprep.mubr.msk.f32.mxu1 %vm17005_vm5, %v1006_v44  ;;  %v1023_v17 = vld [vmem:[#allocation2 + $0xff] sm:$0xff]  ;;  %v1026_v22 = vld [vmem:[#allocation2 + $0x117] sm:$0xff]  ;;  %v1028_v25 = vld [vmem:[#allocation2 + $0x127] sm:$0xff] }
  0x46   : > { %11495 = vmatprep.mubr.msk.f32.mxu0 %vm17005_vm5, %v964_v31  ;;  %v1768_v18 = vld [vmem:[#allocation2 + $0xa1] sm:$0xff]  ;;  %v1770_v23 = vld [vmem:[#allocation2 + $0xb1] sm:$0xff]  ;;  %v1771_v24 = vld [vmem:[#allocation2 + $0xb9] sm:$0xff] }
  0x47   : > { %v1024_v5 = vld [vmem:[#allocation2 + $0x107] sm:$0xff]  ;;  %v1025_v21 = vld [vmem:[#allocation2 + $0x10f] sm:$0xff]  ;;  %v1027_v11 = vld [vmem:[#allocation2 + $0x11f] sm:$0xff] }
  0x48   : > { %11423 = vmatmul.mubr.msk.f32.gmra.mrb[12].mxu1 %vm17005_vm5, %v1007_v47  ;;  %v1772_v27 = vld [vmem:[#allocation2 + $0xc1] sm:$0xff]  ;;  %v1773_v28 = vld [vmem:[#allocation2 + $0xc9] sm:$0xff]  ;;  %v968_v30 = vld [vmem:[#allocation2 + $0x95] sm:$0xff] }
  0x49   : > { %11496 = vmatmul.mubr.msk.f32.gmra.mrb[14].mxu0 %vm17005_vm5, %v965_v45  ;;  %11425 = vmatprep.mubr.msk.f32.mxu1 %vm17005_vm5, %v1008_v48  ;;  %v1029_v29 = vld [vmem:[#allocation2 + $0x12f] sm:$0xff]  ;;  %v1775_v32 = vld [vmem:[#allocation2 + $0xd9] sm:$0xff]  ;;  %v970_v34 = vld [vmem:[#allocation2 + $0xa5] sm:$0xff] }
  0x4a   : > { %11498 = vmatprep.mubr.msk.f32.mxu0 %vm17005_vm5, %v966_v46  ;;  %v1774_v31 = vld [vmem:[#allocation2 + $0xd1] sm:$0xff]  ;;  %v969_v33 = vld [vmem:[#allocation2 + $0x9d] sm:$0xff]  ;;  %v1777_v26 = vld [vmem:[#allocation2 + $0xe9] sm:$0xff] }
  0x4b   : > { %v1776_v35 = vld [vmem:[#allocation2 + $0xe1] sm:$0xff]  ;;  %v971_v36 = vld [vmem:[#allocation2 + $0xad] sm:$0xff]  ;;  %v972_v37 = vld [vmem:[#allocation2 + $0xb5] sm:$0xff] }
  0x4c   : > { %11426 = vmatmul.mubr.msk.f32.gmra.mrb[14].mxu1 %vm17005_vm5, %v1009_v51  ;;  %v1778_v38 = vld [vmem:[#allocation2 + $0xf1] sm:$0xff]  ;;  %v1779_v39 = vld [vmem:[#allocation2 + $0xf9] sm:$0xff]  ;;  %v974_v41 = vld [vmem:[#allocation2 + $0xc5] sm:$0xff] }
  0x4d   : > { %11499 = vmatmul.mubr.msk.f32.gmra.mrb[16].mxu0 %vm17005_vm5, %v967_v49  ;;  %11428 = vmatprep.mubr.msk.f32.mxu1 %vm17005_vm5, %v1010_v52  ;;  %v973_v40 = vld [vmem:[#allocation2 + $0xbd] sm:$0xff]  ;;  %v1781_v43 = vld [vmem:[#allocation2 + $0x109] sm:$0xff]  ;;  %v976_v45 = vld [vmem:[#allocation2 + $0xd5] sm:$0xff] }
  0x4e   : > { %11544 = vmatprep.mubr.msk.f32.mxu0 %vm17005_vm5, %v1753_v50  ;;  %v1780_v42 = vld [vmem:[#allocation2 + $0x101] sm:$0xff]  ;;  %v975_v44 = vld [vmem:[#allocation2 + $0xcd] sm:$0xff]  ;;  %v1783_v47 = vld [vmem:[#allocation2 + $0x119] sm:$0xff] }
  0x4f   : > { %v1782_v46 = vld [vmem:[#allocation2 + $0x111] sm:$0xff]  ;;  %v977_v48 = vld [vmem:[#allocation2 + $0xdd] sm:$0xff]  ;;  %v978_v49 = vld [vmem:[#allocation2 + $0xe5] sm:$0xff] }
  0x50   : > { %11429 = vmatmul.mubr.msk.f32.gmra.mrb[16].mxu1 %vm17005_vm5, %v1011_v55  ;;  %v1784_v50 = vld [vmem:[#allocation2 + $0x121] sm:$0xff]  ;;  %v1785_v51 = vld [vmem:[#allocation2 + $0x129] sm:$0xff]  ;;  %v1787_v55 = vld [vmem:[#allocation2 + $0x139] sm:$0xff] }
  0x51   : > { %11545 = vmatmul.mubr.msk.f32.vlgmr.msra.gmra.mrb[0].mxu0 %vm17005_vm5, %v1754_v53  ;;  %11431 = vmatprep.mubr.msk.f32.mxu1 %vm17005_vm5, %v1012_v56  ;;  %v979_v52 = vld [vmem:[#allocation2 + $0xed] sm:$0xff]  ;;  %v980_v53 = vld [vmem:[#allocation2 + $0xf5] sm:$0xff]  ;;  %v981_v56 = vld [vmem:[#allocation2 + $0xfd] sm:$0xff] }
  0x52   : > { %11547 = vmatprep.mubr.msk.f32.mxu0 %vm17005_vm5, %v1755_v54  ;;  %v1786_v54 = vld [vmem:[#allocation2 + $0x131] sm:$0xff] }
  0x54   : > { %11432 = vmatmul.mubr.msk.f32.gmra.mrb[18].mxu1 %vm17005_vm5, %v1013_v59  ;;  %v983_v59 = vld [vmem:[#allocation2 + $0x10d] sm:$0xff] }
  0x55   : > { %11548 = vmatmul.mubr.msk.f32.gmra.mrb[2].mxu0 %vm17005_vm5, %v1756_v57  ;;  %11434 = vmatprep.mubr.msk.f32.mxu1 %vm17005_vm5, %v1014_v60  ;;  %v982_v57 = vld [vmem:[#allocation2 + $0x105] sm:$0xff]  ;;  %v984_v60 = vld [vmem:[#allocation2 + $0x115] sm:$0xff] }
  0x56   : > { %11550 = vmatprep.mubr.msk.f32.mxu0 %vm17005_vm5, %v1757_v58  ;;  %v1788_v58 = vld [vmem:[#allocation2 + $0x141] sm:$0xff] }
  0x58   : > { %11435 = vmatmul.mubr.msk.f32.gmra.mrb[20].mxu1 %vm17005_vm5, %v1015_v63 }
  0x59   : > { %11551 = vmatmul.mubr.msk.f32.gmra.mrb[4].mxu0 %vm17005_vm5, %v1758_v61  ;;  %11437 = vmatprep.mubr.msk.f32.mxu1 %vm17005_vm5, %v1016_v0  ;;  %v985_v61 = vld [vmem:[#allocation2 + $0x11d] sm:$0xff] }
  0x5a   : > { %11553 = vmatprep.mubr.msk.f32.mxu0 %vm17005_vm5, %v1759_v62  ;;  %v409_v62 = vlaneseq }
  0x5c   : > { %11438 = vmatmul.mubr.msk.f32.gmra.mrb[22].mxu1 %vm17005_vm5, %v1017_v4  ;;  %v13539_v63 = vshrl.u32 %v409_v62, 7 }
  0x5d   : > { %11554 = vmatmul.mubr.msk.f32.gmra.mrb[6].mxu0 %vm17005_vm5, %v1760_v1  ;;  %11440 = vmatprep.mubr.msk.f32.mxu1 %vm17005_vm5, %v1018_v6 }
  0x5e   : > { %11556 = vmatprep.mubr.msk.f32.mxu0 %vm17005_vm5, %v1761_v2  ;;  %v411_v0 = vadd.s32 8, %v13539_v63  ;;  %v446_v2 = vcvt.s32.f32 %v13539_v63  ;;  %v413_v4 = vadd.s32 24, %v13539_v63 }
  0x60   : > { %11441 = vmatmul.mubr.msk.f32.gmra.mrb[24].mxu1 %vm17005_vm5, %v1019_v9  ;;  %v447_v1 = vcvt.s32.f32 %v411_v0  ;;  %v412_v9 = vadd.s32 16, %v13539_v63 }
  0x61   : > { %11557 = vmatmul.mubr.msk.f32.gmra.mrb[8].mxu0 %vm17005_vm5, %v1762_v7  ;;  %11443 = vmatprep.mubr.msk.f32.mxu1 %vm17005_vm5, %v1020_v10  ;;  %v482_v7 = vadd.f32 0.5, %v446_v2 }
  0x62   : > { %11559 = vmatprep.mubr.msk.f32.mxu0 %vm17005_vm5, %v1763_v8  ;;  %v483_v6 = vadd.f32 0.5, %v447_v1  ;;  %v449_v8 = vcvt.s32.f32 %v413_v4 }
  0x64   : > { %11444 = vmatmul.mubr.msk.f32.gmra.mrb[26].mxu1 %vm17005_vm5, %v1021_v14  ;;  %v519_v10 = vmul.f32 0.0029761905, %v483_v6  ;;  %v448_v14 = vcvt.s32.f32 %v412_v9 }
  0x65   : > { %11560 = vmatmul.mubr.msk.f32.gmra.mrb[10].mxu0 %vm17005_vm5, %v1764_v12  ;;  %11446 = vmatprep.mubr.msk.f32.mxu1 %vm17005_vm5, %v1022_v15  ;;  %v518_v12 = vmul.f32 0.0029761905, %v482_v7 }
  0x66   : > { %11562 = vmatprep.mubr.msk.f32.mxu0 %vm17005_vm5, %v1765_v13  ;;  %v485_v13 = vadd.f32 0.5, %v449_v8 }
  0x68   : > { %11447 = vmatmul.mubr.msk.f32.gmra.mrb[28].mxu1 %vm17005_vm5, %v1023_v17  ;;  %v415_v17 = vadd.s32 40, %v13539_v63 }
  0x69   : > { %11563 = vmatmul.mubr.msk.f32.gmra.mrb[12].mxu0 %vm17005_vm5, %v1766_v3  ;;  %11449 = vmatprep.mubr.msk.f32.mxu1 %vm17005_vm5, %v1024_v5  ;;  %v555_v3 = vfloor.f32 %v519_v10  ;;  %v554_v5 = vfloor.f32 %v518_v12 }
  0x6a   : > { %11565 = vmatprep.mubr.msk.f32.mxu0 %vm17005_vm5, %v1767_v16 }
  0x6c   : > { %11450 = vmatmul.mubr.msk.f32.gmra.mrb[30].mxu1 %vm17005_vm5, %v1025_v21  ;;  %v414_v21 = vadd.s32 32, %v13539_v63 }
  0x6d   : > { %11566 = vmatmul.mubr.msk.f32.gmra.mrb[14].mxu0 %vm17005_vm5, %v1768_v18  ;;  %11452 = vmatprep.mubr.msk.f32.mxu1 %vm17005_vm5, %v1026_v22  ;;  %v521_v18 = vmul.f32 0.0029761905, %v485_v13 }
  0x6e   : > { %11568 = vmatprep.mubr.msk.f32.mxu0 %vm17005_vm5, %v1769_v19  ;;  %v484_v19 = vadd.f32 0.5, %v448_v14 }
  0x70   : > { %11453 = vmatmul.mubr.msk.f32.gmra.mrb[32].mxu1 %vm17005_vm5, %v1027_v11  ;;  %v451_v11 = vcvt.s32.f32 %v415_v17 }
  0x71   : > { %11569 = vmatmul.mubr.msk.f32.gmra.mrb[16].mxu0 %vm17005_vm5, %v1770_v23  ;;  %11455 = vmatprep.mubr.msk.f32.mxu1 %vm17005_vm5, %v1028_v25  ;;  %v591_v23 = vmul.f32 336.0, %v555_v3  ;;  %v590_v25 = vmul.f32 336.0, %v554_v5 }
  0x72   : > { %11571 = vmatprep.mubr.msk.f32.mxu0 %vm17005_vm5, %v1771_v24 }
  0x74   : > { %11456 = vmatmul.mubr.msk.f32.gmra.mrb[34].mxu1 %vm17005_vm5, %v1029_v29  ;;  %v450_v29 = vcvt.s32.f32 %v414_v21 }
  0x75   : > { %11572 = vmatmul.mubr.msk.f32.gmra.mrb[18].mxu0 %vm17005_vm5, %v1772_v27  ;;  %11501 = vmatprep.mubr.msk.f32.mxu1 %vm17005_vm5, %v968_v30  ;;  %v557_v27 = vfloor.f32 %v521_v18 }
  0x76   : > { %11574 = vmatprep.mubr.msk.f32.mxu0 %vm17005_vm5, %v1773_v28  ;;  %v520_v28 = vmul.f32 0.0029761905, %v484_v19  ;;  %v13609_v19 = vadd.s32 64, %v13539_v63 }
  0x78   : > { %11502 = vmatmul.mubr.msk.f32.vlgmr.msra.gmra.mrb[18].mxu1 %vm17005_vm5, %v969_v33  ;;  %v487_v33 = vadd.f32 0.5, %v451_v11 }
  0x79   : > { %11575 = vmatmul.mubr.msk.f32.gmra.mrb[20].mxu0 %vm17005_vm5, %v1774_v31  ;;  %11504 = vmatprep.mubr.msk.f32.mxu1 %vm17005_vm5, %v970_v34  ;;  %v13557_v31 = vsub.f32 %v447_v1, %v591_v23  ;;  %v13561_v34 = vsub.f32 %v446_v2, %v590_v25 }
  0x7a   : > { %11577 = vmatprep.mubr.msk.f32.mxu0 %vm17005_vm5, %v1775_v32 }
  0x7b   : > { %vm843_vm6 = vcmp.lt.f32.partialorder %v13557_v31, 285.5  ;;  %vm842_vm8 = vcmp.lt.f32.partialorder %v13561_v34, 285.5 }
  0x7c   : > { %11505 = vmatmul.mubr.msk.f32.gmra.mrb[20].mxu1 %vm17005_vm5, %v971_v36  ;;  %v486_v36 = vadd.f32 0.5, %v450_v29 }
  0x7d   : > { %11578 = vmatmul.mubr.msk.f32.gmra.mrb[22].mxu0 %vm17005_vm5, %v1776_v35  ;;  %11507 = vmatprep.mubr.msk.f32.mxu1 %vm17005_vm5, %v972_v37  ;;  %v593_v35 = vmul.f32 336.0, %v557_v27  ;;  %v663_v37 = vadd.f32 0.5, %v13557_v31  ;;  %v13617_v27 = vld [vmem:[%s17003_s6] ss:$0 sm:$0xff] }
  0x7e   : > { %11580 = vmatprep.mubr.msk.f32.mxu0 %vm17005_vm5, %v1777_v26  ;;  %v556_v26 = vfloor.f32 %v520_v28 }
  0x80   : > { %11508 = vmatmul.mubr.msk.f32.gmra.mrb[22].mxu1 %vm17005_vm5, %v973_v40  ;;  %v523_v40 = vmul.f32 0.0029761905, %v487_v33 }
  0x81   : > { %11581 = vmatmul.mubr.msk.f32.gmra.mrb[24].mxu0 %vm17005_vm5, %v1778_v38  ;;  %11510 = vmatprep.mubr.msk.f32.mxu1 %vm17005_vm5, %v974_v41  ;;  %v13569_v41 = vadd.s32 48, %v13539_v63 }
  0x82   : > { %11583 = vmatprep.mubr.msk.f32.mxu0 %vm17005_vm5, %v1779_v39 }
  0x84   : > { %11511 = vmatmul.mubr.msk.f32.gmra.mrb[24].mxu1 %vm17005_vm5, %v975_v44  ;;  %v592_v44 = vmul.f32 336.0, %v556_v26 }
  0x85   : > { %11584 = vmatmul.mubr.msk.f32.gmra.mrb[26].mxu0 %vm17005_vm5, %v1780_v42  ;;  %11513 = vmatprep.mubr.msk.f32.mxu1 %vm17005_vm5, %v976_v45  ;;  %v662_v42 = vadd.f32 0.5, %v13561_v34  ;;  %v522_v45 = vmul.f32 0.0029761905, %v486_v36 }
  0x86   : > { %11586 = vmatprep.mubr.msk.f32.mxu0 %vm17005_vm5, %v1781_v43  ;;  %v13572_v43 = vsub.f32 %v449_v8, %v593_v35 }
  0x88   : > { %11514 = vmatmul.mubr.msk.f32.gmra.mrb[26].mxu1 %vm17005_vm5, %v977_v48  ;;  %vm845_vm13 = vcmp.lt.f32.partialorder %v13572_v43, 285.5 }
  0x89   : > { %11587 = vmatmul.mubr.msk.f32.gmra.mrb[28].mxu0 %vm17005_vm5, %v1782_v46  ;;  %11516 = vmatprep.mubr.msk.f32.mxu1 %vm17005_vm5, %v978_v49  ;;  %v13575_v46 = vadd.s32 56, %v13539_v63 }
  0x8a   : > { %11589 = vmatprep.mubr.msk.f32.mxu0 %vm17005_vm5, %v1783_v47  ;;  %v699_v47 = vmul.f32 0.055555556, %v663_v37 }
  0x8c   : > { %11517 = vmatmul.mubr.msk.f32.gmra.mrb[28].mxu1 %vm17005_vm5, %v979_v52  ;;  %v698_v52 = vmul.f32 0.055555556, %v662_v42 }
  0x8d   : > { %11590 = vmatmul.mubr.msk.f32.gmra.mrb[30].mxu0 %vm17005_vm5, %v1784_v50  ;;  %11519 = vmatprep.mubr.msk.f32.mxu1 %vm17005_vm5, %v980_v53  ;;  %v559_v50 = vfloor.f32 %v523_v40  ;;  %v665_v53 = vadd.f32 0.5, %v13572_v43 }
  0x8e   : > { %11592 = vmatprep.mubr.msk.f32.mxu0 %vm17005_vm5, %v1785_v51  ;;  %v452_v51 = vcvt.s32.f32 %v13569_v41  ;;  %v734_v62 = vfloor.f32 %v698_v52 }
  0x8f   : > { %v701_v0 = vmul.f32 0.055555556, %v665_v53 }
  0x90   : > { %11520 = vmatmul.mubr.msk.f32.gmra.mrb[30].mxu1 %vm17005_vm5, %v981_v56  ;;  %v453_v56 = vcvt.s32.f32 %v13575_v46  ;;  %v770_v12 = vmul.f32 18.0, %v734_v62 }
  0x91   : > { %11593 = vmatmul.mubr.msk.f32.gmra.mrb[32].mxu0 %vm17005_vm5, %v1786_v54  ;;  %11522 = vmatprep.mubr.msk.f32.mxu1 %vm17005_vm5, %v982_v57  ;;  %v13583_v54 = vsub.f32 %v448_v14, %v592_v44  ;;  %v735_v57 = vfloor.f32 %v699_v47  ;;  %v737_v13 = vfloor.f32 %v701_v0 }
  0x92   : > { %11595 = vmatprep.mubr.msk.f32.mxu0 %vm17005_vm5, %v1787_v55  ;;  %v558_v55 = vfloor.f32 %v522_v45  ;;  %v489_v4 = vadd.f32 0.5, %v453_v56  ;;  %v806_v28 = vsub.f32 %v13561_v34, %v770_v12  ;;  %v454_v45 = vcvt.s32.f32 %v13609_v19  ;;  %v10215_v34 = vld [vmem:[%s16999_s2 + $0x48] sm:$0xff] }
  0x93   : > { %v664_v1 = vadd.f32 0.5, %v13583_v54  ;;  %v771_v6 = vmul.f32 18.0, %v735_v57  ;;  %vm844_vm2 = vcmp.lt.f32.partialorder %v13583_v54, 285.5 }
  0x94   : > { %11523 = vmatmul.mubr.msk.f32.gmra.mrb[32].mxu1 %vm17005_vm5, %v983_v59  ;;  %v594_v2 = vmul.f32 336.0, %v558_v55  ;;  %v13603_v17 = vmul.f32 0.0029761905, %v489_v4  ;;  %vm13639_vm9 = vcmp.lt.f32.partialorder %v806_v28, 15.5  ;;  %v10604_v55 = vld [vmem:[%s17002_s5 + $0x70] sm:$0xff] }
  0x95   : > { %11596 = vmatmul.mubr.msk.f32.gmra.mrb[34].mxu0 %vm17005_vm5, %v1788_v58  ;;  %11525 = vmatprep.mubr.msk.f32.mxu1 %vm17005_vm5, %v984_v60  ;;  %v595_v60 = vmul.f32 336.0, %v559_v50  ;;  %v700_v14 = vmul.f32 0.055555556, %v664_v1  ;;  %v807_v5 = vsub.f32 %v13557_v31, %v771_v6  ;;  %vm13681_vm15 = vmand %vm842_vm8, %vm13639_vm9  ;;  %v10599_v1 = vld [vmem:[%s17002_s5 + $0x48] sm:$0xff] }
  0x96   : > { %v13601_v3 = vsub.f32 %v450_v29, %v594_v2  ;;  %v773_v29 = vmul.f32 18.0, %v737_v13  ;;  %v561_v37 = vfloor.f32 %v13603_v17 }
  0x97   : > { %v13599_v9 = vsub.f32 %v451_v11, %v595_v60  ;;  %v736_v26 = vfloor.f32 %v700_v14  ;;  %vm13625_vm7 = vcmp.lt.f32.partialorder %v807_v5, 15.5  ;;  %v13645_v60 = vadd.s32 72, %v13539_v63 }
  0x98   : > { %11526 = vmatmul.mubr.msk.f32.gmra.mrb[34].mxu1 %vm17005_vm5, %v985_v61  ;;  %v488_v61 = vadd.f32 0.5, %v452_v51  ;;  %v666_v36 = vadd.f32 0.5, %v13601_v3  ;;  %v809_v57 = vsub.f32 %v13572_v43, %v773_v29  ;;  %vm13652_vm10 = vmand %vm843_vm6, %vm13625_vm7  ;;  %v10216_v43 = vld [vmem:[%s16999_s2 + $0x50] sm:$0xff]  ;;  %vm846_vm7 = vcmp.lt.f32.partialorder %v13601_v3, 285.5 }
  0x99   : > { %v667_v23 = vadd.f32 0.5, %v13599_v9  ;;  %v772_v13 = vmul.f32 18.0, %v736_v26  ;;  %v455_v5 = vcvt.s32.f32 %v13645_v60 }
  0x9a   : > { %v524_v10 = vmul.f32 0.0029761905, %v488_v61  ;;  %v702_v2 = vmul.f32 0.055555556, %v666_v36  ;;  %vm13667_vm14 = vcmp.lt.f32.partialorder %v809_v57, 15.5  ;;  %v597_v36 = vmul.f32 336.0, %v561_v37 }
  0x9b   : > { %v13636_v50 = vmul.f32 0.055555556, %v667_v23  ;;  %vm13712_vm1 = vmand %vm845_vm13, %vm13667_vm14  ;;  %vm847_vm13 = vcmp.lt.f32.partialorder %v13599_v9, 285.5 }
  0x9c   : > { %v560_v11 = vfloor.f32 %v524_v10  ;;  %v490_v10 = vadd.f32 0.5, %v454_v45  ;;  %v738_v29 = vfloor.f32 %v702_v2 }
  0x9e   : > { %v596_v52 = vmul.f32 336.0, %v560_v11 }
  0xa0   : > { %v13662_v31 = vsub.f32 %v452_v51, %v596_v52  ;;  %v491_v52 = vadd.f32 0.5, %v455_v5  ;;  %v10601_v51 = vld [vmem:[%s17002_s5 + $0x58] sm:$0xff] }
  0xa2   : > { %v668_v26 = vadd.f32 0.5, %v13662_v31 }
 0x103   : > { %v13545_v15 = vpop.f32.mrb[0].mxu1 }
 0x104   : > { %v13547_v16 = vpop.f32.mrb[1].mxu1 }
 0x107   : > { %v13551_v22 = vpop.f32.mrb[2].mxu1 }
 0x108   : > { %v13553_v24 = vpop.f32.mrb[3].mxu1 }
 0x10b   : > { %v13555_v30 = vpop.f32.mrb[4].mxu1 }
 0x10c   : > { %v13559_v32 = vpop.f32.mrb[5].mxu1 }
 0x10f   : > { %v13564_v38 = vpop.f32.mrb[6].mxu1 }
 0x110   : > { %v13566_v39 = vpop.f32.mrb[7].mxu1 }
 0x113   : > { %v13577_v48 = vpop.f32.mrb[8].mxu1 }
 0x114   : > { %v13579_v49 = vpop.f32.mrb[9].mxu1 }
 0x117   : > { %v13586_v58 = vpop.f32.mrb[10].mxu1 }
 0x118   : > { %v13588_v59 = vpop.f32.mrb[11].mxu1 }
 0x11b   : > { %v13595_v7 = vpop.f32.mrb[12].mxu1 }
 0x11c   : > { %v13597_v8 = vpop.f32.mrb[13].mxu1 }
 0x11f   : > { %v13606_v18 = vpop.f32.mrb[14].mxu1 }
 0x120   : > { %v13611_v21 = vpop.f32.mrb[15].mxu1 }
 0x123   : > { %v13629_v44 = vpop.f32.mrb[16].mxu1 }
 0x124   : > { %v11546_v25 = vpop.f32.mrb[0].mxu0  ;;  %v13634_v47 = vpop.f32.mrb[17].mxu1 }
 0x125   : > { %v12716_v33 = vadd.f32 %v11546_v25, %v13545_v15  ;;  %v1975_v35 = vpop.f32.mrb[1].mxu0 }
 0x126   : > { %v12717_v40 = vadd.f32 %v1975_v35, %v13547_v16  ;;  %v10214_v35 = vld [vmem:[%s16999_s2 + $0x40] sm:$0xff] }
 0x127   : > { %v2196_v15 = vadd.f32 %v12716_v33, %v13617_v27  ;;  %v526_v33 = vmul.f32 0.0029761905, %v490_v10 }
 0x128   : > { %v2195_v16 = vadd.f32 %v12717_v40, %v13617_v27  ;;  %v11549_v53 = vpop.f32.mrb[2].mxu0  ;;  %v12492_v40 = vpack.c.bf16 %v10215_v34, %v10214_v35 }
 0x129   : > { %v2268_v61 = vmul.f32 0.01, %v2196_v15  ;;  %v12718_v62 = vadd.f32 %v11549_v53, %v13551_v22  ;;  %v1985_v0 = vpop.f32.mrb[3].mxu0  ;;  %vm2232_vm11 = vcmp.ge.f32.partialorder %v2196_v15, 0.0  ;;  %v562_v2 = vfloor.f32 %v526_v33 }
 0x12a   : > { %v2267_v4 = vmul.f32 0.01, %v2195_v16  ;;  %v12719_v6 = vadd.f32 %v1985_v0, %v13553_v24  ;;  %vm2231_vm12 = vcmp.ge.f32.partialorder %v2195_v16, 0.0  ;;  %v739_v0 = vfloor.f32 %v13636_v50  ;;  %12493 = vmatprep.subr.bf16.mxu1 %v12492_v40 }
 0x12b   : > { %v2198_v22 = vadd.f32 %v12718_v62, %v13617_v27  ;;  %v2304_v12 = vsel %vm2232_vm11, %v2196_v15, %v2268_v61  ;;  %v774_v62 = vmul.f32 18.0, %v738_v29  ;;  %12495 = vmatpush3.bf16.msra.mxu1 %v12492_v40  ;;  %v598_v29 = vmul.f32 336.0, %v562_v2 }
 0x12c   : > { %v11552_v14 = vpop.f32.mrb[4].mxu0  ;;  %v2412_v17 = vsel %vm13652_vm10, %v2304_v12, 0.0  ;;  %v2303_v25 = vsel %vm2231_vm12, %v2195_v16, %v2267_v4  ;;  %v2197_v16 = vadd.f32 %v12719_v6, %v13617_v27  ;;  %v10217_v4 = vld [vmem:[%s16999_s2 + $0x58] sm:$0xff]  ;;  %v704_v6 = vmul.f32 0.055555556, %v668_v26 }
 0x12d   : > { %v2270_v23 = vmul.f32 0.01, %v2198_v22  ;;  %v13673_v11 = vadd.f32 %v11552_v14, %v13555_v30  ;;  %2775 = vrot.lane.b32.xlu1 %v2412_v17, %s13110_s18  ;;  %2485 = vrot.lane.b32.xlu0 %v2412_v17, %s13111_s19  ;;  %v1995_v41 = vpop.f32.mrb[5].mxu0  ;;  %v13687_v30 = vadd.s32 80, %v13539_v63  ;;  %vm2234_vm0 = vcmp.ge.f32.partialorder %v2198_v22, 0.0 }
 0x12e   : > { %v12721_v28 = vadd.f32 %v1995_v41, %v13559_v32  ;;  %v2411_v15 = vsel %vm13681_vm15, %v2303_v25, 0.0  ;;  %v808_v32 = vsub.f32 %v13583_v54, %v772_v13  ;;  %v12496_v10 = vpack.c.bf16 %v10217_v4, %v10216_v43  ;;  %v10220_v54 = vld [vmem:[%s16999_s2 + $0x70] sm:$0xff] }
 0x12f   : > { %v2306_v57 = vsel %vm2234_vm0, %v2198_v22, %v2270_v23  ;;  %v456_v61 = vcvt.s32.f32 %v13687_v30  ;;  %v527_v13 = vmul.f32 0.0029761905, %v491_v52  ;;  %v13740_v14 = vadd.s32 88, %v13539_v63 }
 0x130   : > { %v11555_v42 = vpop.f32.mrb[6].mxu0  ;;  %v2414_v22 = vsel %vm13712_vm1, %v2306_v57, 0.0  ;;  %vm13735_vm3 = vcmp.lt.f32.partialorder %v808_v32, 15.5  ;;  %v2199_v24 = vadd.f32 %v12721_v28, %v13617_v27  ;;  %vm2233_vm6 = vcmp.ge.f32.partialorder %v2197_v16, 0.0  ;;  %12497 = vmatprep.subr.bf16.mxu1 %v12496_v10  ;;  %v10219_v28 = vld [vmem:[%s16999_s2 + $0x68] sm:$0xff] }
 0x131   : > { %v13704_v53 = vadd.f32 %v11555_v42, %v13564_v38  ;;  %2630 = vrot.lane.b32.xlu0 %v2412_v17, %s13112_s26  ;;  %2628 = vrot.lane.b32.xlu1 %v2411_v15, %s13112_s26  ;;  %v2005_v37 = vpop.f32.mrb[7].mxu0  ;;  %v2269_v17 = vmul.f32 0.01, %v2197_v16  ;;  %v492_v23 = vadd.f32 0.5, %v456_v61  ;;  %v810_v25 = vsub.f32 %v13601_v3, %v774_v62  ;;  %vm13777_vm8 = vmand %vm844_vm2, %vm13735_vm3  ;;  %v10605_v57 = vld [vmem:[%s17002_s5 + $0x78] sm:$0xf] }
 0x132   : > { %v13719_v38 = vadd.f32 %v2005_v37, %v13566_v39  ;;  %v13731_v39 = vsub.f32 %v453_v56, %v597_v36  ;;  %v13760_v33 = vmul.f32 18.0, %v739_v0  ;;  %v740_v35 = vfloor.f32 %v704_v6  ;;  %12499 = vmatpush3.bf16.msra.mxu1 %v12496_v10 }
 0x133   : > { %v563_v36 = vfloor.f32 %v527_v13  ;;  %v457_v40 = vcvt.s32.f32 %v13740_v14  ;;  %v13766_v42 = vadd.s32 96, %v13539_v63  ;;  %v2271_v32 = vmul.f32 0.01, %v2199_v24 }
 0x134   : > { %v11558_v50 = vpop.f32.mrb[8].mxu0  ;;  %v669_v34 = vadd.f32 0.5, %v13731_v39  ;;  %v2305_v62 = vsel %vm2233_vm6, %v2197_v16, %v2269_v17  ;;  %v528_v0 = vmul.f32 0.0029761905, %v492_v23  ;;  %vm13785_vm9 = vcmp.lt.f32.partialorder %v810_v25, 15.5 }
 0x135   : > { %v13744_v46 = vadd.f32 %v11558_v50, %v13577_v48  ;;  %2483 = vrot.lane.b32.xlu0 %v2411_v15, %s13111_s19  ;;  %2489 = vrot.lane.b32.xlu1 %v2414_v22, %s13111_s19  ;;  %v2015_v56 = vpop.f32.mrb[9].mxu0  ;;  %v10218_v48 = vld [vmem:[%s16999_s2 + $0x60] sm:$0xff]  ;;  %vm2235_vm11 = vcmp.ge.f32.partialorder %v2199_v24, 0.0  ;;  %v10221_v16 = vld [vmem:[%s16999_s2 + $0x78] sm:$0xf]  ;;  %v2413_v10 = vsel %vm13777_vm8, %v2305_v62, 0.0  ;;  %v458_v50 = vcvt.s32.f32 %v13766_v42  ;;  %vm13815_vm12 = vmand %vm846_vm7, %vm13785_vm9 }
 0x136   : > { %v13751_v41 = vadd.f32 %v2015_v56, %v13579_v49  ;;  %v12500_v49 = vpack.c.bf16 %v10219_v28, %v10218_v48  ;;  %v705_v43 = vmul.f32 0.055555556, %v669_v34  ;;  %v12504_v4 = vpack.c.bf16 %v10221_v16, %v10220_v54 }
 0x137   : > { %v599_v19 = vmul.f32 336.0, %v563_v36  ;;  %v2200_v12 = vadd.f32 %v13673_v11, %v13617_v27  ;;  %v17123_v56 = vmov 0  ;;  %v2307_v23 = vsel %vm2235_vm11, %v2199_v24, %v2271_v32 }
 0x138   : > { %v11561_v26 = vpop.f32.mrb[10].mxu0  ;;  %12501 = vmatprep.subr.bf16.mxu1 %v12500_v49  ;;  %v17124_v56 = vsel %vm13815_vm12, 4294967295, %v17123_v56  ;;  %v564_v25 = vfloor.f32 %v528_v0  ;;  %v13831_v48 = vadd.s32 104, %v13539_v63  ;;  %v2415_v24 = vsel %vm13815_vm12, %v2307_v23, 0.0 }
 0x139   : > { %v13769_v52 = vadd.f32 %v11561_v26, %v13586_v58  ;;  %2773 = vrot.lane.b32.xlu0 %v2411_v15, %s13110_s18  ;;  %2634 = vrot.lane.b32.xlu1 %v2414_v22, %s13112_s26  ;;  %v2025_v37 = vpop.f32.mrb[11].mxu0  ;;  %v13791_v15 = vsub.f32 %v454_v45, %v598_v29  ;;  %v493_v45 = vadd.f32 0.5, %v457_v40  ;;  %17125 = vst [vmem:[#allocation3_spill] sm:$0xff] %v17124_v56  ;;  %v741_v29 = vfloor.f32 %v705_v43 }
 0x13a   : > { %v13783_v2 = vadd.f32 %v2025_v37, %v13588_v59  ;;  %v776_v59 = vmul.f32 18.0, %v740_v35  ;;  %12503 = vmatpush3.bf16.msra.mxu1 %v12500_v49  ;;  %v13839_v28 = vsub.f32 %v455_v5, %v599_v19  ;;  %v494_v35 = vadd.f32 0.5, %v458_v50 }
 0x13b   : > { %12506 = vmatprep.subr.msk.bf16.mxu1 %vm13277_vm4, %v12504_v4  ;;  %v2272_v34 = vmul.f32 0.01, %v2200_v12  ;;  %v2201_v49 = vadd.f32 %v13719_v38, %v13617_v27  ;;  %v600_v32 = vmul.f32 336.0, %v564_v25  ;;  %vm2236_vm0 = vcmp.ge.f32.partialorder %v2200_v12, 0.0 }
 0x13c   : > { %v11564_v6 = vpop.f32.mrb[12].mxu0  ;;  %v812_v3 = vsub.f32 %v13662_v31, %v776_v59  ;;  %vm848_vm2 = vcmp.lt.f32.partialorder %v13662_v31, 285.5  ;;  %v777_v38 = vmul.f32 18.0, %v741_v29  ;;  %v671_v58 = vadd.f32 0.5, %v13839_v28 }
 0x13d   : > { %v13807_v13 = vadd.f32 %v11564_v6, %v13595_v7  ;;  %2779 = vrot.lane.b32.xlu1 %v2414_v22, %s13110_s18  ;;  %2777 = vrot.lane.b32.xlu0 %v2413_v10, %s13110_s18  ;;  %v2035_v17 = vpop.f32.mrb[13].mxu0  ;;  %v811_v7 = vsub.f32 %v13599_v9, %v13760_v33  ;;  %v670_v22 = vadd.f32 0.5, %v13791_v15  ;;  %v529_v33 = vmul.f32 0.0029761905, %v493_v45 }
 0x13e   : > { %v13821_v11 = vadd.f32 %v2035_v17, %v13597_v8  ;;  %12509 = vmatpush3.bf16.msk.msra.mxu1 %vm13277_vm4, %v12504_v4  ;;  %vm13859_vm3 = vcmp.lt.f32.partialorder %v812_v3, 15.5  ;;  %v530_v54 = vmul.f32 0.0029761905, %v494_v35  ;;  %v2273_v16 = vmul.f32 0.01, %v2201_v49 }
 0x13f   : > { %vm13853_vm14 = vcmp.lt.f32.partialorder %v811_v7, 15.5  ;;  %v706_v37 = vmul.f32 0.055555556, %v670_v22  ;;  %v17130_v4 = vmov 0  ;;  %v2308_v6 = vsel %vm2236_vm0, %v2200_v12, %v2272_v34  ;;  %vm13900_vm9 = vmand %vm848_vm2, %vm13859_vm3 }
 0x140   : > { %v11567_v8 = vpop.f32.mrb[14].mxu0  ;;  %vm13873_vm6 = vmand %vm847_vm13, %vm13853_vm14  ;;  %v13880_v19 = vsub.f32 %v456_v61, %v600_v32  ;;  %vm2237_vm7 = vcmp.ge.f32.partialorder %v2201_v49, 0.0  ;;  %v13886_v45 = vadd.s32 112, %v13539_v63  ;;  %v566_v25 = vfloor.f32 %v530_v54 }
 0x141   : > { %v13846_v26 = vadd.f32 %v11567_v8, %v13606_v18  ;;  %2487 = vrot.lane.b32.xlu1 %v2413_v10, %s13111_s19  ;;  %2491 = vrot.lane.b32.xlu0 %v2415_v24, %s13111_s19  ;;  %v2045_v36 = vpop.f32.mrb[15].mxu0  ;;  %v459_v18 = vcvt.s32.f32 %v13831_v48  ;;  %v17131_v4 = vsel %vm13873_vm6, 4294967295, %v17130_v4  ;;  %v2416_v17 = vsel %vm13873_vm6, %v2308_v6, 0.0 }
 0x142   : > { %v13851_v60 = vadd.f32 %v2045_v36, %v13611_v21  ;;  %v565_v21 = vfloor.f32 %v529_v33  ;;  %17132 = vst [vmem:[#allocation4_spill] sm:$0xff] %v17131_v4  ;;  %v2202_v30 = vadd.f32 %v13704_v53, %v13617_v27  ;;  %v2309_v61 = vsel %vm2237_vm7, %v2201_v49, %v2273_v16 }
 0x143   : > { %v495_v9 = vadd.f32 0.5, %v459_v18  ;;  %v707_v7 = vmul.f32 0.055555556, %v671_v58  ;;  %v672_v22 = vadd.f32 0.5, %v13880_v19  ;;  %v813_v29 = vsub.f32 %v13731_v39, %v777_v38 }
 0x144   : > { %v11570_v62 = vpop.f32.mrb[16].mxu0  ;;  %v601_v12 = vmul.f32 336.0, %v565_v21  ;;  %v460_v8 = vcvt.s32.f32 %v13886_v45  ;;  %v2417_v31 = vsel %vm13900_vm9, %v2309_v61, 0.0  ;;  %vm849_vm11 = vcmp.lt.f32.partialorder %v13731_v39, 285.5 }
 0x145   : > { %v13865_v59 = vadd.f32 %v11570_v62, %v13629_v44  ;;  %2632 = vrot.lane.b32.xlu1 %v2413_v10, %s13112_s26  ;;  %2636 = vrot.lane.b32.xlu0 %v2415_v24, %s13112_s26  ;;  %v2055_v43 = vpop.f32.mrb[17].mxu0  ;;  %v742_v10 = vfloor.f32 %v706_v37  ;;  %v531_v33 = vmul.f32 0.0029761905, %v495_v9  ;;  %v602_v49 = vmul.f32 336.0, %v566_v25 }
 0x146   : > { %v13883_v44 = vadd.f32 %v2055_v43, %v13634_v47  ;;  %v17133_v47 = vmov 0  ;;  %v13915_v34 = vsub.f32 %v457_v40, %v601_v12  ;;  %v2274_v36 = vmul.f32 0.01, %v2202_v30 }
 0x147   : > { %v17134_v47 = vsel %vm13900_vm9, 4294967295, %v17133_v47  ;;  %v778_v53 = vmul.f32 18.0, %v742_v10  ;;  %v2203_v32 = vadd.f32 %v13751_v41, %v13617_v27  ;;  %v743_v5 = vfloor.f32 %v707_v7 }
 0x148   : > { %v11573_v23 = vpop.f32.mrb[18].mxu0  ;;  %17135 = vst [vmem:[#allocation5_spill] sm:$0xff] %v17134_v47  ;;  %v708_v37 = vmul.f32 0.055555556, %v672_v22  ;;  %vm13921_vm13 = vcmp.lt.f32.partialorder %v813_v29, 15.5  ;;  %vm2238_vm14 = vcmp.ge.f32.partialorder %v2202_v30, 0.0  ;;  %v567_v21 = vfloor.f32 %v531_v33 }
 0x149   : > { %2493 = vrot.lane.b32.xlu1 %v2416_v17, %s13111_s19  ;;  %2781 = vrot.lane.b32.xlu0 %v2415_v24, %s13110_s18  ;;  %v2065_v3 = vpop.f32.mrb[19].mxu0  ;;  %v13908_v24 = vadd.s32 120, %v13539_v63  ;;  %v814_v14 = vsub.f32 %v13791_v15, %v778_v53  ;;  %v496_v0 = vadd.f32 0.5, %v460_v8  ;;  %vm850_vm0 = vcmp.lt.f32.partialorder %v13791_v15, 285.5  ;;  %vm13945_vm2 = vmand %vm849_vm11, %vm13921_vm13 }
 0x14a   : > { %v673_v43 = vadd.f32 0.5, %v13915_v34  ;;  %v13937_v10 = vsub.f32 %v458_v50, %v602_v49  ;;  %v2275_v9 = vmul.f32 0.01, %v2203_v32  ;;  %v2310_v12 = vsel %vm2238_vm14, %v2202_v30, %v2274_v36 }
 0x14b   : > { %v11503_v40 = vpop.f32.mrb[18].mxu1  ;;  %v17007_v54 = vcvt.s32.f32 %v13908_v24  ;;  %v779_v25 = vmul.f32 18.0, %v743_v5  ;;  %v744_v61 = vfloor.f32 %v708_v37  ;;  %vm13950_vm3 = vcmp.lt.f32.partialorder %v814_v14, 15.5 }
 0x14c   : > { %v11576_v35 = vpop.f32.mrb[20].mxu0  ;;  %v13928_v58 = vadd.f32 %v11573_v23, %v11503_v40  ;;  %v1664_v41 = vpop.f32.mrb[19].mxu1  ;;  %v17138_v23 = vmov 0  ;;  %vm2239_vm7 = vcmp.ge.f32.partialorder %v2203_v32, 0.0  ;;  %v532_v7 = vmul.f32 0.0029761905, %v496_v0  ;;  %vm13974_vm11 = vmand %vm850_vm0, %vm13950_vm3 }
 0x14d   : > { %2638 = vrot.lane.b32.xlu1 %v2416_v17, %s13112_s26  ;;  %2495 = vrot.lane.b32.xlu0 %v2417_v31, %s13111_s19  ;;  %v2075_v38 = vpop.f32.mrb[21].mxu0  ;;  %v13932_v16 = vadd.f32 %v2065_v3, %v1664_v41  ;;  %v17139_v23 = vsel %vm13945_vm2, 4294967295, %v17138_v23  ;;  %v13955_v22 = vadd.s32 128, %v13539_v63  ;;  %v603_v29 = vmul.f32 336.0, %v567_v21 }
 0x14e   : > { %17140 = vst [vmem:[#allocation6_spill] sm:$0xff] %v17139_v23  ;;  %v497_v30 = vadd.f32 0.5, %v17007_v54  ;;  %v2418_v53 = vsel %vm13945_vm2, %v2310_v12, 0.0  ;;  %v709_v49 = vmul.f32 0.055555556, %v673_v43  ;;  %v674_v36 = vadd.f32 0.5, %v13937_v10 }
 0x14f   : > { %v2204_v37 = vadd.f32 %v13744_v46, %v13617_v27  ;;  %v780_v62 = vmul.f32 18.0, %v744_v61  ;;  %v815_v40 = vsub.f32 %v13839_v28, %v779_v25  ;;  %v568_v46 = vfloor.f32 %v532_v7 }
 0x150   : > { %v11579_v6 = vpop.f32.mrb[22].mxu0  ;;  %v17006_v41 = vcvt.s32.f32 %v13955_v22  ;;  %vm851_vm13 = vcmp.lt.f32.partialorder %v13839_v28, 285.5  ;;  %v13986_v15 = vsub.f32 %v459_v18, %v603_v29  ;;  %v533_v43 = vmul.f32 0.0029761905, %v497_v30 }
 0x151   : > { %2783 = vrot.lane.b32.xlu1 %v2416_v17, %s13110_s18  ;;  %2640 = vrot.lane.b32.xlu0 %v2417_v31, %s13112_s26  ;;  %v2085_v42 = vpop.f32.mrb[23].mxu0  ;;  %v11506_v17 = vpop.f32.mrb[20].mxu1  ;;  %v710_v25 = vmul.f32 0.055555556, %v674_v36  ;;  %v2276_v50 = vmul.f32 0.01, %v2204_v37  ;;  %v816_v48 = vsub.f32 %v13880_v19, %v780_v62  ;;  %v2206_v45 = vadd.f32 %v13769_v52, %v13617_v27 }
 0x152   : > { %v13957_v39 = vadd.f32 %v11576_v35, %v11506_v17  ;;  %v1674_v3 = vpop.f32.mrb[21].mxu1  ;;  %v17143_v35 = vmov 0  ;;  %v2205_v17 = vadd.f32 %v13783_v2, %v13617_v27  ;;  %vm14000_vm14 = vcmp.lt.f32.partialorder %v815_v40, 15.5 }
 0x153   : > { %v13963_v33 = vadd.f32 %v2075_v38, %v1674_v3  ;;  %v17144_v35 = vsel %vm13974_vm11, 4294967295, %v17143_v35  ;;  %v2311_v38 = vsel %vm2239_vm7, %v2203_v32, %v2275_v9  ;;  %v11509_v0 = vpop.f32.mrb[22].mxu1  ;;  %v745_v9 = vfloor.f32 %v709_v49  ;;  %vm14018_vm7 = vmand %vm851_vm13, %vm14000_vm14 }
 0x154   : > { %v11582_v5 = vpop.f32.mrb[24].mxu0  ;;  %17145 = vst [vmem:[#allocation7_spill] sm:$0xff] %v17144_v35  ;;  %v1684_v21 = vpop.f32.mrb[23].mxu1  ;;  %v2419_v32 = vsel %vm13974_vm11, %v2311_v38, 0.0  ;;  %vm2240_vm0 = vcmp.ge.f32.partialorder %v2204_v37, 0.0  ;;  %v604_v3 = vmul.f32 336.0, %v568_v46  ;;  %v569_v36 = vfloor.f32 %v533_v43 }
 0x155   : > { %2497 = vrot.lane.b32.xlu1 %v2418_v53, %s13111_s19  ;;  %2785 = vrot.lane.b32.xlu0 %v2417_v31, %s13110_s18  ;;  %v2095_v14 = vpop.f32.mrb[25].mxu0  ;;  %v13982_v31 = vadd.f32 %v11579_v6, %v11509_v0  ;;  %v13990_v12 = vadd.f32 %v2085_v42, %v1684_v21  ;;  %v13998_v6 = vadd.s32 136, %v13539_v63  ;;  %v498_v2 = vadd.f32 0.5, %v17006_v41 }
 0x156   : > { %v675_v49 = vadd.f32 0.5, %v13986_v15  ;;  %v781_v38 = vmul.f32 18.0, %v745_v9  ;;  %v746_v62 = vfloor.f32 %v710_v25  ;;  %v2277_v21 = vmul.f32 0.01, %v2205_v17 }
 0x157   : > { %v11512_v42 = vpop.f32.mrb[24].mxu1  ;;  %v2312_v46 = vsel %vm2240_vm0, %v2204_v37, %v2276_v50  ;;  %vm14023_vm5 = vcmp.lt.f32.partialorder %v816_v48, 15.5  ;;  %vm2241_vm3 = vcmp.ge.f32.partialorder %v2205_v17, 0.0  ;;  %v14030_v25 = vsub.f32 %v460_v8, %v604_v3 }
 0x158   : > { %v11585_v61 = vpop.f32.mrb[26].mxu0  ;;  %v14006_v29 = vadd.f32 %v11582_v5, %v11512_v42  ;;  %v1694_v30 = vpop.f32.mrb[25].mxu1  ;;  %v17148_v5 = vmov 0  ;;  %v534_v28 = vmul.f32 0.0029761905, %v498_v2  ;;  %v14033_v7 = vadd.s32 144, %v13539_v63 }
 0x159   : > { %2642 = vrot.lane.b32.xlu1 %v2418_v53, %s13112_s26  ;;  %2499 = vrot.lane.b32.xlu0 %v2419_v32, %s13111_s19  ;;  %v2105_v18 = vpop.f32.mrb[27].mxu0  ;;  %v14010_v40 = vadd.f32 %v2095_v14, %v1694_v30  ;;  %v17149_v5 = vsel %vm14018_vm7, 4294967295, %v17148_v5  ;;  %v711_v50 = vmul.f32 0.055555556, %v675_v49  ;;  %v605_v48 = vmul.f32 336.0, %v569_v36 }
 0x15a   : > { %17150 = vst [vmem:[#allocation8_spill] sm:$0xff] %v17149_v5  ;;  %v2420_v30 = vsel %vm14018_vm7, %v2312_v46, 0.0  ;;  %v782_v41 = vmul.f32 18.0, %v746_v62  ;;  %vm17153_vm13 = vcmp.lt.f32.partialorder %v13880_v19, 285.5  ;;  %v17154_v8 = vmov 0 }
 0x15b   : > { %vm14049_vm14 = vmand %vm17153_vm13, %vm14023_vm5  ;;  %v17157_v2 = vcvt.s32.f32 %v13998_v6  ;;  %v676_v36 = vadd.f32 0.5, %v14030_v25  ;;  %v747_v19 = vfloor.f32 %v711_v50  ;;  %v2278_v62 = vmul.f32 0.01, %v2206_v45 }
 0x15c   : > { %v11588_v0 = vpop.f32.mrb[28].mxu0  ;;  %v17155_v8 = vsel %vm14049_vm14, 4294967295, %v17154_v8  ;;  %vm17167_vm13 = vcmp.ge.f32.partialorder %v2206_v45, 0.0  ;;  %vm17057_vm2 = vcmask 195744   ;;  %vm17206_vm9 = vcmask 130144  }
 0x15d   : > { %2787 = vrot.lane.b32.xlu1 %v2418_v53, %s13110_s18  ;;  %2644 = vrot.lane.b32.xlu0 %v2419_v32, %s13112_s26  ;;  %v2115_v14 = vpop.f32.mrb[29].mxu0  ;;  %v11515_v53 = vpop.f32.mrb[26].mxu1  ;;  %17156 = vst [vmem:[#allocation9_spill] sm:$0xff] %v17155_v8  ;;  %v499_v52 = vadd.f32 0.5, %v17157_v2  ;;  %v14072_v2 = vadd.s32 152, %v13539_v63  ;;  %vm17312_vm6 = vcmask 490496  }
 0x15e   : > { %v14035_v42 = vadd.f32 %v11585_v61, %v11515_v53  ;;  %v1704_v37 = vpop.f32.mrb[27].mxu1  ;;  %v2313_v61 = vsel %vm2241_vm3, %v2205_v17, %v2277_v21  ;;  %v17158_v17 = vcvt.s32.f32 %v13908_v24  ;;  %v818_v53 = vsub.f32 %v13937_v10, %v782_v41 }
 0x15f   : > { %v14039_v54 = vadd.f32 %v2105_v18, %v1704_v37  ;;  %v817_v18 = vsub.f32 %v13915_v34, %v781_v38  ;;  %v11518_v49 = vpop.f32.mrb[28].mxu1  ;;  %v2421_v38 = vsel %vm14049_vm14, %v2313_v61, 0.0  ;;  %v535_v41 = vmul.f32 0.0029761905, %v499_v52 }
 0x160   : > { %v11591_v9 = vpop.f32.mrb[30].mxu0  ;;  %v14060_v46 = vadd.f32 %v11588_v0, %v11518_v49  ;;  %v1714_v43 = vpop.f32.mrb[29].mxu1  ;;  %v14064_v21 = vsub.f32 %v17158_v17, %v605_v48  ;;  %v2207_v0 = vadd.f32 %v13821_v11, %v13617_v27  ;;  %v712_v48 = vmul.f32 0.055555556, %v676_v36 }
 0x161   : > { %2501 = vrot.lane.b32.xlu1 %v2420_v30, %s13111_s19  ;;  %2789 = vrot.lane.b32.xlu0 %v2419_v32, %s13110_s18  ;;  %v2125_v3 = vpop.f32.mrb[31].mxu0  ;;  %v570_v32 = vfloor.f32 %v534_v28  ;;  %v14069_v37 = vadd.f32 %v2115_v14, %v1714_v43  ;;  %vm14078_vm5 = vcmp.lt.f32.partialorder %v817_v18, 15.5  ;;  %v17161_v49 = vcvt.s32.f32 %v14033_v7 }
 0x162   : > { %v783_v17 = vmul.f32 18.0, %v747_v19  ;;  %v677_v5 = vadd.f32 0.5, %v14064_v21  ;;  %vm14088_vm0 = vcmp.lt.f32.partialorder %v818_v53, 15.5  ;;  %vm17164_vm3 = vcmp.lt.f32.partialorder %v13915_v34, 285.5 }
 0x163   : > { %v11521_v14 = vpop.f32.mrb[30].mxu1  ;;  %v606_v61 = vmul.f32 336.0, %v570_v32  ;;  %v500_v43 = vadd.f32 0.5, %v17161_v49  ;;  %v2279_v32 = vmul.f32 0.01, %v2207_v0  ;;  %vm14101_vm14 = vmand %vm17164_vm3, %vm14078_vm5  ;;  %v2314_v19 = vsel %vm17167_vm13, %v2206_v45, %v2278_v62 }
 0x164   : > { %v11594_v28 = vpop.f32.mrb[32].mxu0  ;;  %v14084_v8 = vadd.f32 %v11591_v9, %v11521_v14  ;;  %v1724_v11 = vpop.f32.mrb[31].mxu1  ;;  %v17165_v9 = vmov 0  ;;  %v571_v53 = vfloor.f32 %v535_v41  ;;  %v14107_v14 = vadd.s32 160, %v13539_v63 }
 0x165   : > { %2646 = vrot.lane.b32.xlu1 %v2420_v30, %s13112_s26  ;;  %2503 = vrot.lane.b32.xlu0 %v2421_v38, %s13111_s19  ;;  %v2135_v50 = vpop.f32.mrb[33].mxu0  ;;  %v14092_v52 = vadd.f32 %v2125_v3, %v1724_v11  ;;  %v17166_v9 = vsel %vm14101_vm14, 4294967295, %v17165_v9  ;;  %vm2243_vm7 = vcmp.ge.f32.partialorder %v2207_v0, 0.0  ;;  %v748_v49 = vfloor.f32 %v712_v48 }
 0x166   : > { %v17168_v11 = vcvt.s32.f32 %v13955_v22  ;;  %v536_v24 = vmul.f32 0.0029761905, %v500_v43  ;;  %v819_v34 = vsub.f32 %v13986_v15, %v783_v17  ;;  %v713_v4 = vmul.f32 0.055555556, %v677_v5 }
 0x167   : > { %v2422_v45 = vsel %vm14101_vm14, %v2314_v19, 0.0  ;;  %v17169_v41 = vcvt.s32.f32 %v14072_v2  ;;  %v2208_v22 = vadd.f32 %v13807_v13, %v13617_v27  ;;  %vm17170_vm5 = vcmp.lt.f32.partialorder %v13937_v10, 285.5 }
 0x168   : > { %v11597_v35 = vpop.f32.mrb[34].mxu0  ;;  %v14111_v36 = vsub.f32 %v17168_v11, %v606_v61  ;;  %vm14130_vm3 = vmand %vm17170_vm5, %vm14088_vm0  ;;  %v17171_v5 = vmov 0  ;;  %v784_v61 = vmul.f32 18.0, %v748_v49  ;;  %v572_v17 = vfloor.f32 %v536_v24 }
 0x169   : > { %2791 = vrot.lane.b32.xlu1 %v2420_v30, %s13110_s18  ;;  %2648 = vrot.lane.b32.xlu0 %v2421_v38, %s13112_s26  ;;  %v2145_v3 = vpop.f32.mrb[35].mxu0  ;;  %v11524_v30 = vpop.f32.mrb[32].mxu1  ;;  %v501_v48 = vadd.f32 0.5, %v17169_v41  ;;  %v17172_v5 = vsel %vm14130_vm3, 4294967295, %v17171_v5  ;;  %vm855_vm13 = vcmp.lt.f32.partialorder %v13986_v15, 285.5  ;;  %vm14138_vm14 = vcmp.lt.f32.partialorder %v819_v34, 15.5 }
 0x16a   : > { %v14114_v23 = vadd.f32 %v11594_v28, %v11524_v30  ;;  %v1734_v47 = vpop.f32.mrb[33].mxu1  ;;  %v607_v28 = vmul.f32 336.0, %v571_v53  ;;  %v678_v13 = vadd.f32 0.5, %v14111_v36  ;;  %v749_v10 = vfloor.f32 %v713_v4  ;;  %vm14173_vm5 = vmand %vm855_vm13, %vm14138_vm14 }
 0x16b   : > { %v14118_v62 = vadd.f32 %v2135_v50, %v1734_v47  ;;  %v2315_v47 = vsel %vm2243_vm7, %v2207_v0, %v2279_v32  ;;  %v466_v50 = vcvt.s32.f32 %v14107_v14  ;;  %v11527_v43 = vpop.f32.mrb[34].mxu1  ;;  %v537_v53 = vmul.f32 0.0029761905, %v501_v48 }
 0x16c   : > { %v14142_v18 = vadd.f32 %v11597_v35, %v11527_v43  ;;  %v1744_v19 = vpop.f32.mrb[35].mxu1  ;;  %v2423_v0 = vsel %vm14130_vm3, %v2315_v47, 0.0  ;;  %v14149_v49 = vadd.s32 168, %v13539_v63  ;;  %v2280_v30 = vmul.f32 0.01, %v2208_v22 }
 0x16d   : > { %2505 = vrot.lane.b32.xlu1 %v2422_v45, %s13111_s19  ;;  %2793 = vrot.lane.b32.xlu0 %v2421_v38, %s13110_s18  ;;  %v14146_v32 = vadd.f32 %v2145_v3, %v1744_v19  ;;  %v2209_v11 = vadd.f32 %v13851_v60, %v13617_v27  ;;  %v17175_v4 = vcvt.s32.f32 %v13998_v6  ;;  %v502_v3 = vadd.f32 0.5, %v466_v50 }
 0x16e   : > { %vm2244_vm7 = vcmp.ge.f32.partialorder %v2208_v22, 0.0  ;;  %v820_v24 = vsub.f32 %v14030_v25, %v784_v61  ;;  %v714_v34 = vmul.f32 0.055555556, %v678_v13  ;;  %v608_v41 = vmul.f32 336.0, %v572_v17 }
 0x16f   : > { %v14157_v35 = vsub.f32 %v17175_v4, %v607_v28  ;;  %v785_v48 = vmul.f32 18.0, %v749_v10  ;;  %v573_v60 = vfloor.f32 %v537_v53  ;;  %v467_v47 = vcvt.s32.f32 %v14149_v49 }
 0x170   : > { %v14165_v43 = vadd.s32 176, %v13539_v63  ;;  %v2281_v6 = vmul.f32 0.01, %v2209_v11  ;;  %v17176_v28 = vmov 0  ;;  %v2316_v61 = vsel %vm2244_vm7, %v2208_v22, %v2280_v30 }
 0x171   : > { %2650 = vrot.lane.b32.xlu1 %v2422_v45, %s13112_s26  ;;  %2507 = vrot.lane.b32.xlu0 %v2423_v0, %s13111_s19  ;;  %v17177_v28 = vsel %vm14173_vm5, 4294967295, %v17176_v28  ;;  %v679_v13 = vadd.f32 0.5, %v14157_v35  ;;  %v538_v17 = vmul.f32 0.0029761905, %v502_v3  ;;  %vm892_vm0 = vcmp.lt.f32.partialorder %v820_v24, 15.5 }
 0x172   : > { %vm2245_vm3 = vcmp.ge.f32.partialorder %v2209_v11, 0.0  ;;  %v750_v10 = vfloor.f32 %v714_v34  ;;  %v17178_v19 = vcvt.s32.f32 %v14033_v7  ;;  %v2424_v38 = vsel %vm14173_vm5, %v2316_v61, 0.0 }
 0x173   : > { %v609_v53 = vmul.f32 336.0, %v573_v60  ;;  %v503_v15 = vadd.f32 0.5, %v467_v47  ;;  %v17032_v4 = vcvt.s32.f32 %v14165_v43  ;;  %v2210_v22 = vadd.f32 %v13846_v26, %v13617_v27 }
 0x174   : > { %vm17179_vm14 = vcmp.lt.f32.partialorder %v14030_v25, 285.5  ;;  %v17180_v7 = vmov 0  ;;  %v2317_v30 = vsel %vm2245_vm3, %v2209_v11, %v2281_v6  ;;  %v821_v3 = vsub.f32 %v14064_v21, %v785_v48 }
 0x175   : > { %2795 = vrot.lane.b32.xlu1 %v2422_v45, %s13110_s18  ;;  %2652 = vrot.lane.b32.xlu0 %v2423_v0, %s13112_s26  ;;  %v14180_v45 = vsub.f32 %v17178_v19, %v608_v41  ;;  %vm14193_vm13 = vmand %vm17179_vm14, %vm892_vm0  ;;  %v574_v24 = vfloor.f32 %v538_v17  ;;  %v786_v34 = vmul.f32 18.0, %v750_v10  ;;  %v715_v41 = vmul.f32 0.055555556, %v679_v13 }
 0x176   : > { %v17181_v7 = vsel %vm14193_vm13, 4294967295, %v17180_v7  ;;  %vm857_vm7 = vcmp.lt.f32.partialorder %v14064_v21, 285.5  ;;  %v14201_v26 = vadd.s32 184, %v13539_v63  ;;  %v2425_v25 = vsel %vm14193_vm13, %v2317_v30, 0.0 }
 0x177   : > { %v680_v60 = vadd.f32 0.5, %v14180_v45  ;;  %v539_v11 = vmul.f32 0.0029761905, %v503_v15  ;;  %v504_v48 = vadd.f32 0.5, %v17032_v4  ;;  %v2282_v6 = vmul.f32 0.01, %v2210_v22 }
 0x178   : > { %v2211_v13 = vadd.f32 %v13883_v44, %v13617_v27  ;;  %vm893_vm3 = vcmp.lt.f32.partialorder %v821_v3, 15.5  ;;  %v610_v17 = vmul.f32 336.0, %v574_v24  ;;  %vm2246_vm0 = vcmp.ge.f32.partialorder %v2210_v22, 0.0 }
 0x179   : > { %2509 = vrot.lane.b32.xlu1 %v2424_v38, %s13111_s19  ;;  %2797 = vrot.lane.b32.xlu0 %v2423_v0, %s13110_s18  ;;  %v17182_v0 = vcvt.s32.f32 %v14072_v2  ;;  %v822_v10 = vsub.f32 %v14111_v36, %v786_v34  ;;  %v751_v2 = vfloor.f32 %v715_v41  ;;  %v716_v19 = vmul.f32 0.055555556, %v680_v60  ;;  %vm14223_vm13 = vmand %vm857_vm7, %vm893_vm3 }
 0x17a   : > { %v575_v30 = vfloor.f32 %v539_v11  ;;  %v2283_v44 = vmul.f32 0.01, %v2211_v13  ;;  %v17183_v3 = vmov 0  ;;  %v2318_v24 = vsel %vm2246_vm0, %v2210_v22, %v2282_v6 }
 0x17b   : > { %v14207_v61 = vsub.f32 %v17182_v0, %v609_v53  ;;  %v469_v53 = vcvt.s32.f32 %v14201_v26  ;;  %v540_v0 = vmul.f32 0.0029761905, %v504_v48  ;;  %v17184_v3 = vsel %vm14223_vm13, 4294967295, %v17183_v3 }
 0x17c   : > { %v14229_v34 = vsub.f32 %v466_v50, %v610_v17  ;;  %v14232_v41 = vadd.s32 192, %v13539_v63  ;;  %vm894_vm14 = vcmp.lt.f32.partialorder %v822_v10, 15.5  ;;  %vm2247_vm5 = vcmp.ge.f32.partialorder %v2211_v13, 0.0 }
 0x17d   : > { %2654 = vrot.lane.b32.xlu1 %v2424_v38, %s13112_s26  ;;  %2511 = vrot.lane.b32.xlu0 %v2425_v25, %s13111_s19  ;;  %v681_v15 = vadd.f32 0.5, %v14207_v61  ;;  %v787_v60 = vmul.f32 18.0, %v751_v2  ;;  %v505_v11 = vadd.f32 0.5, %v469_v53  ;;  %v2426_v21 = vsel %vm14223_vm13, %v2318_v24, 0.0 }
 0x17e   : > { %v611_v4 = vmul.f32 336.0, %v575_v30  ;;  %v576_v22 = vfloor.f32 %v540_v0  ;;  %v2212_v14 = vadd.f32 %v13865_v59, %v13617_v27  ;;  %vm17185_vm7 = vcmp.lt.f32.partialorder %v14111_v36, 285.5 }
 0x17f   : > { %v717_v48 = vmul.f32 0.055555556, %v681_v15  ;;  %vm14244_vm3 = vmand %vm17185_vm7, %vm894_vm14  ;;  %v17186_v50 = vmov 0  ;;  %v2319_v6 = vsel %vm2247_vm5, %v2211_v13, %v2283_v44  ;;  %v682_v17 = vadd.f32 0.5, %v14229_v34 }
 0x180   : > { %v17187_v50 = vsel %vm14244_vm3, 4294967295, %v17186_v50  ;;  %v470_v10 = vcvt.s32.f32 %v14232_v41  ;;  %v823_v2 = vsub.f32 %v14157_v35, %v787_v60  ;;  %v541_v15 = vmul.f32 0.0029761905, %v505_v11 }
 0x181   : > { %2799 = vrot.lane.b32.xlu1 %v2424_v38, %s13110_s18  ;;  %2656 = vrot.lane.b32.xlu0 %v2425_v25, %s13112_s26  ;;  %v752_v38 = vfloor.f32 %v716_v19  ;;  %v14252_v59 = vadd.s32 200, %v13539_v63  ;;  %v753_v36 = vfloor.f32 %v717_v48  ;;  %v14258_v30 = vsub.f32 %v467_v47, %v611_v4 }
 0x182   : > { %v612_v13 = vmul.f32 336.0, %v576_v22  ;;  %v2284_v0 = vmul.f32 0.01, %v2212_v14  ;;  %v2213_v44 = vadd.f32 %v13932_v16, %v13617_v27  ;;  %v718_v24 = vmul.f32 0.055555556, %v682_v17 }
 0x183   : > { %v788_v19 = vmul.f32 18.0, %v752_v38  ;;  %v506_v60 = vadd.f32 0.5, %v470_v10  ;;  %vm859_vm5 = vcmp.lt.f32.partialorder %v14157_v35, 285.5  ;;  %vm895_vm0 = vcmp.lt.f32.partialorder %v823_v2, 15.5 }
 0x184   : > { %vm2248_vm14 = vcmp.ge.f32.partialorder %v2212_v14, 0.0  ;;  %v577_v47 = vfloor.f32 %v541_v15  ;;  %v17039_v4 = vcvt.s32.f32 %v14252_v59  ;;  %v789_v38 = vmul.f32 18.0, %v753_v36  ;;  %vm14276_vm7 = vmand %vm859_vm5, %vm895_vm0 }
 0x185   : > { %2513 = vrot.lane.b32.xlu1 %v2426_v21, %s13111_s19  ;;  %2801 = vrot.lane.b32.xlu0 %v2425_v25, %s13110_s18  ;;  %v2427_v25 = vsel %vm14244_vm3, %v2319_v6, 0.0  ;;  %v824_v49 = vsub.f32 %v14180_v45, %v788_v19  ;;  %v683_v27 = vadd.f32 0.5, %v14258_v30  ;;  %v17188_v16 = vcvt.s32.f32 %v14165_v43 }
 0x186   : > { %v2285_v48 = vmul.f32 0.01, %v2213_v44  ;;  %v17189_v35 = vmov 0  ;;  %v2320_v22 = vsel %vm2248_vm14, %v2212_v14, %v2284_v0  ;;  %v754_v6 = vfloor.f32 %v718_v24  ;;  %v14292_v14 = vld [vmem:[%s17003_s6] ss:$0 sm:$0xff] }
 0x187   : > { %v14272_v11 = vsub.f32 %v17188_v16, %v612_v13  ;;  %v17190_v35 = vsel %vm14276_vm7, 4294967295, %v17189_v35  ;;  %v542_v17 = vmul.f32 0.0029761905, %v506_v60  ;;  %vm860_vm3 = vcmp.lt.f32.partialorder %v14180_v45, 285.5 }
 0x188   : > { %vm896_vm13 = vcmp.lt.f32.partialorder %v824_v49, 15.5  ;;  %vm2249_vm11 = vcmp.ge.f32.partialorder %v2213_v44, 0.0  ;;  %v14282_v43 = vadd.s32 208, %v13539_v63  ;;  %v613_v2 = vmul.f32 336.0, %v577_v47 }
 0x189   : > { %2658 = vrot.lane.b32.xlu1 %v2426_v21, %s13112_s26  ;;  %2515 = vrot.lane.b32.xlu0 %v2427_v25, %s13111_s19  ;;  %v2428_v19 = vsel %vm14276_vm7, %v2320_v22, 0.0  ;;  %v719_v15 = vmul.f32 0.055555556, %v683_v27  ;;  %v684_v36 = vadd.f32 0.5, %v14272_v11  ;;  %v2214_v45 = vadd.f32 %v14292_v14, %v13928_v58  ;;  %vm14298_vm5 = vmand %vm860_vm3, %vm896_vm13 }
 0x18a   : > { %v17191_v13 = vmov 0  ;;  %v2321_v0 = vsel %vm2249_vm11, %v2213_v44, %v2285_v48  ;;  %v825_v24 = vsub.f32 %v14207_v61, %v789_v38  ;;  %v790_v60 = vmul.f32 18.0, %v754_v6 }
 0x18b   : > { %v17192_v13 = vsel %vm14298_vm5, 4294967295, %v17191_v13  ;;  %v578_v49 = vfloor.f32 %v542_v17  ;;  %v17046_v47 = vcvt.s32.f32 %v14282_v43  ;;  %v14306_v27 = vsub.f32 %v469_v53, %v613_v2 }
 0x18c   : > { %v2429_v16 = vsel %vm14298_vm5, %v2321_v0, 0.0  ;;  %v720_v22 = vmul.f32 0.055555556, %v684_v36  ;;  %v2286_v44 = vmul.f32 0.01, %v2214_v45  ;;  %v2215_v38 = vadd.f32 %v14292_v14, %v13963_v33 }
 0x18d   : > { %2803 = vrot.lane.b32.xlu1 %v2426_v21, %s13110_s18  ;;  %2660 = vrot.lane.b32.xlu0 %v2427_v25, %s13112_s26  ;;  %v507_v21 = vadd.f32 0.5, %v17039_v4  ;;  %v14311_v4 = vadd.s32 216, %v13539_v63  ;;  %vm861_vm11 = vcmp.lt.f32.partialorder %v14207_v61, 285.5  ;;  %vm897_vm13 = vcmp.lt.f32.partialorder %v825_v24, 15.5 }
 0x18e   : > { %vm2250_vm3 = vcmp.ge.f32.partialorder %v2214_v45, 0.0  ;;  %v826_v26 = vsub.f32 %v14229_v34, %v790_v60  ;;  %v614_v53 = vmul.f32 336.0, %v578_v49  ;;  %v508_v48 = vadd.f32 0.5, %v17046_v47  ;;  %vm14325_vm0 = vmand %vm861_vm11, %vm897_vm13 }
 0x18f   : > { %v543_v58 = vmul.f32 0.0029761905, %v507_v21  ;;  %v685_v6 = vadd.f32 0.5, %v14306_v27  ;;  %v756_v2 = vfloor.f32 %v720_v22  ;;  %v17044_v33 = vcvt.s32.f32 %v14311_v4 }
 0x190   : > { %v17193_v61 = vmov 0  ;;  %v2322_v36 = vsel %vm2250_vm3, %v2214_v45, %v2286_v44  ;;  %vm862_vm14 = vcmp.lt.f32.partialorder %v14229_v34, 285.5  ;;  %v14331_v0 = vadd.s32 224, %v13539_v63 }
 0x191   : > { %2517 = vrot.lane.b32.xlu1 %v2428_v19, %s13111_s19  ;;  %2805 = vrot.lane.b32.xlu0 %v2427_v25, %s13110_s18  ;;  %v755_v25 = vfloor.f32 %v719_v15  ;;  %v579_v21 = vfloor.f32 %v543_v58  ;;  %v2287_v15 = vmul.f32 0.01, %v2215_v38  ;;  %v17194_v61 = vsel %vm14325_vm0, 4294967295, %v17193_v61 }
 0x192   : > { %vm898_vm5 = vcmp.lt.f32.partialorder %v826_v26, 15.5  ;;  %vm2251_vm7 = vcmp.ge.f32.partialorder %v2215_v38, 0.0  ;;  %v14335_v24 = vsub.f32 %v470_v10, %v614_v53  ;;  %v544_v60 = vmul.f32 0.0029761905, %v508_v48 }
 0x193   : > { %v791_v17 = vmul.f32 18.0, %v755_v25  ;;  %v2430_v49 = vsel %vm14325_vm0, %v2322_v36, 0.0  ;;  %v792_v58 = vmul.f32 18.0, %v756_v2  ;;  %v615_v25 = vmul.f32 336.0, %v579_v21  ;;  %vm14347_vm13 = vmand %vm862_vm14, %vm898_vm5 }
 0x194   : > { %v509_v45 = vadd.f32 0.5, %v17044_v33  ;;  %v2216_v22 = vadd.f32 %v14292_v14, %v13957_v39  ;;  %vm17045_vm11 = vcmask 130144   ;;  %v17195_v41 = vmov 0 }
 0x195   : > { %2662 = vrot.lane.b32.xlu1 %v2428_v19, %s13112_s26  ;;  %2519 = vrot.lane.b32.xlu0 %v2429_v16, %s13111_s19  ;;  %v17196_v41 = vsel %vm14347_vm13, 4294967295, %v17195_v41  ;;  %v2323_v10 = vsel %vm2251_vm7, %v2215_v38, %v2287_v15  ;;  %v17051_v44 = vcvt.s32.f32 %v14331_v0  ;;  %v827_v26 = vsub.f32 %v14258_v30, %v791_v17 }
 0x196   : > { %v686_v53 = vadd.f32 0.5, %v14335_v24  ;;  %v580_v48 = vfloor.f32 %v544_v60  ;;  %vm863_vm3 = vcmp.lt.f32.partialorder %v14258_v30, 285.5  ;;  %v2431_v34 = vsel %vm14347_vm13, %v2323_v10, 0.0 }
 0x197   : > { %v828_v2 = vsub.f32 %v14272_v11, %v792_v58  ;;  %v545_v38 = vmul.f32 0.0029761905, %v509_v45  ;;  %v14360_v21 = vadd.s32 232, %v13539_v63  ;;  %v2288_v17 = vmul.f32 0.01, %v2216_v22 }
 0x198   : > { %v2217_v15 = vadd.f32 %v14292_v14, %v13990_v12  ;;  %v17197_v36 = vcvt.s32.f32 %v14252_v59  ;;  %vm14372_vm7 = vcmp.lt.f32.partialorder %v827_v26, 15.5  ;;  %vm2252_vm5 = vcmp.ge.f32.partialorder %v2216_v22, 0.0 }
 0x199   : > { %2807 = vrot.lane.b32.xlu1 %v2428_v19, %s13110_s18  ;;  %2664 = vrot.lane.b32.xlu0 %v2429_v16, %s13112_s26  ;;  %v721_v19 = vmul.f32 0.055555556, %v685_v6  ;;  %v722_v45 = vmul.f32 0.055555556, %v686_v53  ;;  %v616_v10 = vmul.f32 336.0, %v580_v48  ;;  %v581_v59 = vfloor.f32 %v545_v38  ;;  %vm14391_vm14 = vmand %vm863_vm3, %vm14372_vm7 }
 0x19a   : > { %v14368_v60 = vsub.f32 %v17197_v36, %v615_v25  ;;  %v14383_v26 = vadd.s32 240, %v13539_v63  ;;  %v2289_v36 = vmul.f32 0.01, %v2217_v15  ;;  %v17202_v53 = vmov 0  ;;  %vm17207_vm3 = vmmov %vm17206_vm9 }
 0x19b   : > { %v17203_v53 = vsel %vm14391_vm14, 4294967295, %v17202_v53  ;;  %v2324_v48 = vsel %vm2252_vm5, %v2216_v22, %v2288_v17  ;;  %vm17062_vm13 = vcmask 162944   ;;  %vm2253_vm0 = vcmp.ge.f32.partialorder %v2217_v15, 0.0 }
 0x19c   : > { %17204 = vst [vmem:[#allocation10_spill] sm:$0xff] %v17203_v53  ;;  %v758_v38 = vfloor.f32 %v722_v45  ;;  %v2432_v30 = vsel %vm14391_vm14, %v2324_v48, 0.0  ;;  %v617_v22 = vmul.f32 336.0, %v581_v59  ;;  %v17208_v17 = vcvt.s32.f32 %v14360_v21 }
 0x19d   : > { %2521 = vrot.lane.b32.xlu1 %v2430_v49, %s13111_s19  ;;  %2809 = vrot.lane.b32.xlu0 %v2429_v16, %s13110_s18  ;;  %v757_v16 = vfloor.f32 %v721_v19  ;;  %v510_v19 = vadd.f32 0.5, %v17051_v44  ;;  %v17056_v45 = vcvt.s32.f32 %v14383_v26  ;;  %v2325_v59 = vsel %vm2253_vm0, %v2217_v15, %v2289_v36 }
 0x19e   : > { %vm865_vm5 = vcmp.lt.f32.partialorder %v14306_v27, 285.5  ;;  %v17213_v15 = vcvt.s32.f32 %v14311_v4 }
 0x19f   : > { %v2776_v39 = vpop.permute.xlu1 %2775  ;;  %v2486_v6 = vpop.permute.xlu0 %2485  ;;  %v793_v33 = vmul.f32 18.0, %v757_v16  ;;  %v687_v16 = vadd.f32 0.5, %v14368_v60  ;;  %v512_v36 = vadd.f32 0.5, %v17056_v45 }
 0x1a0   : > { %2593 = vst.msk [vmem:[#allocation2 + $0x20] sm:$0xff] %vm17045_vm11, %v2486_v6  ;;  %vm14377_vm11 = vcmp.lt.f32.partialorder %v828_v2, 15.5  ;;  %v546_v2 = vmul.f32 0.0029761905, %v510_v19  ;;  %v511_v19 = vadd.f32 0.5, %v17208_v17 }
 0x1a1   : > { %2666 = vrot.lane.b32.xlu1 %v2430_v49, %s13112_s26  ;;  %2523 = vrot.lane.b32.xlu0 %v2431_v34, %s13111_s19 }
 0x1a3   : > { %v2631_v6 = vpop.permute.xlu0 %2630  ;;  %v2629_v12 = vpop.permute.xlu1 %2628 }
 0x1a5   : > { %2811 = vrot.lane.b32.xlu1 %v2430_v49, %s13110_s18  ;;  %2668 = vrot.lane.b32.xlu0 %v2431_v34, %s13112_s26  ;;  %v17205_v49 = vcvt.s32.f32 %v14282_v43  ;;  %v2218_v43 = vadd.f32 %v14292_v14, %v13982_v31  ;;  %v582_v31 = vfloor.f32 %v546_v2  ;;  %v2219_v2 = vadd.f32 %v14292_v14, %v14010_v40 }
 0x1a7   : > { %v14399_v44 = vsub.f32 %v17205_v49, %v616_v10  ;;  %v2484_v25 = vpop.permute.xlu0 %2483  ;;  %v2490_v58 = vpop.permute.xlu1 %2489  ;;  %v17210_v10 = vmov 0  ;;  %v2291_v45 = vmul.f32 0.01, %v2219_v2 }
 0x1a8   : > { %2592 = vst.msk [vmem:[#allocation2 + $0x18] sm:$0xff] %vm17206_vm9, %v2484_v25  ;;  %vm17209_vm9 = vcmp.lt.f32.partialorder %v14272_v11, 285.5  ;;  %v723_v25 = vmul.f32 0.055555556, %v687_v16  ;;  %v14428_v11 = vadd.s32 248, %v13539_v63 }
 0x1a9   : > { %2595 = vst.msk [vmem:[#allocation2 + $0x30] sm:$0xff] %vm17207_vm3, %v2490_v58  ;;  %2525 = vrot.lane.b32.xlu1 %v2432_v30, %s13111_s19  ;;  %2813 = vrot.lane.b32.xlu0 %v2431_v34, %s13110_s18  ;;  %vm14418_vm7 = vmand %vm17209_vm9, %vm14377_vm11  ;;  %v688_v48 = vadd.f32 0.5, %v14399_v44  ;;  %v2290_v16 = vmul.f32 0.01, %v2218_v43  ;;  %v618_v58 = vmul.f32 336.0, %v582_v31  ;;  %vm2254_vm11 = vcmp.ge.f32.partialorder %v2218_v43, 0.0 }
 0x1aa   : > { %2738 = vst.msk [vmem:[#allocation2 + $0x1f] sm:$0xff] %vm17062_vm13, %v2631_v6  ;;  %2737 = vst.msk [vmem:[#allocation2 + $0x17] sm:$0xff] %vm17062_vm13, %v2629_v12  ;;  %v17211_v10 = vsel %vm14418_vm7, 4294967295, %v17210_v10  ;;  %v829_v6 = vsub.f32 %v14306_v27, %v793_v33  ;;  %v794_v12 = vmul.f32 18.0, %v758_v38  ;;  %v2433_v47 = vsel %vm14418_vm7, %v2325_v59, 0.0 }
 0x1ab   : > { %17212 = vst [vmem:[#allocation11_spill] sm:$0xff] %v17211_v10  ;;  %2883 = vst.msk [vmem:[#allocation2 + $0x1e] sm:$0xff] %vm17057_vm2, %v2776_v39  ;;  %v2774_v34 = vpop.permute.xlu0 %2773  ;;  %v2635_v49 = vpop.permute.xlu1 %2634  ;;  %v14435_v39 = vsub.f32 %v17213_v15, %v617_v22  ;;  %v547_v33 = vmul.f32 0.0029761905, %v511_v19  ;;  %v759_v38 = vfloor.f32 %v723_v25  ;;  %v724_v22 = vmul.f32 0.055555556, %v688_v48 }
 0x1ac   : > { %2882 = vst.msk [vmem:[#allocation2 + $0x16] sm:$0xff] %vm17057_vm2, %v2774_v34  ;;  %vm901_vm0 = vcmp.lt.f32.partialorder %v829_v6, 15.5  ;;  %v830_v4 = vsub.f32 %v14335_v24, %v794_v12  ;;  %v548_v15 = vmul.f32 0.0029761905, %v512_v36  ;;  %v17214_v25 = vmov 0 }
 0x1ad   : > { %2670 = vrot.lane.b32.xlu1 %v2432_v30, %s13112_s26  ;;  %2527 = vrot.lane.b32.xlu0 %v2433_v47, %s13111_s19  ;;  %v689_v34 = vadd.f32 0.5, %v14435_v39  ;;  %v583_v40 = vfloor.f32 %v547_v33  ;;  %vm14451_vm9 = vmand %vm865_vm5, %vm901_vm0  ;;  %v2326_v31 = vsel %vm2254_vm11, %v2218_v43, %v2290_v16  ;;  %v795_v6 = vmul.f32 18.0, %v759_v38 }
 0x1ae   : > { %v17215_v25 = vsel %vm14451_vm9, 4294967295, %v17214_v25  ;;  %v17216_v12 = vcvt.s32.f32 %v14331_v0  ;;  %vm14459_vm2 = vcmp.lt.f32.partialorder %v830_v4, 15.5  ;;  %vm2255_vm3 = vcmp.ge.f32.partialorder %v2219_v2, 0.0 }
 0x1af   : > { %v2780_v17 = vpop.permute.xlu1 %2779  ;;  %v2778_v19 = vpop.permute.xlu0 %2777  ;;  %v14464_v36 = vadd.s32 256, %v13539_v63  ;;  %v17219_v53 = vcvt.s32.f32 %v14428_v11  ;;  %vm17220_vm5 = vcmask 130144   ;;  %vm17222_vm11 = vcmask 490496  }
 0x1b0   : > { %v14457_v48 = vsub.f32 %v17216_v12, %v618_v58  ;;  %vm17221_vm0 = vmmov %vm17220_vm5  ;;  %v2434_v0 = vsel %vm14451_vm9, %v2326_v31, 0.0  ;;  %v725_v16 = vmul.f32 0.055555556, %v689_v34  ;;  %v619_v38 = vmul.f32 336.0, %v583_v40 }
 0x1b1   : > { %2815 = vrot.lane.b32.xlu1 %v2432_v30, %s13110_s18  ;;  %2672 = vrot.lane.b32.xlu0 %v2433_v47, %s13112_s26  ;;  %v760_v30 = vfloor.f32 %v724_v22  ;;  %v513_v43 = vadd.f32 0.5, %v17219_v53  ;;  %v584_v58 = vfloor.f32 %v548_v15  ;;  %v2220_v4 = vadd.f32 %v14292_v14, %v14006_v29 }
 0x1b2   : > { %v17224_v53 = vmov 0  ;;  %v690_v22 = vadd.f32 0.5, %v14457_v48  ;;  %v831_v29 = vsub.f32 %v14368_v60, %v795_v6  ;;  %v2221_v12 = vadd.f32 %v14292_v14, %v14039_v54 }
 0x1b3   : > { %v2488_v27 = vpop.permute.xlu1 %2487  ;;  %v2492_v59 = vpop.permute.xlu0 %2491  ;;  %v2962_v10 = vld [vmem:[#allocation2 + $0x17] sm:$0xff]  ;;  %v620_v31 = vmul.f32 336.0, %v584_v58  ;;  %v2292_v6 = vmul.f32 0.01, %v2220_v4 }
 0x1b4   : > { %2594 = vst.msk [vmem:[#allocation2 + $0x28] sm:$0xff] %vm17220_vm5, %v2488_v27  ;;  %11614 = vmatprep.mubr.msk.f32.mxu1 %vm17222_vm11, %v2962_v10  ;;  %vm17223_vm5 = vcmp.lt.f32.partialorder %v14335_v24, 285.5  ;;  %v2327_v10 = vsel %vm2255_vm3, %v2219_v2, %v2291_v45  ;;  %vm867_vm11 = vcmp.lt.f32.partialorder %v14368_v60, 285.5  ;;  %v761_v45 = vfloor.f32 %v725_v16  ;;  %v2954_v16 = vld [vmem:[%s16999_s2] sm:$0xff] }
 0x1b5   : > { %2596 = vst.msk [vmem:[#allocation2 + $0x38] sm:$0xff] %vm17221_vm0, %v2492_v59  ;;  %2529 = vrot.lane.b32.xlu1 %v2434_v0, %s13111_s19  ;;  %2817 = vrot.lane.b32.xlu0 %v2433_v47, %s13110_s18  ;;  %vm14482_vm0 = vmand %vm17223_vm5, %vm14459_vm2  ;;  %v796_v59 = vmul.f32 18.0, %v760_v30  ;;  %v549_v47 = vmul.f32 0.0029761905, %v513_v43  ;;  %v17226_v2 = vcvt.s32.f32 %v14360_v21  ;;  %vm17227_vm2 = vcmask 195744  }
 0x1b6   : > { %2740 = vst.msk [vmem:[#allocation2 + $0x2f] sm:$0xff] %vm17062_vm13, %v2635_v49  ;;  %v17225_v53 = vsel %vm14482_vm0, 4294967295, %v17224_v53  ;;  %v478_v49 = vcvt.s32.f32 %v14464_v36  ;;  %v2435_v24 = vsel %vm14482_vm0, %v2327_v10, 0.0  ;;  %vm17228_vm3 = vmmov %vm17227_vm2  ;;  %v726_v33 = vmul.f32 0.055555556, %v690_v22 }
 0x1b7   : > { %v2633_v34 = vpop.permute.xlu1 %2632  ;;  %v2637_v40 = vpop.permute.xlu0 %2636  ;;  %v14497_v15 = vsub.f32 %v17226_v2, %v619_v38  ;;  %v14506_v30 = vadd.s32 264, %v13539_v63  ;;  %vm14508_vm5 = vcmp.lt.f32.partialorder %v831_v29, 15.5  ;;  %v832_v27 = vsub.f32 %v14399_v44, %v796_v59  ;;  %v2955_v38 = vld [vmem:[%s16999_s2 + $0x8] sm:$0xff] }
 0x1b8   : > { %2739 = vst.msk [vmem:[#allocation2 + $0x27] sm:$0xff] %vm17062_vm13, %v2633_v34  ;;  %2741 = vst.msk [vmem:[#allocation2 + $0x37] sm:$0xff] %vm17062_vm13, %v2637_v40  ;;  %v514_v54 = vadd.f32 0.5, %v478_v49  ;;  %v585_v43 = vfloor.f32 %v549_v47  ;;  %v797_v58 = vmul.f32 18.0, %v761_v45  ;;  %v17233_v22 = vcvt.s32.f32 %v14383_v26 }
 0x1b9   : > { %2884 = vst.msk [vmem:[#allocation2 + $0x26] sm:$0xff] %vm17227_vm2, %v2778_v19  ;;  %2674 = vrot.lane.b32.xlu1 %v2434_v0, %s13112_s26  ;;  %2531 = vrot.lane.b32.xlu0 %v2435_v24, %s13111_s19  ;;  %vm17232_vm13 = vmmov %vm17227_vm2  ;;  %v691_v10 = vadd.f32 0.5, %v14497_v15  ;;  %v12510_v59 = vpack.c.bf16 %v2955_v38, %v2954_v16  ;;  %v2293_v34 = vmul.f32 0.01, %v2221_v12  ;;  %v17234_v40 = vmov 0 }
 0x1ba   : > { %2885 = vst.msk [vmem:[#allocation2 + $0x2e] sm:$0xff] %vm17228_vm3, %v2780_v17  ;;  %vm17231_vm3 = vcmask 130144   ;;  %v14527_v29 = vsub.f32 %v17233_v22, %v620_v31  ;;  %v762_v45 = vfloor.f32 %v726_v33  ;;  %v479_v26 = vcvt.s32.f32 %v14506_v30 }
 0x1bb   : > { %v2494_v19 = vpop.permute.xlu1 %2493  ;;  %v2782_v17 = vpop.permute.xlu0 %2781  ;;  %vm14541_vm2 = vcmp.lt.f32.partialorder %v832_v27, 15.5  ;;  %vm2257_vm0 = vcmp.ge.f32.partialorder %v2221_v12, 0.0  ;;  %v14546_v31 = vadd.s32 272, %v13539_v63  ;;  %12511 = vmatprep.subr.bf16.mxu1 %v12510_v59  ;;  %v727_v33 = vmul.f32 0.055555556, %v691_v10 }
 0x1bc   : > { %2597 = vst.msk [vmem:[#allocation2 + $0x40] sm:$0xff] %vm17231_vm3, %v2494_v19  ;;  %vm14535_vm3 = vmand %vm867_vm11, %vm14508_vm5  ;;  %v621_v19 = vmul.f32 336.0, %v585_v43  ;;  %vm17239_vm11 = vcmask 162944   ;;  %vm17240_vm5 = vcmask 130144   ;;  %v692_v27 = vadd.f32 0.5, %v14527_v29 }
 0x1bd   : > { %2886 = vst.msk [vmem:[#allocation2 + $0x36] sm:$0xff] %vm17232_vm13, %v2782_v17  ;;  %2819 = vrot.lane.b32.xlu1 %v2434_v0, %s13110_s18  ;;  %2676 = vrot.lane.b32.xlu0 %v2435_v24, %s13112_s26  ;;  %v17235_v40 = vsel %vm14535_vm3, 4294967295, %v17234_v40  ;;  %vm17236_vm13 = vcmp.ge.f32.partialorder %v2220_v4, 0.0  ;;  %v550_v0 = vmul.f32 0.0029761905, %v514_v54  ;;  %v2222_v54 = vadd.f32 %v14292_v14, %v14035_v42 }
 0x1be   : > { %v2328_v47 = vsel %vm17236_vm13, %v2220_v4, %v2292_v6  ;;  %v833_v6 = vsub.f32 %v14435_v39, %v797_v58  ;;  %vm17241_vm13 = vcmp.lt.f32.partialorder %v14399_v44, 285.5  ;;  %v17242_v16 = vmov 0 }
 0x1bf   : > { %v2639_v60 = vpop.permute.xlu1 %2638  ;;  %v2496_v21 = vpop.permute.xlu0 %2495  ;;  %v2436_v4 = vsel %vm14535_vm3, %v2328_v47, 0.0  ;;  %v2329_v38 = vsel %vm2257_vm0, %v2221_v12, %v2293_v34  ;;  %v798_v58 = vmul.f32 18.0, %v762_v45  ;;  %v515_v42 = vadd.f32 0.5, %v479_v26 }
 0x1c0   : > { %2742 = vst.msk [vmem:[#allocation2 + $0x3f] sm:$0xff] %vm17239_vm11, %v2639_v60  ;;  %v2963_v17 = vld [vmem:[#allocation2 + $0x1f] sm:$0xff]  ;;  %vm14562_vm11 = vmand %vm17241_vm13, %vm14541_vm2  ;;  %v586_v10 = vfloor.f32 %v550_v0  ;;  %v17246_v2 = vcvt.s32.f32 %v14428_v11  ;;  %vm17247_vm0 = vcmask 195744   ;;  %vm17248_vm13 = vcmask 162944  }
 0x1c1   : > { %2598 = vst.msk [vmem:[#allocation2 + $0x48] sm:$0xff] %vm17240_vm5, %v2496_v21  ;;  %2533 = vrot.lane.b32.xlu1 %v2436_v4, %s13111_s19  ;;  %2821 = vrot.lane.b32.xlu0 %v2435_v24, %s13110_s18  ;;  %v2964_v43 = vld [vmem:[#allocation2 + $0x27] sm:$0xff]  ;;  %v17243_v16 = vsel %vm14562_vm11, 4294967295, %v17242_v16  ;;  %vm17244_vm5 = vcmask 490496   ;;  %v480_v24 = vcvt.s32.f32 %v14546_v31  ;;  %v2437_v12 = vsel %vm14562_vm11, %v2329_v38, 0.0  ;;  %vm17252_vm2 = vmmov %vm17247_vm0 }
 0x1c2   : > { %11615 = vmatmul.mubr.msk.f32.vlgmr.msra.gmra.mrb[36].mxu1 %vm17244_vm5, %v2963_v17  ;;  %vm17245_vm3 = vmmov %vm17244_vm5  ;;  %v14575_v60 = vsub.f32 %v17246_v2, %v621_v19  ;;  %vm14581_vm5 = vcmp.lt.f32.partialorder %v833_v6, 15.5  ;;  %v763_v45 = vfloor.f32 %v727_v33  ;;  %v728_v0 = vmul.f32 0.055555556, %v692_v27 }
 0x1c3   : > { %11617 = vmatprep.mubr.msk.f32.mxu1 %vm17245_vm3, %v2964_v43  ;;  %v2784_v22 = vpop.permute.xlu1 %2783  ;;  %v2641_v47 = vpop.permute.xlu0 %2640  ;;  %12513 = vmatpush3.bf16.msra.mxu1 %v12510_v59  ;;  %v2294_v21 = vmul.f32 0.01, %v2222_v54  ;;  %v2223_v11 = vadd.f32 %v14292_v14, %v14069_v37  ;;  %v834_v59 = vsub.f32 %v14457_v48, %v798_v58  ;;  %v551_v19 = vmul.f32 0.0029761905, %v515_v42 }
 0x1c4   : > { %v2965_v44 = vld [vmem:[#allocation2 + $0x2f] sm:$0xff]  ;;  %2887 = vst.msk [vmem:[#allocation2 + $0x3e] sm:$0xff] %vm17247_vm0, %v2784_v22  ;;  %v622_v6 = vmul.f32 336.0, %v586_v10  ;;  %v516_v17 = vadd.f32 0.5, %v480_v24  ;;  %v14594_v33 = vadd.s32 280, %v13539_v63  ;;  %v799_v37 = vmul.f32 18.0, %v763_v45 }
 0x1c5   : > { %2743 = vst.msk [vmem:[#allocation2 + $0x47] sm:$0xff] %vm17248_vm13, %v2641_v47  ;;  %2678 = vrot.lane.b32.xlu1 %v2436_v4, %s13112_s26  ;;  %2535 = vrot.lane.b32.xlu0 %v2437_v12, %s13111_s19  ;;  %vm17251_vm13 = vcmask 130144   ;;  %v764_v38 = vfloor.f32 %v728_v0  ;;  %v693_v58 = vadd.f32 0.5, %v14575_v60  ;;  %v2295_v42 = vmul.f32 0.01, %v2223_v11 }
 0x1c6   : > { %11618 = vmatmul.mubr.msk.f32.gmra.mrb[38].mxu1 %vm17245_vm3, %v2965_v44  ;;  %vm17253_vm3 = vcmp.lt.f32.partialorder %v14435_v39, 285.5  ;;  %v17254_v63 = vmov 0  ;;  %v587_v47 = vfloor.f32 %v551_v19  ;;  %v552_v44 = vmul.f32 0.0029761905, %v516_v17 }
 0x1c7   : > { %v2498_v27 = vpop.permute.xlu1 %2497  ;;  %v2786_v43 = vpop.permute.xlu0 %2785  ;;  %vm14606_vm0 = vmand %vm17253_vm3, %vm14581_vm5  ;;  %v481_v2 = vcvt.s32.f32 %v14594_v33  ;;  %vm17259_vm5 = vcmask 162944   ;;  %vm17260_vm3 = vcmask 130144   ;;  %v800_v0 = vmul.f32 18.0, %v764_v38 }
 0x1c8   : > { %2599 = vst.msk [vmem:[#allocation2 + $0x50] sm:$0xff] %vm17251_vm13, %v2498_v27  ;;  %v17255_v63 = vsel %vm14606_vm0, 4294967295, %v17254_v63  ;;  %vm14611_vm13 = vcmp.lt.f32.partialorder %v834_v59, 15.5  ;;  %v2224_v36 = vadd.f32 %v14292_v14, %v14060_v46  ;;  %v835_v19 = vsub.f32 %v14497_v15, %v799_v37 }
 0x1c9   : > { %2888 = vst.msk [vmem:[#allocation2 + $0x46] sm:$0xff] %vm17252_vm2, %v2786_v43  ;;  %2823 = vrot.lane.b32.xlu1 %v2436_v4, %s13110_s18  ;;  %2680 = vrot.lane.b32.xlu0 %v2437_v12, %s13112_s26  ;;  %vm17256_vm2 = vcmp.ge.f32.partialorder %v2222_v54, 0.0  ;;  %v14617_v4 = vsub.f32 %v478_v49, %v622_v6  ;;  %v17263_v49 = vmov 0  ;;  %v623_v6 = vmul.f32 336.0, %v587_v47 }
 0x1ca   : > { %v2330_v10 = vsel %vm17256_vm2, %v2222_v54, %v2294_v21  ;;  %vm17261_vm2 = vcmask 490496   ;;  %v729_v21 = vmul.f32 0.055555556, %v693_v58  ;;  %v588_v46 = vfloor.f32 %v552_v44 }
 0x1cb   : > { %v2643_v39 = vpop.permute.xlu1 %2642  ;;  %v2500_v34 = vpop.permute.xlu0 %2499  ;;  %v2966_v45 = vld [vmem:[#allocation2 + $0x37] sm:$0xff]  ;;  %v2438_v54 = vsel %vm14606_vm0, %v2330_v10, 0.0  ;;  %v694_v17 = vadd.f32 0.5, %v14617_v4  ;;  %v517_v27 = vadd.f32 0.5, %v481_v2  ;;  %v2296_v58 = vmul.f32 0.01, %v2224_v36 }
 0x1cc   : > { %2744 = vst.msk [vmem:[#allocation2 + $0x4f] sm:$0xff] %vm17259_vm5, %v2643_v39  ;;  %11620 = vmatprep.mubr.msk.f32.mxu1 %vm17261_vm2, %v2966_v45  ;;  %vm17262_vm5 = vcmp.lt.f32.partialorder %v14457_v48, 285.5  ;;  %vm17266_vm2 = vcmask 195744   ;;  %v765_v37 = vfloor.f32 %v729_v21  ;;  %v14659_v22 = vsub.f32 %v479_v26, %v623_v6 }
 0x1cd   : > { %2600 = vst.msk [vmem:[#allocation2 + $0x58] sm:$0xff] %vm17260_vm3, %v2500_v34  ;;  %2537 = vrot.lane.b32.xlu1 %v2438_v54, %s13111_s19  ;;  %2825 = vrot.lane.b32.xlu0 %v2437_v12, %s13110_s18  ;;  %vm14633_vm11 = vmand %vm17262_vm5, %vm14611_vm13  ;;  %vm17265_vm3 = vcmp.ge.f32.partialorder %v2223_v11, 0.0  ;;  %vm17267_vm13 = vcmask 162944   ;;  %vm17268_vm5 = vcmask 490496   ;;  %v730_v47 = vmul.f32 0.055555556, %v694_v17 }
 0x1ce   : > { %v17264_v49 = vsel %vm14633_vm11, 4294967295, %v17263_v49  ;;  %v2331_v59 = vsel %vm17265_vm3, %v2223_v11, %v2295_v42  ;;  %v836_v11 = vsub.f32 %v14527_v29, %v800_v0  ;;  %v2225_v42 = vadd.f32 %v14292_v14, %v14092_v52  ;;  %v2956_v52 = vld [vmem:[%s16999_s2 + $0x10] sm:$0xff]  ;;  %v2957_v0 = vld [vmem:[%s16999_s2 + $0x18] sm:$0xff] }
 0x1cf   : > { %v2788_v12 = vpop.permute.xlu1 %2787  ;;  %v2645_v43 = vpop.permute.xlu0 %2644  ;;  %v2439_v48 = vsel %vm14633_vm11, %v2331_v59, 0.0  ;;  %v624_v44 = vmul.f32 336.0, %v588_v46  ;;  %v553_v39 = vmul.f32 0.0029761905, %v517_v27  ;;  %vm17272_vm3 = vcmask 195744  }
 0x1d0   : > { %v2967_v38 = vld [vmem:[#allocation2 + $0x3f] sm:$0xff]  ;;  %2889 = vst.msk [vmem:[#allocation2 + $0x4e] sm:$0xff] %vm17266_vm2, %v2788_v12  ;;  %vm14653_vm2 = vcmp.lt.f32.partialorder %v835_v19, 15.5  ;;  %v801_v30 = vmul.f32 18.0, %v765_v37  ;;  %v12514_v26 = vpack.c.bf16 %v2957_v0, %v2956_v52  ;;  %v2297_v21 = vmul.f32 0.01, %v2225_v42 }
 0x1d1   : > { %2745 = vst.msk [vmem:[#allocation2 + $0x57] sm:$0xff] %vm17267_vm13, %v2645_v43  ;;  %11621 = vmatmul.mubr.msk.f32.gmra.mrb[40].mxu1 %vm17268_vm5, %v2967_v38  ;;  %2682 = vrot.lane.b32.xlu1 %v2438_v54, %s13112_s26  ;;  %vm17271_vm5 = vcmask 130144   ;;  %vm17273_vm13 = vcmp.lt.f32.partialorder %v14497_v15, 285.5  ;;  %v17274_v59 = vmov 0  ;;  %v695_v17 = vadd.f32 0.5, %v14659_v22 }
 0x1d2   : > { %2539 = vrot.lane.b32.xlu0 %v2439_v48, %s13111_s19  ;;  %vm14676_vm0 = vmand %vm17273_vm13, %vm14653_vm2  ;;  %v14688_v46 = vsub.f32 %v480_v24, %v624_v44  ;;  %v589_v27 = vfloor.f32 %v553_v39  ;;  %12515 = vmatprep.subr.bf16.mxu1 %v12514_v26  ;;  %vm17279_vm2 = vcmask 162944   ;;  %vm17280_vm13 = vcmask 130144  }
 0x1d3   : > { %v2502_v34 = vpop.permute.xlu1 %2501  ;;  %v2790_v45 = vpop.permute.xlu0 %2789  ;;  %v17275_v59 = vsel %vm14676_vm0, 4294967295, %v17274_v59  ;;  %12517 = vmatpush3.bf16.msra.mxu1 %v12514_v26  ;;  %v2226_v31 = vadd.f32 %v14292_v14, %v14084_v8  ;;  %vm17282_vm11 = vcmp.lt.f32.partialorder %v14527_v29, 285.5  ;;  %v17283_v24 = vmov 0 }
 0x1d4   : > { %2601 = vst.msk [vmem:[#allocation2 + $0x60] sm:$0xff] %vm17271_vm5, %v2502_v34  ;;  %vm17276_vm5 = vcmp.ge.f32.partialorder %v2224_v36, 0.0  ;;  %v731_v37 = vmul.f32 0.055555556, %v695_v17  ;;  %v696_v8 = vadd.f32 0.5, %v14688_v46  ;;  %v625_v10 = vmul.f32 336.0, %v589_v27 }
 0x1d5   : > { %2890 = vst.msk [vmem:[#allocation2 + $0x56] sm:$0xff] %vm17272_vm3, %v2790_v45  ;;  %2827 = vrot.lane.b32.xlu1 %v2438_v54, %s13110_s18  ;;  %v2332_v19 = vsel %vm17276_vm5, %v2224_v36, %v2296_v58  ;;  %vm14681_vm3 = vcmp.lt.f32.partialorder %v836_v11, 15.5  ;;  %v766_v54 = vfloor.f32 %v730_v47  ;;  %vm17281_vm5 = vcmask 490496  }
 0x1d6   : > { %2684 = vrot.lane.b32.xlu0 %v2439_v48, %s13112_s26  ;;  %v2440_v36 = vsel %vm14676_vm0, %v2332_v19, 0.0  ;;  %vm14703_vm9 = vmand %vm17282_vm11, %vm14681_vm3  ;;  %v837_v11 = vsub.f32 %v14575_v60, %v801_v30  ;;  %vm17288_vm11 = vcmask 490496   ;;  %vm873_vm3 = vcmp.lt.f32.partialorder %v14575_v60, 285.5  ;;  %v2959_v19 = vld [vmem:[%s16999_s2 + $0x28] sm:$0xff] }
 0x1d7   : > { %v2647_v15 = vpop.permute.xlu1 %2646  ;;  %v2504_v12 = vpop.permute.xlu0 %2503  ;;  %v2968_v43 = vld [vmem:[#allocation2 + $0x47] sm:$0xff]  ;;  %v17284_v24 = vsel %vm14703_vm9, 4294967295, %v17283_v24  ;;  %v802_v58 = vmul.f32 18.0, %v766_v54  ;;  %v2227_v39 = vadd.f32 %v14292_v14, %v14118_v62  ;;  %v767_v45 = vfloor.f32 %v731_v37 }
 0x1d8   : > { %2746 = vst.msk [vmem:[#allocation2 + $0x5f] sm:$0xff] %vm17279_vm2, %v2647_v15  ;;  %11623 = vmatprep.mubr.msk.f32.mxu1 %vm17281_vm5, %v2968_v43  ;;  %vm17285_vm2 = vcmp.ge.f32.partialorder %v2225_v42, 0.0  ;;  %vm17287_vm5 = vcmask 162944   ;;  %v732_v0 = vmul.f32 0.055555556, %v696_v8  ;;  %v14727_v30 = vsub.f32 %v481_v2, %v625_v10  ;;  %v2958_v62 = vld [vmem:[%s16999_s2 + $0x20] sm:$0xff] }
 0x1d9   : > { %2602 = vst.msk [vmem:[#allocation2 + $0x68] sm:$0xff] %vm17280_vm13, %v2504_v12  ;;  %2541 = vrot.lane.b32.xlu1 %v2440_v36, %s13111_s19  ;;  %v2333_v38 = vsel %vm17285_vm2, %v2225_v42, %v2297_v21  ;;  %vm17286_vm13 = vcmask 195744   ;;  %v2298_v42 = vmul.f32 0.01, %v2226_v31  ;;  %vm14720_vm2 = vcmp.lt.f32.partialorder %v837_v11, 15.5 }
 0x1da   : > { %2829 = vrot.lane.b32.xlu0 %v2439_v48, %s13110_s18  ;;  %v2441_v29 = vsel %vm14703_vm9, %v2333_v38, 0.0  ;;  %v838_v52 = vsub.f32 %v14617_v4, %v802_v58  ;;  %v12518_v6 = vpack.c.bf16 %v2959_v19, %v2958_v62  ;;  %v2299_v17 = vmul.f32 0.01, %v2227_v39 }
 0x1db   : > { %v2792_v47 = vpop.permute.xlu1 %2791  ;;  %v2649_v44 = vpop.permute.xlu0 %2648  ;;  %v17293_v33 = vmov 0  ;;  %vm17295_vm9 = vcmp.ge.f32.partialorder %v2226_v31, 0.0  ;;  %v803_v54 = vmul.f32 18.0, %v767_v45  ;;  %v768_v15 = vfloor.f32 %v732_v0 }
 0x1dc   : > { %v2969_v48 = vld [vmem:[#allocation2 + $0x4f] sm:$0xff]  ;;  %2891 = vst.msk [vmem:[#allocation2 + $0x5e] sm:$0xff] %vm17286_vm13, %v2792_v47  ;;  %v2334_v2 = vsel %vm17295_vm9, %v2226_v31, %v2298_v42  ;;  %v697_v12 = vadd.f32 0.5, %v14727_v30  ;;  %12519 = vmatprep.subr.bf16.mxu1 %v12518_v6  ;;  %vm17300_vm9 = vcmask 490496   ;;  %v2228_v38 = vadd.f32 %v14292_v14, %v14114_v23 }
 0x1dd   : > { %2747 = vst.msk [vmem:[#allocation2 + $0x67] sm:$0xff] %vm17287_vm5, %v2649_v44  ;;  %11624 = vmatmul.mubr.msk.f32.gmra.mrb[42].mxu1 %vm17288_vm11, %v2969_v48  ;;  %2686 = vrot.lane.b32.xlu1 %v2440_v36, %s13112_s26  ;;  %vm17291_vm5 = vcmask 130144   ;;  %vm17292_vm11 = vmmov %vm17286_vm13  ;;  %v17301_v11 = vmov 0  ;;  %v839_v58 = vsub.f32 %v14659_v22, %v803_v54  ;;  %v804_v8 = vmul.f32 18.0, %v768_v15 }
 0x1de   : > { %2543 = vrot.lane.b32.xlu0 %v2441_v29, %s13111_s19  ;;  %vm14743_vm13 = vmand %vm873_vm3, %vm14720_vm2  ;;  %12521 = vmatpush3.bf16.msra.mxu1 %v12518_v6  ;;  %vm17298_vm3 = vcmask 162944   ;;  %vm17299_vm2 = vcmask 130144   ;;  %v733_v10 = vmul.f32 0.055555556, %v697_v12  ;;  %v2300_v48 = vmul.f32 0.01, %v2228_v38 }
 0x1df   : > { %v2506_v26 = vpop.permute.xlu1 %2505  ;;  %v2794_v21 = vpop.permute.xlu0 %2793  ;;  %v17294_v33 = vsel %vm14743_vm13, 4294967295, %v17293_v33  ;;  %v2442_v31 = vsel %vm14743_vm13, %v2334_v2, 0.0  ;;  %vm17306_vm13 = vcmask 490496   ;;  %v840_v42 = vsub.f32 %v14688_v46, %v804_v8 }
 0x1e0   : > { %2603 = vst.msk [vmem:[#allocation2 + $0x70] sm:$0xff] %vm17291_vm5, %v2506_v26  ;;  %vm874_vm5 = vcmp.lt.f32.partialorder %v14617_v4, 285.5  ;;  %v2230_v6 = vadd.f32 %v14292_v14, %v14142_v18 }
 0x1e1   : > { %2892 = vst.msk [vmem:[#allocation2 + $0x66] sm:$0xff] %vm17292_vm11, %v2794_v21  ;;  %2831 = vrot.lane.b32.xlu1 %v2440_v36, %s13110_s18  ;;  %vm14749_vm11 = vcmp.lt.f32.partialorder %v838_v52, 15.5  ;;  %vm912_vm7 = vcmp.lt.f32.partialorder %v840_v42, 15.5 }
 0x1e2   : > { %2688 = vrot.lane.b32.xlu0 %v2441_v29, %s13112_s26  ;;  %vm14767_vm0 = vmand %vm874_vm5, %vm14749_vm11  ;;  %vm875_vm5 = vcmp.lt.f32.partialorder %v14659_v22, 285.5  ;;  %vm911_vm11 = vcmp.lt.f32.partialorder %v839_v58, 15.5 }
 0x1e3   : > { %v2651_v43 = vpop.permute.xlu1 %2650  ;;  %v2508_v60 = vpop.permute.xlu0 %2507  ;;  %v2970_v36 = vld [vmem:[#allocation2 + $0x57] sm:$0xff]  ;;  %v17302_v11 = vsel %vm14767_vm0, 4294967295, %v17301_v11 }
 0x1e4   : > { %2748 = vst.msk [vmem:[#allocation2 + $0x6f] sm:$0xff] %vm17298_vm3, %v2651_v43  ;;  %11626 = vmatprep.mubr.msk.f32.mxu1 %vm17300_vm9, %v2970_v36  ;;  %vm17303_vm3 = vcmp.ge.f32.partialorder %v2227_v39, 0.0  ;;  %vm17305_vm9 = vcmask 162944   ;;  %v2961_v36 = vld [vmem:[%s16999_s2 + $0x38] sm:$0xf] }
 0x1e5   : > { %2604 = vst.msk [vmem:[#allocation2 + $0x78] sm:$0xff] %vm17299_vm2, %v2508_v60  ;;  %2545 = vrot.lane.b32.xlu1 %v2442_v31, %s13111_s19  ;;  %v2335_v37 = vsel %vm17303_vm3, %v2227_v39, %v2299_v17  ;;  %vm17304_vm2 = vcmask 195744   ;;  %vm2264_vm3 = vcmp.ge.f32.partialorder %v2228_v38, 0.0  ;;  %v769_v39 = vfloor.f32 %v733_v10  ;;  %v2960_v60 = vld [vmem:[%s16999_s2 + $0x30] sm:$0xff] }
 0x1e6   : > { %2833 = vrot.lane.b32.xlu0 %v2441_v29, %s13110_s18  ;;  %v2443_v4 = vsel %vm14767_vm0, %v2335_v37, 0.0  ;;  %v2229_v29 = vadd.f32 %v14292_v14, %v14146_v32  ;;  %v17308_v32 = vmov 0  ;;  %v2336_v22 = vsel %vm2264_vm3, %v2228_v38, %v2300_v48  ;;  %v10297_v48 = vld [vmem:[%s16999_s2 + $0x88] sm:$0xff] }
 0x1e7   : > { %v2796_v47 = vpop.permute.xlu1 %2795  ;;  %v2653_v23 = vpop.permute.xlu0 %2652  ;;  %vm876_vm0 = vcmp.lt.f32.partialorder %v14688_v46, 285.5  ;;  %v805_v0 = vmul.f32 18.0, %v769_v39  ;;  %v17313_v46 = vmov 0  ;;  %vm17317_vm3 = vcmask 490496  }
 0x1e8   : > { %v2971_v44 = vld [vmem:[#allocation2 + $0x5f] sm:$0xff]  ;;  %2893 = vst.msk [vmem:[#allocation2 + $0x6e] sm:$0xff] %vm17304_vm2, %v2796_v47  ;;  %v2301_v52 = vmul.f32 0.01, %v2229_v29  ;;  %vm2265_vm14 = vcmp.ge.f32.partialorder %v2229_v29, 0.0 }
 0x1e9   : > { %2749 = vst.msk [vmem:[#allocation2 + $0x77] sm:$0xff] %vm17305_vm9, %v2653_v23  ;;  %11627 = vmatmul.mubr.msk.f32.gmra.mrb[44].mxu1 %vm17306_vm13, %v2971_v44  ;;  %2690 = vrot.lane.b32.xlu1 %v2442_v31, %s13112_s26  ;;  %vm17307_vm13 = vcmask 130144   ;;  %vm14788_vm9 = vmand %vm875_vm5, %vm911_vm11  ;;  %v841_v2 = vsub.f32 %v14727_v30, %v805_v0  ;;  %v2302_v14 = vmul.f32 0.01, %v2230_v6 }
 0x1ea   : > { %2547 = vrot.lane.b32.xlu0 %v2443_v4, %s13111_s19  ;;  %v17309_v32 = vsel %vm14788_vm9, 4294967295, %v17308_v32  ;;  %v2444_v19 = vsel %vm14788_vm9, %v2336_v22, 0.0  ;;  %vm14802_vm5 = vmand %vm876_vm0, %vm912_vm7  ;;  %v2337_v17 = vsel %vm2265_vm14, %v2229_v29, %v2301_v52  ;;  %vm877_vm14 = vcmp.lt.f32.partialorder %v14727_v30, 285.5 }
 0x1eb   : > { %v2510_v34 = vpop.permute.xlu1 %2509  ;;  %v2798_v45 = vpop.permute.xlu0 %2797  ;;  %v17314_v46 = vsel %vm14802_vm5, 4294967295, %v17313_v46  ;;  %v2445_v18 = vsel %vm14802_vm5, %v2337_v17, 0.0  ;;  %vm913_vm7 = vcmp.lt.f32.partialorder %v841_v2, 15.5  ;;  %vm2266_vm0 = vcmp.ge.f32.partialorder %v2230_v6, 0.0 }
 0x1ec   : > { %2605 = vst.msk [vmem:[#allocation2 + $0x80] sm:$0xff] %vm17307_vm13, %v2510_v34  ;;  %vm17310_vm13 = vcmask 162944   ;;  %v17320_v30 = vmov 0  ;;  %v2338_v38 = vsel %vm2266_vm0, %v2230_v6, %v2302_v14 }
 0x1ed   : > { %2894 = vst.msk [vmem:[#allocation2 + $0x76] sm:$0xff] %vm17304_vm2, %v2798_v45  ;;  %2835 = vrot.lane.b32.xlu1 %v2442_v31, %s13110_s18  ;;  %vm17311_vm2 = vcmask 130144   ;;  %vm17316_vm11 = vmmov %vm17310_vm13  ;;  %v12522_v31 = vpack.c.bf16 %v2961_v36, %v2960_v60 }
 0x1ee   : > { %2692 = vrot.lane.b32.xlu0 %v2443_v4, %s13112_s26 }
 0x1ef   : > { %v2655_v26 = vpop.permute.xlu1 %2654  ;;  %v2512_v21 = vpop.permute.xlu0 %2511  ;;  %v2972_v62 = vld [vmem:[#allocation2 + $0x67] sm:$0xff]  ;;  %12524 = vmatprep.subr.msk.bf16.mxu1 %vm13277_vm4, %v12522_v31 }
 0x1f0   : > { %2750 = vst.msk [vmem:[#allocation2 + $0x7f] sm:$0xff] %vm17310_vm13, %v2655_v26  ;;  %11629 = vmatprep.mubr.msk.f32.mxu1 %vm17312_vm6, %v2972_v62  ;;  %vm17315_vm6 = vcmask 195744   ;;  %vm17318_vm13 = vmmov %vm17311_vm2  ;;  %12527 = vmatpush3.bf16.msk.msra.mxu1 %vm13277_vm4, %v12522_v31 }
 0x1f1   : > { %2606 = vst.msk [vmem:[#allocation2 + $0x88] sm:$0xff] %vm17311_vm2, %v2512_v21  ;;  %2549 = vrot.lane.b32.xlu1 %v2444_v19, %s13111_s19  ;;  %vm17319_vm2 = vmmov %vm17315_vm6 }
 0x1f2   : > { %2837 = vrot.lane.b32.xlu0 %v2443_v4, %s13110_s18  ;;  %v10296_v4 = vld [vmem:[%s16999_s2 + $0x80] sm:$0xff] }
 0x1f3   : > { %v2800_v54 = vpop.permute.xlu1 %2799  ;;  %v2657_v27 = vpop.permute.xlu0 %2656  ;;  %v14851_v39 = vpack.c.bf16 %v10297_v48, %v10296_v4 }
 0x1f4   : > { %v2973_v15 = vld [vmem:[#allocation2 + $0x6f] sm:$0xff]  ;;  %2895 = vst.msk [vmem:[#allocation2 + $0x7e] sm:$0xff] %vm17315_vm6, %v2800_v54  ;;  %vm14825_vm6 = vmand %vm877_vm14, %vm913_vm7 }
 0x1f5   : > { %2751 = vst.msk [vmem:[#allocation2 + $0x87] sm:$0xff] %vm17316_vm11, %v2657_v27  ;;  %11630 = vmatmul.mubr.msk.f32.gmra.mrb[46].mxu1 %vm17317_vm3, %v2973_v15  ;;  %2694 = vrot.lane.b32.xlu1 %v2444_v19, %s13112_s26  ;;  %v17321_v30 = vsel %vm14825_vm6, 4294967295, %v17320_v30  ;;  %vm17322_vm3 = vmmov %vm17318_vm13  ;;  %v2446_v10 = vsel %vm14825_vm6, %v2338_v38, 0.0 }
 0x1f6   : > { %2551 = vrot.lane.b32.xlu0 %v2445_v18, %s13111_s19  ;;  %vm17324_vm14 = vmmov %vm17319_vm2  ;;  %12529 = vmatprep.subr.bf16.mxu1 %v14851_v39 }
 0x1f7   : > { %v2514_v12 = vpop.permute.xlu1 %2513  ;;  %v2802_v43 = vpop.permute.xlu0 %2801  ;;  %vm17325_vm7 = vmmov %vm17316_vm11 }
 0x1f8   : > { %2607 = vst.msk [vmem:[#allocation2 + $0x90] sm:$0xff] %vm17318_vm13, %v2514_v12  ;;  %vm17323_vm13 = vcmask 490496  }
 0x1f9   : > { %2896 = vst.msk [vmem:[#allocation2 + $0x86] sm:$0xff] %vm17319_vm2, %v2802_v43  ;;  %2839 = vrot.lane.b32.xlu1 %v2444_v19, %s13110_s18  ;;  %vm17326_vm0 = vmmov %vm17323_vm13 }
 0x1fa   : > { %2696 = vrot.lane.b32.xlu0 %v2445_v18, %s13112_s26  ;;  %vm17327_vm2 = vmmov %vm17322_vm3 }
 0x1fb   : > { %v2659_v37 = vpop.permute.xlu1 %2658  ;;  %v2516_v58 = vpop.permute.xlu0 %2515  ;;  %v2974_v8 = vld [vmem:[#allocation2 + $0x77] sm:$0xff] }
 0x1fc   : > { %2752 = vst.msk [vmem:[#allocation2 + $0x8f] sm:$0xff] %vm17316_vm11, %v2659_v37  ;;  %11632 = vmatprep.mubr.msk.f32.mxu1 %vm17323_vm13, %v2974_v8  ;;  %vm17328_vm11 = vmmov %vm17324_vm14 }
 0x1fd   : > { %2608 = vst.msk [vmem:[#allocation2 + $0x98] sm:$0xff] %vm17322_vm3, %v2516_v58  ;;  %2553 = vrot.lane.b32.xlu1 %v2446_v10, %s13111_s19  ;;  %vm17329_vm3 = vmmov %vm17325_vm7 }
 0x1fe   : > { %2841 = vrot.lane.b32.xlu0 %v2445_v18, %s13110_s18  ;;  %vm17330_vm13 = vmmov %vm17327_vm2 }
 0x1ff   : > { %v2804_v47 = vpop.permute.xlu1 %2803  ;;  %v2661_v23 = vpop.permute.xlu0 %2660 }
 0x200   : > { %v2975_v44 = vld [vmem:[#allocation2 + $0x7f] sm:$0xff]  ;;  %2897 = vst.msk [vmem:[#allocation2 + $0x8e] sm:$0xff] %vm17324_vm14, %v2804_v47  ;;  %vm17331_vm14 = vmmov %vm17326_vm0 }
 0x201   : > { %2753 = vst.msk [vmem:[#allocation2 + $0x97] sm:$0xff] %vm17325_vm7, %v2661_v23  ;;  %11633 = vmatmul.mubr.msk.f32.gmra.mrb[48].mxu1 %vm17326_vm0, %v2975_v44  ;;  %2843 = vrot.lane.b32.xlu1 %v2446_v10, %s13110_s18  ;;  %vm17332_vm7 = vmmov %vm17328_vm11  ;;  %s13115_s18 = smov 32  }
 0x202   : > { %2698 = vrot.lane.b32.xlu0 %v2446_v10, %s13112_s26  ;;  %vm17333_vm0 = vmmov %vm17329_vm3 }
 0x203   : > { %v2518_v29 = vpop.permute.xlu1 %2517  ;;  %v2806_v42 = vpop.permute.xlu0 %2805  ;;  %vm17336_vm6 = vmmov %vm17332_vm7 }
 0x204   : > { %2609 = vst.msk [vmem:[#allocation2 + $0xa0] sm:$0xff] %vm17327_vm2, %v2518_v29  ;;  %vm17334_vm2 = vmmov %vm17331_vm14 }
 0x205   : > { %2898 = vst.msk [vmem:[#allocation2 + $0x96] sm:$0xff] %vm17328_vm11, %v2806_v42  ;;  %vm17335_vm11 = vmmov %vm17330_vm13 }
 0x207   : > { %v2663_v34 = vpop.permute.xlu1 %2662  ;;  %v2520_v45 = vpop.permute.xlu0 %2519  ;;  %v2976_v52 = vld [vmem:[#allocation2 + $0x87] sm:$0xff] }
 0x208   : > { %2754 = vst.msk [vmem:[#allocation2 + $0x9f] sm:$0xff] %vm17329_vm3, %v2663_v34  ;;  %11635 = vmatprep.mubr.msk.f32.mxu1 %vm17331_vm14, %v2976_v52  ;;  %vm17337_vm3 = vmmov %vm17333_vm0 }
 0x209   : > { %2610 = vst.msk [vmem:[#allocation2 + $0xa8] sm:$0xff] %vm17330_vm13, %v2520_v45  ;;  %vm17338_vm13 = vmmov %vm17335_vm11 }
 0x20a   : > { %vm17339_vm14 = vmmov %vm17334_vm2 }
 0x20b   : > { %v2808_v22 = vpop.permute.xlu1 %2807  ;;  %v2665_v0 = vpop.permute.xlu0 %2664 }
 0x20c   : > { %v2977_v26 = vld [vmem:[#allocation2 + $0x8f] sm:$0xff]  ;;  %2899 = vst.msk [vmem:[#allocation2 + $0x9e] sm:$0xff] %vm17332_vm7, %v2808_v22  ;;  %vm17340_vm7 = vmmov %vm17336_vm6 }
 0x20d   : > { %2755 = vst.msk [vmem:[#allocation2 + $0xa7] sm:$0xff] %vm17333_vm0, %v2665_v0  ;;  %11636 = vmatmul.mubr.msk.f32.gmra.mrb[50].mxu1 %vm17334_vm2, %v2977_v26 }
 0x20f   : > { %v2522_v21 = vpop.permute.xlu1 %2521  ;;  %v2810_v62 = vpop.permute.xlu0 %2809 }
 0x210   : > { %2611 = vst.msk [vmem:[#allocation2 + $0xb0] sm:$0xff] %vm17335_vm11, %v2522_v21 }
 0x211   : > { %2900 = vst.msk [vmem:[#allocation2 + $0xa6] sm:$0xff] %vm17336_vm6, %v2810_v62  ;;  %vm17341_vm6 = vmmov %vm17335_vm11 }
 0x212   : > { %vm17342_vm11 = vmmov %vm17340_vm7 }
 0x213   : > { %v2667_v19 = vpop.permute.xlu1 %2666  ;;  %v2524_v6 = vpop.permute.xlu0 %2523  ;;  %v2978_v17 = vld [vmem:[#allocation2 + $0x97] sm:$0xff] }
 0x214   : > { %2756 = vst.msk [vmem:[#allocation2 + $0xaf] sm:$0xff] %vm17337_vm3, %v2667_v19  ;;  %11638 = vmatprep.mubr.msk.f32.mxu1 %vm17339_vm14, %v2978_v17  ;;  %vm17343_vm3 = vmmov %vm17333_vm0 }
 0x215   : > { %2612 = vst.msk [vmem:[#allocation2 + $0xb8] sm:$0xff] %vm17338_vm13, %v2524_v6  ;;  %vm17344_vm13 = vmmov %vm17341_vm6 }
 0x216   : > { %vm17345_vm14 = vmmov %vm17334_vm2 }
 0x217   : > { %v2812_v2 = vpop.permute.xlu1 %2811  ;;  %v2669_v54 = vpop.permute.xlu0 %2668 }
 0x218   : > { %v2979_v27 = vld [vmem:[#allocation2 + $0x9f] sm:$0xff]  ;;  %2901 = vst.msk [vmem:[#allocation2 + $0xae] sm:$0xff] %vm17340_vm7, %v2812_v2 }
 0x219   : > { %2757 = vst.msk [vmem:[#allocation2 + $0xb7] sm:$0xff] %vm17333_vm0, %v2669_v54  ;;  %11639 = vmatmul.mubr.msk.f32.gmra.mrb[52].mxu1 %vm17334_vm2, %v2979_v27 }
 0x21b   : > { %v2526_v15 = vpop.permute.xlu1 %2525  ;;  %v2814_v18 = vpop.permute.xlu0 %2813 }
 0x21c   : > { %2613 = vst.msk [vmem:[#allocation2 + $0xc0] sm:$0xff] %vm17341_vm6, %v2526_v15 }
 0x21d   : > { %2902 = vst.msk [vmem:[#allocation2 + $0xb6] sm:$0xff] %vm17342_vm11, %v2814_v18  ;;  %vm17346_vm11 = vmmov %vm17340_vm7 }
 0x21f   : > { %v2671_v14 = vpop.permute.xlu1 %2670  ;;  %v2528_v12 = vpop.permute.xlu0 %2527  ;;  %v2980_v43 = vld [vmem:[#allocation2 + $0xa7] sm:$0xff] }
 0x220   : > { %2758 = vst.msk [vmem:[#allocation2 + $0xbf] sm:$0xff] %vm17343_vm3, %v2671_v14  ;;  %11641 = vmatprep.mubr.msk.f32.mxu1 %vm17345_vm14, %v2980_v43  ;;  %vm17347_vm3 = vmmov %vm17333_vm0 }
 0x221   : > { %2614 = vst.msk [vmem:[#allocation2 + $0xc8] sm:$0xff] %vm17344_vm13, %v2528_v12  ;;  %vm17348_vm13 = vmmov %vm17341_vm6 }
 0x222   : > { %vm17349_vm14 = vmmov %vm17334_vm2 }
 0x223   : > { %v2816_v60 = vpop.permute.xlu1 %2815  ;;  %v2673_v36 = vpop.permute.xlu0 %2672 }
 0x224   : > { %v2981_v31 = vld [vmem:[#allocation2 + $0xaf] sm:$0xff]  ;;  %2903 = vst.msk [vmem:[#allocation2 + $0xbe] sm:$0xff] %vm17340_vm7, %v2816_v60 }
 0x225   : > { %2759 = vst.msk [vmem:[#allocation2 + $0xc7] sm:$0xff] %vm17333_vm0, %v2673_v36  ;;  %11642 = vmatmul.mubr.msk.f32.gmra.mrb[54].mxu1 %vm17334_vm2, %v2981_v31 }
 0x227   : > { %v2530_v38 = vpop.permute.xlu1 %2529  ;;  %v2818_v37 = vpop.permute.xlu0 %2817 }
 0x228   : > { %2615 = vst.msk [vmem:[#allocation2 + $0xd0] sm:$0xff] %vm17341_vm6, %v2530_v38 }
 0x229   : > { %2904 = vst.msk [vmem:[#allocation2 + $0xc6] sm:$0xff] %vm17346_vm11, %v2818_v37  ;;  %vm17350_vm11 = vmmov %vm17340_vm7 }
 0x22b   : > { %v2675_v58 = vpop.permute.xlu1 %2674  ;;  %v2532_v8 = vpop.permute.xlu0 %2531  ;;  %v2982_v10 = vld [vmem:[#allocation2 + $0xb7] sm:$0xff] }
 0x22c   : > { %2760 = vst.msk [vmem:[#allocation2 + $0xcf] sm:$0xff] %vm17347_vm3, %v2675_v58  ;;  %11644 = vmatprep.mubr.msk.f32.mxu1 %vm17349_vm14, %v2982_v10  ;;  %vm17351_vm3 = vmmov %vm17333_vm0 }
 0x22d   : > { %2616 = vst.msk [vmem:[#allocation2 + $0xd8] sm:$0xff] %vm17348_vm13, %v2532_v8  ;;  %vm17352_vm13 = vmmov %vm17341_vm6 }
 0x22e   : > { %vm17353_vm14 = vmmov %vm17334_vm2 }
 0x22f   : > { %v2820_v47 = vpop.permute.xlu1 %2819  ;;  %v2677_v23 = vpop.permute.xlu0 %2676 }
 0x230   : > { %v2983_v44 = vld [vmem:[#allocation2 + $0xbf] sm:$0xff]  ;;  %2905 = vst.msk [vmem:[#allocation2 + $0xce] sm:$0xff] %vm17340_vm7, %v2820_v47 }
 0x231   : > { %2761 = vst.msk [vmem:[#allocation2 + $0xd7] sm:$0xff] %vm17333_vm0, %v2677_v23  ;;  %11645 = vmatmul.mubr.msk.f32.gmra.mrb[56].mxu1 %vm17334_vm2, %v2983_v44 }
 0x233   : > { %v2534_v4 = vpop.permute.xlu1 %2533  ;;  %v2822_v48 = vpop.permute.xlu0 %2821 }
 0x234   : > { %2617 = vst.msk [vmem:[#allocation2 + $0xe0] sm:$0xff] %vm17341_vm6, %v2534_v4 }
 0x235   : > { %2906 = vst.msk [vmem:[#allocation2 + $0xd6] sm:$0xff] %vm17350_vm11, %v2822_v48  ;;  %vm17354_vm11 = vmmov %vm17340_vm7 }
 0x237   : > { %v2679_v29 = vpop.permute.xlu1 %2678  ;;  %v2536_v42 = vpop.permute.xlu0 %2535  ;;  %v2984_v34 = vld [vmem:[#allocation2 + $0xc7] sm:$0xff] }
 0x238   : > { %2762 = vst.msk [vmem:[#allocation2 + $0xdf] sm:$0xff] %vm17351_vm3, %v2679_v29  ;;  %11647 = vmatprep.mubr.msk.f32.mxu1 %vm17353_vm14, %v2984_v34  ;;  %vm17355_vm3 = vmmov %vm17333_vm0 }
 0x239   : > { %2618 = vst.msk [vmem:[#allocation2 + $0xe8] sm:$0xff] %vm17352_vm13, %v2536_v42  ;;  %vm17356_vm13 = vmmov %vm17341_vm6 }
 0x23a   : > { %vm17357_vm14 = vmmov %vm17334_vm2 }
 0x23b   : > { %v2824_v45 = vpop.permute.xlu1 %2823  ;;  %v2681_v52 = vpop.permute.xlu0 %2680 }
 0x23c   : > { %v2985_v22 = vld [vmem:[#allocation2 + $0xcf] sm:$0xff]  ;;  %2907 = vst.msk [vmem:[#allocation2 + $0xde] sm:$0xff] %vm17340_vm7, %v2824_v45 }
 0x23d   : > { %2763 = vst.msk [vmem:[#allocation2 + $0xe7] sm:$0xff] %vm17333_vm0, %v2681_v52  ;;  %11648 = vmatmul.mubr.msk.f32.gmra.mrb[58].mxu1 %vm17334_vm2, %v2985_v22 }
 0x23f   : > { %v2538_v0 = vpop.permute.xlu1 %2537  ;;  %v2826_v26 = vpop.permute.xlu0 %2825 }
 0x240   : > { %2619 = vst.msk [vmem:[#allocation2 + $0xf0] sm:$0xff] %vm17341_vm6, %v2538_v0 }
 0x241   : > { %2908 = vst.msk [vmem:[#allocation2 + $0xe6] sm:$0xff] %vm17354_vm11, %v2826_v26  ;;  %vm17358_vm11 = vmmov %vm17340_vm7 }
 0x243   : > { %v2683_v21 = vpop.permute.xlu1 %2682  ;;  %v2986_v19 = vld [vmem:[#allocation2 + $0xd7] sm:$0xff] }
 0x244   : > { %v2540_v62 = vpop.permute.xlu0 %2539  ;;  %2764 = vst.msk [vmem:[#allocation2 + $0xef] sm:$0xff] %vm17355_vm3, %v2683_v21  ;;  %11650 = vmatprep.mubr.msk.f32.mxu1 %vm17357_vm14, %v2986_v19  ;;  %vm17359_vm3 = vmmov %vm17333_vm0 }
 0x245   : > { %2620 = vst.msk [vmem:[#allocation2 + $0xf8] sm:$0xff] %vm17356_vm13, %v2540_v62  ;;  %vm17360_vm13 = vmmov %vm17341_vm6 }
 0x246   : > { %vm17361_vm14 = vmmov %vm17334_vm2 }
 0x247   : > { %v2828_v6 = vpop.permute.xlu1 %2827 }
 0x248   : > { %v2685_v17 = vpop.permute.xlu0 %2684  ;;  %v2987_v2 = vld [vmem:[#allocation2 + $0xdf] sm:$0xff]  ;;  %2909 = vst.msk [vmem:[#allocation2 + $0xee] sm:$0xff] %vm17340_vm7, %v2828_v6 }
 0x249   : > { %2765 = vst.msk [vmem:[#allocation2 + $0xf7] sm:$0xff] %vm17333_vm0, %v2685_v17  ;;  %11651 = vmatmul.mubr.msk.f32.gmra.mrb[60].mxu1 %vm17334_vm2, %v2987_v2  ;;  %v2918_v17 = vld [vmem:[#allocation2 + $0x5] sm:$0xff]  ;;  %v10298_v2 = vld [vmem:[%s16999_s2 + $0x90] sm:$0xff] }
 0x24b   : > { %v2542_v54 = vpop.permute.xlu1 %2541 }
 0x24c   : > { %v2830_v27 = vpop.permute.xlu0 %2829  ;;  %2621 = vst.msk [vmem:[#allocation2 + $0x100] sm:$0xff] %vm17341_vm6, %v2542_v54  ;;  %v10299_v54 = vld [vmem:[%s16999_s2 + $0x98] sm:$0xff] }
 0x24d   : > { %2910 = vst.msk [vmem:[#allocation2 + $0xf6] sm:$0xff] %vm17358_vm11, %v2830_v27  ;;  %vm17362_vm11 = vmmov %vm17340_vm7  ;;  %v2919_v27 = vld [vmem:[#allocation2 + $0xd] sm:$0xff] }
 0x24f   : > { %v2687_v15 = vpop.permute.xlu1 %2686  ;;  %v2988_v14 = vld [vmem:[#allocation2 + $0xe7] sm:$0xff] }
 0x250   : > { %v2544_v18 = vpop.permute.xlu0 %2543  ;;  %2766 = vst.msk [vmem:[#allocation2 + $0xff] sm:$0xff] %vm17359_vm3, %v2687_v15  ;;  %11653 = vmatprep.mubr.msk.f32.mxu1 %vm17361_vm14, %v2988_v14  ;;  %vm17363_vm3 = vmmov %vm17333_vm0  ;;  %v12532_v15 = vpack.c.bf16 %v10299_v54, %v10298_v2  ;;  %v10301_v14 = vld [vmem:[%s16999_s2 + $0xa8] sm:$0xff]  ;;  %v2945_v2 = vld [vmem:[#allocation2 + $0xdd] sm:$0xff] }
 0x251   : > { %2622 = vst.msk [vmem:[#allocation2 + $0x108] sm:$0xff] %vm17360_vm13, %v2544_v18  ;;  %vm17364_vm13 = vmmov %vm17341_vm6  ;;  %v10300_v18 = vld [vmem:[%s16999_s2 + $0xa0] sm:$0xff] }
 0x252   : > { %vm17365_vm14 = vmmov %vm17334_vm2  ;;  %v2946_v54 = vld [vmem:[#allocation2 + $0xe5] sm:$0xff] }
 0x253   : > { %v2832_v12 = vpop.permute.xlu1 %2831 }
 0x254   : > { %v2689_v43 = vpop.permute.xlu0 %2688  ;;  %v2989_v60 = vld [vmem:[#allocation2 + $0xef] sm:$0xff]  ;;  %2911 = vst.msk [vmem:[#allocation2 + $0xfe] sm:$0xff] %vm17340_vm7, %v2832_v12 }
 0x255   : > { %2767 = vst.msk [vmem:[#allocation2 + $0x107] sm:$0xff] %vm17333_vm0, %v2689_v43  ;;  %11654 = vmatmul.mubr.msk.f32.gmra.mrb[62].mxu1 %vm17334_vm2, %v2989_v60  ;;  %v2920_v12 = vld [vmem:[#allocation2 + $0x15] sm:$0xff]  ;;  %v12536_v43 = vpack.c.bf16 %v10301_v14, %v10300_v18  ;;  %v2921_v60 = vld [vmem:[#allocation2 + $0x1d] sm:$0xff] }
 0x257   : > { %v2546_v36 = vpop.permute.xlu1 %2545 }
 0x258   : > { %v2834_v31 = vpop.permute.xlu0 %2833  ;;  %2623 = vst.msk [vmem:[#allocation2 + $0x110] sm:$0xff] %vm17341_vm6, %v2546_v36  ;;  %v10302_v36 = vld [vmem:[%s16999_s2 + $0xb0] sm:$0xff] }
 0x259   : > { %2912 = vst.msk [vmem:[#allocation2 + $0x106] sm:$0xff] %vm17362_vm11, %v2834_v31  ;;  %vm17366_vm11 = vmmov %vm17340_vm7  ;;  %v10303_v31 = vld [vmem:[%s16999_s2 + $0xb8] sm:$0xf] }
 0x25b   : > { %v2691_v38 = vpop.permute.xlu1 %2690  ;;  %v2990_v58 = vld [vmem:[#allocation2 + $0xf7] sm:$0xff] }
 0x25c   : > { %v2548_v37 = vpop.permute.xlu0 %2547  ;;  %2768 = vst.msk [vmem:[#allocation2 + $0x10f] sm:$0xff] %vm17363_vm3, %v2691_v38  ;;  %11656 = vmatprep.mubr.msk.f32.mxu1 %vm17365_vm14, %v2990_v58  ;;  %vm17367_vm3 = vmmov %vm17333_vm0  ;;  %v2922_v38 = vld [vmem:[#allocation2 + $0x25] sm:$0xff]  ;;  %v2924_v58 = vld [vmem:[#allocation2 + $0x35] sm:$0xff] }
 0x25d   : > { %2624 = vst.msk [vmem:[#allocation2 + $0x118] sm:$0xff] %vm17364_vm13, %v2548_v37  ;;  %vm17368_vm13 = vmmov %vm17341_vm6  ;;  %v12540_v37 = vpack.c.bf16 %v10303_v31, %v10302_v36  ;;  %v2949_v18 = vld [vmem:[#allocation2 + $0xfd] sm:$0xff]  ;;  %v3719_v36 = vld [vmem:[#allocation2 + $0x29] sm:$0xff] }
 0x25e   : > { %vm17369_vm14 = vmmov %vm17334_vm2  ;;  %v3720_v31 = vld [vmem:[#allocation2 + $0x31] sm:$0xff] }
 0x25f   : > { %v2836_v8 = vpop.permute.xlu1 %2835 }
 0x260   : > { %v2693_v10 = vpop.permute.xlu0 %2692  ;;  %v2991_v47 = vld [vmem:[#allocation2 + $0xff] sm:$0xff]  ;;  %2913 = vst.msk [vmem:[#allocation2 + $0x10e] sm:$0xff] %vm17340_vm7, %v2836_v8 }
 0x261   : > { %2769 = vst.msk [vmem:[#allocation2 + $0x117] sm:$0xff] %vm17333_vm0, %v2693_v10  ;;  %11657 = vmatmul.mubr.msk.f32.gmra.mrb[64].mxu1 %vm17334_vm2, %v2991_v47  ;;  %v2925_v8 = vld [vmem:[#allocation2 + $0x3d] sm:$0xff]  ;;  %v2926_v10 = vld [vmem:[#allocation2 + $0x45] sm:$0xff]  ;;  %v2927_v47 = vld [vmem:[#allocation2 + $0x4d] sm:$0xff] }
 0x262   : > { %v2950_v14 = vld [vmem:[#allocation2 + $0x105] sm:$0xff] }
 0x263   : > { %v2550_v23 = vpop.permute.xlu1 %2549 }
 0x264   : > { %v2838_v44 = vpop.permute.xlu0 %2837  ;;  %2625 = vst.msk [vmem:[#allocation2 + $0x120] sm:$0xff] %vm17341_vm6, %v2550_v23  ;;  %v2928_v23 = vld [vmem:[#allocation2 + $0x55] sm:$0xff] }
 0x265   : > { %2914 = vst.msk [vmem:[#allocation2 + $0x116] sm:$0xff] %vm17366_vm11, %v2838_v44  ;;  %vm17370_vm11 = vmmov %vm17340_vm7  ;;  %v2929_v44 = vld [vmem:[#allocation2 + $0x5d] sm:$0xff] }
 0x267   : > { %v2695_v4 = vpop.permute.xlu1 %2694  ;;  %v2992_v29 = vld [vmem:[#allocation2 + $0x107] sm:$0xff] }
 0x268   : > { %v2552_v48 = vpop.permute.xlu0 %2551  ;;  %2770 = vst.msk [vmem:[#allocation2 + $0x11f] sm:$0xff] %vm17367_vm3, %v2695_v4  ;;  %11659 = vmatprep.mubr.msk.f32.mxu1 %vm17369_vm14, %v2992_v29  ;;  %vm17371_vm3 = vmmov %vm17333_vm0  ;;  %v2930_v4 = vld [vmem:[#allocation2 + $0x65] sm:$0xff]  ;;  %v2932_v29 = vld [vmem:[#allocation2 + $0x75] sm:$0xff] }
 0x269   : > { %2626 = vst.msk [vmem:[#allocation2 + $0x128] sm:$0xff] %vm17368_vm13, %v2552_v48  ;;  %vm17372_vm13 = vmmov %vm17334_vm2  ;;  %v2931_v48 = vld [vmem:[#allocation2 + $0x6d] sm:$0xff] }
 0x26a   : > { %vm17373_vm14 = vmmov %vm17340_vm7 }
 0x26b   : > { %v2840_v42 = vpop.permute.xlu1 %2839 }
 0x26c   : > { %v2697_v34 = vpop.permute.xlu0 %2696  ;;  %v2993_v45 = vld [vmem:[#allocation2 + $0x10f] sm:$0xff]  ;;  %2915 = vst.msk [vmem:[#allocation2 + $0x11e] sm:$0xff] %vm17340_vm7, %v2840_v42  ;;  %vm17374_vm7 = vmmov %vm17334_vm2  ;;  %v2933_v42 = vld [vmem:[#allocation2 + $0x7d] sm:$0xff] }
 0x26d   : > { %2771 = vst.msk [vmem:[#allocation2 + $0x127] sm:$0xff] %vm17333_vm0, %v2697_v34  ;;  %11660 = vmatmul.mubr.msk.f32.gmra.mrb[66].mxu1 %vm17334_vm2, %v2993_v45  ;;  %vm17375_vm0 = vmmov %vm17334_vm2  ;;  %v2934_v34 = vld [vmem:[#allocation2 + $0x85] sm:$0xff]  ;;  %v2935_v45 = vld [vmem:[#allocation2 + $0x8d] sm:$0xff] }
 0x26e   : > { %vm17376_vm2 = vmmov %vm17375_vm0 }
 0x26f   : > { %v2554_v52 = vpop.permute.xlu1 %2553 }
 0x270   : > { %v2842_v22 = vpop.permute.xlu0 %2841  ;;  %2627 = vst.msk [vmem:[#allocation2 + $0x130] sm:$0xff] %vm17341_vm6, %v2554_v52  ;;  %vm17377_vm6 = vmmov %vm17375_vm0  ;;  %v2936_v52 = vld [vmem:[#allocation2 + $0x95] sm:$0xff] }
 0x271   : > { %2916 = vst.msk [vmem:[#allocation2 + $0x126] sm:$0xff] %vm17370_vm11, %v2842_v22  ;;  %vm17378_vm11 = vmmov %vm17375_vm0  ;;  %v2937_v22 = vld [vmem:[#allocation2 + $0x9d] sm:$0xff] }
 0x273   : > { %v2844_v0 = vpop.permute.xlu1 %2843  ;;  %v2994_v21 = vld [vmem:[#allocation2 + $0x117] sm:$0xff] }
 0x274   : > { %v2699_v26 = vpop.permute.xlu0 %2698  ;;  %11662 = vmatprep.mubr.msk.f32.mxu1 %vm17372_vm13, %v2994_v21  ;;  %vm17380_vm13 = vmmov %vm17375_vm0  ;;  %v2940_v21 = vld [vmem:[#allocation2 + $0xb5] sm:$0xff] }
 0x275   : > { %2772 = vst.msk [vmem:[#allocation2 + $0x12f] sm:$0xff] %vm17371_vm3, %v2699_v26  ;;  %vm17379_vm3 = vmmov %vm17375_vm0  ;;  %v2939_v26 = vld [vmem:[#allocation2 + $0xad] sm:$0xff] }
 0x276   : > { %2917 = vst.msk [vmem:[#allocation2 + $0x12e] sm:$0xff] %vm17373_vm14, %v2844_v0  ;;  %vm17381_vm14 = vmmov %vm17375_vm0  ;;  %v2938_v0 = vld [vmem:[#allocation2 + $0xa5] sm:$0xff] }
 0x278   : > { %v2995_v62 = vld [vmem:[#allocation2 + $0x11f] sm:$0xff] }
 0x279   : > { %11663 = vmatmul.mubr.msk.f32.gmra.mrb[68].mxu1 %vm17374_vm7, %v2995_v62  ;;  %vm17382_vm7 = vmmov %vm17375_vm0  ;;  %v2941_v62 = vld [vmem:[#allocation2 + $0xbd] sm:$0xff] }
 0x27d   : > { %v2996_v19 = vld [vmem:[#allocation2 + $0x127] sm:$0xff]  ;;  %v2997_v6 = vld [vmem:[#allocation2 + $0x12f] sm:$0xff] }
 0x27e   : > { %11665 = vmatprep.mubr.msk.f32.mxu1 %vm17375_vm0, %v2996_v19  ;;  %v2942_v19 = vld [vmem:[#allocation2 + $0xc5] sm:$0xff] }
 0x27f   : > { %11666 = vmatmul.mubr.msk.f32.gmra.mrb[70].mxu1 %vm17376_vm2, %v2997_v6  ;;  %vm17383_vm2 = vmmov %vm17375_vm0  ;;  %v2943_v6 = vld [vmem:[#allocation2 + $0xcd] sm:$0xff] }
 0x280   : > { %11684 = vmatprep.mubr.msk.f32.mxu1 %vm17377_vm6, %v2918_v17  ;;  %vm17384_vm6 = vmmov %vm17375_vm0  ;;  %v2944_v17 = vld [vmem:[#allocation2 + $0xd5] sm:$0xff] }
 0x283   : > { %11685 = vmatmul.mubr.msk.f32.vlgmr.msra.gmra.mrb[36].mxu1 %vm17378_vm11, %v2919_v27  ;;  %vm17385_vm11 = vmmov %vm17375_vm0  ;;  %v2947_v27 = vld [vmem:[#allocation2 + $0xed] sm:$0xff] }
 0x284   : > { %11687 = vmatprep.mubr.msk.f32.mxu1 %vm17379_vm3, %v2920_v12  ;;  %12531 = vmatpush3.bf16.msra.mxu1 %v14851_v39  ;;  %v2923_v39 = vld [vmem:[#allocation2 + $0x2d] sm:$0xff]  ;;  %vm17386_vm3 = vmmov %vm17375_vm0 }
 0x285   : > { %12533 = vmatprep.subr.bf16.mxu1 %v12532_v15  ;;  %v2951_v12 = vld [vmem:[#allocation2 + $0x10d] sm:$0xff] }
 0x287   : > { %11688 = vmatmul.mubr.msk.f32.gmra.mrb[38].mxu1 %vm17380_vm13, %v2921_v60  ;;  %vm17387_vm13 = vmmov %vm17375_vm0  ;;  %v2953_v60 = vld [vmem:[#allocation2 + $0x11d] sm:$0xff] }
 0x288   : > { %11690 = vmatprep.mubr.msk.f32.mxu1 %vm17381_vm14, %v2922_v38  ;;  %12535 = vmatpush3.bf16.msra.mxu1 %v12532_v15  ;;  %vm17388_vm14 = vmmov %vm17375_vm0  ;;  %v2948_v15 = vld [vmem:[#allocation2 + $0xf5] sm:$0xff] }
 0x289   : > { %12537 = vmatprep.subr.bf16.mxu1 %v12536_v43  ;;  %v3721_v38 = vld [vmem:[#allocation2 + $0x39] sm:$0xff] }
 0x28b   : > { %11691 = vmatmul.mubr.msk.f32.gmra.mrb[40].mxu1 %vm17382_vm7, %v2923_v39  ;;  %vm17389_vm7 = vmmov %vm17375_vm0  ;;  %v3723_v39 = vld [vmem:[#allocation2 + $0x49] sm:$0xff] }
 0x28c   : > { %11693 = vmatprep.mubr.msk.f32.mxu1 %vm17375_vm0, %v2924_v58  ;;  %12539 = vmatpush3.bf16.msra.mxu1 %v12536_v43  ;;  %v2952_v43 = vld [vmem:[#allocation2 + $0x115] sm:$0xff] }
 0x28d   : > { %12542 = vmatprep.subr.msk.bf16.mxu1 %vm13277_vm4, %v12540_v37  ;;  %v3724_v58 = vld [vmem:[#allocation2 + $0x51] sm:$0xff] }
 0x28f   : > { %11694 = vmatmul.mubr.msk.f32.gmra.mrb[42].mxu1 %vm17383_vm2, %v2925_v8  ;;  %vm17390_vm2 = vmmov %vm17375_vm0  ;;  %v3725_v8 = vld [vmem:[#allocation2 + $0x59] sm:$0xff] }
 0x290   : > { %11696 = vmatprep.mubr.msk.f32.mxu1 %vm17384_vm6, %v2926_v10  ;;  %12545 = vmatpush3.bf16.msk.msra.mxu1 %vm13277_vm4, %v12540_v37  ;;  %vm17391_vm6 = vmmov %vm17375_vm0  ;;  %v3722_v37 = vld [vmem:[#allocation2 + $0x41] sm:$0xff] }
 0x291   : > { %v3726_v10 = vld [vmem:[#allocation2 + $0x61] sm:$0xff] }
 0x293   : > { %11697 = vmatmul.mubr.msk.f32.gmra.mrb[44].mxu1 %vm17385_vm11, %v2927_v47  ;;  %vm17392_vm11 = vmmov %vm17375_vm0  ;;  %v3727_v47 = vld [vmem:[#allocation2 + $0x69] sm:$0xff] }
 0x294   : > { %11699 = vmatprep.mubr.msk.f32.mxu1 %vm17386_vm3, %v2928_v23  ;;  %vm17393_vm3 = vmmov %vm17375_vm0  ;;  %v3728_v23 = vld [vmem:[#allocation2 + $0x71] sm:$0xff] }
 0x297   : > { %11700 = vmatmul.mubr.msk.f32.gmra.mrb[46].mxu1 %vm17387_vm13, %v2929_v44  ;;  %vm17394_vm13 = vmmov %vm17375_vm0  ;;  %v3729_v44 = vld [vmem:[#allocation2 + $0x79] sm:$0xff] }
 0x298   : > { %11702 = vmatprep.mubr.msk.f32.mxu1 %vm17388_vm14, %v2930_v4  ;;  %vm17395_vm14 = vmmov %vm17375_vm0  ;;  %v3730_v4 = vld [vmem:[#allocation2 + $0x81] sm:$0xff] }
 0x29b   : > { %11703 = vmatmul.mubr.msk.f32.gmra.mrb[48].mxu1 %vm17389_vm7, %v2931_v48  ;;  %vm17396_vm7 = vmmov %vm17375_vm0  ;;  %v3731_v48 = vld [vmem:[#allocation2 + $0x89] sm:$0xff] }
 0x29c   : > { %11705 = vmatprep.mubr.msk.f32.mxu1 %vm17375_vm0, %v2932_v29  ;;  %v3732_v29 = vld [vmem:[#allocation2 + $0x91] sm:$0xff] }
 0x29f   : > { %11706 = vmatmul.mubr.msk.f32.gmra.mrb[50].mxu1 %vm17390_vm2, %v2933_v42  ;;  %vm17397_vm2 = vmmov %vm17375_vm0  ;;  %v3733_v42 = vld [vmem:[#allocation2 + $0x99] sm:$0xff] }
 0x2a0   : > { %11708 = vmatprep.mubr.msk.f32.mxu1 %vm17391_vm6, %v2934_v34  ;;  %vm17398_vm6 = vmmov %vm17375_vm0  ;;  %v3734_v34 = vld [vmem:[#allocation2 + $0xa1] sm:$0xff] }
 0x2a3   : > { %11709 = vmatmul.mubr.msk.f32.gmra.mrb[52].mxu1 %vm17392_vm11, %v2935_v45  ;;  %vm17399_vm11 = vmmov %vm17375_vm0  ;;  %v3735_v45 = vld [vmem:[#allocation2 + $0xa9] sm:$0xff] }
 0x2a4   : > { %11711 = vmatprep.mubr.msk.f32.mxu1 %vm17393_vm3, %v2936_v52  ;;  %vm17400_vm3 = vmmov %vm17375_vm0  ;;  %v3736_v52 = vld [vmem:[#allocation2 + $0xb1] sm:$0xff] }
 0x2a7   : > { %11712 = vmatmul.mubr.msk.f32.gmra.mrb[54].mxu1 %vm17394_vm13, %v2937_v22  ;;  %vm17401_vm13 = vmmov %vm17375_vm0  ;;  %v3737_v22 = vld [vmem:[#allocation2 + $0xb9] sm:$0xff] }
 0x2a8   : > { %11714 = vmatprep.mubr.msk.f32.mxu1 %vm17395_vm14, %v2938_v0  ;;  %vm17402_vm14 = vmmov %vm17375_vm0  ;;  %v3738_v0 = vld [vmem:[#allocation2 + $0xc1] sm:$0xff] }
 0x2ab   : > { %11715 = vmatmul.mubr.msk.f32.gmra.mrb[56].mxu1 %vm17396_vm7, %v2939_v26  ;;  %vm17403_vm7 = vmmov %vm17375_vm0  ;;  %v3739_v26 = vld [vmem:[#allocation2 + $0xc9] sm:$0xff] }
 0x2ac   : > { %11717 = vmatprep.mubr.msk.f32.mxu1 %vm17375_vm0, %v2940_v21  ;;  %v3740_v21 = vld [vmem:[#allocation2 + $0xd1] sm:$0xff] }
 0x2af   : > { %11718 = vmatmul.mubr.msk.f32.gmra.mrb[58].mxu1 %vm17397_vm2, %v2941_v62  ;;  %vm17404_vm2 = vmmov %vm17375_vm0  ;;  %v3741_v62 = vld [vmem:[#allocation2 + $0xd9] sm:$0xff] }
 0x2b0   : > { %11720 = vmatprep.mubr.msk.f32.mxu1 %vm17398_vm6, %v2942_v19  ;;  %vm17405_vm6 = vmmov %vm17375_vm0  ;;  %v3742_v19 = vld [vmem:[#allocation2 + $0xe1] sm:$0xff] }
 0x2b3   : > { %11721 = vmatmul.mubr.msk.f32.gmra.mrb[60].mxu1 %vm17399_vm11, %v2943_v6  ;;  %vm17406_vm11 = vmmov %vm17375_vm0  ;;  %v3743_v6 = vld [vmem:[#allocation2 + $0xe9] sm:$0xff] }
 0x2b4   : > { %11723 = vmatprep.mubr.msk.f32.mxu1 %vm17400_vm3, %v2944_v17  ;;  %vm17407_vm3 = vmmov %vm17375_vm0  ;;  %v3744_v17 = vld [vmem:[#allocation2 + $0xf1] sm:$0xff] }
 0x2b7   : > { %11724 = vmatmul.mubr.msk.f32.gmra.mrb[62].mxu1 %vm17401_vm13, %v2945_v2  ;;  %vm17408_vm13 = vmmov %vm17375_vm0  ;;  %v3745_v2 = vld [vmem:[#allocation2 + $0xf9] sm:$0xff] }
 0x2b8   : > { %11726 = vmatprep.mubr.msk.f32.mxu1 %vm17402_vm14, %v2946_v54  ;;  %vm17409_vm14 = vmmov %vm17375_vm0  ;;  %v3746_v54 = vld [vmem:[#allocation2 + $0x101] sm:$0xff] }
 0x2bb   : > { %11727 = vmatmul.mubr.msk.f32.gmra.mrb[64].mxu1 %vm17403_vm7, %v2947_v27  ;;  %vm17410_vm7 = vmmov %vm17375_vm0  ;;  %v3747_v27 = vld [vmem:[#allocation2 + $0x109] sm:$0xff] }
 0x2bc   : > { %11729 = vmatprep.mubr.msk.f32.mxu1 %vm17375_vm0, %v2948_v15  ;;  %v3748_v15 = vld [vmem:[#allocation2 + $0x111] sm:$0xff] }
 0x2bf   : > { %11730 = vmatmul.mubr.msk.f32.gmra.mrb[66].mxu1 %vm17404_vm2, %v2949_v18  ;;  %vm17411_vm2 = vmmov %vm17375_vm0  ;;  %v3749_v18 = vld [vmem:[#allocation2 + $0x119] sm:$0xff] }
 0x2c0   : > { %11732 = vmatprep.mubr.msk.f32.mxu1 %vm17405_vm6, %v2950_v14  ;;  %vm17412_vm6 = vmmov %vm17375_vm0  ;;  %v3750_v14 = vld [vmem:[#allocation2 + $0x121] sm:$0xff] }
 0x2c3   : > { %11733 = vmatmul.mubr.msk.f32.gmra.mrb[68].mxu1 %vm17406_vm11, %v2951_v12  ;;  %vm17413_vm11 = vmmov %vm17375_vm0  ;;  %v3751_v12 = vld [vmem:[#allocation2 + $0x129] sm:$0xff] }
 0x2c4   : > { %11735 = vmatprep.mubr.msk.f32.mxu1 %vm17407_vm3, %v2952_v43  ;;  %vm17414_vm3 = vmmov %vm17375_vm0  ;;  %v3753_v43 = vld [vmem:[#allocation2 + $0x139] sm:$0xff] }
 0x2c7   : > { %11736 = vmatmul.mubr.msk.f32.gmra.mrb[70].mxu1 %vm17408_vm13, %v2953_v60  ;;  %vm17415_vm13 = vmmov %vm17375_vm0  ;;  %v3752_v60 = vld [vmem:[#allocation2 + $0x131] sm:$0xff] }
 0x2c8   : > { %11754 = vmatprep.mubr.msk.f32.mxu1 %vm17409_vm14, %v3719_v36  ;;  %vm17416_vm14 = vmmov %vm17375_vm0  ;;  %v3754_v36 = vld [vmem:[#allocation2 + $0x141] sm:$0xff] }
 0x2cb   : > { %11755 = vmatmul.mubr.msk.f32.vlgmr.msra.gmra.mrb[36].mxu1 %vm17410_vm7, %v3720_v31  ;;  %vm17417_vm7 = vmmov %vm17375_vm0  ;;  %v15032_v31 = vld [vmem:[%s17003_s6 + $0x1] ss:$0 sm:$0xff] }
 0x2cc   : > { %11757 = vmatprep.mubr.msk.f32.mxu1 %vm17375_vm0, %v3721_v38 }
 0x2cf   : > { %11758 = vmatmul.mubr.msk.f32.gmra.mrb[38].mxu1 %vm17411_vm2, %v3722_v37  ;;  %vm17418_vm2 = vmmov %vm17375_vm0 }
 0x2d0   : > { %11760 = vmatprep.mubr.msk.f32.mxu1 %vm17412_vm6, %v3723_v39  ;;  %vm17419_vm6 = vmmov %vm17375_vm0 }
 0x2d3   : > { %11761 = vmatmul.mubr.msk.f32.gmra.mrb[40].mxu1 %vm17413_vm11, %v3724_v58  ;;  %vm17420_vm11 = vmmov %vm17375_vm0 }
 0x2d4   : > { %11763 = vmatprep.mubr.msk.f32.mxu1 %vm17414_vm3, %v3725_v8  ;;  %vm17421_vm3 = vmmov %vm17375_vm0 }
 0x2d7   : > { %11764 = vmatmul.mubr.msk.f32.gmra.mrb[42].mxu1 %vm17415_vm13, %v3726_v10  ;;  %vm17422_vm13 = vmmov %vm17375_vm0 }
 0x2d8   : > { %11766 = vmatprep.mubr.msk.f32.mxu1 %vm17416_vm14, %v3727_v47  ;;  %vm17423_vm14 = vmmov %vm17375_vm0 }
 0x2db   : > { %11767 = vmatmul.mubr.msk.f32.gmra.mrb[44].mxu1 %vm17417_vm7, %v3728_v23  ;;  %vm17424_vm7 = vmmov %vm17375_vm0 }
 0x2dc   : > { %11769 = vmatprep.mubr.msk.f32.mxu1 %vm17375_vm0, %v3729_v44 }
 0x2df   : > { %11770 = vmatmul.mubr.msk.f32.gmra.mrb[46].mxu1 %vm17418_vm2, %v3730_v4  ;;  %vm17425_vm2 = vmmov %vm17375_vm0 }
 0x2e0   : > { %11772 = vmatprep.mubr.msk.f32.mxu1 %vm17419_vm6, %v3731_v48  ;;  %vm17426_vm6 = vmmov %vm17375_vm0 }
 0x2e3   : > { %11773 = vmatmul.mubr.msk.f32.gmra.mrb[48].mxu1 %vm17420_vm11, %v3732_v29  ;;  %vm17427_vm11 = vmmov %vm17375_vm0 }
 0x2e4   : > { %11775 = vmatprep.mubr.msk.f32.mxu1 %vm17421_vm3, %v3733_v42  ;;  %vm17428_vm3 = vmmov %vm17375_vm0 }
 0x2e7   : > { %11776 = vmatmul.mubr.msk.f32.gmra.mrb[50].mxu1 %vm17422_vm13, %v3734_v34  ;;  %vm17429_vm13 = vmmov %vm17375_vm0 }
 0x2e8   : > { %11778 = vmatprep.mubr.msk.f32.mxu1 %vm17423_vm14, %v3735_v45  ;;  %vm17430_vm14 = vmmov %vm17375_vm0 }
 0x2eb   : > { %11779 = vmatmul.mubr.msk.f32.gmra.mrb[52].mxu1 %vm17424_vm7, %v3736_v52  ;;  %vm17431_vm7 = vmmov %vm17375_vm0  ;;  %v10342_v52 = vld [vmem:[%s17000_s3 + $0x40] sm:$0xff] }
 0x2ec   : > { %11781 = vmatprep.mubr.msk.f32.mxu1 %vm17375_vm0, %v3737_v22  ;;  %v10343_v22 = vld [vmem:[%s17000_s3 + $0x48] sm:$0xff] }
 0x2ef   : > { %11782 = vmatmul.mubr.msk.f32.gmra.mrb[54].mxu1 %vm17425_vm2, %v3738_v0  ;;  %vm17432_vm2 = vmmov %vm17375_vm0 }
 0x2f0   : > { %11784 = vmatprep.mubr.msk.f32.mxu1 %vm17426_vm6, %v3739_v26  ;;  %vm17433_vm6 = vmmov %vm17375_vm0  ;;  %v12546_v26 = vpack.c.bf16 %v10343_v22, %v10342_v52 }
 0x2f2   : > { %12547 = vmatprep.subr.bf16.mxu0 %v12546_v26 }
 0x2f3   : > { %11785 = vmatmul.mubr.msk.f32.gmra.mrb[56].mxu1 %vm17427_vm11, %v3740_v21  ;;  %vm17434_vm11 = vmmov %vm17375_vm0  ;;  %12549 = vmatpush3.bf16.msra.mxu0 %v12546_v26 }
 0x2f4   : > { %11787 = vmatprep.mubr.msk.f32.mxu1 %vm17428_vm3, %v3741_v62  ;;  %vm17435_vm3 = vmmov %vm17375_vm0 }
 0x2f7   : > { %11788 = vmatmul.mubr.msk.f32.gmra.mrb[58].mxu1 %vm17429_vm13, %v3742_v19  ;;  %vm17436_vm13 = vmmov %vm17375_vm0 }
 0x2f8   : > { %11790 = vmatprep.mubr.msk.f32.mxu1 %vm17430_vm14, %v3743_v6  ;;  %vm17437_vm14 = vmmov %vm17375_vm0 }
 0x2fb   : > { %11791 = vmatmul.mubr.msk.f32.gmra.mrb[60].mxu1 %vm17431_vm7, %v3744_v17  ;;  %vm17438_vm7 = vmmov %vm17375_vm0  ;;  %v10344_v17 = vld [vmem:[%s17000_s3 + $0x50] sm:$0xff] }
 0x2fc   : > { %11793 = vmatprep.mubr.msk.f32.mxu1 %vm17375_vm0, %v3745_v2  ;;  %v10345_v2 = vld [vmem:[%s17000_s3 + $0x58] sm:$0xff] }
 0x2ff   : > { %11794 = vmatmul.mubr.msk.f32.gmra.mrb[62].mxu1 %vm17432_vm2, %v3746_v54  ;;  %vm17439_vm2 = vmmov %vm17375_vm0  ;;  %v12550_v54 = vpack.c.bf16 %v10345_v2, %v10344_v17 }
 0x300   : > { %11796 = vmatprep.mubr.msk.f32.mxu1 %vm17433_vm6, %v3747_v27 }
 0x301   : > { %12551 = vmatprep.subr.bf16.mxu0 %v12550_v54 }
 0x302   : > { %12553 = vmatpush3.bf16.msra.mxu0 %v12550_v54 }
 0x303   : > { %11797 = vmatmul.mubr.msk.f32.gmra.mrb[64].mxu1 %vm17434_vm11, %v3748_v15 }
 0x304   : > { %11799 = vmatprep.mubr.msk.f32.mxu1 %vm17435_vm3, %v3749_v18 }
 0x307   : > { %11800 = vmatmul.mubr.msk.f32.gmra.mrb[66].mxu1 %vm17436_vm13, %v3750_v14 }
 0x308   : > { %11802 = vmatprep.mubr.msk.f32.mxu1 %vm17437_vm14, %v3751_v12 }
 0x30b   : > { %11803 = vmatmul.mubr.msk.f32.gmra.mrb[68].mxu1 %vm17438_vm7, %v3752_v60  ;;  %v10347_v60 = vld [vmem:[%s17000_s3 + $0x68] sm:$0xff] }
 0x30c   : > { %11805 = vmatprep.mubr.msk.f32.mxu1 %vm17375_vm0, %v3753_v43  ;;  %v10346_v43 = vld [vmem:[%s17000_s3 + $0x60] sm:$0xff] }
 0x30f   : > { %11806 = vmatmul.mubr.msk.f32.gmra.mrb[70].mxu1 %vm17439_vm2, %v3754_v36 }
 0x39e   : > { %v11756_v38 = vpop.f32.mrb[36].mxu1 }
 0x39f   : > { %v4162_v37 = vadd.f32 %v11756_v38, %v15032_v31  ;;  %v3941_v39 = vpop.f32.mrb[37].mxu1 }
 0x3a0   : > { %v4161_v58 = vadd.f32 %v15032_v31, %v3941_v39 }
 0x3a1   : > { %vm4198_vm6 = vcmp.ge.f32.partialorder %v4162_v37, 0.0  ;;  %v4234_v8 = vmul.f32 0.01, %v4162_v37 }
 0x3a2   : > { %vm4197_vm11 = vcmp.ge.f32.partialorder %v4161_v58, 0.0  ;;  %v4233_v10 = vmul.f32 0.01, %v4161_v58  ;;  %v11759_v47 = vpop.f32.mrb[38].mxu1 }
 0x3a3   : > { %v3951_v23 = vpop.f32.mrb[39].mxu1  ;;  %v4270_v44 = vsel %vm4198_vm6, %v4162_v37, %v4234_v8  ;;  %v4164_v48 = vadd.f32 %v11759_v47, %v15032_v31  ;;  %v12554_v37 = vpack.c.bf16 %v10347_v60, %v10346_v43  ;;  %v10349_v47 = vld [vmem:[%s17000_s3 + $0x78] sm:$0xf] }
 0x3a4   : > { %v4306_v4 = vsel %vm13652_vm10, %v4270_v44, 0.0  ;;  %v4163_v29 = vadd.f32 %v15032_v31, %v3951_v23  ;;  %v4269_v42 = vsel %vm4197_vm11, %v4161_v58, %v4233_v10  ;;  %v10348_v10 = vld [vmem:[%s17000_s3 + $0x70] sm:$0xff] }
 0x3a5   : > { %4524 = vrot.lane.b32.xlu0 %v4306_v4, %s13113_s16  ;;  %4379 = vrot.lane.b32.xlu1 %v4306_v4, %s13114_s17  ;;  %v4305_v0 = vsel %vm13681_vm15, %v4269_v42, 0.0  ;;  %v4236_v21 = vmul.f32 0.01, %v4164_v48  ;;  %vm4200_vm3 = vcmp.ge.f32.partialorder %v4164_v48, 0.0  ;;  %v12558_v23 = vpack.c.bf16 %v10349_v47, %v10348_v10 }
 0x3a6   : > { %v11762_v34 = vpop.f32.mrb[40].mxu1  ;;  %v4235_v62 = vmul.f32 0.01, %v4163_v29  ;;  %vm4199_vm13 = vcmp.ge.f32.partialorder %v4163_v29, 0.0  ;;  %12555 = vmatprep.subr.bf16.mxu0 %v12554_v37 }
 0x3a7   : > { %v3961_v45 = vpop.f32.mrb[41].mxu1  ;;  %v4272_v15 = vsel %vm4200_vm3, %v4164_v48, %v4236_v21  ;;  %12557 = vmatpush3.bf16.msra.mxu0 %v12554_v37  ;;  %v4166_v44 = vadd.f32 %v11762_v34, %v15032_v31 }
 0x3a8   : > { %v4165_v27 = vadd.f32 %v15032_v31, %v3961_v45  ;;  %v4271_v18 = vsel %vm4199_vm13, %v4163_v29, %v4235_v62  ;;  %v4308_v36 = vsel %vm13712_vm1, %v4272_v15, 0.0  ;;  %12560 = vmatprep.subr.msk.bf16.mxu0 %vm13277_vm4, %v12558_v23 }
 0x3a9   : > { %4669 = vrot.lane.b32.xlu1 %v4306_v4, %s13115_s18  ;;  %4377 = vrot.lane.b32.xlu0 %v4305_v0, %s13114_s17  ;;  %v4307_v38 = vsel %vm13777_vm8, %v4271_v18, 0.0  ;;  %v4238_v45 = vmul.f32 0.01, %v4166_v44  ;;  %vm4202_vm7 = vcmp.ge.f32.partialorder %v4166_v44, 0.0  ;;  %v17442_v18 = vld [vmem:[#allocation5_spill] sm:$0xff] }
 0x3aa   : > { %v11765_v19 = vpop.f32.mrb[42].mxu1  ;;  %v4237_v39 = vmul.f32 0.01, %v4165_v27  ;;  %vm4201_vm14 = vcmp.ge.f32.partialorder %v4165_v27, 0.0  ;;  %vm17443_vm6 = vnez %v17442_v18 }
 0x3ab   : > { %v3971_v6 = vpop.f32.mrb[43].mxu1  ;;  %12563 = vmatpush3.bf16.msk.msra.mxu0 %vm13277_vm4, %v12558_v23  ;;  %v4274_v26 = vsel %vm4202_vm7, %v4166_v44, %v4238_v45  ;;  %v4168_v2 = vadd.f32 %v11765_v19, %v15032_v31 }
 0x3ac   : > { %v4273_v4 = vsel %vm4201_vm14, %v4165_v27, %v4237_v39  ;;  %v4167_v34 = vadd.f32 %v15032_v31, %v3971_v6  ;;  %v17440_v6 = vld [vmem:[#allocation4_spill] sm:$0xff] }
 0x3ad   : > { %4522 = vrot.lane.b32.xlu1 %v4305_v0, %s13113_s16  ;;  %4667 = vrot.lane.b32.xlu0 %v4305_v0, %s13115_s18  ;;  %v4309_v42 = vsel %vm13815_vm12, %v4273_v4, 0.0  ;;  %vm17441_vm2 = vnez %v17440_v6  ;;  %v4240_v60 = vmul.f32 0.01, %v4168_v2  ;;  %vm4204_vm11 = vcmp.ge.f32.partialorder %v4168_v2, 0.0 }
 0x3ae   : > { %v15061_v14 = vpop.f32.mrb[44].mxu1  ;;  %v4239_v0 = vmul.f32 0.01, %v4167_v34  ;;  %vm4203_vm0 = vcmp.ge.f32.partialorder %v4167_v34, 0.0  ;;  %v4310_v17 = vsel %vm17441_vm2, %v4274_v26, 0.0 }
 0x3af   : > { %v3981_v12 = vpop.f32.mrb[45].mxu1  ;;  %v4276_v39 = vsel %vm4204_vm11, %v4168_v2, %v4240_v60  ;;  %v4170_v44 = vadd.f32 %v15061_v14, %v15032_v31 }
 0x3b0   : > { %v4275_v54 = vsel %vm4203_vm0, %v4167_v34, %v4239_v0  ;;  %v17446_v34 = vld [vmem:[#allocation7_spill] sm:$0xff] }
 0x3b1   : > { %4383 = vrot.lane.b32.xlu1 %v4308_v36, %s13114_s17  ;;  %4381 = vrot.lane.b32.xlu0 %v4307_v38, %s13114_s17  ;;  %v4311_v43 = vsel %vm17443_vm6, %v4275_v54, 0.0  ;;  %vm17447_vm14 = vnez %v17446_v34  ;;  %v4242_v26 = vmul.f32 0.01, %v4170_v44  ;;  %vm4206_vm7 = vcmp.ge.f32.partialorder %v4170_v44, 0.0 }
 0x3b2   : > { %v15075_v58 = vpop.f32.mrb[46].mxu1  ;;  %vm17475_vm6 = vnez %v17235_v40 }
 0x3b3   : > { %v3991_v8 = vpop.f32.mrb[47].mxu1 }
 0x3b5   : > { %4528 = vrot.lane.b32.xlu1 %v4308_v36, %s13113_s16  ;;  %4671 = vrot.lane.b32.xlu0 %v4307_v38, %s13115_s18 }
 0x3b6   : > { %v15086_v48 = vpop.f32.mrb[48].mxu1 }
 0x3b7   : > { %v15090_v29 = vpop.f32.mrb[49].mxu1 }
 0x3b9   : > { %4673 = vrot.lane.b32.xlu1 %v4308_v36, %s13115_s18  ;;  %4385 = vrot.lane.b32.xlu0 %v4309_v42, %s13114_s17  ;;  %v4169_v36 = vadd.f32 %v15032_v31, %v3981_v12  ;;  %v17444_v12 = vld [vmem:[#allocation6_spill] sm:$0xff] }
 0x3ba   : > { %v15099_v52 = vpop.f32.mrb[50].mxu1  ;;  %vm17445_vm13 = vnez %v17444_v12 }
 0x3bb   : > { %v15101_v22 = vpop.f32.mrb[51].mxu1  ;;  %v4241_v37 = vmul.f32 0.01, %v4169_v36  ;;  %vm4205_vm3 = vcmp.ge.f32.partialorder %v4169_v36, 0.0  ;;  %v4312_v23 = vsel %vm17445_vm13, %v4276_v39, 0.0  ;;  %v4172_v39 = vadd.f32 %v15075_v58, %v15032_v31 }
 0x3bd   : > { %4526 = vrot.lane.b32.xlu1 %v4307_v38, %s13113_s16  ;;  %4530 = vrot.lane.b32.xlu0 %v4309_v42, %s13113_s16  ;;  %v4277_v4 = vsel %vm4205_vm3, %v4169_v36, %v4241_v37  ;;  %v4244_v12 = vmul.f32 0.01, %v4172_v39 }
 0x3be   : > { %v15105_v21 = vpop.f32.mrb[52].mxu1  ;;  %v4313_v0 = vsel %vm17447_vm14, %v4277_v4, 0.0  ;;  %vm17461_vm14 = vnez %v17196_v41 }
 0x3bf   : > { %v15107_v62 = vpop.f32.mrb[53].mxu1 }
 0x3c1   : > { %4387 = vrot.lane.b32.xlu1 %v4310_v17, %s13114_s17  ;;  %4675 = vrot.lane.b32.xlu0 %v4309_v42, %s13115_s18 }
 0x3c2   : > { %v15114_v27 = vpop.f32.mrb[54].mxu1 }
 0x3c3   : > { %v15116_v15 = vpop.f32.mrb[55].mxu1 }
 0x3c5   : > { %4532 = vrot.lane.b32.xlu1 %v4310_v17, %s13113_s16  ;;  %4389 = vrot.lane.b32.xlu0 %v4311_v43, %s13114_s17 }
 0x3c6   : > { %v15123_v19 = vpop.f32.mrb[56].mxu1 }
 0x3c7   : > { %v15125_v38 = vpop.f32.mrb[57].mxu1 }
 0x3c9   : > { %4677 = vrot.lane.b32.xlu1 %v4310_v17, %s13115_s18  ;;  %4534 = vrot.lane.b32.xlu0 %v4311_v43, %s13113_s16  ;;  %v4171_v17 = vadd.f32 %v15032_v31, %v3991_v8  ;;  %v17448_v8 = vld [vmem:[#allocation8_spill] sm:$0xff] }
 0x3ca   : > { %v15129_v10 = vpop.f32.mrb[58].mxu1  ;;  %vm17449_vm11 = vnez %v17448_v8  ;;  %v4173_v8 = vadd.f32 %v15032_v31, %v15090_v29 }
 0x3cb   : > { %v15131_v47 = vpop.f32.mrb[59].mxu1  ;;  %v4243_v54 = vmul.f32 0.01, %v4171_v17  ;;  %vm4207_vm0 = vcmp.ge.f32.partialorder %v4171_v17, 0.0 }
 0x3cd   : > { %4391 = vrot.lane.b32.xlu1 %v4312_v23, %s13114_s17  ;;  %4679 = vrot.lane.b32.xlu0 %v4311_v43, %s13115_s18  ;;  %v4278_v43 = vsel %vm4206_vm7, %v4170_v44, %v4242_v26  ;;  %v4279_v4 = vsel %vm4207_vm0, %v4171_v17, %v4243_v54  ;;  %v17450_v44 = vld [vmem:[#allocation9_spill] sm:$0xff]  ;;  %vm4208_vm7 = vcmp.ge.f32.partialorder %v4172_v39, 0.0  ;;  %v4245_v17 = vmul.f32 0.01, %v4173_v8 }
 0x3ce   : > { %v15139_v42 = vpop.f32.mrb[60].mxu1  ;;  %v4314_v37 = vsel %vm17449_vm11, %v4278_v43, 0.0  ;;  %vm17451_vm3 = vnez %v17450_v44  ;;  %v4280_v54 = vsel %vm4208_vm7, %v4172_v39, %v4244_v12  ;;  %vm4209_vm0 = vcmp.ge.f32.partialorder %v4173_v8, 0.0 }
 0x3cf   : > { %v15141_v45 = vpop.f32.mrb[61].mxu1  ;;  %v4315_v26 = vsel %vm17451_vm3, %v4279_v4, 0.0  ;;  %vm17452_vm3 = vnez %v17166_v9  ;;  %v4174_v44 = vadd.f32 %v15086_v48, %v15032_v31  ;;  %v4281_v18 = vsel %vm4209_vm0, %v4173_v8, %v4245_v17 }
 0x3d0   : > { %v4316_v29 = vsel %vm17452_vm3, %v4280_v54, 0.0  ;;  %vm17453_vm11 = vnez %v17172_v5  ;;  %v4175_v39 = vadd.f32 %v15032_v31, %v15101_v22  ;;  %vm17454_vm0 = vnez %v17177_v28 }
 0x3d1   : > { %4536 = vrot.lane.b32.xlu1 %v4312_v23, %s13113_s16  ;;  %4393 = vrot.lane.b32.xlu0 %v4313_v0, %s13114_s17  ;;  %v4246_v12 = vmul.f32 0.01, %v4174_v44  ;;  %vm4210_vm7 = vcmp.ge.f32.partialorder %v4174_v44, 0.0 }
 0x3d2   : > { %v15148_v14 = vpop.f32.mrb[62].mxu1  ;;  %v4247_v54 = vmul.f32 0.01, %v4175_v39  ;;  %vm4211_vm3 = vcmp.ge.f32.partialorder %v4175_v39, 0.0 }
 0x3d3   : > { %v15150_v2 = vpop.f32.mrb[63].mxu1  ;;  %v4282_v48 = vsel %vm4210_vm7, %v4174_v44, %v4246_v12  ;;  %v4178_v12 = vadd.f32 %v15105_v21, %v15032_v31 }
 0x3d4   : > { %v4318_v8 = vsel %vm17454_vm0, %v4282_v48, 0.0  ;;  %v4283_v22 = vsel %vm4211_vm3, %v4175_v39, %v4247_v54  ;;  %vm17456_vm3 = vnez %v17184_v3  ;;  %v4179_v48 = vadd.f32 %v15032_v31, %v15116_v15 }
 0x3d5   : > { %4681 = vrot.lane.b32.xlu1 %v4312_v23, %s13115_s18  ;;  %4538 = vrot.lane.b32.xlu0 %v4313_v0, %s13113_s16  ;;  %v4250_v54 = vmul.f32 0.01, %v4178_v12 }
 0x3d6   : > { %v15154_v60 = vpop.f32.mrb[64].mxu1 }
 0x3d7   : > { %v15156_v36 = vpop.f32.mrb[65].mxu1 }
 0x3d9   : > { %4395 = vrot.lane.b32.xlu1 %v4314_v37, %s13114_s17  ;;  %4683 = vrot.lane.b32.xlu0 %v4313_v0, %s13115_s18 }
 0x3da   : > { %v15164_v23 = vpop.f32.mrb[66].mxu1 }
 0x3db   : > { %v15166_v34 = vpop.f32.mrb[67].mxu1 }
 0x3dd   : > { %4540 = vrot.lane.b32.xlu1 %v4314_v37, %s13113_s16  ;;  %4397 = vrot.lane.b32.xlu0 %v4315_v26, %s13114_s17 }
 0x3de   : > { %v15174_v58 = vpop.f32.mrb[68].mxu1 }
 0x3df   : > { %v15176_v0 = vpop.f32.mrb[69].mxu1 }
 0x3e1   : > { %4685 = vrot.lane.b32.xlu1 %v4314_v37, %s13115_s18  ;;  %4542 = vrot.lane.b32.xlu0 %v4315_v26, %s13113_s16  ;;  %v4317_v37 = vsel %vm17453_vm11, %v4281_v18, 0.0  ;;  %v4176_v18 = vadd.f32 %v15099_v52, %v15032_v31  ;;  %vm17455_vm11 = vnez %v17181_v7 }
 0x3e2   : > { %v15180_v43 = vpop.f32.mrb[70].mxu1 }
 0x3e3   : > { %v15182_v4 = vpop.f32.mrb[71].mxu1  ;;  %v4248_v17 = vmul.f32 0.01, %v4176_v18  ;;  %vm4212_vm7 = vcmp.ge.f32.partialorder %v4176_v18, 0.0 }
 0x3e5   : > { %4399 = vrot.lane.b32.xlu1 %v4316_v29, %s13114_s17  ;;  %4687 = vrot.lane.b32.xlu0 %v4315_v26, %s13115_s18  ;;  %v4319_v26 = vsel %vm17455_vm11, %v4283_v22, 0.0  ;;  %v4284_v52 = vsel %vm4212_vm7, %v4176_v18, %v4248_v17  ;;  %vm17457_vm11 = vnez %v17187_v50  ;;  %vm4214_vm7 = vcmp.ge.f32.partialorder %v4178_v12, 0.0 }
 0x3e6   : > { %v4286_v21 = vsel %vm4214_vm7, %v4178_v12, %v4250_v54  ;;  %v4180_v22 = vadd.f32 %v15114_v27, %v15032_v31 }
 0x3e8   : > { %v4252_v17 = vmul.f32 0.01, %v4180_v22  ;;  %vm4216_vm7 = vcmp.ge.f32.partialorder %v4180_v22, 0.0 }
 0x3e9   : > { %4544 = vrot.lane.b32.xlu1 %v4316_v29, %s13113_s16  ;;  %4401 = vrot.lane.b32.xlu0 %v4317_v37, %s13114_s17 }
 0x3ea   : > { %v4288_v27 = vsel %vm4216_vm7, %v4180_v22, %v4252_v17  ;;  %v4184_v17 = vadd.f32 %v15129_v10, %v15032_v31  ;;  %v4185_v10 = vadd.f32 %v15032_v31, %v15141_v45 }
 0x3ed   : > { %4689 = vrot.lane.b32.xlu1 %v4316_v29, %s13115_s18  ;;  %4546 = vrot.lane.b32.xlu0 %v4317_v37, %s13113_s16  ;;  %v4177_v29 = vadd.f32 %v15032_v31, %v15107_v62 }
 0x3ef   : > { %v4249_v44 = vmul.f32 0.01, %v4177_v29  ;;  %vm4213_vm0 = vcmp.ge.f32.partialorder %v4177_v29, 0.0 }
 0x3f1   : > { %4403 = vrot.lane.b32.xlu1 %v4318_v8, %s13114_s17  ;;  %4691 = vrot.lane.b32.xlu0 %v4317_v37, %s13115_s18  ;;  %v4320_v37 = vsel %vm17456_vm3, %v4284_v52, 0.0  ;;  %v4285_v62 = vsel %vm4213_vm0, %v4177_v29, %v4249_v44  ;;  %vm4215_vm3 = vcmp.ge.f32.partialorder %v4179_v48, 0.0  ;;  %vm17458_vm0 = vnez %v17190_v35 }
 0x3f2   : > { %v4321_v39 = vsel %vm17457_vm11, %v4285_v62, 0.0  ;;  %v4322_v18 = vsel %vm17458_vm0, %v4286_v21, 0.0  ;;  %vm17459_vm11 = vnez %v17192_v13  ;;  %v4181_v29 = vadd.f32 %v15032_v31, %v15125_v38 }
 0x3f4   : > { %v4253_v44 = vmul.f32 0.01, %v4181_v29  ;;  %vm4217_vm0 = vcmp.ge.f32.partialorder %v4181_v29, 0.0 }
 0x3f5   : > { %4548 = vrot.lane.b32.xlu1 %v4318_v8, %s13113_s16  ;;  %4405 = vrot.lane.b32.xlu0 %v4319_v26, %s13114_s17 }
 0x3f6   : > { %v4289_v38 = vsel %vm4217_vm0, %v4181_v29, %v4253_v44 }
 0x3f9   : > { %4693 = vrot.lane.b32.xlu1 %v4318_v8, %s13115_s18  ;;  %4550 = vrot.lane.b32.xlu0 %v4319_v26, %s13113_s16  ;;  %v4251_v8 = vmul.f32 0.01, %v4179_v48 }
 0x3fb   : > { %v4287_v15 = vsel %vm4215_vm3, %v4179_v48, %v4251_v8  ;;  %vm17460_vm3 = vnez %v17194_v61  ;;  %v4183_v48 = vadd.f32 %v15032_v31, %v15131_v47 }
 0x3fc   : > { %v4324_v52 = vsel %vm17460_vm3, %v4288_v27, 0.0  ;;  %vm17093_vm3 = vcmask 261344  }
 0x3fd   : > { %4407 = vrot.lane.b32.xlu1 %v4320_v37, %s13114_s17  ;;  %4695 = vrot.lane.b32.xlu0 %v4319_v26, %s13115_s18  ;;  %v4323_v26 = vsel %vm17459_vm11, %v4287_v15, 0.0  ;;  %vm17092_vm11 = vcmask 228544   ;;  %v4255_v21 = vmul.f32 0.01, %v4183_v48  ;;  %vm4219_vm0 = vcmp.ge.f32.partialorder %v4183_v48, 0.0  ;;  %v17462_v15 = vld [vmem:[#allocation10_spill] sm:$0xff] }
 0x3fe   : > { %vm17463_vm13 = vnez %v17462_v15 }
 0x3ff   : > { %v4291_v29 = vsel %vm4219_vm0, %v4183_v48, %v4255_v21  ;;  %vm17466_vm0 = vcmask 490496   ;;  %v4257_v48 = vmul.f32 0.01, %v4185_v10  ;;  %v4186_v21 = vadd.f32 %v15139_v42, %v15032_v31 }
 0x401   : > { %4552 = vrot.lane.b32.xlu1 %v4320_v37, %s13113_s16  ;;  %4409 = vrot.lane.b32.xlu0 %v4321_v39, %s13114_s17 }
 0x405   : > { %4697 = vrot.lane.b32.xlu1 %v4320_v37, %s13115_s18  ;;  %4554 = vrot.lane.b32.xlu0 %v4321_v39, %s13113_s16  ;;  %v4182_v37 = vadd.f32 %v15123_v19, %v15032_v31 }
 0x407   : > { %v4254_v54 = vmul.f32 0.01, %v4182_v37  ;;  %vm4218_vm7 = vcmp.ge.f32.partialorder %v4182_v37, 0.0 }
 0x409   : > { %4411 = vrot.lane.b32.xlu1 %v4322_v18, %s13114_s17  ;;  %4699 = vrot.lane.b32.xlu0 %v4321_v39, %s13115_s18  ;;  %v4325_v39 = vsel %vm17461_vm14, %v4289_v38, 0.0  ;;  %vm17091_vm14 = vcmask 294144   ;;  %v4256_v38 = vmul.f32 0.01, %v4184_v17 }
 0x40d   : > { %4556 = vrot.lane.b32.xlu1 %v4322_v18, %s13113_s16  ;;  %4413 = vrot.lane.b32.xlu0 %v4323_v26, %s13114_s17 }
 0x411   : > { %4701 = vrot.lane.b32.xlu1 %v4322_v18, %s13115_s18  ;;  %4558 = vrot.lane.b32.xlu0 %v4323_v26, %s13113_s16  ;;  %v4290_v18 = vsel %vm4218_vm7, %v4182_v37, %v4254_v54 }
 0x415   : > { %4415 = vrot.lane.b32.xlu1 %v4324_v52, %s13114_s17  ;;  %4703 = vrot.lane.b32.xlu0 %v4323_v26, %s13115_s18  ;;  %v4326_v26 = vsel %vm17463_vm13, %v4290_v18, 0.0  ;;  %vm17468_vm13 = vnez %v17215_v25 }
 0x417   : > { %v4525_v12 = vpop.permute.xlu0 %4524  ;;  %v4380_v62 = vpop.permute.xlu1 %4379 }
 0x418   : > { %4487 = vst.msk [vmem:[#allocation2 + $0x20] sm:$0xff] %vm17092_vm11, %v4380_v62 }
 0x419   : > { %4560 = vrot.lane.b32.xlu1 %v4324_v52, %s13113_s16  ;;  %4417 = vrot.lane.b32.xlu0 %v4325_v39, %s13114_s17 }
 0x41b   : > { %v4670_v19 = vpop.permute.xlu1 %4669  ;;  %v4378_v8 = vpop.permute.xlu0 %4377 }
 0x41c   : > { %4486 = vst.msk [vmem:[#allocation2 + $0x18] sm:$0xff] %vm17092_vm11, %v4378_v8 }
 0x41d   : > { %4632 = vst.msk [vmem:[#allocation2 + $0x1f] sm:$0xff] %vm17093_vm3, %v4525_v12  ;;  %4705 = vrot.lane.b32.xlu1 %v4324_v52, %s13115_s18  ;;  %4562 = vrot.lane.b32.xlu0 %v4325_v39, %s13113_s16  ;;  %v17464_v52 = vld [vmem:[#allocation11_spill] sm:$0xff] }
 0x41e   : > { %vm17465_vm7 = vnez %v17464_v52 }
 0x41f   : > { %v4523_v47 = vpop.permute.xlu1 %4522  ;;  %v4668_v22 = vpop.permute.xlu0 %4667  ;;  %v4327_v37 = vsel %vm17465_vm7, %v4291_v29, 0.0  ;;  %vm17467_vm7 = vcmask 228544   ;;  %v4849_v29 = vld [vmem:[%s17000_s3 + $0x8] sm:$0xff] }
 0x420   : > { %4631 = vst.msk [vmem:[#allocation2 + $0x17] sm:$0xff] %vm17093_vm3, %v4523_v47 }
 0x421   : > { %4776 = vst.msk [vmem:[#allocation2 + $0x16] sm:$0xff] %vm17091_vm14, %v4668_v22  ;;  %4777 = vst.msk [vmem:[#allocation2 + $0x1e] sm:$0xff] %vm17091_vm14, %v4670_v19  ;;  %4419 = vrot.lane.b32.xlu1 %v4326_v26, %s13114_s17  ;;  %4707 = vrot.lane.b32.xlu0 %v4325_v39, %s13115_s18  ;;  %vm4220_vm14 = vcmp.ge.f32.partialorder %v4184_v17, 0.0 }
 0x422   : > { %v4292_v54 = vsel %vm4220_vm14, %v4184_v17, %v4256_v38  ;;  %vm17469_vm14 = vcmask 294144   ;;  %v4848_v17 = vld [vmem:[%s17000_s3] sm:$0xff] }
 0x423   : > { %v4384_v44 = vpop.permute.xlu1 %4383  ;;  %v4382_v27 = vpop.permute.xlu0 %4381  ;;  %v4328_v45 = vsel %vm17468_vm13, %v4292_v54, 0.0 }
 0x424   : > { %4489 = vst.msk [vmem:[#allocation2 + $0x30] sm:$0xff] %vm17092_vm11, %v4384_v44  ;;  %4488 = vst.msk [vmem:[#allocation2 + $0x28] sm:$0xff] %vm17092_vm11, %v4382_v27  ;;  %vm4221_vm11 = vcmp.ge.f32.partialorder %v4185_v10, 0.0  ;;  %v4187_v44 = vadd.f32 %v15032_v31, %v15150_v2  ;;  %v12564_v27 = vpack.c.bf16 %v4849_v29, %v4848_v17 }
 0x425   : > { %4564 = vrot.lane.b32.xlu1 %v4326_v26, %s13113_s16  ;;  %4421 = vrot.lane.b32.xlu0 %v4327_v37, %s13114_s17  ;;  %v4293_v18 = vsel %vm4221_vm11, %v4185_v10, %v4257_v48  ;;  %vm4222_vm11 = vcmp.ge.f32.partialorder %v4186_v21, 0.0 }
 0x426   : > { %12565 = vmatprep.subr.bf16.mxu0 %v12564_v27 }
 0x427   : > { %v4529_v12 = vpop.permute.xlu1 %4528  ;;  %v4672_v62 = vpop.permute.xlu0 %4671 }
 0x428   : > { %4634 = vst.msk [vmem:[#allocation2 + $0x2f] sm:$0xff] %vm17093_vm3, %v4529_v12  ;;  %v4856_v39 = vld [vmem:[#allocation2 + $0x17] sm:$0xff]  ;;  %v4259_v12 = vmul.f32 0.01, %v4187_v44 }
 0x429   : > { %11824 = vmatprep.mubr.msk.f32.mxu0 %vm17466_vm0, %v4856_v39  ;;  %4709 = vrot.lane.b32.xlu1 %v4326_v26, %s13115_s18  ;;  %v4258_v26 = vmul.f32 0.01, %v4186_v21  ;;  %vm17471_vm0 = vnez %v17225_v53 }
 0x42a   : > { %4566 = vrot.lane.b32.xlu0 %v4327_v37, %s13113_s16  ;;  %v4329_v42 = vsel %vm17471_vm0, %v4293_v18, 0.0  ;;  %vm17473_vm0 = vcmask 261344  }
 0x42b   : > { %v4674_v19 = vpop.permute.xlu1 %4673  ;;  %v4386_v8 = vpop.permute.xlu0 %4385  ;;  %v4294_v10 = vsel %vm4222_vm11, %v4186_v21, %v4258_v26 }
 0x42c   : > { %4490 = vst.msk [vmem:[#allocation2 + $0x38] sm:$0xff] %vm17467_vm7, %v4386_v8  ;;  %vm17470_vm7 = vmmov %vm17469_vm14  ;;  %v4330_v54 = vsel %vm17475_vm6, %v4294_v10, 0.0  ;;  %v4850_v10 = vld [vmem:[%s17000_s3 + $0x10] sm:$0xff] }
 0x42d   : > { %4423 = vrot.lane.b32.xlu1 %v4328_v45, %s13114_s17 }
 0x42e   : > { %4711 = vrot.lane.b32.xlu0 %v4327_v37, %s13115_s18 }
 0x42f   : > { %v4527_v47 = vpop.permute.xlu1 %4526  ;;  %v4531_v22 = vpop.permute.xlu0 %4530 }
 0x430   : > { %4633 = vst.msk [vmem:[#allocation2 + $0x27] sm:$0xff] %vm17093_vm3, %v4527_v47  ;;  %4635 = vst.msk [vmem:[#allocation2 + $0x37] sm:$0xff] %vm17093_vm3, %v4531_v22  ;;  %vm4223_vm3 = vcmp.ge.f32.partialorder %v4187_v44, 0.0  ;;  %v4189_v22 = vadd.f32 %v15032_v31, %v15156_v36 }
 0x431   : > { %4778 = vst.msk [vmem:[#allocation2 + $0x26] sm:$0xff] %vm17469_vm14, %v4672_v62  ;;  %4568 = vrot.lane.b32.xlu1 %v4328_v45, %s13113_s16  ;;  %vm17472_vm14 = vcmask 228544   ;;  %v4295_v8 = vsel %vm4223_vm3, %v4187_v44, %v4259_v12  ;;  %vm17481_vm3 = vcmask 228544   ;;  %v4851_v12 = vld [vmem:[%s17000_s3 + $0x18] sm:$0xff] }
 0x432   : > { %4779 = vst.msk [vmem:[#allocation2 + $0x2e] sm:$0xff] %vm17470_vm7, %v4674_v19  ;;  %4425 = vrot.lane.b32.xlu0 %v4329_v42, %s13114_s17  ;;  %vm17474_vm13 = vmmov %vm17472_vm14  ;;  %v4188_v19 = vadd.f32 %v15148_v14, %v15032_v31  ;;  %v4261_v29 = vmul.f32 0.01, %v4189_v22 }
 0x433   : > { %v4388_v37 = vpop.permute.xlu1 %4387  ;;  %v4676_v38 = vpop.permute.xlu0 %4675 }
 0x434   : > { %4491 = vst.msk [vmem:[#allocation2 + $0x40] sm:$0xff] %vm17472_vm14, %v4388_v37  ;;  %vm17476_vm14 = vcmask 490496   ;;  %v4260_v47 = vmul.f32 0.01, %v4188_v19  ;;  %vm4224_vm6 = vcmp.ge.f32.partialorder %v4188_v19, 0.0 }
 0x435   : > { %4780 = vst.msk [vmem:[#allocation2 + $0x36] sm:$0xff] %vm17470_vm7, %v4676_v38  ;;  %4713 = vrot.lane.b32.xlu1 %v4328_v45, %s13115_s18  ;;  %vm17477_vm11 = vmmov %vm17476_vm14  ;;  %v4190_v38 = vadd.f32 %v15154_v60, %v15032_v31 }
 0x436   : > { %4570 = vrot.lane.b32.xlu0 %v4329_v42, %s13113_s16  ;;  %v4296_v17 = vsel %vm4224_vm6, %v4188_v19, %v4260_v47 }
 0x437   : > { %v4533_v62 = vpop.permute.xlu1 %4532  ;;  %v4390_v39 = vpop.permute.xlu0 %4389  ;;  %v4262_v60 = vmul.f32 0.01, %v4190_v38 }
 0x438   : > { %4636 = vst.msk [vmem:[#allocation2 + $0x3f] sm:$0xff] %vm17473_vm0, %v4533_v62  ;;  %v4857_v2 = vld [vmem:[#allocation2 + $0x1f] sm:$0xff] }
 0x439   : > { %4492 = vst.msk [vmem:[#allocation2 + $0x48] sm:$0xff] %vm17474_vm13, %v4390_v39  ;;  %v4858_v48 = vld [vmem:[#allocation2 + $0x27] sm:$0xff]  ;;  %11825 = vmatmul.mubr.msk.f32.vlgmr.msra.gmra.mrb[36].mxu0 %vm17476_vm14, %v4857_v2  ;;  %4427 = vrot.lane.b32.xlu1 %v4330_v54, %s13114_s17  ;;  %vm17478_vm13 = vmmov %vm17470_vm7  ;;  %vm17480_vm14 = vnez %v17243_v16  ;;  %v12568_v39 = vpack.c.bf16 %v4851_v12, %v4850_v10  ;;  %v4193_v10 = vadd.f32 %v15032_v31, %v15176_v0 }
 0x43a   : > { %4715 = vrot.lane.b32.xlu0 %v4329_v42, %s13115_s18  ;;  %11827 = vmatprep.mubr.msk.f32.mxu0 %vm17477_vm11, %v4858_v48  ;;  %vm17479_vm7 = vmmov %vm17477_vm11  ;;  %v4331_v14 = vsel %vm17480_vm14, %v4295_v8, 0.0  ;;  %vm17484_vm14 = vcmask 490496   ;;  %v4191_v8 = vadd.f32 %v15032_v31, %v15166_v34 }
 0x43b   : > { %v4678_v45 = vpop.permute.xlu1 %4677  ;;  %v4535_v21 = vpop.permute.xlu0 %4534  ;;  %12567 = vmatpush3.bf16.msra.mxu0 %v12564_v27  ;;  %vm17482_vm11 = vmmov %vm17478_vm13 }
 0x43c   : > { %v4859_v18 = vld [vmem:[#allocation2 + $0x2f] sm:$0xff]  ;;  %4781 = vst.msk [vmem:[#allocation2 + $0x3e] sm:$0xff] %vm17478_vm13, %v4678_v45  ;;  %vm4225_vm13 = vcmp.ge.f32.partialorder %v4189_v22, 0.0  ;;  %vm17486_vm6 = vmmov %vm17482_vm11  ;;  %12569 = vmatprep.subr.bf16.mxu0 %v12568_v39  ;;  %v4263_v47 = vmul.f32 0.01, %v4191_v8 }
 0x43d   : > { %4637 = vst.msk [vmem:[#allocation2 + $0x47] sm:$0xff] %vm17473_vm0, %v4535_v21  ;;  %11828 = vmatmul.mubr.msk.f32.gmra.mrb[38].mxu0 %vm17479_vm7, %v4859_v18  ;;  %4572 = vrot.lane.b32.xlu1 %v4330_v54, %s13113_s16  ;;  %vm17483_vm7 = vmmov %vm17481_vm3  ;;  %v4297_v62 = vsel %vm4225_vm13, %v4189_v22, %v4261_v29  ;;  %vm17490_vm13 = vcmask 228544  }
 0x43e   : > { %4429 = vrot.lane.b32.xlu0 %v4331_v14, %s13114_s17 }
 0x43f   : > { %v4392_v26 = vpop.permute.xlu1 %4391  ;;  %v4680_v42 = vpop.permute.xlu0 %4679  ;;  %12571 = vmatpush3.bf16.msra.mxu0 %v12568_v39 }
 0x440   : > { %4493 = vst.msk [vmem:[#allocation2 + $0x50] sm:$0xff] %vm17481_vm3, %v4392_v26  ;;  %vm17485_vm3 = vnez %v17255_v63 }
 0x441   : > { %4782 = vst.msk [vmem:[#allocation2 + $0x46] sm:$0xff] %vm17482_vm11, %v4680_v42  ;;  %4717 = vrot.lane.b32.xlu1 %v4330_v54, %s13115_s18  ;;  %v4332_v36 = vsel %vm17485_vm3, %v4296_v17, 0.0  ;;  %vm17488_vm11 = vcmask 490496   ;;  %vm17493_vm3 = vcmask 490496   ;;  %v4192_v42 = vadd.f32 %v15164_v23, %v15032_v31 }
 0x442   : > { %4574 = vrot.lane.b32.xlu0 %v4331_v14, %s13113_s16 }
 0x443   : > { %v4537_v44 = vpop.permute.xlu1 %4536  ;;  %v4394_v27 = vpop.permute.xlu0 %4393  ;;  %v4860_v37 = vld [vmem:[#allocation2 + $0x37] sm:$0xff] }
 0x444   : > { %4638 = vst.msk [vmem:[#allocation2 + $0x4f] sm:$0xff] %vm17473_vm0, %v4537_v44  ;;  %11830 = vmatprep.mubr.msk.f32.mxu0 %vm17484_vm14, %v4860_v37  ;;  %vm17487_vm14 = vmmov %vm17473_vm0  ;;  %vm17489_vm0 = vnez %v17264_v49  ;;  %v4264_v37 = vmul.f32 0.01, %v4192_v42 }
 0x445   : > { %4494 = vst.msk [vmem:[#allocation2 + $0x58] sm:$0xff] %vm17483_vm7, %v4394_v27  ;;  %4431 = vrot.lane.b32.xlu1 %v4332_v36, %s13114_s17  ;;  %v4333_v19 = vsel %vm17489_vm0, %v4297_v62, 0.0  ;;  %vm4226_vm7 = vcmp.ge.f32.partialorder %v4190_v38, 0.0  ;;  %vm17492_vm0 = vmmov %vm17490_vm13 }
 0x446   : > { %4719 = vrot.lane.b32.xlu0 %v4331_v14, %s13115_s18  ;;  %v4298_v18 = vsel %vm4226_vm7, %v4190_v38, %v4262_v60  ;;  %vm17495_vm7 = vmmov %vm17486_vm6  ;;  %v4853_v38 = vld [vmem:[%s17000_s3 + $0x28] sm:$0xff] }
 0x447   : > { %v4682_v2 = vpop.permute.xlu1 %4681  ;;  %v4539_v54 = vpop.permute.xlu0 %4538 }
 0x448   : > { %v4861_v48 = vld [vmem:[#allocation2 + $0x3f] sm:$0xff]  ;;  %4783 = vst.msk [vmem:[#allocation2 + $0x4e] sm:$0xff] %vm17486_vm6, %v4682_v2 }
 0x449   : > { %4639 = vst.msk [vmem:[#allocation2 + $0x57] sm:$0xff] %vm17487_vm14, %v4539_v54  ;;  %11831 = vmatmul.mubr.msk.f32.gmra.mrb[40].mxu0 %vm17488_vm11, %v4861_v48  ;;  %4576 = vrot.lane.b32.xlu1 %v4332_v36, %s13113_s16  ;;  %vm4227_vm14 = vcmp.ge.f32.partialorder %v4191_v8, 0.0  ;;  %vm17491_vm11 = vcmask 261344   ;;  %v4265_v54 = vmul.f32 0.01, %v4193_v10 }
 0x44a   : > { %4433 = vrot.lane.b32.xlu0 %v4333_v19, %s13114_s17  ;;  %v4299_v17 = vsel %vm4227_vm14, %v4191_v8, %v4263_v47  ;;  %vm4228_vm14 = vcmp.ge.f32.partialorder %v4192_v42, 0.0  ;;  %v4194_v8 = vadd.f32 %v15174_v58, %v15032_v31 }
 0x44b   : > { %v4396_v45 = vpop.permute.xlu1 %4395  ;;  %v4684_v21 = vpop.permute.xlu0 %4683  ;;  %v4300_v2 = vsel %vm4228_vm14, %v4192_v42, %v4264_v37  ;;  %vm17504_vm14 = vmmov %vm17495_vm7  ;;  %v4196_v37 = vadd.f32 %v15180_v43, %v15032_v31 }
 0x44c   : > { %4495 = vst.msk [vmem:[#allocation2 + $0x60] sm:$0xff] %vm17490_vm13, %v4396_v45  ;;  %vm17494_vm13 = vnez %v17275_v59 }
 0x44d   : > { %4784 = vst.msk [vmem:[#allocation2 + $0x56] sm:$0xff] %vm17486_vm6, %v4684_v21  ;;  %4721 = vrot.lane.b32.xlu1 %v4332_v36, %s13115_s18  ;;  %v4334_v34 = vsel %vm17494_vm13, %v4298_v18, 0.0  ;;  %vm17496_vm6 = vmmov %vm17491_vm11  ;;  %v4852_v36 = vld [vmem:[%s17000_s3 + $0x20] sm:$0xff]  ;;  %vm17502_vm13 = vcmask 490496  }
 0x44e   : > { %4578 = vrot.lane.b32.xlu0 %v4333_v19, %s13113_s16  ;;  %v12572_v12 = vpack.c.bf16 %v4853_v38, %v4852_v36  ;;  %v4855_v36 = vld [vmem:[%s17000_s3 + $0x38] sm:$0xf] }
 0x44f   : > { %v4541_v14 = vpop.permute.xlu1 %4540  ;;  %v4398_v22 = vpop.permute.xlu0 %4397  ;;  %v4862_v26 = vld [vmem:[#allocation2 + $0x47] sm:$0xff] }
 0x450   : > { %4640 = vst.msk [vmem:[#allocation2 + $0x5f] sm:$0xff] %vm17491_vm11, %v4541_v14  ;;  %11833 = vmatprep.mubr.msk.f32.mxu0 %vm17493_vm3, %v4862_v26  ;;  %vm17499_vm11 = vcmask 228544   ;;  %12573 = vmatprep.subr.bf16.mxu0 %v12572_v12  ;;  %v4266_v14 = vmul.f32 0.01, %v4194_v8 }
 0x451   : > { %4496 = vst.msk [vmem:[#allocation2 + $0x68] sm:$0xff] %vm17492_vm0, %v4398_v22  ;;  %4435 = vrot.lane.b32.xlu1 %v4334_v34, %s13114_s17  ;;  %vm17497_vm0 = vmmov %vm17493_vm3  ;;  %vm17498_vm3 = vnez %v17284_v24  ;;  %12575 = vmatpush3.bf16.msra.mxu0 %v12572_v12  ;;  %v4195_v22 = vadd.f32 %v15032_v31, %v15182_v4  ;;  %v4268_v31 = vmul.f32 0.01, %v4196_v37 }
 0x452   : > { %4723 = vrot.lane.b32.xlu0 %v4333_v19, %s13115_s18  ;;  %v4335_v23 = vsel %vm17498_vm3, %v4299_v17, 0.0  ;;  %vm17501_vm3 = vmmov %vm17499_vm11 }
 0x453   : > { %v4686_v29 = vpop.permute.xlu1 %4685  ;;  %v4543_v44 = vpop.permute.xlu0 %4542  ;;  %v4267_v17 = vmul.f32 0.01, %v4195_v22 }
 0x454   : > { %v4863_v27 = vld [vmem:[#allocation2 + $0x4f] sm:$0xff]  ;;  %4785 = vst.msk [vmem:[#allocation2 + $0x5e] sm:$0xff] %vm17495_vm7, %v4686_v29 }
 0x455   : > { %4641 = vst.msk [vmem:[#allocation2 + $0x67] sm:$0xff] %vm17496_vm6, %v4543_v44  ;;  %11834 = vmatmul.mubr.msk.f32.gmra.mrb[42].mxu0 %vm17497_vm0, %v4863_v27  ;;  %4580 = vrot.lane.b32.xlu1 %v4334_v34, %s13113_s16  ;;  %vm4229_vm6 = vcmp.ge.f32.partialorder %v4193_v10, 0.0  ;;  %vm17500_vm0 = vcmask 261344  }
 0x456   : > { %4437 = vrot.lane.b32.xlu0 %v4335_v23, %s13114_s17  ;;  %v4301_v45 = vsel %vm4229_vm6, %v4193_v10, %v4265_v54  ;;  %vm17508_vm6 = vcmask 228544  }
 0x457   : > { %v4400_v62 = vpop.permute.xlu1 %4399  ;;  %v4688_v39 = vpop.permute.xlu0 %4687 }
 0x458   : > { %4497 = vst.msk [vmem:[#allocation2 + $0x70] sm:$0xff] %vm17499_vm11, %v4400_v62  ;;  %vm17503_vm11 = vnez %v17294_v33 }
 0x459   : > { %4786 = vst.msk [vmem:[#allocation2 + $0x66] sm:$0xff] %vm17495_vm7, %v4688_v39  ;;  %4725 = vrot.lane.b32.xlu1 %v4334_v34, %s13115_s18  ;;  %v4336_v19 = vsel %vm17503_vm11, %v4300_v2, 0.0  ;;  %vm17505_vm7 = vmmov %vm17500_vm0  ;;  %vm17511_vm11 = vcmask 490496  }
 0x45a   : > { %4582 = vrot.lane.b32.xlu0 %v4335_v23, %s13113_s16 }
 0x45b   : > { %v4545_v48 = vpop.permute.xlu1 %4544  ;;  %v4402_v0 = vpop.permute.xlu0 %4401  ;;  %v4864_v60 = vld [vmem:[#allocation2 + $0x57] sm:$0xff] }
 0x45c   : > { %4642 = vst.msk [vmem:[#allocation2 + $0x6f] sm:$0xff] %vm17500_vm0, %v4545_v48  ;;  %11836 = vmatprep.mubr.msk.f32.mxu0 %vm17502_vm13, %v4864_v60  ;;  %vm4230_vm0 = vcmp.ge.f32.partialorder %v4194_v8, 0.0 }
 0x45d   : > { %4498 = vst.msk [vmem:[#allocation2 + $0x78] sm:$0xff] %vm17501_vm3, %v4402_v0  ;;  %4439 = vrot.lane.b32.xlu1 %v4336_v19, %s13114_s17  ;;  %vm17506_vm3 = vmmov %vm17502_vm13  ;;  %vm17507_vm13 = vnez %v17302_v11  ;;  %v4302_v42 = vsel %vm4230_vm0, %v4194_v8, %v4266_v14  ;;  %vm17514_vm0 = vcmask 490496  }
 0x45e   : > { %4727 = vrot.lane.b32.xlu0 %v4335_v23, %s13115_s18  ;;  %v4337_v58 = vsel %vm17507_vm13, %v4301_v45, 0.0  ;;  %vm17510_vm13 = vmmov %vm17508_vm6  ;;  %v4338_v4 = vsel %vm14788_vm9, %v4302_v42, 0.0  ;;  %v4854_v23 = vld [vmem:[%s17000_s3 + $0x30] sm:$0xff] }
 0x45f   : > { %v4690_v21 = vpop.permute.xlu1 %4689  ;;  %v4547_v18 = vpop.permute.xlu0 %4546  ;;  %v12576_v10 = vpack.c.bf16 %v4855_v36, %v4854_v23 }
 0x460   : > { %v4865_v47 = vld [vmem:[#allocation2 + $0x5f] sm:$0xff]  ;;  %4787 = vst.msk [vmem:[#allocation2 + $0x6e] sm:$0xff] %vm17504_vm14, %v4690_v21 }
 0x461   : > { %4643 = vst.msk [vmem:[#allocation2 + $0x77] sm:$0xff] %vm17505_vm7, %v4547_v18  ;;  %11837 = vmatmul.mubr.msk.f32.gmra.mrb[44].mxu0 %vm17506_vm3, %v4865_v47  ;;  %4584 = vrot.lane.b32.xlu1 %v4336_v19, %s13113_s16  ;;  %vm4231_vm7 = vcmp.ge.f32.partialorder %v4195_v22, 0.0  ;;  %vm17509_vm3 = vcmask 261344  }
 0x462   : > { %4441 = vrot.lane.b32.xlu0 %v4337_v58, %s13114_s17  ;;  %v4303_v38 = vsel %vm4231_vm7, %v4195_v22, %v4267_v17  ;;  %12578 = vmatprep.subr.msk.bf16.mxu0 %vm13277_vm4, %v12576_v10  ;;  %v10425_v22 = vld [vmem:[%s17000_s3 + $0x88] sm:$0xff] }
 0x463   : > { %v4404_v26 = vpop.permute.xlu1 %4403  ;;  %v4692_v34 = vpop.permute.xlu0 %4691  ;;  %v4339_v43 = vsel %vm14802_vm5, %v4303_v38, 0.0  ;;  %12581 = vmatpush3.bf16.msk.msra.mxu0 %vm13277_vm4, %v12576_v10 }
 0x464   : > { %4499 = vst.msk [vmem:[#allocation2 + $0x80] sm:$0xff] %vm17508_vm6, %v4404_v26  ;;  %vm4232_vm6 = vcmp.ge.f32.partialorder %v4196_v37, 0.0 }
 0x465   : > { %4788 = vst.msk [vmem:[#allocation2 + $0x76] sm:$0xff] %vm17504_vm14, %v4692_v34  ;;  %4729 = vrot.lane.b32.xlu1 %v4336_v19, %s13115_s18  ;;  %v4304_v48 = vsel %vm4232_vm6, %v4196_v37, %v4268_v31 }
 0x466   : > { %4586 = vrot.lane.b32.xlu0 %v4337_v58, %s13113_s16 }
 0x467   : > { %v4549_v29 = vpop.permute.xlu1 %4548  ;;  %v4406_v44 = vpop.permute.xlu0 %4405  ;;  %v4866_v27 = vld [vmem:[#allocation2 + $0x67] sm:$0xff] }
 0x468   : > { %4644 = vst.msk [vmem:[#allocation2 + $0x7f] sm:$0xff] %vm17509_vm3, %v4549_v29  ;;  %11839 = vmatprep.mubr.msk.f32.mxu0 %vm17511_vm11, %v4866_v27  ;;  %vm17512_vm11 = vmmov %vm17504_vm14  ;;  %vm17515_vm14 = vcmask 228544  }
 0x469   : > { %4500 = vst.msk [vmem:[#allocation2 + $0x88] sm:$0xff] %vm17510_vm13, %v4406_v44  ;;  %4443 = vrot.lane.b32.xlu1 %v4338_v4, %s13114_s17  ;;  %vm17513_vm13 = vmmov %vm17509_vm3 }
 0x46a   : > { %4731 = vrot.lane.b32.xlu0 %v4337_v58, %s13115_s18  ;;  %vm17516_vm7 = vmmov %vm17512_vm11  ;;  %v10424_v58 = vld [vmem:[%s17000_s3 + $0x80] sm:$0xff] }
 0x46b   : > { %v4694_v12 = vpop.permute.xlu1 %4693  ;;  %v4551_v62 = vpop.permute.xlu0 %4550  ;;  %vm17520_vm6 = vmmov %vm17516_vm7  ;;  %v15456_v26 = vpack.c.bf16 %v10425_v22, %v10424_v58 }
 0x46c   : > { %v4867_v39 = vld [vmem:[#allocation2 + $0x6f] sm:$0xff]  ;;  %4789 = vst.msk [vmem:[#allocation2 + $0x7e] sm:$0xff] %vm17512_vm11, %v4694_v12  ;;  %vm17517_vm11 = vmmov %vm17515_vm14 }
 0x46d   : > { %4645 = vst.msk [vmem:[#allocation2 + $0x87] sm:$0xff] %vm17513_vm13, %v4551_v62  ;;  %11840 = vmatmul.mubr.msk.f32.gmra.mrb[46].mxu0 %vm17514_vm0, %v4867_v39  ;;  %4588 = vrot.lane.b32.xlu1 %v4338_v4, %s13113_s16  ;;  %vm17518_vm13 = vmmov %vm17514_vm0  ;;  %vm17519_vm0 = vnez %v17321_v30 }
 0x46e   : > { %4445 = vrot.lane.b32.xlu0 %v4339_v43, %s13114_s17  ;;  %v4340_v8 = vsel %vm17519_vm0, %v4304_v48, 0.0  ;;  %12583 = vmatprep.subr.bf16.mxu0 %v15456_v26 }
 0x46f   : > { %v4408_v2 = vpop.permute.xlu1 %4407  ;;  %v4696_v54 = vpop.permute.xlu0 %4695 }
 0x470   : > { %4501 = vst.msk [vmem:[#allocation2 + $0x90] sm:$0xff] %vm17515_vm14, %v4408_v2  ;;  %vm17521_vm14 = vmmov %vm17509_vm3 }
 0x471   : > { %4790 = vst.msk [vmem:[#allocation2 + $0x86] sm:$0xff] %vm17516_vm7, %v4696_v54  ;;  %4733 = vrot.lane.b32.xlu1 %v4338_v4, %s13115_s18  ;;  %vm17522_vm7 = vmmov %vm17518_vm13 }
 0x472   : > { %4590 = vrot.lane.b32.xlu0 %v4339_v43, %s13113_s16 }
 0x473   : > { %v4553_v0 = vpop.permute.xlu1 %4552  ;;  %v4410_v60 = vpop.permute.xlu0 %4409  ;;  %v4868_v19 = vld [vmem:[#allocation2 + $0x77] sm:$0xff] }
 0x474   : > { %4646 = vst.msk [vmem:[#allocation2 + $0x8f] sm:$0xff] %vm17509_vm3, %v4553_v0  ;;  %11842 = vmatprep.mubr.msk.f32.mxu0 %vm17518_vm13, %v4868_v19  ;;  %vm17523_vm3 = vmmov %vm17517_vm11 }
 0x475   : > { %4502 = vst.msk [vmem:[#allocation2 + $0x98] sm:$0xff] %vm17517_vm11, %v4410_v60  ;;  %4447 = vrot.lane.b32.xlu1 %v4340_v8, %s13114_s17  ;;  %vm17524_vm11 = vmmov %vm17520_vm6 }
 0x476   : > { %4735 = vrot.lane.b32.xlu0 %v4339_v43, %s13115_s18  ;;  %vm17525_vm13 = vmmov %vm17521_vm14 }
 0x477   : > { %v4698_v45 = vpop.permute.xlu1 %4697  ;;  %v4555_v21 = vpop.permute.xlu0 %4554 }
 0x478   : > { %v4869_v18 = vld [vmem:[#allocation2 + $0x7f] sm:$0xff]  ;;  %4791 = vst.msk [vmem:[#allocation2 + $0x8e] sm:$0xff] %vm17520_vm6, %v4698_v45  ;;  %vm17526_vm6 = vmmov %vm17523_vm3 }
 0x479   : > { %4647 = vst.msk [vmem:[#allocation2 + $0x97] sm:$0xff] %vm17521_vm14, %v4555_v21  ;;  %11843 = vmatmul.mubr.msk.f32.gmra.mrb[48].mxu0 %vm17522_vm7, %v4869_v18  ;;  %4737 = vrot.lane.b32.xlu1 %v4340_v8, %s13115_s18  ;;  %vm17527_vm14 = vmmov %vm17522_vm7 }
 0x47a   : > { %4592 = vrot.lane.b32.xlu0 %v4340_v8, %s13113_s16  ;;  %vm17528_vm7 = vmmov %vm17524_vm11  ;;  %s13118_s16 = smov 44  }
 0x47b   : > { %v4412_v47 = vpop.permute.xlu1 %4411  ;;  %v4700_v14 = vpop.permute.xlu0 %4699  ;;  %vm17531_vm0 = vmmov %vm17526_vm6 }
 0x47c   : > { %4503 = vst.msk [vmem:[#allocation2 + $0xa0] sm:$0xff] %vm17523_vm3, %v4412_v47  ;;  %vm17529_vm3 = vmmov %vm17525_vm13 }
 0x47d   : > { %4792 = vst.msk [vmem:[#allocation2 + $0x96] sm:$0xff] %vm17524_vm11, %v4700_v14  ;;  %vm17530_vm11 = vmmov %vm17527_vm14 }
 0x47e   : > { %vm17532_vm5 = vmmov %vm17528_vm7 }
 0x47f   : > { %v4557_v34 = vpop.permute.xlu1 %4556  ;;  %v4414_v42 = vpop.permute.xlu0 %4413  ;;  %v4870_v17 = vld [vmem:[#allocation2 + $0x87] sm:$0xff] }
 0x480   : > { %4648 = vst.msk [vmem:[#allocation2 + $0x9f] sm:$0xff] %vm17525_vm13, %v4557_v34  ;;  %11845 = vmatprep.mubr.msk.f32.mxu0 %vm17527_vm14, %v4870_v17  ;;  %vm17533_vm13 = vmmov %vm17529_vm3 }
 0x481   : > { %4504 = vst.msk [vmem:[#allocation2 + $0xa8] sm:$0xff] %vm17526_vm6, %v4414_v42  ;;  %vm17534_vm6 = vmmov %vm17531_vm0 }
 0x482   : > { %vm17535_vm14 = vmmov %vm17530_vm11 }
 0x483   : > { %v4702_v29 = vpop.permute.xlu1 %4701  ;;  %v4559_v44 = vpop.permute.xlu0 %4558 }
 0x484   : > { %v4871_v27 = vld [vmem:[#allocation2 + $0x8f] sm:$0xff]  ;;  %4793 = vst.msk [vmem:[#allocation2 + $0x9e] sm:$0xff] %vm17528_vm7, %v4702_v29  ;;  %vm17536_vm7 = vmmov %vm17532_vm5 }
 0x485   : > { %4649 = vst.msk [vmem:[#allocation2 + $0xa7] sm:$0xff] %vm17529_vm3, %v4559_v44  ;;  %11846 = vmatmul.mubr.msk.f32.gmra.mrb[50].mxu0 %vm17530_vm11, %v4871_v27 }
 0x487   : > { %v4416_v4 = vpop.permute.xlu1 %4415  ;;  %v4704_v37 = vpop.permute.xlu0 %4703 }
 0x488   : > { %4505 = vst.msk [vmem:[#allocation2 + $0xb0] sm:$0xff] %vm17531_vm0, %v4416_v4 }
 0x489   : > { %4794 = vst.msk [vmem:[#allocation2 + $0xa6] sm:$0xff] %vm17532_vm5, %v4704_v37  ;;  %vm17537_vm5 = vmmov %vm17531_vm0 }
 0x48a   : > { %vm17538_vm0 = vmmov %vm17536_vm7 }
 0x48b   : > { %v4561_v23 = vpop.permute.xlu1 %4560  ;;  %v4418_v36 = vpop.permute.xlu0 %4417  ;;  %v4872_v38 = vld [vmem:[#allocation2 + $0x97] sm:$0xff] }
 0x48c   : > { %4650 = vst.msk [vmem:[#allocation2 + $0xaf] sm:$0xff] %vm17533_vm13, %v4561_v23  ;;  %11848 = vmatprep.mubr.msk.f32.mxu0 %vm17535_vm14, %v4872_v38  ;;  %vm17539_vm13 = vmmov %vm17529_vm3 }
 0x48d   : > { %4506 = vst.msk [vmem:[#allocation2 + $0xb8] sm:$0xff] %vm17534_vm6, %v4418_v36  ;;  %vm17540_vm6 = vmmov %vm17537_vm5 }
 0x48e   : > { %vm17541_vm14 = vmmov %vm17530_vm11 }
 0x48f   : > { %v4706_v10 = vpop.permute.xlu1 %4705  ;;  %v4563_v12 = vpop.permute.xlu0 %4562 }
 0x490   : > { %v4873_v62 = vld [vmem:[#allocation2 + $0x9f] sm:$0xff]  ;;  %4795 = vst.msk [vmem:[#allocation2 + $0xae] sm:$0xff] %vm17536_vm7, %v4706_v10  ;;  %vm17542_vm7 = vmmov %vm17538_vm0 }
 0x491   : > { %4651 = vst.msk [vmem:[#allocation2 + $0xb7] sm:$0xff] %vm17529_vm3, %v4563_v12  ;;  %11849 = vmatmul.mubr.msk.f32.gmra.mrb[52].mxu0 %vm17530_vm11, %v4873_v62  ;;  %vm17543_vm3 = vmmov %vm17530_vm11 }
 0x492   : > { %vm17544_vm11 = vmmov %vm17539_vm13 }
 0x493   : > { %v4420_v39 = vpop.permute.xlu1 %4419  ;;  %v4708_v31 = vpop.permute.xlu0 %4707 }
 0x494   : > { %4507 = vst.msk [vmem:[#allocation2 + $0xc0] sm:$0xff] %vm17537_vm5, %v4420_v39 }
 0x495   : > { %4796 = vst.msk [vmem:[#allocation2 + $0xb6] sm:$0xff] %vm17538_vm0, %v4708_v31 }
 0x497   : > { %v4565_v43 = vpop.permute.xlu1 %4564  ;;  %v4422_v2 = vpop.permute.xlu0 %4421  ;;  %v4874_v54 = vld [vmem:[#allocation2 + $0xa7] sm:$0xff] }
 0x498   : > { %4652 = vst.msk [vmem:[#allocation2 + $0xbf] sm:$0xff] %vm17539_vm13, %v4565_v43  ;;  %11851 = vmatprep.mubr.msk.f32.mxu0 %vm17541_vm14, %v4874_v54  ;;  %vm17545_vm13 = vmmov %vm17544_vm11 }
 0x499   : > { %4508 = vst.msk [vmem:[#allocation2 + $0xc8] sm:$0xff] %vm17540_vm6, %v4422_v2  ;;  %vm17546_vm6 = vmmov %vm17543_vm3 }
 0x49a   : > { %vm17547_vm14 = vmmov %vm17537_vm5 }
 0x49b   : > { %v4710_v48 = vpop.permute.xlu1 %4709 }
 0x49c   : > { %v4875_v0 = vld [vmem:[#allocation2 + $0xaf] sm:$0xff]  ;;  %4797 = vst.msk [vmem:[#allocation2 + $0xbe] sm:$0xff] %vm17542_vm7, %v4710_v48  ;;  %v4567_v60 = vpop.permute.xlu0 %4566  ;;  %vm17548_vm7 = vmmov %vm17538_vm0 }
 0x49d   : > { %11852 = vmatmul.mubr.msk.f32.gmra.mrb[54].mxu0 %vm17543_vm3, %v4875_v0  ;;  %4653 = vst.msk [vmem:[#allocation2 + $0xc7] sm:$0xff] %vm17544_vm11, %v4567_v60  ;;  %vm17549_vm3 = vmmov %vm17544_vm11 }
 0x49e   : > { %vm17550_vm11 = vmmov %vm17546_vm6 }
 0x49f   : > { %v4424_v19 = vpop.permute.xlu1 %4423 }
 0x4a0   : > { %4509 = vst.msk [vmem:[#allocation2 + $0xd0] sm:$0xff] %vm17537_vm5, %v4424_v19  ;;  %v4712_v8 = vpop.permute.xlu0 %4711 }
 0x4a1   : > { %4798 = vst.msk [vmem:[#allocation2 + $0xc6] sm:$0xff] %vm17538_vm0, %v4712_v8 }
 0x4a3   : > { %v4569_v45 = vpop.permute.xlu1 %4568  ;;  %v4876_v21 = vld [vmem:[#allocation2 + $0xb7] sm:$0xff] }
 0x4a4   : > { %4654 = vst.msk [vmem:[#allocation2 + $0xcf] sm:$0xff] %vm17545_vm13, %v4569_v45  ;;  %v4426_v18 = vpop.permute.xlu0 %4425  ;;  %11854 = vmatprep.mubr.msk.f32.mxu0 %vm17546_vm6, %v4876_v21  ;;  %vm17551_vm13 = vmmov %vm17549_vm3 }
 0x4a5   : > { %4510 = vst.msk [vmem:[#allocation2 + $0xd8] sm:$0xff] %vm17547_vm14, %v4426_v18  ;;  %vm17552_vm14 = vmmov %vm17537_vm5 }
 0x4a7   : > { %v4714_v47 = vpop.permute.xlu1 %4713 }
 0x4a8   : > { %4799 = vst.msk [vmem:[#allocation2 + $0xce] sm:$0xff] %vm17548_vm7, %v4714_v47  ;;  %v4571_v14 = vpop.permute.xlu0 %4570  ;;  %v4877_v58 = vld [vmem:[#allocation2 + $0xbf] sm:$0xff]  ;;  %vm17553_vm7 = vmmov %vm17538_vm0 }
 0x4a9   : > { %4655 = vst.msk [vmem:[#allocation2 + $0xd7] sm:$0xff] %vm17549_vm3, %v4571_v14  ;;  %11855 = vmatmul.mubr.msk.f32.gmra.mrb[56].mxu0 %vm17550_vm11, %v4877_v58  ;;  %vm17554_vm11 = vmmov %vm17546_vm6 }
 0x4ab   : > { %v4428_v22 = vpop.permute.xlu1 %4427 }
 0x4ac   : > { %4511 = vst.msk [vmem:[#allocation2 + $0xe0] sm:$0xff] %vm17537_vm5, %v4428_v22  ;;  %v4716_v34 = vpop.permute.xlu0 %4715 }
 0x4ad   : > { %4800 = vst.msk [vmem:[#allocation2 + $0xd6] sm:$0xff] %vm17538_vm0, %v4716_v34 }
 0x4af   : > { %v4573_v42 = vpop.permute.xlu1 %4572  ;;  %v4878_v17 = vld [vmem:[#allocation2 + $0xc7] sm:$0xff] }
 0x4b0   : > { %4656 = vst.msk [vmem:[#allocation2 + $0xdf] sm:$0xff] %vm17551_vm13, %v4573_v42  ;;  %v4430_v29 = vpop.permute.xlu0 %4429  ;;  %11857 = vmatprep.mubr.msk.f32.mxu0 %vm17546_vm6, %v4878_v17  ;;  %vm17555_vm13 = vmmov %vm17549_vm3 }
 0x4b1   : > { %4512 = vst.msk [vmem:[#allocation2 + $0xe8] sm:$0xff] %vm17552_vm14, %v4430_v29  ;;  %vm17556_vm14 = vmmov %vm17537_vm5 }
 0x4b3   : > { %v4718_v44 = vpop.permute.xlu1 %4717 }
 0x4b4   : > { %4801 = vst.msk [vmem:[#allocation2 + $0xde] sm:$0xff] %vm17553_vm7, %v4718_v44  ;;  %v4575_v27 = vpop.permute.xlu0 %4574  ;;  %v4879_v4 = vld [vmem:[#allocation2 + $0xcf] sm:$0xff]  ;;  %vm17557_vm7 = vmmov %vm17538_vm0 }
 0x4b5   : > { %4657 = vst.msk [vmem:[#allocation2 + $0xe7] sm:$0xff] %vm17549_vm3, %v4575_v27  ;;  %11858 = vmatmul.mubr.msk.f32.gmra.mrb[58].mxu0 %vm17554_vm11, %v4879_v4  ;;  %vm17558_vm11 = vmmov %vm17546_vm6 }
 0x4b7   : > { %v4432_v37 = vpop.permute.xlu1 %4431 }
 0x4b8   : > { %4513 = vst.msk [vmem:[#allocation2 + $0xf0] sm:$0xff] %vm17537_vm5, %v4432_v37  ;;  %v4720_v23 = vpop.permute.xlu0 %4719 }
 0x4b9   : > { %4802 = vst.msk [vmem:[#allocation2 + $0xe6] sm:$0xff] %vm17538_vm0, %v4720_v23 }
 0x4bb   : > { %v4577_v36 = vpop.permute.xlu1 %4576  ;;  %v4880_v38 = vld [vmem:[#allocation2 + $0xd7] sm:$0xff] }
 0x4bc   : > { %4658 = vst.msk [vmem:[#allocation2 + $0xef] sm:$0xff] %vm17555_vm13, %v4577_v36  ;;  %v4434_v10 = vpop.permute.xlu0 %4433  ;;  %11860 = vmatprep.mubr.msk.f32.mxu0 %vm17546_vm6, %v4880_v38  ;;  %vm17559_vm13 = vmmov %vm17549_vm3 }
 0x4bd   : > { %4514 = vst.msk [vmem:[#allocation2 + $0xf8] sm:$0xff] %vm17556_vm14, %v4434_v10  ;;  %vm17560_vm14 = vmmov %vm17537_vm5 }
 0x4bf   : > { %v4722_v12 = vpop.permute.xlu1 %4721 }
 0x4c0   : > { %4803 = vst.msk [vmem:[#allocation2 + $0xee] sm:$0xff] %vm17557_vm7, %v4722_v12  ;;  %v4579_v62 = vpop.permute.xlu0 %4578  ;;  %v4881_v39 = vld [vmem:[#allocation2 + $0xdf] sm:$0xff]  ;;  %vm17561_vm7 = vmmov %vm17538_vm0 }
 0x4c1   : > { %4659 = vst.msk [vmem:[#allocation2 + $0xf7] sm:$0xff] %vm17549_vm3, %v4579_v62  ;;  %11861 = vmatmul.mubr.msk.f32.gmra.mrb[60].mxu0 %vm17558_vm11, %v4881_v39  ;;  %vm17562_vm11 = vmmov %vm17546_vm6 }
 0x4c3   : > { %v4436_v31 = vpop.permute.xlu1 %4435 }
 0x4c4   : > { %4515 = vst.msk [vmem:[#allocation2 + $0x100] sm:$0xff] %vm17537_vm5, %v4436_v31  ;;  %v4724_v43 = vpop.permute.xlu0 %4723 }
 0x4c5   : > { %4804 = vst.msk [vmem:[#allocation2 + $0xf6] sm:$0xff] %vm17538_vm0, %v4724_v43  ;;  %v4812_v43 = vld [vmem:[#allocation2 + $0x5] sm:$0xff] }
 0x4c7   : > { %v4581_v2 = vpop.permute.xlu1 %4580  ;;  %v4882_v54 = vld [vmem:[#allocation2 + $0xe7] sm:$0xff] }
 0x4c8   : > { %4660 = vst.msk [vmem:[#allocation2 + $0xff] sm:$0xff] %vm17559_vm13, %v4581_v2  ;;  %v4438_v48 = vpop.permute.xlu0 %4437  ;;  %11863 = vmatprep.mubr.msk.f32.mxu0 %vm17546_vm6, %v4882_v54  ;;  %vm17563_vm13 = vmmov %vm17549_vm3  ;;  %v10426_v2 = vld [vmem:[%s17000_s3 + $0x90] sm:$0xff]  ;;  %v10427_v54 = vld [vmem:[%s17000_s3 + $0x98] sm:$0xff] }
 0x4c9   : > { %4516 = vst.msk [vmem:[#allocation2 + $0x108] sm:$0xff] %vm17560_vm14, %v4438_v48  ;;  %vm17564_vm14 = vmmov %vm17537_vm5  ;;  %v4813_v48 = vld [vmem:[#allocation2 + $0xd] sm:$0xff] }
 0x4cb   : > { %v4726_v0 = vpop.permute.xlu1 %4725 }
 0x4cc   : > { %4805 = vst.msk [vmem:[#allocation2 + $0xfe] sm:$0xff] %vm17561_vm7, %v4726_v0  ;;  %v4583_v60 = vpop.permute.xlu0 %4582  ;;  %v4883_v19 = vld [vmem:[#allocation2 + $0xef] sm:$0xff]  ;;  %vm17565_vm7 = vmmov %vm17538_vm0  ;;  %v12586_v0 = vpack.c.bf16 %v10427_v54, %v10426_v2  ;;  %v4836_v2 = vld [vmem:[#allocation2 + $0xc5] sm:$0xff] }
 0x4cd   : > { %4661 = vst.msk [vmem:[#allocation2 + $0x107] sm:$0xff] %vm17549_vm3, %v4583_v60  ;;  %11864 = vmatmul.mubr.msk.f32.gmra.mrb[62].mxu0 %vm17562_vm11, %v4883_v19  ;;  %vm17566_vm11 = vmmov %vm17546_vm6  ;;  %v10428_v60 = vld [vmem:[%s17000_s3 + $0xa0] sm:$0xff]  ;;  %v10429_v19 = vld [vmem:[%s17000_s3 + $0xa8] sm:$0xff] }
 0x4ce   : > { %v4837_v54 = vld [vmem:[#allocation2 + $0xcd] sm:$0xff] }
 0x4cf   : > { %v4440_v8 = vpop.permute.xlu1 %4439 }
 0x4d0   : > { %4517 = vst.msk [vmem:[#allocation2 + $0x110] sm:$0xff] %vm17537_vm5, %v4440_v8  ;;  %v4728_v45 = vpop.permute.xlu0 %4727  ;;  %v4814_v8 = vld [vmem:[#allocation2 + $0x15] sm:$0xff] }
 0x4d1   : > { %4806 = vst.msk [vmem:[#allocation2 + $0x106] sm:$0xff] %vm17538_vm0, %v4728_v45  ;;  %v12590_v45 = vpack.c.bf16 %v10429_v19, %v10428_v60  ;;  %v4840_v60 = vld [vmem:[#allocation2 + $0xe5] sm:$0xff]  ;;  %v4841_v19 = vld [vmem:[#allocation2 + $0xed] sm:$0xff] }
 0x4d3   : > { %v4585_v21 = vpop.permute.xlu1 %4584  ;;  %v4884_v18 = vld [vmem:[#allocation2 + $0xf7] sm:$0xff] }
 0x4d4   : > { %4662 = vst.msk [vmem:[#allocation2 + $0x10f] sm:$0xff] %vm17563_vm13, %v4585_v21  ;;  %v4442_v47 = vpop.permute.xlu0 %4441  ;;  %11866 = vmatprep.mubr.msk.f32.mxu0 %vm17546_vm6, %v4884_v18  ;;  %vm17567_vm13 = vmmov %vm17549_vm3  ;;  %v4815_v21 = vld [vmem:[#allocation2 + $0x1d] sm:$0xff]  ;;  %v10430_v18 = vld [vmem:[%s17000_s3 + $0xb0] sm:$0xff] }
 0x4d5   : > { %4518 = vst.msk [vmem:[#allocation2 + $0x118] sm:$0xff] %vm17564_vm14, %v4442_v47  ;;  %vm17568_vm14 = vmmov %vm17537_vm5  ;;  %v10431_v47 = vld [vmem:[%s17000_s3 + $0xb8] sm:$0xf] }
 0x4d7   : > { %v4730_v14 = vpop.permute.xlu1 %4729 }
 0x4d8   : > { %4807 = vst.msk [vmem:[#allocation2 + $0x10e] sm:$0xff] %vm17565_vm7, %v4730_v14  ;;  %v4587_v58 = vpop.permute.xlu0 %4586  ;;  %v4885_v22 = vld [vmem:[#allocation2 + $0xff] sm:$0xff]  ;;  %vm17569_vm7 = vmmov %vm17538_vm0 }
 0x4d9   : > { %4663 = vst.msk [vmem:[#allocation2 + $0x117] sm:$0xff] %vm17549_vm3, %v4587_v58  ;;  %11867 = vmatmul.mubr.msk.f32.gmra.mrb[64].mxu0 %vm17566_vm11, %v4885_v22  ;;  %vm17570_vm11 = vmmov %vm17546_vm6  ;;  %v4816_v14 = vld [vmem:[#allocation2 + $0x25] sm:$0xff]  ;;  %v12594_v58 = vpack.c.bf16 %v10431_v47, %v10430_v18  ;;  %v4818_v22 = vld [vmem:[#allocation2 + $0x35] sm:$0xff] }
 0x4db   : > { %v4444_v34 = vpop.permute.xlu1 %4443 }
 0x4dc   : > { %4519 = vst.msk [vmem:[#allocation2 + $0x120] sm:$0xff] %vm17537_vm5, %v4444_v34  ;;  %v4732_v42 = vpop.permute.xlu0 %4731  ;;  %v4819_v34 = vld [vmem:[#allocation2 + $0x3d] sm:$0xff] }
 0x4dd   : > { %4808 = vst.msk [vmem:[#allocation2 + $0x116] sm:$0xff] %vm17538_vm0, %v4732_v42  ;;  %v4820_v42 = vld [vmem:[#allocation2 + $0x45] sm:$0xff] }
 0x4df   : > { %v4589_v17 = vpop.permute.xlu1 %4588  ;;  %v4886_v29 = vld [vmem:[#allocation2 + $0x107] sm:$0xff] }
 0x4e0   : > { %4664 = vst.msk [vmem:[#allocation2 + $0x11f] sm:$0xff] %vm17567_vm13, %v4589_v17  ;;  %v4446_v44 = vpop.permute.xlu0 %4445  ;;  %11869 = vmatprep.mubr.msk.f32.mxu0 %vm17546_vm6, %v4886_v29  ;;  %vm17571_vm13 = vmmov %vm17546_vm6  ;;  %v4821_v17 = vld [vmem:[#allocation2 + $0x4d] sm:$0xff]  ;;  %v4822_v29 = vld [vmem:[#allocation2 + $0x55] sm:$0xff] }
 0x4e1   : > { %4520 = vst.msk [vmem:[#allocation2 + $0x128] sm:$0xff] %vm17568_vm14, %v4446_v44  ;;  %vm17572_vm6 = vmmov %vm17549_vm3  ;;  %v4823_v44 = vld [vmem:[#allocation2 + $0x5d] sm:$0xff]  ;;  %v4845_v18 = vld [vmem:[#allocation2 + $0x10d] sm:$0xff] }
 0x4e2   : > { %vm17573_vm14 = vmmov %vm17538_vm0 }
 0x4e3   : > { %v4734_v27 = vpop.permute.xlu1 %4733 }
 0x4e4   : > { %4809 = vst.msk [vmem:[#allocation2 + $0x11e] sm:$0xff] %vm17569_vm7, %v4734_v27  ;;  %v4591_v4 = vpop.permute.xlu0 %4590  ;;  %v4887_v37 = vld [vmem:[#allocation2 + $0x10f] sm:$0xff]  ;;  %vm17574_vm7 = vmmov %vm17570_vm11  ;;  %v4824_v27 = vld [vmem:[#allocation2 + $0x65] sm:$0xff] }
 0x4e5   : > { %4665 = vst.msk [vmem:[#allocation2 + $0x127] sm:$0xff] %vm17549_vm3, %v4591_v4  ;;  %11870 = vmatmul.mubr.msk.f32.gmra.mrb[66].mxu0 %vm17570_vm11, %v4887_v37  ;;  %vm17575_vm3 = vmmov %vm17574_vm7  ;;  %v4825_v4 = vld [vmem:[#allocation2 + $0x6d] sm:$0xff]  ;;  %v4826_v37 = vld [vmem:[#allocation2 + $0x75] sm:$0xff] }
 0x4e6   : > { %vm17576_vm11 = vmmov %vm17575_vm3  ;;  %v4846_v47 = vld [vmem:[#allocation2 + $0x115] sm:$0xff] }
 0x4e7   : > { %v4448_v23 = vpop.permute.xlu1 %4447 }
 0x4e8   : > { %4521 = vst.msk [vmem:[#allocation2 + $0x130] sm:$0xff] %vm17537_vm5, %v4448_v23  ;;  %v4736_v36 = vpop.permute.xlu0 %4735  ;;  %vm17577_vm5 = vmmov %vm17575_vm3  ;;  %v4827_v23 = vld [vmem:[#allocation2 + $0x7d] sm:$0xff] }
 0x4e9   : > { %4810 = vst.msk [vmem:[#allocation2 + $0x126] sm:$0xff] %vm17538_vm0, %v4736_v36  ;;  %vm17578_vm0 = vmmov %vm17575_vm3  ;;  %v4828_v36 = vld [vmem:[#allocation2 + $0x85] sm:$0xff] }
 0x4eb   : > { %v4738_v38 = vpop.permute.xlu1 %4737  ;;  %v4888_v10 = vld [vmem:[#allocation2 + $0x117] sm:$0xff] }
 0x4ec   : > { %v4593_v12 = vpop.permute.xlu0 %4592  ;;  %11872 = vmatprep.mubr.msk.f32.mxu0 %vm17571_vm13, %v4888_v10  ;;  %vm17579_vm13 = vmmov %vm17578_vm0  ;;  %v4830_v10 = vld [vmem:[#allocation2 + $0x95] sm:$0xff] }
 0x4ed   : > { %4666 = vst.msk [vmem:[#allocation2 + $0x12f] sm:$0xff] %vm17572_vm6, %v4593_v12  ;;  %vm17580_vm6 = vmmov %vm17578_vm0  ;;  %v4831_v12 = vld [vmem:[#allocation2 + $0x9d] sm:$0xff] }
 0x4ee   : > { %4811 = vst.msk [vmem:[#allocation2 + $0x12e] sm:$0xff] %vm17573_vm14, %v4738_v38  ;;  %vm17581_vm14 = vmmov %vm17578_vm0  ;;  %v4829_v38 = vld [vmem:[#allocation2 + $0x8d] sm:$0xff] }
 0x4f0   : > { %v4889_v62 = vld [vmem:[#allocation2 + $0x11f] sm:$0xff] }
 0x4f1   : > { %11873 = vmatmul.mubr.msk.f32.gmra.mrb[68].mxu0 %vm17574_vm7, %v4889_v62  ;;  %vm17582_vm7 = vmmov %vm17578_vm0  ;;  %v4832_v62 = vld [vmem:[#allocation2 + $0xa5] sm:$0xff] }
 0x4f5   : > { %v4890_v39 = vld [vmem:[#allocation2 + $0x127] sm:$0xff]  ;;  %v4891_v31 = vld [vmem:[#allocation2 + $0x12f] sm:$0xff] }
 0x4f6   : > { %11875 = vmatprep.mubr.msk.f32.mxu0 %vm17575_vm3, %v4890_v39  ;;  %vm17583_vm3 = vmmov %vm17578_vm0  ;;  %v4833_v39 = vld [vmem:[#allocation2 + $0xad] sm:$0xff] }
 0x4f7   : > { %11876 = vmatmul.mubr.msk.f32.gmra.mrb[70].mxu0 %vm17576_vm11, %v4891_v31  ;;  %vm17584_vm11 = vmmov %vm17578_vm0  ;;  %v4834_v31 = vld [vmem:[#allocation2 + $0xb5] sm:$0xff] }
 0x4f8   : > { %11894 = vmatprep.mubr.msk.f32.mxu0 %vm17577_vm5, %v4812_v43  ;;  %vm17585_vm5 = vmmov %vm17578_vm0  ;;  %v4835_v43 = vld [vmem:[#allocation2 + $0xbd] sm:$0xff] }
 0x4fb   : > { %11895 = vmatmul.mubr.msk.f32.vlgmr.msra.gmra.mrb[36].mxu0 %vm17578_vm0, %v4813_v48  ;;  %v4838_v48 = vld [vmem:[#allocation2 + $0xd5] sm:$0xff] }
 0x4fc   : > { %11897 = vmatprep.mubr.msk.f32.mxu0 %vm17579_vm13, %v4814_v8  ;;  %12585 = vmatpush3.bf16.msra.mxu0 %v15456_v26  ;;  %v4817_v26 = vld [vmem:[#allocation2 + $0x2d] sm:$0xff]  ;;  %vm17586_vm13 = vmmov %vm17578_vm0  ;;  %v4842_v8 = vld [vmem:[#allocation2 + $0xf5] sm:$0xff] }
 0x4fd   : > { %12587 = vmatprep.subr.bf16.mxu0 %v12586_v0 }
 0x4ff   : > { %11898 = vmatmul.mubr.msk.f32.gmra.mrb[38].mxu0 %vm17580_vm6, %v4815_v21  ;;  %vm17587_vm6 = vmmov %vm17578_vm0  ;;  %v4844_v21 = vld [vmem:[#allocation2 + $0x105] sm:$0xff] }
 0x500   : > { %11900 = vmatprep.mubr.msk.f32.mxu0 %vm17581_vm14, %v4816_v14  ;;  %12589 = vmatpush3.bf16.msra.mxu0 %v12586_v0  ;;  %vm17588_vm14 = vmmov %vm17578_vm0  ;;  %v4839_v0 = vld [vmem:[#allocation2 + $0xdd] sm:$0xff] }
 0x501   : > { %12591 = vmatprep.subr.bf16.mxu0 %v12590_v45  ;;  %v4847_v14 = vld [vmem:[#allocation2 + $0x11d] sm:$0xff] }
 0x503   : > { %11901 = vmatmul.mubr.msk.f32.gmra.mrb[40].mxu0 %vm17582_vm7, %v4817_v26  ;;  %vm17589_vm7 = vmmov %vm17578_vm0  ;;  %v5614_v26 = vld [vmem:[#allocation2 + $0x31] sm:$0xff] }
 0x504   : > { %11903 = vmatprep.mubr.msk.f32.mxu0 %vm17583_vm3, %v4818_v22  ;;  %12593 = vmatpush3.bf16.msra.mxu0 %v12590_v45  ;;  %vm17590_vm3 = vmmov %vm17578_vm0  ;;  %v4843_v45 = vld [vmem:[#allocation2 + $0xfd] sm:$0xff] }
 0x505   : > { %12596 = vmatprep.subr.msk.bf16.mxu0 %vm13277_vm4, %v12594_v58  ;;  %v5615_v22 = vld [vmem:[#allocation2 + $0x39] sm:$0xff] }
 0x507   : > { %11904 = vmatmul.mubr.msk.f32.gmra.mrb[42].mxu0 %vm17584_vm11, %v4819_v34  ;;  %vm17591_vm11 = vmmov %vm17578_vm0  ;;  %v5616_v34 = vld [vmem:[#allocation2 + $0x41] sm:$0xff] }
 0x508   : > { %11906 = vmatprep.mubr.msk.f32.mxu0 %vm17585_vm5, %v4820_v42  ;;  %12599 = vmatpush3.bf16.msk.msra.mxu0 %vm13277_vm4, %v12594_v58  ;;  %vm17592_vm5 = vmmov %vm17578_vm0  ;;  %v5613_v58 = vld [vmem:[#allocation2 + $0x29] sm:$0xff] }
 0x509   : > { %v5617_v42 = vld [vmem:[#allocation2 + $0x49] sm:$0xff] }
 0x50b   : > { %11907 = vmatmul.mubr.msk.f32.gmra.mrb[44].mxu0 %vm17578_vm0, %v4821_v17  ;;  %v5618_v17 = vld [vmem:[#allocation2 + $0x51] sm:$0xff] }
 0x50c   : > { %11909 = vmatprep.mubr.msk.f32.mxu0 %vm17586_vm13, %v4822_v29  ;;  %vm17593_vm13 = vmmov %vm17578_vm0  ;;  %v5619_v29 = vld [vmem:[#allocation2 + $0x59] sm:$0xff] }
 0x50f   : > { %11910 = vmatmul.mubr.msk.f32.gmra.mrb[46].mxu0 %vm17587_vm6, %v4823_v44  ;;  %vm17594_vm6 = vmmov %vm17578_vm0  ;;  %v5620_v44 = vld [vmem:[#allocation2 + $0x61] sm:$0xff] }
 0x510   : > { %11912 = vmatprep.mubr.msk.f32.mxu0 %vm17588_vm14, %v4824_v27  ;;  %vm17595_vm14 = vmmov %vm17578_vm0  ;;  %v5621_v27 = vld [vmem:[#allocation2 + $0x69] sm:$0xff] }
 0x513   : > { %11913 = vmatmul.mubr.msk.f32.gmra.mrb[48].mxu0 %vm17589_vm7, %v4825_v4  ;;  %vm17596_vm7 = vmmov %vm17578_vm0  ;;  %v5622_v4 = vld [vmem:[#allocation2 + $0x71] sm:$0xff] }
 0x514   : > { %11915 = vmatprep.mubr.msk.f32.mxu0 %vm17590_vm3, %v4826_v37  ;;  %vm17597_vm3 = vmmov %vm17578_vm0  ;;  %v5623_v37 = vld [vmem:[#allocation2 + $0x79] sm:$0xff] }
 0x517   : > { %11916 = vmatmul.mubr.msk.f32.gmra.mrb[50].mxu0 %vm17591_vm11, %v4827_v23  ;;  %vm17598_vm11 = vmmov %vm17578_vm0  ;;  %v5624_v23 = vld [vmem:[#allocation2 + $0x81] sm:$0xff] }
 0x518   : > { %11918 = vmatprep.mubr.msk.f32.mxu0 %vm17592_vm5, %v4828_v36  ;;  %vm17599_vm5 = vmmov %vm17578_vm0  ;;  %v5625_v36 = vld [vmem:[#allocation2 + $0x89] sm:$0xff] }
 0x51b   : > { %11919 = vmatmul.mubr.msk.f32.gmra.mrb[52].mxu0 %vm17578_vm0, %v4829_v38  ;;  %v5626_v38 = vld [vmem:[#allocation2 + $0x91] sm:$0xff] }
 0x51c   : > { %11921 = vmatprep.mubr.msk.f32.mxu0 %vm17593_vm13, %v4830_v10  ;;  %vm17600_vm13 = vmmov %vm17578_vm0  ;;  %v5627_v10 = vld [vmem:[#allocation2 + $0x99] sm:$0xff] }
 0x51f   : > { %11922 = vmatmul.mubr.msk.f32.gmra.mrb[54].mxu0 %vm17594_vm6, %v4831_v12  ;;  %vm17601_vm6 = vmmov %vm17578_vm0  ;;  %v5628_v12 = vld [vmem:[#allocation2 + $0xa1] sm:$0xff] }
 0x520   : > { %11924 = vmatprep.mubr.msk.f32.mxu0 %vm17595_vm14, %v4832_v62  ;;  %vm17602_vm14 = vmmov %vm17578_vm0  ;;  %v5629_v62 = vld [vmem:[#allocation2 + $0xa9] sm:$0xff] }
 0x523   : > { %11925 = vmatmul.mubr.msk.f32.gmra.mrb[56].mxu0 %vm17596_vm7, %v4833_v39  ;;  %vm17603_vm7 = vmmov %vm17578_vm0  ;;  %v5630_v39 = vld [vmem:[#allocation2 + $0xb1] sm:$0xff] }
 0x524   : > { %11927 = vmatprep.mubr.msk.f32.mxu0 %vm17597_vm3, %v4834_v31  ;;  %vm17604_vm3 = vmmov %vm17578_vm0  ;;  %v5631_v31 = vld [vmem:[#allocation2 + $0xb9] sm:$0xff] }
 0x527   : > { %11928 = vmatmul.mubr.msk.f32.gmra.mrb[58].mxu0 %vm17598_vm11, %v4835_v43  ;;  %vm17605_vm11 = vmmov %vm17578_vm0  ;;  %v5632_v43 = vld [vmem:[#allocation2 + $0xc1] sm:$0xff] }
 0x528   : > { %11930 = vmatprep.mubr.msk.f32.mxu0 %vm17599_vm5, %v4836_v2  ;;  %vm17606_vm5 = vmmov %vm17578_vm0  ;;  %v5633_v2 = vld [vmem:[#allocation2 + $0xc9] sm:$0xff] }
 0x52b   : > { %11931 = vmatmul.mubr.msk.f32.gmra.mrb[60].mxu0 %vm17578_vm0, %v4837_v54  ;;  %v5634_v54 = vld [vmem:[#allocation2 + $0xd1] sm:$0xff] }
 0x52c   : > { %11933 = vmatprep.mubr.msk.f32.mxu0 %vm17600_vm13, %v4838_v48  ;;  %vm17607_vm13 = vmmov %vm17578_vm0  ;;  %v5635_v48 = vld [vmem:[#allocation2 + $0xd9] sm:$0xff] }
 0x52f   : > { %11934 = vmatmul.mubr.msk.f32.gmra.mrb[62].mxu0 %vm17601_vm6, %v4839_v0  ;;  %vm17608_vm6 = vmmov %vm17578_vm0  ;;  %v5636_v0 = vld [vmem:[#allocation2 + $0xe1] sm:$0xff] }
 0x530   : > { %11936 = vmatprep.mubr.msk.f32.mxu0 %vm17602_vm14, %v4840_v60  ;;  %vm17609_vm14 = vmmov %vm17578_vm0  ;;  %v5637_v60 = vld [vmem:[#allocation2 + $0xe9] sm:$0xff] }
 0x533   : > { %11937 = vmatmul.mubr.msk.f32.gmra.mrb[64].mxu0 %vm17603_vm7, %v4841_v19  ;;  %vm17610_vm7 = vmmov %vm17578_vm0  ;;  %v5638_v19 = vld [vmem:[#allocation2 + $0xf1] sm:$0xff] }
 0x534   : > { %11939 = vmatprep.mubr.msk.f32.mxu0 %vm17604_vm3, %v4842_v8  ;;  %vm17611_vm3 = vmmov %vm17578_vm0  ;;  %v5639_v8 = vld [vmem:[#allocation2 + $0xf9] sm:$0xff] }
 0x537   : > { %11940 = vmatmul.mubr.msk.f32.gmra.mrb[66].mxu0 %vm17605_vm11, %v4843_v45  ;;  %vm17612_vm11 = vmmov %vm17578_vm0  ;;  %v5640_v45 = vld [vmem:[#allocation2 + $0x101] sm:$0xff] }
 0x538   : > { %11942 = vmatprep.mubr.msk.f32.mxu0 %vm17606_vm5, %v4844_v21  ;;  %vm17613_vm5 = vmmov %vm17578_vm0  ;;  %v5641_v21 = vld [vmem:[#allocation2 + $0x109] sm:$0xff] }
 0x53b   : > { %11943 = vmatmul.mubr.msk.f32.gmra.mrb[68].mxu0 %vm17578_vm0, %v4845_v18  ;;  %v5642_v18 = vld [vmem:[#allocation2 + $0x111] sm:$0xff] }
 0x53c   : > { %11945 = vmatprep.mubr.msk.f32.mxu0 %vm17607_vm13, %v4846_v47  ;;  %vm17614_vm13 = vmmov %vm17578_vm0  ;;  %v5643_v47 = vld [vmem:[#allocation2 + $0x119] sm:$0xff] }
 0x53f   : > { %11946 = vmatmul.mubr.msk.f32.gmra.mrb[70].mxu0 %vm17608_vm6, %v4847_v14  ;;  %vm17615_vm6 = vmmov %vm17578_vm0  ;;  %v5644_v14 = vld [vmem:[#allocation2 + $0x121] sm:$0xff] }
 0x540   : > { %11964 = vmatprep.mubr.msk.f32.mxu0 %vm17609_vm14, %v5613_v58  ;;  %vm17616_vm14 = vmmov %vm17578_vm0  ;;  %v5645_v58 = vld [vmem:[#allocation2 + $0x129] sm:$0xff] }
 0x543   : > { %11965 = vmatmul.mubr.msk.f32.vlgmr.msra.gmra.mrb[36].mxu0 %vm17610_vm7, %v5614_v26  ;;  %vm17617_vm7 = vmmov %vm17578_vm0  ;;  %v5647_v26 = vld [vmem:[#allocation2 + $0x139] sm:$0xff] }
 0x544   : > { %11967 = vmatprep.mubr.msk.f32.mxu0 %vm17611_vm3, %v5615_v22  ;;  %vm17618_vm3 = vmmov %vm17578_vm0  ;;  %v5646_v22 = vld [vmem:[#allocation2 + $0x131] sm:$0xff] }
 0x547   : > { %11968 = vmatmul.mubr.msk.f32.gmra.mrb[38].mxu0 %vm17612_vm11, %v5616_v34  ;;  %vm17619_vm11 = vmmov %vm17578_vm0  ;;  %v5648_v34 = vld [vmem:[#allocation2 + $0x141] sm:$0xff] }
 0x548   : > { %11970 = vmatprep.mubr.msk.f32.mxu0 %vm17613_vm5, %v5617_v42  ;;  %vm17620_vm5 = vmmov %vm17578_vm0  ;;  %v15635_v42 = vld [vmem:[%s17003_s6 + $0x2] ss:$0 sm:$0xff] }
 0x54b   : > { %11971 = vmatmul.mubr.msk.f32.gmra.mrb[40].mxu0 %vm17578_vm0, %v5618_v17 }
 0x54c   : > { %11973 = vmatprep.mubr.msk.f32.mxu0 %vm17614_vm13, %v5619_v29  ;;  %vm17621_vm13 = vmmov %vm17578_vm0 }
 0x54f   : > { %11974 = vmatmul.mubr.msk.f32.gmra.mrb[42].mxu0 %vm17615_vm6, %v5620_v44  ;;  %vm17622_vm6 = vmmov %vm17578_vm0 }
 0x550   : > { %11976 = vmatprep.mubr.msk.f32.mxu0 %vm17616_vm14, %v5621_v27  ;;  %vm17623_vm14 = vmmov %vm17578_vm0 }
 0x553   : > { %11977 = vmatmul.mubr.msk.f32.gmra.mrb[44].mxu0 %vm17617_vm7, %v5622_v4  ;;  %vm17624_vm7 = vmmov %vm17578_vm0 }
 0x554   : > { %11979 = vmatprep.mubr.msk.f32.mxu0 %vm17618_vm3, %v5623_v37  ;;  %vm17625_vm3 = vmmov %vm17578_vm0 }
 0x557   : > { %11980 = vmatmul.mubr.msk.f32.gmra.mrb[46].mxu0 %vm17619_vm11, %v5624_v23  ;;  %vm17626_vm11 = vmmov %vm17578_vm0 }
 0x558   : > { %11982 = vmatprep.mubr.msk.f32.mxu0 %vm17620_vm5, %v5625_v36  ;;  %vm17627_vm5 = vmmov %vm17578_vm0 }
 0x55b   : > { %11983 = vmatmul.mubr.msk.f32.gmra.mrb[48].mxu0 %vm17578_vm0, %v5626_v38 }
 0x55c   : > { %11985 = vmatprep.mubr.msk.f32.mxu0 %vm17621_vm13, %v5627_v10  ;;  %vm17628_vm13 = vmmov %vm17578_vm0 }
 0x55f   : > { %11986 = vmatmul.mubr.msk.f32.gmra.mrb[50].mxu0 %vm17622_vm6, %v5628_v12  ;;  %vm17629_vm6 = vmmov %vm17578_vm0 }
 0x560   : > { %11988 = vmatprep.mubr.msk.f32.mxu0 %vm17623_vm14, %v5629_v62  ;;  %vm17630_vm14 = vmmov %vm17578_vm0 }
 0x563   : > { %11989 = vmatmul.mubr.msk.f32.gmra.mrb[52].mxu0 %vm17624_vm7, %v5630_v39  ;;  %vm17631_vm7 = vmmov %vm17578_vm0 }
 0x564   : > { %11991 = vmatprep.mubr.msk.f32.mxu0 %vm17625_vm3, %v5631_v31  ;;  %vm17632_vm3 = vmmov %vm17578_vm0 }
 0x567   : > { %11992 = vmatmul.mubr.msk.f32.gmra.mrb[54].mxu0 %vm17626_vm11, %v5632_v43  ;;  %vm17633_vm11 = vmmov %vm17578_vm0 }
 0x568   : > { %11994 = vmatprep.mubr.msk.f32.mxu0 %vm17627_vm5, %v5633_v2  ;;  %vm17634_vm5 = vmmov %vm17578_vm0  ;;  %v10470_v2 = vld [vmem:[%s17001_s4 + $0x40] sm:$0xff] }
 0x56b   : > { %11995 = vmatmul.mubr.msk.f32.gmra.mrb[56].mxu0 %vm17578_vm0, %v5634_v54  ;;  %v10471_v54 = vld [vmem:[%s17001_s4 + $0x48] sm:$0xff] }
 0x56c   : > { %11997 = vmatprep.mubr.msk.f32.mxu0 %vm17628_vm13, %v5635_v48  ;;  %vm17635_vm13 = vmmov %vm17578_vm0 }
 0x56f   : > { %11998 = vmatmul.mubr.msk.f32.gmra.mrb[58].mxu0 %vm17629_vm6, %v5636_v0  ;;  %vm17636_vm6 = vmmov %vm17578_vm0  ;;  %v12600_v0 = vpack.c.bf16 %v10471_v54, %v10470_v2 }
 0x570   : > { %12000 = vmatprep.mubr.msk.f32.mxu0 %vm17630_vm14, %v5637_v60  ;;  %vm17637_vm14 = vmmov %vm17578_vm0 }
 0x571   : > { %12601 = vmatprep.subr.bf16.mxu1 %v12600_v0 }
 0x572   : > { %12603 = vmatpush3.bf16.msra.mxu1 %v12600_v0 }
 0x573   : > { %12001 = vmatmul.mubr.msk.f32.gmra.mrb[60].mxu0 %vm17631_vm7, %v5638_v19  ;;  %vm17638_vm7 = vmmov %vm17578_vm0 }
 0x574   : > { %12003 = vmatprep.mubr.msk.f32.mxu0 %vm17632_vm3, %v5639_v8  ;;  %vm17639_vm3 = vmmov %vm17578_vm0 }
 0x577   : > { %12004 = vmatmul.mubr.msk.f32.gmra.mrb[62].mxu0 %vm17633_vm11, %v5640_v45  ;;  %vm17640_vm11 = vmmov %vm17578_vm0 }
 0x578   : > { %12006 = vmatprep.mubr.msk.f32.mxu0 %vm17634_vm5, %v5641_v21  ;;  %v10472_v21 = vld [vmem:[%s17001_s4 + $0x50] sm:$0xff] }
 0x57b   : > { %12007 = vmatmul.mubr.msk.f32.gmra.mrb[64].mxu0 %vm17578_vm0, %v5642_v18  ;;  %v10473_v18 = vld [vmem:[%s17001_s4 + $0x58] sm:$0xff] }
 0x57c   : > { %12009 = vmatprep.mubr.msk.f32.mxu0 %vm17635_vm13, %v5643_v47  ;;  %v12604_v47 = vpack.c.bf16 %v10473_v18, %v10472_v21 }
 0x57e   : > { %12605 = vmatprep.subr.bf16.mxu1 %v12604_v47 }
 0x57f   : > { %12010 = vmatmul.mubr.msk.f32.gmra.mrb[66].mxu0 %vm17636_vm6, %v5644_v14  ;;  %12607 = vmatpush3.bf16.msra.mxu1 %v12604_v47 }
 0x580   : > { %12012 = vmatprep.mubr.msk.f32.mxu0 %vm17637_vm14, %v5645_v58 }
 0x583   : > { %12013 = vmatmul.mubr.msk.f32.gmra.mrb[68].mxu0 %vm17638_vm7, %v5646_v22 }
 0x584   : > { %12015 = vmatprep.mubr.msk.f32.mxu0 %vm17639_vm3, %v5647_v26 }
 0x587   : > { %12016 = vmatmul.mubr.msk.f32.gmra.mrb[70].mxu0 %vm17640_vm11, %v5648_v34 }
 0x616   : > { %v11966_v17 = vpop.f32.mrb[36].mxu0 }
 0x617   : > { %v6056_v29 = vadd.f32 %v11966_v17, %v15635_v42  ;;  %v5835_v44 = vpop.f32.mrb[37].mxu0  ;;  %v10474_v17 = vld [vmem:[%s17001_s4 + $0x60] sm:$0xff] }
 0x618   : > { %v6055_v27 = vadd.f32 %v15635_v42, %v5835_v44 }
 0x619   : > { %vm6092_vm5 = vcmp.ge.f32.partialorder %v6056_v29, 0.0  ;;  %v6128_v4 = vmul.f32 0.01, %v6056_v29 }
 0x61a   : > { %vm6091_vm0 = vcmp.ge.f32.partialorder %v6055_v27, 0.0  ;;  %v6127_v37 = vmul.f32 0.01, %v6055_v27  ;;  %v11969_v23 = vpop.f32.mrb[38].mxu0 }
 0x61b   : > { %v5845_v36 = vpop.f32.mrb[39].mxu0  ;;  %v6164_v38 = vsel %vm6092_vm5, %v6056_v29, %v6128_v4  ;;  %v6058_v12 = vadd.f32 %v11969_v23, %v15635_v42  ;;  %v10475_v29 = vld [vmem:[%s17001_s4 + $0x68] sm:$0xff] }
 0x61c   : > { %v6200_v10 = vsel %vm13652_vm10, %v6164_v38, 0.0  ;;  %v6057_v62 = vadd.f32 %v15635_v42, %v5845_v36  ;;  %v6163_v39 = vsel %vm6091_vm0, %v6055_v27, %v6127_v37  ;;  %v12608_v4 = vpack.c.bf16 %v10475_v29, %v10474_v17  ;;  %v10476_v38 = vld [vmem:[%s17001_s4 + $0x70] sm:$0xff]  ;;  %v17641_v29 = vld [vmem:[#allocation5_spill] sm:$0xff] }
 0x61d   : > { %6418 = vrot.lane.b32.xlu0 %v6200_v10, %s13116_s12  ;;  %6273 = vrot.lane.b32.xlu1 %v6200_v10, %s13117_s13  ;;  %v6199_v48 = vsel %vm13681_vm15, %v6163_v39, 0.0  ;;  %v6130_v60 = vmul.f32 0.01, %v6058_v12  ;;  %vm6094_vm13 = vcmp.ge.f32.partialorder %v6058_v12, 0.0  ;;  %vm17642_vm11 = vnez %v17641_v29 }
 0x61e   : > { %v11972_v31 = vpop.f32.mrb[40].mxu0  ;;  %v6129_v19 = vmul.f32 0.01, %v6057_v62  ;;  %vm6093_vm6 = vcmp.ge.f32.partialorder %v6057_v62, 0.0  ;;  %12609 = vmatprep.subr.bf16.mxu1 %v12608_v4 }
 0x61f   : > { %v5855_v43 = vpop.f32.mrb[41].mxu0  ;;  %v6166_v58 = vsel %vm6094_vm13, %v6058_v12, %v6130_v60  ;;  %12611 = vmatpush3.bf16.msra.mxu1 %v12608_v4 }
 0x620   : > { %v6059_v14 = vadd.f32 %v15635_v42, %v5855_v43  ;;  %v6165_v26 = vsel %vm6093_vm6, %v6057_v62, %v6129_v19  ;;  %v6202_v44 = vsel %vm13712_vm1, %v6166_v58, 0.0  ;;  %v6060_v62 = vadd.f32 %v11972_v31, %v15635_v42 }
 0x621   : > { %6563 = vrot.lane.b32.xlu1 %v6200_v10, %s13118_s16  ;;  %6271 = vrot.lane.b32.xlu0 %v6199_v48, %s13117_s13  ;;  %v6201_v27 = vsel %vm13777_vm8, %v6165_v26, 0.0  ;;  %v10477_v10 = vld [vmem:[%s17001_s4 + $0x78] sm:$0xf] }
 0x622   : > { %v11975_v8 = vpop.f32.mrb[42].mxu0  ;;  %v6131_v37 = vmul.f32 0.01, %v6059_v14  ;;  %vm6095_vm14 = vcmp.ge.f32.partialorder %v6059_v14, 0.0  ;;  %v12612_v12 = vpack.c.bf16 %v10477_v10, %v10476_v38  ;;  %vm6096_vm7 = vcmp.ge.f32.partialorder %v6060_v62, 0.0 }
 0x623   : > { %v5865_v45 = vpop.f32.mrb[43].mxu0 }
 0x624   : > { %v6167_v39 = vsel %vm6095_vm14, %v6059_v14, %v6131_v37  ;;  %12614 = vmatprep.subr.msk.bf16.mxu1 %vm13277_vm4, %v12612_v12  ;;  %v6061_v31 = vadd.f32 %v15635_v42, %v5865_v45  ;;  %v6062_v14 = vadd.f32 %v11975_v8, %v15635_v42 }
 0x625   : > { %6416 = vrot.lane.b32.xlu1 %v6199_v48, %s13116_s12  ;;  %6561 = vrot.lane.b32.xlu0 %v6199_v48, %s13118_s16  ;;  %v6203_v54 = vsel %vm13815_vm12, %v6167_v39, 0.0  ;;  %v6132_v48 = vmul.f32 0.01, %v6060_v62 }
 0x626   : > { %v15664_v22 = vpop.f32.mrb[44].mxu0  ;;  %12617 = vmatpush3.bf16.msk.msra.mxu1 %vm13277_vm4, %v12612_v12  ;;  %v6133_v19 = vmul.f32 0.01, %v6061_v31  ;;  %vm6097_vm3 = vcmp.ge.f32.partialorder %v6061_v31, 0.0  ;;  %vm6098_vm5 = vcmp.ge.f32.partialorder %v6062_v14, 0.0 }
 0x627   : > { %v5875_v34 = vpop.f32.mrb[45].mxu0  ;;  %v6168_v21 = vsel %vm6096_vm7, %v6060_v62, %v6132_v48 }
 0x628   : > { %v6204_v45 = vsel %vm17441_vm2, %v6168_v21, 0.0  ;;  %v6169_v58 = vsel %vm6097_vm3, %v6061_v31, %v6133_v19  ;;  %v6063_v4 = vadd.f32 %v15635_v42, %v5875_v34  ;;  %v17643_v34 = vld [vmem:[#allocation6_spill] sm:$0xff]  ;;  %v17645_v21 = vld [vmem:[#allocation7_spill] sm:$0xff] }
 0x629   : > { %6277 = vrot.lane.b32.xlu1 %v6202_v44, %s13117_s13  ;;  %6275 = vrot.lane.b32.xlu0 %v6201_v27, %s13117_s13  ;;  %vm17644_vm13 = vnez %v17643_v34  ;;  %vm17646_vm6 = vnez %v17645_v21 }
 0x62a   : > { %v15678_v23 = vpop.f32.mrb[46].mxu0  ;;  %v6135_v38 = vmul.f32 0.01, %v6063_v4  ;;  %vm6099_vm0 = vcmp.ge.f32.partialorder %v6063_v4, 0.0 }
 0x62b   : > { %v5885_v36 = vpop.f32.mrb[47].mxu0  ;;  %v6066_v21 = vadd.f32 %v15678_v23, %v15635_v42 }
 0x62c   : > { %v6171_v48 = vsel %vm6099_vm0, %v6063_v4, %v6135_v38 }
 0x62d   : > { %6422 = vrot.lane.b32.xlu1 %v6202_v44, %s13116_s12  ;;  %6565 = vrot.lane.b32.xlu0 %v6201_v27, %s13118_s16  ;;  %v6138_v6 = vmul.f32 0.01, %v6066_v21  ;;  %vm6102_vm0 = vcmp.ge.f32.partialorder %v6066_v21, 0.0 }
 0x62e   : > { %v15689_v43 = vpop.f32.mrb[48].mxu0 }
 0x62f   : > { %v15693_v2 = vpop.f32.mrb[49].mxu0 }
 0x631   : > { %6567 = vrot.lane.b32.xlu1 %v6202_v44, %s13118_s16  ;;  %6279 = vrot.lane.b32.xlu0 %v6203_v54, %s13117_s13  ;;  %v6205_v44 = vsel %vm17642_vm11, %v6169_v58, 0.0  ;;  %v6065_v58 = vadd.f32 %v15635_v42, %v5885_v36  ;;  %v17647_v36 = vld [vmem:[#allocation8_spill] sm:$0xff] }
 0x632   : > { %v15702_v0 = vpop.f32.mrb[50].mxu0  ;;  %vm17648_vm3 = vnez %v17647_v36  ;;  %v6067_v36 = vadd.f32 %v15635_v42, %v15693_v2 }
 0x633   : > { %v15704_v60 = vpop.f32.mrb[51].mxu0  ;;  %vm6101_vm7 = vcmp.ge.f32.partialorder %v6065_v58, 0.0 }
 0x635   : > { %6420 = vrot.lane.b32.xlu1 %v6201_v27, %s13116_s12  ;;  %6424 = vrot.lane.b32.xlu0 %v6203_v54, %s13116_s12  ;;  %v6134_v27 = vmul.f32 0.01, %v6062_v14 }
 0x636   : > { %v15708_v18 = vpop.f32.mrb[52].mxu0 }
 0x637   : > { %v15710_v47 = vpop.f32.mrb[53].mxu0  ;;  %v6170_v10 = vsel %vm6098_vm5, %v6062_v14, %v6134_v27 }
 0x638   : > { %v6206_v39 = vsel %vm17644_vm13, %v6170_v10, 0.0  ;;  %vm17672_vm13 = vnez %v17235_v40 }
 0x639   : > { %6281 = vrot.lane.b32.xlu1 %v6204_v45, %s13117_s13  ;;  %6569 = vrot.lane.b32.xlu0 %v6203_v54, %s13118_s16  ;;  %v6064_v54 = vadd.f32 %v15664_v22, %v15635_v42 }
 0x63a   : > { %v15717_v26 = vpop.f32.mrb[54].mxu0 }
 0x63b   : > { %v15719_v17 = vpop.f32.mrb[55].mxu0  ;;  %v6136_v14 = vmul.f32 0.01, %v6064_v54  ;;  %vm6100_vm14 = vcmp.ge.f32.partialorder %v6064_v54, 0.0 }
 0x63d   : > { %6426 = vrot.lane.b32.xlu1 %v6204_v45, %s13116_s12  ;;  %6283 = vrot.lane.b32.xlu0 %v6205_v44, %s13117_s13  ;;  %v6172_v4 = vsel %vm6100_vm14, %v6064_v54, %v6136_v14  ;;  %v17649_v54 = vld [vmem:[#allocation9_spill] sm:$0xff]  ;;  %vm6103_vm14 = vcmp.ge.f32.partialorder %v6067_v36, 0.0 }
 0x63e   : > { %v15726_v8 = vpop.f32.mrb[56].mxu0  ;;  %vm17650_vm5 = vnez %v17649_v54  ;;  %v6068_v54 = vadd.f32 %v15689_v43, %v15635_v42 }
 0x63f   : > { %v15728_v37 = vpop.f32.mrb[57].mxu0 }
 0x641   : > { %6571 = vrot.lane.b32.xlu1 %v6204_v45, %s13118_s16  ;;  %6428 = vrot.lane.b32.xlu0 %v6205_v44, %s13116_s12  ;;  %v6207_v45 = vsel %vm17646_vm6, %v6171_v48, 0.0  ;;  %v6208_v48 = vsel %vm17648_vm3, %v6172_v4, 0.0  ;;  %vm17660_vm3 = vnez %v17196_v41  ;;  %vm17661_vm6 = vnez %v17462_v15 }
 0x642   : > { %v15732_v12 = vpop.f32.mrb[58].mxu0 }
 0x643   : > { %v15734_v62 = vpop.f32.mrb[59].mxu0 }
 0x645   : > { %6285 = vrot.lane.b32.xlu1 %v6206_v39, %s13117_s13  ;;  %6573 = vrot.lane.b32.xlu0 %v6205_v44, %s13118_s16  ;;  %v6137_v44 = vmul.f32 0.01, %v6065_v58 }
 0x646   : > { %v15742_v31 = vpop.f32.mrb[60].mxu0 }
 0x647   : > { %v15744_v19 = vpop.f32.mrb[61].mxu0  ;;  %v6173_v34 = vsel %vm6101_vm7, %v6065_v58, %v6137_v44  ;;  %v6139_v58 = vmul.f32 0.01, %v6067_v36  ;;  %v6174_v44 = vsel %vm6102_vm0, %v6066_v21, %v6138_v6  ;;  %vm17651_vm7 = vnez %v17166_v9 }
 0x648   : > { %v6209_v14 = vsel %vm17650_vm5, %v6173_v34, 0.0  ;;  %v6210_v2 = vsel %vm17651_vm7, %v6174_v44, 0.0  ;;  %vm17652_vm5 = vnez %v17172_v5  ;;  %v6140_v6 = vmul.f32 0.01, %v6068_v54 }
 0x649   : > { %6430 = vrot.lane.b32.xlu1 %v6206_v39, %s13116_s12  ;;  %6287 = vrot.lane.b32.xlu0 %v6207_v45, %s13117_s13  ;;  %v6175_v56 = vsel %vm6103_vm14, %v6067_v36, %v6139_v58  ;;  %v6069_v21 = vadd.f32 %v15635_v42, %v15704_v60  ;;  %vm6104_vm0 = vcmp.ge.f32.partialorder %v6068_v54, 0.0  ;;  %vm17653_vm14 = vnez %v17177_v28 }
 0x64a   : > { %v15751_v22 = vpop.f32.mrb[62].mxu0  ;;  %v6176_v43 = vsel %vm6104_vm0, %v6068_v54, %v6140_v6  ;;  %v6072_v6 = vadd.f32 %v15708_v18, %v15635_v42 }
 0x64b   : > { %v15753_v27 = vpop.f32.mrb[63].mxu0  ;;  %v6141_v44 = vmul.f32 0.01, %v6069_v21  ;;  %vm6105_vm7 = vcmp.ge.f32.partialorder %v6069_v21, 0.0  ;;  %v6212_v36 = vsel %vm17653_vm14, %v6176_v43, 0.0  ;;  %v6073_v43 = vadd.f32 %v15635_v42, %v15719_v17 }
 0x64d   : > { %6575 = vrot.lane.b32.xlu1 %v6206_v39, %s13118_s16  ;;  %6432 = vrot.lane.b32.xlu0 %v6207_v45, %s13116_s12  ;;  %v6177_v60 = vsel %vm6105_vm7, %v6069_v21, %v6141_v44  ;;  %vm17655_vm7 = vnez %v17184_v3  ;;  %v6144_v44 = vmul.f32 0.01, %v6072_v6 }
 0x64e   : > { %v15757_v38 = vpop.f32.mrb[64].mxu0 }
 0x64f   : > { %v15759_v10 = vpop.f32.mrb[65].mxu0 }
 0x651   : > { %6289 = vrot.lane.b32.xlu1 %v6208_v48, %s13117_s13  ;;  %6577 = vrot.lane.b32.xlu0 %v6207_v45, %s13118_s16 }
 0x652   : > { %v15767_v39 = vpop.f32.mrb[66].mxu0 }
 0x653   : > { %v15769_v29 = vpop.f32.mrb[67].mxu0 }
 0x655   : > { %6434 = vrot.lane.b32.xlu1 %v6208_v48, %s13116_s12  ;;  %6291 = vrot.lane.b32.xlu0 %v6209_v14, %s13117_s13 }
 0x656   : > { %v15777_v23 = vpop.f32.mrb[68].mxu0 }
 0x657   : > { %v15779_v45 = vpop.f32.mrb[69].mxu0 }
 0x659   : > { %6579 = vrot.lane.b32.xlu1 %v6208_v48, %s13118_s16  ;;  %6436 = vrot.lane.b32.xlu0 %v6209_v14, %s13116_s12  ;;  %v6211_v48 = vsel %vm17652_vm5, %v6175_v56, 0.0  ;;  %v6070_v56 = vadd.f32 %v15702_v0, %v15635_v42  ;;  %vm17654_vm5 = vnez %v17181_v7 }
 0x65a   : > { %v15783_v34 = vpop.f32.mrb[70].mxu0 }
 0x65b   : > { %v15785_v4 = vpop.f32.mrb[71].mxu0  ;;  %v6142_v58 = vmul.f32 0.01, %v6070_v56  ;;  %vm6106_vm0 = vcmp.ge.f32.partialorder %v6070_v56, 0.0 }
 0x65d   : > { %6293 = vrot.lane.b32.xlu1 %v6210_v2, %s13117_s13  ;;  %6581 = vrot.lane.b32.xlu0 %v6209_v14, %s13118_s16  ;;  %v6213_v14 = vsel %vm17654_vm5, %v6177_v60, 0.0  ;;  %v6178_v0 = vsel %vm6106_vm0, %v6070_v56, %v6142_v58  ;;  %vm17656_vm5 = vnez %v17187_v50  ;;  %vm6108_vm0 = vcmp.ge.f32.partialorder %v6072_v6, 0.0 }
 0x65e   : > { %v6180_v18 = vsel %vm6108_vm0, %v6072_v6, %v6144_v44  ;;  %v6074_v60 = vadd.f32 %v15717_v26, %v15635_v42 }
 0x660   : > { %v6146_v58 = vmul.f32 0.01, %v6074_v60  ;;  %vm6110_vm0 = vcmp.ge.f32.partialorder %v6074_v60, 0.0 }
 0x661   : > { %6438 = vrot.lane.b32.xlu1 %v6210_v2, %s13116_s12  ;;  %6295 = vrot.lane.b32.xlu0 %v6211_v48, %s13117_s13 }
 0x662   : > { %v6182_v26 = vsel %vm6110_vm0, %v6074_v60, %v6146_v58 }
 0x665   : > { %6583 = vrot.lane.b32.xlu1 %v6210_v2, %s13118_s16  ;;  %6440 = vrot.lane.b32.xlu0 %v6211_v48, %s13116_s12  ;;  %v6071_v2 = vadd.f32 %v15635_v42, %v15710_v47 }
 0x667   : > { %v6143_v54 = vmul.f32 0.01, %v6071_v2  ;;  %vm6107_vm14 = vcmp.ge.f32.partialorder %v6071_v2, 0.0 }
 0x669   : > { %6297 = vrot.lane.b32.xlu1 %v6212_v36, %s13117_s13  ;;  %6585 = vrot.lane.b32.xlu0 %v6211_v48, %s13118_s16  ;;  %v6214_v48 = vsel %vm17655_vm7, %v6178_v0, 0.0  ;;  %v6179_v47 = vsel %vm6107_vm14, %v6071_v2, %v6143_v54  ;;  %vm6109_vm7 = vcmp.ge.f32.partialorder %v6073_v43, 0.0  ;;  %vm17657_vm14 = vnez %v17190_v35 }
 0x66a   : > { %v6215_v21 = vsel %vm17656_vm5, %v6179_v47, 0.0  ;;  %v6216_v56 = vsel %vm17657_vm14, %v6180_v18, 0.0  ;;  %vm17658_vm5 = vnez %v17192_v13  ;;  %v6075_v2 = vadd.f32 %v15635_v42, %v15728_v37 }
 0x66c   : > { %v6147_v54 = vmul.f32 0.01, %v6075_v2  ;;  %vm6111_vm14 = vcmp.ge.f32.partialorder %v6075_v2, 0.0 }
 0x66d   : > { %6442 = vrot.lane.b32.xlu1 %v6212_v36, %s13116_s12  ;;  %6299 = vrot.lane.b32.xlu0 %v6213_v14, %s13117_s13 }
 0x66e   : > { %v6183_v37 = vsel %vm6111_vm14, %v6075_v2, %v6147_v54 }
 0x671   : > { %6587 = vrot.lane.b32.xlu1 %v6212_v36, %s13118_s16  ;;  %6444 = vrot.lane.b32.xlu0 %v6213_v14, %s13116_s12  ;;  %v6145_v36 = vmul.f32 0.01, %v6073_v43 }
 0x673   : > { %v6181_v17 = vsel %vm6109_vm7, %v6073_v43, %v6145_v36  ;;  %vm17659_vm7 = vnez %v17194_v61  ;;  %v6077_v43 = vadd.f32 %v15635_v42, %v15734_v62 }
 0x674   : > { %v6218_v0 = vsel %vm17659_vm7, %v6182_v26, 0.0  ;;  %vm17100_vm7 = vcmask 359744  }
 0x675   : > { %6301 = vrot.lane.b32.xlu1 %v6214_v48, %s13117_s13  ;;  %6589 = vrot.lane.b32.xlu0 %v6213_v14, %s13118_s16  ;;  %v6217_v14 = vsel %vm17658_vm5, %v6181_v17, 0.0  ;;  %vm17099_vm5 = vcmask 326944   ;;  %v6149_v18 = vmul.f32 0.01, %v6077_v43  ;;  %vm6113_vm14 = vcmp.ge.f32.partialorder %v6077_v43, 0.0 }
 0x677   : > { %v6185_v58 = vsel %vm6113_vm14, %v6077_v43, %v6149_v18  ;;  %vm17663_vm14 = vcmask 490496  }
 0x679   : > { %6446 = vrot.lane.b32.xlu1 %v6214_v48, %s13116_s12  ;;  %6303 = vrot.lane.b32.xlu0 %v6215_v21, %s13117_s13 }
 0x67d   : > { %6591 = vrot.lane.b32.xlu1 %v6214_v48, %s13118_s16  ;;  %6448 = vrot.lane.b32.xlu0 %v6215_v21, %s13116_s12  ;;  %v6076_v48 = vadd.f32 %v15726_v8, %v15635_v42 }
 0x67f   : > { %v6148_v44 = vmul.f32 0.01, %v6076_v48  ;;  %vm6112_vm0 = vcmp.ge.f32.partialorder %v6076_v48, 0.0 }
 0x681   : > { %6305 = vrot.lane.b32.xlu1 %v6216_v56, %s13117_s13  ;;  %6593 = vrot.lane.b32.xlu0 %v6215_v21, %s13118_s16  ;;  %v6219_v21 = vsel %vm17660_vm3, %v6183_v37, 0.0  ;;  %vm17098_vm3 = vcmask 392544  }
 0x685   : > { %6450 = vrot.lane.b32.xlu1 %v6216_v56, %s13116_s12  ;;  %6307 = vrot.lane.b32.xlu0 %v6217_v14, %s13117_s13 }
 0x689   : > { %6595 = vrot.lane.b32.xlu1 %v6216_v56, %s13118_s16  ;;  %6452 = vrot.lane.b32.xlu0 %v6217_v14, %s13116_s12  ;;  %v6184_v56 = vsel %vm6112_vm0, %v6076_v48, %v6148_v44  ;;  %vm17662_vm0 = vnez %v17464_v52 }
 0x68a   : > { %v6220_v17 = vsel %vm17661_vm6, %v6184_v56, 0.0  ;;  %v6221_v26 = vsel %vm17662_vm0, %v6185_v58, 0.0  ;;  %vm17664_vm0 = vcmask 326944   ;;  %vm17665_vm6 = vnez %v17215_v25 }
 0x68d   : > { %6309 = vrot.lane.b32.xlu1 %v6218_v0, %s13117_s13  ;;  %6597 = vrot.lane.b32.xlu0 %v6217_v14, %s13118_s16  ;;  %v6078_v14 = vadd.f32 %v15732_v12, %v15635_v42  ;;  %v6079_v12 = vadd.f32 %v15635_v42, %v15744_v19 }
 0x68f   : > { %v6419_v6 = vpop.permute.xlu0 %6418  ;;  %v6274_v47 = vpop.permute.xlu1 %6273 }
 0x690   : > { %6381 = vst.msk [vmem:[#allocation2 + $0x20] sm:$0xff] %vm17099_vm5, %v6274_v47 }
 0x691   : > { %6454 = vrot.lane.b32.xlu1 %v6218_v0, %s13116_s12  ;;  %6311 = vrot.lane.b32.xlu0 %v6219_v21, %s13117_s13 }
 0x693   : > { %v6564_v8 = vpop.permute.xlu1 %6563  ;;  %v6272_v36 = vpop.permute.xlu0 %6271 }
 0x694   : > { %6380 = vst.msk [vmem:[#allocation2 + $0x18] sm:$0xff] %vm17099_vm5, %v6272_v36 }
 0x695   : > { %6599 = vrot.lane.b32.xlu1 %v6218_v0, %s13118_s16  ;;  %6456 = vrot.lane.b32.xlu0 %v6219_v21, %s13116_s12  ;;  %6526 = vst.msk [vmem:[#allocation2 + $0x1f] sm:$0xff] %vm17100_vm7, %v6419_v6  ;;  %v6150_v0 = vmul.f32 0.01, %v6078_v14 }
 0x697   : > { %v6417_v62 = vpop.permute.xlu1 %6416  ;;  %v6562_v60 = vpop.permute.xlu0 %6561 }
 0x698   : > { %6525 = vst.msk [vmem:[#allocation2 + $0x17] sm:$0xff] %vm17100_vm7, %v6417_v62 }
 0x699   : > { %6670 = vst.msk [vmem:[#allocation2 + $0x16] sm:$0xff] %vm17098_vm3, %v6562_v60  ;;  %6671 = vst.msk [vmem:[#allocation2 + $0x1e] sm:$0xff] %vm17098_vm3, %v6564_v8  ;;  %6313 = vrot.lane.b32.xlu1 %v6220_v17, %s13117_s13  ;;  %6601 = vrot.lane.b32.xlu0 %v6219_v21, %s13118_s16  ;;  %vm6114_vm3 = vcmp.ge.f32.partialorder %v6078_v14, 0.0  ;;  %v6151_v21 = vmul.f32 0.01, %v6079_v12  ;;  %v6080_v8 = vadd.f32 %v15742_v31, %v15635_v42  ;;  %v6742_v60 = vld [vmem:[%s17001_s4] sm:$0xff] }
 0x69a   : > { %v6186_v47 = vsel %vm6114_vm3, %v6078_v14, %v6150_v0  ;;  %vm17666_vm3 = vcmask 392544   ;;  %v6081_v14 = vadd.f32 %v15635_v42, %v15753_v27 }
 0x69b   : > { %v6278_v2 = vpop.permute.xlu1 %6277  ;;  %v6276_v54 = vpop.permute.xlu0 %6275  ;;  %v6222_v19 = vsel %vm17665_vm6, %v6186_v47, 0.0  ;;  %v6152_v62 = vmul.f32 0.01, %v6080_v8  ;;  %v6082_v47 = vadd.f32 %v15751_v22, %v15635_v42 }
 0x69c   : > { %6383 = vst.msk [vmem:[#allocation2 + $0x30] sm:$0xff] %vm17099_vm5, %v6278_v2  ;;  %6382 = vst.msk [vmem:[#allocation2 + $0x28] sm:$0xff] %vm17099_vm5, %v6276_v54  ;;  %vm6115_vm5 = vcmp.ge.f32.partialorder %v6079_v12, 0.0  ;;  %v6153_v0 = vmul.f32 0.01, %v6081_v14 }
 0x69d   : > { %6458 = vrot.lane.b32.xlu1 %v6220_v17, %s13116_s12  ;;  %6315 = vrot.lane.b32.xlu0 %v6221_v26, %s13117_s13  ;;  %v6187_v36 = vsel %vm6115_vm5, %v6079_v12, %v6151_v21  ;;  %vm6116_vm5 = vcmp.ge.f32.partialorder %v6080_v8, 0.0 }
 0x69f   : > { %v6423_v48 = vpop.permute.xlu1 %6422  ;;  %v6566_v37 = vpop.permute.xlu0 %6565 }
 0x6a0   : > { %6528 = vst.msk [vmem:[#allocation2 + $0x2f] sm:$0xff] %vm17100_vm7, %v6423_v48  ;;  %v6750_v6 = vld [vmem:[#allocation2 + $0x17] sm:$0xff] }
 0x6a1   : > { %12034 = vmatprep.mubr.msk.f32.mxu1 %vm17663_vm14, %v6750_v6  ;;  %6603 = vrot.lane.b32.xlu1 %v6220_v17, %s13118_s16  ;;  %vm17668_vm14 = vnez %v17225_v53  ;;  %v6743_v17 = vld [vmem:[%s17001_s4 + $0x8] sm:$0xff] }
 0x6a2   : > { %6460 = vrot.lane.b32.xlu0 %v6221_v26, %s13116_s12  ;;  %v6223_v31 = vsel %vm17668_vm14, %v6187_v36, 0.0  ;;  %v12618_v58 = vpack.c.bf16 %v6743_v17, %v6742_v60  ;;  %vm17670_vm14 = vcmask 359744   ;;  %v6083_v36 = vadd.f32 %v15635_v42, %v15759_v10 }
 0x6a3   : > { %v6568_v44 = vpop.permute.xlu1 %6567  ;;  %v6280_v43 = vpop.permute.xlu0 %6279 }
 0x6a4   : > { %6384 = vst.msk [vmem:[#allocation2 + $0x38] sm:$0xff] %vm17664_vm0, %v6280_v43  ;;  %vm17667_vm0 = vmmov %vm17666_vm3  ;;  %12619 = vmatprep.subr.bf16.mxu1 %v12618_v58 }
 0x6a5   : > { %6317 = vrot.lane.b32.xlu1 %v6222_v19, %s13117_s13 }
 0x6a6   : > { %6605 = vrot.lane.b32.xlu0 %v6221_v26, %s13118_s16  ;;  %v6188_v26 = vsel %vm6116_vm5, %v6080_v8, %v6152_v62  ;;  %v6154_v8 = vmul.f32 0.01, %v6082_v47 }
 0x6a7   : > { %v6421_v18 = vpop.permute.xlu1 %6420  ;;  %v6425_v56 = vpop.permute.xlu0 %6424 }
 0x6a8   : > { %6527 = vst.msk [vmem:[#allocation2 + $0x27] sm:$0xff] %vm17100_vm7, %v6421_v18  ;;  %6529 = vst.msk [vmem:[#allocation2 + $0x37] sm:$0xff] %vm17100_vm7, %v6425_v56  ;;  %vm6117_vm7 = vcmp.ge.f32.partialorder %v6081_v14, 0.0 }
 0x6a9   : > { %6672 = vst.msk [vmem:[#allocation2 + $0x26] sm:$0xff] %vm17666_vm3, %v6566_v37  ;;  %6462 = vrot.lane.b32.xlu1 %v6222_v19, %s13116_s12  ;;  %vm17669_vm3 = vcmask 326944   ;;  %v6224_v37 = vsel %vm17672_vm13, %v6188_v26, 0.0  ;;  %v6189_v21 = vsel %vm6117_vm7, %v6081_v14, %v6153_v0  ;;  %vm6118_vm13 = vcmp.ge.f32.partialorder %v6082_v47, 0.0 }
 0x6aa   : > { %6673 = vst.msk [vmem:[#allocation2 + $0x2e] sm:$0xff] %vm17667_vm0, %v6568_v44  ;;  %6319 = vrot.lane.b32.xlu0 %v6223_v31, %s13117_s13  ;;  %vm17671_vm6 = vmmov %vm17669_vm3  ;;  %vm17678_vm7 = vcmask 326944   ;;  %v6190_v62 = vsel %vm6118_vm13, %v6082_v47, %v6154_v8 }
 0x6ab   : > { %v6282_v2 = vpop.permute.xlu1 %6281  ;;  %v6570_v54 = vpop.permute.xlu0 %6569 }
 0x6ac   : > { %6385 = vst.msk [vmem:[#allocation2 + $0x40] sm:$0xff] %vm17669_vm3, %v6282_v2  ;;  %vm17673_vm3 = vcmask 490496   ;;  %v6744_v2 = vld [vmem:[%s17001_s4 + $0x10] sm:$0xff] }
 0x6ad   : > { %6674 = vst.msk [vmem:[#allocation2 + $0x36] sm:$0xff] %vm17667_vm0, %v6570_v54  ;;  %6607 = vrot.lane.b32.xlu1 %v6222_v19, %s13118_s16  ;;  %vm17674_vm5 = vmmov %vm17673_vm3  ;;  %v6745_v54 = vld [vmem:[%s17001_s4 + $0x18] sm:$0xff] }
 0x6ae   : > { %6464 = vrot.lane.b32.xlu0 %v6223_v31, %s13116_s12  ;;  %v12622_v0 = vpack.c.bf16 %v6745_v54, %v6744_v2 }
 0x6af   : > { %v6427_v12 = vpop.permute.xlu1 %6426  ;;  %v6284_v48 = vpop.permute.xlu0 %6283 }
 0x6b0   : > { %6530 = vst.msk [vmem:[#allocation2 + $0x3f] sm:$0xff] %vm17670_vm14, %v6427_v12  ;;  %v6751_v27 = vld [vmem:[#allocation2 + $0x1f] sm:$0xff] }
 0x6b1   : > { %6386 = vst.msk [vmem:[#allocation2 + $0x48] sm:$0xff] %vm17671_vm6, %v6284_v48  ;;  %v6752_v6 = vld [vmem:[#allocation2 + $0x27] sm:$0xff]  ;;  %12035 = vmatmul.mubr.msk.f32.vlgmr.msra.gmra.mrb[72].mxu1 %vm17673_vm3, %v6751_v27  ;;  %6321 = vrot.lane.b32.xlu1 %v6224_v37, %s13117_s13  ;;  %vm17675_vm6 = vmmov %vm17667_vm0 }
 0x6b2   : > { %6609 = vrot.lane.b32.xlu0 %v6223_v31, %s13118_s16  ;;  %12037 = vmatprep.mubr.msk.f32.mxu1 %vm17674_vm5, %v6752_v6  ;;  %vm17676_vm0 = vmmov %vm17673_vm3  ;;  %vm17677_vm3 = vnez %v17243_v16  ;;  %v6155_v31 = vmul.f32 0.01, %v6083_v36  ;;  %v6085_v6 = vadd.f32 %v15635_v42, %v15769_v29 }
 0x6b3   : > { %v6572_v44 = vpop.permute.xlu1 %6571  ;;  %v6429_v43 = vpop.permute.xlu0 %6428  ;;  %12621 = vmatpush3.bf16.msra.mxu1 %v12618_v58  ;;  %v6225_v22 = vsel %vm17677_vm3, %v6189_v21, 0.0  ;;  %vm17679_vm5 = vmmov %vm17675_vm6  ;;  %vm17681_vm3 = vcmask 490496   ;;  %v6084_v58 = vadd.f32 %v15757_v38, %v15635_v42 }
 0x6b4   : > { %v6753_v19 = vld [vmem:[#allocation2 + $0x2f] sm:$0xff]  ;;  %6675 = vst.msk [vmem:[#allocation2 + $0x3e] sm:$0xff] %vm17675_vm6, %v6572_v44  ;;  %vm6119_vm6 = vcmp.ge.f32.partialorder %v6083_v36, 0.0  ;;  %vm17683_vm13 = vmmov %vm17679_vm5  ;;  %12623 = vmatprep.subr.bf16.mxu1 %v12622_v0 }
 0x6b5   : > { %6531 = vst.msk [vmem:[#allocation2 + $0x47] sm:$0xff] %vm17670_vm14, %v6429_v43  ;;  %12038 = vmatmul.mubr.msk.f32.gmra.mrb[74].mxu1 %vm17676_vm0, %v6753_v19  ;;  %6466 = vrot.lane.b32.xlu1 %v6224_v37, %s13116_s12  ;;  %vm17680_vm0 = vmmov %vm17678_vm7  ;;  %v6191_v26 = vsel %vm6119_vm6, %v6083_v36, %v6155_v31  ;;  %v6156_v38 = vmul.f32 0.01, %v6084_v58  ;;  %vm17687_vm6 = vcmask 326944   ;;  %v6157_v43 = vmul.f32 0.01, %v6085_v6 }
 0x6b6   : > { %6323 = vrot.lane.b32.xlu0 %v6225_v22, %s13117_s13  ;;  %v6086_v36 = vadd.f32 %v15767_v39, %v15635_v42 }
 0x6b7   : > { %v6286_v18 = vpop.permute.xlu1 %6285  ;;  %v6574_v56 = vpop.permute.xlu0 %6573  ;;  %12625 = vmatpush3.bf16.msra.mxu1 %v12622_v0 }
 0x6b8   : > { %6387 = vst.msk [vmem:[#allocation2 + $0x50] sm:$0xff] %vm17678_vm7, %v6286_v18  ;;  %vm17682_vm7 = vnez %v17255_v63 }
 0x6b9   : > { %6676 = vst.msk [vmem:[#allocation2 + $0x46] sm:$0xff] %vm17679_vm5, %v6574_v56  ;;  %6611 = vrot.lane.b32.xlu1 %v6224_v37, %s13118_s16  ;;  %v6226_v10 = vsel %vm17682_vm7, %v6190_v62, 0.0  ;;  %vm17685_vm5 = vcmask 490496   ;;  %vm17690_vm7 = vcmask 490496  }
 0x6ba   : > { %6468 = vrot.lane.b32.xlu0 %v6225_v22, %s13116_s12 }
 0x6bb   : > { %v6431_v60 = vpop.permute.xlu1 %6430  ;;  %v6288_v17 = vpop.permute.xlu0 %6287  ;;  %v6754_v14 = vld [vmem:[#allocation2 + $0x37] sm:$0xff] }
 0x6bc   : > { %6532 = vst.msk [vmem:[#allocation2 + $0x4f] sm:$0xff] %vm17670_vm14, %v6431_v60  ;;  %12040 = vmatprep.mubr.msk.f32.mxu1 %vm17681_vm3, %v6754_v14  ;;  %vm17684_vm3 = vmmov %vm17670_vm14  ;;  %vm17686_vm14 = vnez %v17264_v49  ;;  %v6158_v60 = vmul.f32 0.01, %v6086_v36  ;;  %v6747_v14 = vld [vmem:[%s17001_s4 + $0x28] sm:$0xff] }
 0x6bd   : > { %6388 = vst.msk [vmem:[#allocation2 + $0x58] sm:$0xff] %vm17680_vm0, %v6288_v17  ;;  %6325 = vrot.lane.b32.xlu1 %v6226_v10, %s13117_s13  ;;  %v6227_v37 = vsel %vm17686_vm14, %v6191_v26, 0.0  ;;  %vm6120_vm0 = vcmp.ge.f32.partialorder %v6084_v58, 0.0  ;;  %vm17689_vm14 = vmmov %vm17687_vm6  ;;  %v6746_v17 = vld [vmem:[%s17001_s4 + $0x20] sm:$0xff] }
 0x6be   : > { %6613 = vrot.lane.b32.xlu0 %v6225_v22, %s13118_s16  ;;  %v6192_v44 = vsel %vm6120_vm0, %v6084_v58, %v6156_v38  ;;  %vm17692_vm0 = vmmov %vm17683_vm13  ;;  %v12626_v58 = vpack.c.bf16 %v6747_v14, %v6746_v17  ;;  %v6088_v38 = vadd.f32 %v15777_v23, %v15635_v42 }
 0x6bf   : > { %v6576_v12 = vpop.permute.xlu1 %6575  ;;  %v6433_v48 = vpop.permute.xlu0 %6432 }
 0x6c0   : > { %v6755_v27 = vld [vmem:[#allocation2 + $0x3f] sm:$0xff]  ;;  %6677 = vst.msk [vmem:[#allocation2 + $0x4e] sm:$0xff] %vm17683_vm13, %v6576_v12  ;;  %12627 = vmatprep.subr.bf16.mxu1 %v12626_v58 }
 0x6c1   : > { %6533 = vst.msk [vmem:[#allocation2 + $0x57] sm:$0xff] %vm17684_vm3, %v6433_v48  ;;  %12041 = vmatmul.mubr.msk.f32.gmra.mrb[76].mxu1 %vm17685_vm5, %v6755_v27  ;;  %6470 = vrot.lane.b32.xlu1 %v6226_v10, %s13116_s12  ;;  %vm6121_vm3 = vcmp.ge.f32.partialorder %v6085_v6, 0.0  ;;  %vm17688_vm5 = vcmask 359744  }
 0x6c2   : > { %6327 = vrot.lane.b32.xlu0 %v6227_v37, %s13117_s13  ;;  %v6193_v18 = vsel %vm6121_vm3, %v6085_v6, %v6157_v43  ;;  %vm6122_vm3 = vcmp.ge.f32.partialorder %v6086_v36, 0.0  ;;  %12629 = vmatpush3.bf16.msra.mxu1 %v12626_v58  ;;  %v6089_v43 = vadd.f32 %v15635_v42, %v15785_v4 }
 0x6c3   : > { %v6290_v47 = vpop.permute.xlu1 %6289  ;;  %v6578_v21 = vpop.permute.xlu0 %6577  ;;  %v6194_v26 = vsel %vm6122_vm3, %v6086_v36, %v6158_v60  ;;  %vm17701_vm3 = vmmov %vm17692_vm0  ;;  %v6749_v60 = vld [vmem:[%s17001_s4 + $0x38] sm:$0xf] }
 0x6c4   : > { %6389 = vst.msk [vmem:[#allocation2 + $0x60] sm:$0xff] %vm17687_vm6, %v6290_v47  ;;  %vm17691_vm6 = vnez %v17275_v59 }
 0x6c5   : > { %6678 = vst.msk [vmem:[#allocation2 + $0x56] sm:$0xff] %vm17683_vm13, %v6578_v21  ;;  %6615 = vrot.lane.b32.xlu1 %v6226_v10, %s13118_s16  ;;  %v6228_v29 = vsel %vm17691_vm6, %v6192_v44, 0.0  ;;  %vm17693_vm13 = vmmov %vm17688_vm5  ;;  %v6087_v10 = vadd.f32 %v15635_v42, %v15779_v45  ;;  %vm17699_vm6 = vcmask 490496   ;;  %v6160_v44 = vmul.f32 0.01, %v6088_v38 }
 0x6c6   : > { %6472 = vrot.lane.b32.xlu0 %v6227_v37, %s13116_s12 }
 0x6c7   : > { %v6435_v19 = vpop.permute.xlu1 %6434  ;;  %v6292_v8 = vpop.permute.xlu0 %6291  ;;  %v6756_v22 = vld [vmem:[#allocation2 + $0x47] sm:$0xff]  ;;  %v6159_v0 = vmul.f32 0.01, %v6087_v10 }
 0x6c8   : > { %6534 = vst.msk [vmem:[#allocation2 + $0x5f] sm:$0xff] %vm17688_vm5, %v6435_v19  ;;  %12043 = vmatprep.mubr.msk.f32.mxu1 %vm17690_vm7, %v6756_v22  ;;  %vm17696_vm5 = vcmask 326944  }
 0x6c9   : > { %6390 = vst.msk [vmem:[#allocation2 + $0x68] sm:$0xff] %vm17689_vm14, %v6292_v8  ;;  %6329 = vrot.lane.b32.xlu1 %v6228_v29, %s13117_s13  ;;  %vm17694_vm14 = vmmov %vm17690_vm7  ;;  %vm17695_vm7 = vnez %v17284_v24 }
 0x6ca   : > { %6617 = vrot.lane.b32.xlu0 %v6227_v37, %s13118_s16  ;;  %v6229_v39 = vsel %vm17695_vm7, %v6193_v18, 0.0  ;;  %vm17698_vm7 = vmmov %vm17696_vm5 }
 0x6cb   : > { %v6580_v56 = vpop.permute.xlu1 %6579  ;;  %v6437_v62 = vpop.permute.xlu0 %6436 }
 0x6cc   : > { %v6757_v31 = vld [vmem:[#allocation2 + $0x4f] sm:$0xff]  ;;  %6679 = vst.msk [vmem:[#allocation2 + $0x5e] sm:$0xff] %vm17692_vm0, %v6580_v56 }
 0x6cd   : > { %6535 = vst.msk [vmem:[#allocation2 + $0x67] sm:$0xff] %vm17693_vm13, %v6437_v62  ;;  %12044 = vmatmul.mubr.msk.f32.gmra.mrb[78].mxu1 %vm17694_vm14, %v6757_v31  ;;  %6474 = vrot.lane.b32.xlu1 %v6228_v29, %s13116_s12  ;;  %vm6123_vm13 = vcmp.ge.f32.partialorder %v6087_v10, 0.0  ;;  %vm17697_vm14 = vcmask 359744   ;;  %v6090_v62 = vadd.f32 %v15783_v34, %v15635_v42  ;;  %v6748_v31 = vld [vmem:[%s17001_s4 + $0x30] sm:$0xff] }
 0x6ce   : > { %6331 = vrot.lane.b32.xlu0 %v6229_v39, %s13117_s13  ;;  %v6195_v37 = vsel %vm6123_vm13, %v6087_v10, %v6159_v0  ;;  %vm17705_vm13 = vcmask 326944   ;;  %v12630_v17 = vpack.c.bf16 %v6749_v60, %v6748_v31 }
 0x6cf   : > { %v6294_v2 = vpop.permute.xlu1 %6293  ;;  %v6582_v54 = vpop.permute.xlu0 %6581  ;;  %v6162_v42 = vmul.f32 0.01, %v6090_v62 }
 0x6d0   : > { %6391 = vst.msk [vmem:[#allocation2 + $0x70] sm:$0xff] %vm17696_vm5, %v6294_v2  ;;  %vm17700_vm5 = vnez %v17294_v33  ;;  %12632 = vmatprep.subr.msk.bf16.mxu1 %vm13277_vm4, %v12630_v17 }
 0x6d1   : > { %6680 = vst.msk [vmem:[#allocation2 + $0x66] sm:$0xff] %vm17692_vm0, %v6582_v54  ;;  %6619 = vrot.lane.b32.xlu1 %v6228_v29, %s13118_s16  ;;  %v6230_v27 = vsel %vm17700_vm5, %v6194_v26, 0.0  ;;  %vm17702_vm0 = vmmov %vm17697_vm14  ;;  %v6161_v29 = vmul.f32 0.01, %v6089_v43  ;;  %vm17708_vm5 = vcmask 490496   ;;  %12635 = vmatpush3.bf16.msk.msra.mxu1 %vm13277_vm4, %v12630_v17 }
 0x6d2   : > { %6476 = vrot.lane.b32.xlu0 %v6229_v39, %s13116_s12 }
 0x6d3   : > { %v6439_v12 = vpop.permute.xlu1 %6438  ;;  %v6296_v45 = vpop.permute.xlu0 %6295  ;;  %v6758_v48 = vld [vmem:[#allocation2 + $0x57] sm:$0xff] }
 0x6d4   : > { %6536 = vst.msk [vmem:[#allocation2 + $0x6f] sm:$0xff] %vm17697_vm14, %v6439_v12  ;;  %12046 = vmatprep.mubr.msk.f32.mxu1 %vm17699_vm6, %v6758_v48  ;;  %vm6124_vm14 = vcmp.ge.f32.partialorder %v6088_v38, 0.0 }
 0x6d5   : > { %6392 = vst.msk [vmem:[#allocation2 + $0x78] sm:$0xff] %vm17698_vm7, %v6296_v45  ;;  %6333 = vrot.lane.b32.xlu1 %v6230_v27, %s13117_s13  ;;  %vm17703_vm7 = vmmov %vm17699_vm6  ;;  %vm17704_vm6 = vnez %v17302_v11  ;;  %v6196_v22 = vsel %vm6124_vm14, %v6088_v38, %v6160_v44  ;;  %vm17711_vm14 = vcmask 490496   ;;  %v10553_v44 = vld [vmem:[%s17001_s4 + $0x88] sm:$0xff] }
 0x6d6   : > { %6621 = vrot.lane.b32.xlu0 %v6229_v39, %s13118_s16  ;;  %v6231_v23 = vsel %vm17704_vm6, %v6195_v37, 0.0  ;;  %vm17707_vm6 = vmmov %vm17705_vm13  ;;  %v6232_v4 = vsel %vm14788_vm9, %v6196_v22, 0.0 }
 0x6d7   : > { %v6584_v6 = vpop.permute.xlu1 %6583  ;;  %v6441_v47 = vpop.permute.xlu0 %6440 }
 0x6d8   : > { %v6759_v21 = vld [vmem:[#allocation2 + $0x5f] sm:$0xff]  ;;  %6681 = vst.msk [vmem:[#allocation2 + $0x6e] sm:$0xff] %vm17701_vm3, %v6584_v6 }
 0x6d9   : > { %6537 = vst.msk [vmem:[#allocation2 + $0x77] sm:$0xff] %vm17702_vm0, %v6441_v47  ;;  %12047 = vmatmul.mubr.msk.f32.gmra.mrb[80].mxu1 %vm17703_vm7, %v6759_v21  ;;  %6478 = vrot.lane.b32.xlu1 %v6230_v27, %s13116_s12  ;;  %vm6125_vm0 = vcmp.ge.f32.partialorder %v6089_v43, 0.0  ;;  %vm17706_vm7 = vcmask 359744   ;;  %v10552_v21 = vld [vmem:[%s17001_s4 + $0x80] sm:$0xff] }
 0x6da   : > { %6335 = vrot.lane.b32.xlu0 %v6231_v23, %s13117_s13  ;;  %v6197_v39 = vsel %vm6125_vm0, %v6089_v43, %v6161_v29  ;;  %vm17713_vm0 = vcmask 326944  }
 0x6db   : > { %v6298_v19 = vpop.permute.xlu1 %6297  ;;  %v6586_v8 = vpop.permute.xlu0 %6585 }
 0x6dc   : > { %6393 = vst.msk [vmem:[#allocation2 + $0x80] sm:$0xff] %vm17705_vm13, %v6298_v19  ;;  %vm17712_vm13 = vnez %v17314_v46 }
 0x6dd   : > { %6682 = vst.msk [vmem:[#allocation2 + $0x76] sm:$0xff] %vm17701_vm3, %v6586_v8  ;;  %6623 = vrot.lane.b32.xlu1 %v6230_v27, %s13118_s16  ;;  %v6233_v34 = vsel %vm17712_vm13, %v6197_v39, 0.0  ;;  %vm17717_vm13 = vnez %v17321_v30 }
 0x6de   : > { %6480 = vrot.lane.b32.xlu0 %v6231_v23, %s13116_s12 }
 0x6df   : > { %v6443_v36 = vpop.permute.xlu1 %6442  ;;  %v6300_v18 = vpop.permute.xlu0 %6299  ;;  %v6760_v56 = vld [vmem:[#allocation2 + $0x67] sm:$0xff] }
 0x6e0   : > { %6538 = vst.msk [vmem:[#allocation2 + $0x7f] sm:$0xff] %vm17706_vm7, %v6443_v36  ;;  %12049 = vmatprep.mubr.msk.f32.mxu1 %vm17708_vm5, %v6760_v56  ;;  %vm17709_vm5 = vmmov %vm17701_vm3  ;;  %vm6126_vm3 = vcmp.ge.f32.partialorder %v6090_v62, 0.0 }
 0x6e1   : > { %6394 = vst.msk [vmem:[#allocation2 + $0x88] sm:$0xff] %vm17707_vm6, %v6300_v18  ;;  %6337 = vrot.lane.b32.xlu1 %v6232_v4, %s13117_s13  ;;  %vm17710_vm6 = vmmov %vm17706_vm7  ;;  %v6198_v26 = vsel %vm6126_vm3, %v6090_v62, %v6162_v42 }
 0x6e2   : > { %6625 = vrot.lane.b32.xlu0 %v6231_v23, %s13118_s16  ;;  %vm17714_vm7 = vmmov %vm17709_vm5  ;;  %v6234_v48 = vsel %vm17717_vm13, %v6198_v26, 0.0  ;;  %v16059_v23 = vpack.c.bf16 %v10553_v44, %v10552_v21 }
 0x6e3   : > { %v6588_v14 = vpop.permute.xlu1 %6587  ;;  %v6445_v10 = vpop.permute.xlu0 %6444  ;;  %vm17718_vm3 = vmmov %vm17714_vm7 }
 0x6e4   : > { %v6761_v58 = vld [vmem:[#allocation2 + $0x6f] sm:$0xff]  ;;  %6683 = vst.msk [vmem:[#allocation2 + $0x7e] sm:$0xff] %vm17709_vm5, %v6588_v14  ;;  %vm17715_vm5 = vmmov %vm17710_vm6  ;;  %12637 = vmatprep.subr.bf16.mxu1 %v16059_v23 }
 0x6e5   : > { %6539 = vst.msk [vmem:[#allocation2 + $0x87] sm:$0xff] %vm17710_vm6, %v6445_v10  ;;  %12050 = vmatmul.mubr.msk.f32.gmra.mrb[82].mxu1 %vm17711_vm14, %v6761_v58  ;;  %6482 = vrot.lane.b32.xlu1 %v6232_v4, %s13116_s12  ;;  %vm17716_vm6 = vmmov %vm17713_vm0 }
 0x6e6   : > { %6339 = vrot.lane.b32.xlu0 %v6233_v34, %s13117_s13 }
 0x6e7   : > { %v6302_v2 = vpop.permute.xlu1 %6301  ;;  %v6590_v54 = vpop.permute.xlu0 %6589 }
 0x6e8   : > { %6395 = vst.msk [vmem:[#allocation2 + $0x90] sm:$0xff] %vm17713_vm0, %v6302_v2  ;;  %vm17719_vm0 = vmmov %vm17715_vm5 }
 0x6e9   : > { %6684 = vst.msk [vmem:[#allocation2 + $0x86] sm:$0xff] %vm17714_vm7, %v6590_v54  ;;  %6627 = vrot.lane.b32.xlu1 %v6232_v4, %s13118_s16  ;;  %vm17720_vm7 = vmmov %vm17711_vm14 }
 0x6ea   : > { %6484 = vrot.lane.b32.xlu0 %v6233_v34, %s13116_s12 }
 0x6eb   : > { %v6447_v0 = vpop.permute.xlu1 %6446  ;;  %v6304_v12 = vpop.permute.xlu0 %6303  ;;  %v6762_v45 = vld [vmem:[#allocation2 + $0x77] sm:$0xff] }
 0x6ec   : > { %6540 = vst.msk [vmem:[#allocation2 + $0x8f] sm:$0xff] %vm17715_vm5, %v6447_v0  ;;  %12052 = vmatprep.mubr.msk.f32.mxu1 %vm17711_vm14, %v6762_v45  ;;  %vm17721_vm5 = vmmov %vm17716_vm6 }
 0x6ed   : > { %6396 = vst.msk [vmem:[#allocation2 + $0x98] sm:$0xff] %vm17716_vm6, %v6304_v12  ;;  %6341 = vrot.lane.b32.xlu1 %v6234_v48, %s13117_s13  ;;  %vm17722_vm6 = vmmov %vm17718_vm3 }
 0x6ee   : > { %6629 = vrot.lane.b32.xlu0 %v6233_v34, %s13118_s16  ;;  %vm17723_vm14 = vmmov %vm17719_vm0 }
 0x6ef   : > { %v6592_v27 = vpop.permute.xlu1 %6591  ;;  %v6449_v38 = vpop.permute.xlu0 %6448 }
 0x6f0   : > { %v6763_v37 = vld [vmem:[#allocation2 + $0x7f] sm:$0xff]  ;;  %6685 = vst.msk [vmem:[#allocation2 + $0x8e] sm:$0xff] %vm17718_vm3, %v6592_v27  ;;  %vm17724_vm3 = vmmov %vm17721_vm5 }
 0x6f1   : > { %6541 = vst.msk [vmem:[#allocation2 + $0x97] sm:$0xff] %vm17719_vm0, %v6449_v38  ;;  %12053 = vmatmul.mubr.msk.f32.gmra.mrb[84].mxu1 %vm17720_vm7, %v6763_v37  ;;  %6631 = vrot.lane.b32.xlu1 %v6234_v48, %s13118_s16  ;;  %vm17725_vm0 = vmmov %vm17720_vm7 }
 0x6f2   : > { %6486 = vrot.lane.b32.xlu0 %v6234_v48, %s13116_s12  ;;  %vm17726_vm7 = vmmov %vm17722_vm6  ;;  %s13121_s12 = smov 56  }
 0x6f3   : > { %v6306_v6 = vpop.permute.xlu1 %6305  ;;  %v6594_v47 = vpop.permute.xlu0 %6593  ;;  %vm17729_vm13 = vmmov %vm17724_vm3 }
 0x6f4   : > { %6397 = vst.msk [vmem:[#allocation2 + $0xa0] sm:$0xff] %vm17721_vm5, %v6306_v6  ;;  %vm17727_vm5 = vmmov %vm17723_vm14 }
 0x6f5   : > { %6686 = vst.msk [vmem:[#allocation2 + $0x96] sm:$0xff] %vm17722_vm6, %v6594_v47  ;;  %vm17728_vm6 = vmmov %vm17725_vm0 }
 0x6f6   : > { %vm17730_vm9 = vmmov %vm17726_vm7 }
 0x6f7   : > { %v6451_v43 = vpop.permute.xlu1 %6450  ;;  %v6308_v19 = vpop.permute.xlu0 %6307  ;;  %v6764_v8 = vld [vmem:[#allocation2 + $0x87] sm:$0xff] }
 0x6f8   : > { %6542 = vst.msk [vmem:[#allocation2 + $0x9f] sm:$0xff] %vm17723_vm14, %v6451_v43  ;;  %12055 = vmatprep.mubr.msk.f32.mxu1 %vm17725_vm0, %v6764_v8  ;;  %vm17731_vm14 = vmmov %vm17727_vm5 }
 0x6f9   : > { %6398 = vst.msk [vmem:[#allocation2 + $0xa8] sm:$0xff] %vm17724_vm3, %v6308_v19 }
 0x6fb   : > { %v6596_v22 = vpop.permute.xlu1 %6595  ;;  %v6453_v29 = vpop.permute.xlu0 %6452 }
 0x6fc   : > { %v6765_v36 = vld [vmem:[#allocation2 + $0x8f] sm:$0xff]  ;;  %6687 = vst.msk [vmem:[#allocation2 + $0x9e] sm:$0xff] %vm17726_vm7, %v6596_v22 }
 0x6fd   : > { %6543 = vst.msk [vmem:[#allocation2 + $0xa7] sm:$0xff] %vm17727_vm5, %v6453_v29  ;;  %12056 = vmatmul.mubr.msk.f32.gmra.mrb[86].mxu1 %vm17728_vm6, %v6765_v36  ;;  %vm17732_vm6 = vmmov %vm17725_vm0 }
 0x6ff   : > { %v6310_v18 = vpop.permute.xlu1 %6309  ;;  %v6598_v56 = vpop.permute.xlu0 %6597 }
 0x700   : > { %6399 = vst.msk [vmem:[#allocation2 + $0xb0] sm:$0xff] %vm17729_vm13, %v6310_v18  ;;  %vm17734_vm13 = vmmov %vm17726_vm7 }
 0x701   : > { %6688 = vst.msk [vmem:[#allocation2 + $0xa6] sm:$0xff] %vm17730_vm9, %v6598_v56  ;;  %vm17733_vm9 = vmmov %vm17724_vm3 }
 0x703   : > { %v6455_v4 = vpop.permute.xlu1 %6454  ;;  %v6312_v62 = vpop.permute.xlu0 %6311  ;;  %v6766_v31 = vld [vmem:[#allocation2 + $0x97] sm:$0xff] }
 0x704   : > { %6544 = vst.msk [vmem:[#allocation2 + $0xaf] sm:$0xff] %vm17731_vm14, %v6455_v4  ;;  %12058 = vmatprep.mubr.msk.f32.mxu1 %vm17725_vm0, %v6766_v31  ;;  %vm17735_vm14 = vmmov %vm17727_vm5 }
 0x705   : > { %6400 = vst.msk [vmem:[#allocation2 + $0xb8] sm:$0xff] %vm17724_vm3, %v6312_v62 }
 0x707   : > { %v6600_v60 = vpop.permute.xlu1 %6599  ;;  %v6457_v39 = vpop.permute.xlu0 %6456 }
 0x708   : > { %v6767_v17 = vld [vmem:[#allocation2 + $0x9f] sm:$0xff]  ;;  %6689 = vst.msk [vmem:[#allocation2 + $0xae] sm:$0xff] %vm17726_vm7, %v6600_v60 }
 0x709   : > { %6545 = vst.msk [vmem:[#allocation2 + $0xb7] sm:$0xff] %vm17727_vm5, %v6457_v39  ;;  %12059 = vmatmul.mubr.msk.f32.gmra.mrb[88].mxu1 %vm17732_vm6, %v6767_v17  ;;  %vm17736_vm5 = vmmov %vm17725_vm0 }
 0x70a   : > { %vm17737_vm6 = vmmov %vm17735_vm14 }
 0x70b   : > { %v6314_v14 = vpop.permute.xlu1 %6313  ;;  %v6602_v10 = vpop.permute.xlu0 %6601 }
 0x70c   : > { %6401 = vst.msk [vmem:[#allocation2 + $0xc0] sm:$0xff] %vm17733_vm9, %v6314_v14  ;;  %vm17738_vm9 = vmmov %vm17724_vm3 }
 0x70d   : > { %6690 = vst.msk [vmem:[#allocation2 + $0xb6] sm:$0xff] %vm17734_vm13, %v6602_v10  ;;  %vm17739_vm13 = vmmov %vm17726_vm7 }
 0x70f   : > { %v6459_v58 = vpop.permute.xlu1 %6458  ;;  %v6316_v42 = vpop.permute.xlu0 %6315  ;;  %v6768_v34 = vld [vmem:[#allocation2 + $0xa7] sm:$0xff] }
 0x710   : > { %6546 = vst.msk [vmem:[#allocation2 + $0xbf] sm:$0xff] %vm17735_vm14, %v6459_v58  ;;  %12061 = vmatprep.mubr.msk.f32.mxu1 %vm17725_vm0, %v6768_v34  ;;  %vm17740_vm14 = vmmov %vm17737_vm6 }
 0x711   : > { %6402 = vst.msk [vmem:[#allocation2 + $0xc8] sm:$0xff] %vm17724_vm3, %v6316_v42  ;;  %vm17741_vm3 = vmmov %vm17725_vm0 }
 0x712   : > { %vm17742_vm0 = vmmov %vm17738_vm9 }
 0x713   : > { %v6604_v2 = vpop.permute.xlu1 %6603 }
 0x714   : > { %v6769_v54 = vld [vmem:[#allocation2 + $0xaf] sm:$0xff]  ;;  %6691 = vst.msk [vmem:[#allocation2 + $0xbe] sm:$0xff] %vm17726_vm7, %v6604_v2  ;;  %v6461_v26 = vpop.permute.xlu0 %6460 }
 0x715   : > { %12062 = vmatmul.mubr.msk.f32.gmra.mrb[90].mxu1 %vm17736_vm5, %v6769_v54  ;;  %6547 = vst.msk [vmem:[#allocation2 + $0xc7] sm:$0xff] %vm17737_vm6, %v6461_v26  ;;  %vm17743_vm5 = vmmov %vm17737_vm6 }
 0x716   : > { %vm17744_vm6 = vmmov %vm17741_vm3 }
 0x717   : > { %v6318_v0 = vpop.permute.xlu1 %6317 }
 0x718   : > { %6403 = vst.msk [vmem:[#allocation2 + $0xd0] sm:$0xff] %vm17738_vm9, %v6318_v0  ;;  %v6606_v12 = vpop.permute.xlu0 %6605  ;;  %vm17745_vm9 = vmmov %vm17742_vm0 }
 0x719   : > { %6692 = vst.msk [vmem:[#allocation2 + $0xc6] sm:$0xff] %vm17739_vm13, %v6606_v12  ;;  %vm17746_vm13 = vmmov %vm17726_vm7 }
 0x71b   : > { %v6463_v45 = vpop.permute.xlu1 %6462  ;;  %v6770_v48 = vld [vmem:[#allocation2 + $0xb7] sm:$0xff] }
 0x71c   : > { %6548 = vst.msk [vmem:[#allocation2 + $0xcf] sm:$0xff] %vm17740_vm14, %v6463_v45  ;;  %v6320_v27 = vpop.permute.xlu0 %6319  ;;  %12064 = vmatprep.mubr.msk.f32.mxu1 %vm17741_vm3, %v6770_v48  ;;  %vm17747_vm14 = vmmov %vm17743_vm5 }
 0x71d   : > { %6404 = vst.msk [vmem:[#allocation2 + $0xd8] sm:$0xff] %vm17742_vm0, %v6320_v27 }
 0x71f   : > { %v6608_v38 = vpop.permute.xlu1 %6607 }
 0x720   : > { %6693 = vst.msk [vmem:[#allocation2 + $0xce] sm:$0xff] %vm17726_vm7, %v6608_v38  ;;  %v6465_v37 = vpop.permute.xlu0 %6464  ;;  %v6771_v6 = vld [vmem:[#allocation2 + $0xbf] sm:$0xff] }
 0x721   : > { %6549 = vst.msk [vmem:[#allocation2 + $0xd7] sm:$0xff] %vm17743_vm5, %v6465_v37  ;;  %12065 = vmatmul.mubr.msk.f32.gmra.mrb[92].mxu1 %vm17744_vm6, %v6771_v6  ;;  %vm17748_vm6 = vmmov %vm17741_vm3 }
 0x723   : > { %v6322_v47 = vpop.permute.xlu1 %6321 }
 0x724   : > { %6405 = vst.msk [vmem:[#allocation2 + $0xe0] sm:$0xff] %vm17745_vm9, %v6322_v47  ;;  %v6610_v21 = vpop.permute.xlu0 %6609  ;;  %vm17749_vm9 = vmmov %vm17742_vm0 }
 0x725   : > { %6694 = vst.msk [vmem:[#allocation2 + $0xd6] sm:$0xff] %vm17746_vm13, %v6610_v21  ;;  %vm17750_vm13 = vmmov %vm17726_vm7 }
 0x727   : > { %v6467_v44 = vpop.permute.xlu1 %6466  ;;  %v6772_v43 = vld [vmem:[#allocation2 + $0xc7] sm:$0xff] }
 0x728   : > { %6550 = vst.msk [vmem:[#allocation2 + $0xdf] sm:$0xff] %vm17747_vm14, %v6467_v44  ;;  %v6324_v19 = vpop.permute.xlu0 %6323  ;;  %12067 = vmatprep.mubr.msk.f32.mxu1 %vm17741_vm3, %v6772_v43  ;;  %vm17751_vm14 = vmmov %vm17743_vm5 }
 0x729   : > { %6406 = vst.msk [vmem:[#allocation2 + $0xe8] sm:$0xff] %vm17742_vm0, %v6324_v19 }
 0x72b   : > { %v6612_v8 = vpop.permute.xlu1 %6611 }
 0x72c   : > { %6695 = vst.msk [vmem:[#allocation2 + $0xde] sm:$0xff] %vm17726_vm7, %v6612_v8  ;;  %v6469_v22 = vpop.permute.xlu0 %6468  ;;  %v6773_v29 = vld [vmem:[#allocation2 + $0xcf] sm:$0xff] }
 0x72d   : > { %6551 = vst.msk [vmem:[#allocation2 + $0xe7] sm:$0xff] %vm17743_vm5, %v6469_v22  ;;  %12068 = vmatmul.mubr.msk.f32.gmra.mrb[94].mxu1 %vm17748_vm6, %v6773_v29  ;;  %vm17752_vm6 = vmmov %vm17741_vm3 }
 0x72f   : > { %v6326_v36 = vpop.permute.xlu1 %6325 }
 0x730   : > { %6407 = vst.msk [vmem:[#allocation2 + $0xf0] sm:$0xff] %vm17749_vm9, %v6326_v36  ;;  %v6614_v18 = vpop.permute.xlu0 %6613  ;;  %vm17753_vm9 = vmmov %vm17742_vm0 }
 0x731   : > { %6696 = vst.msk [vmem:[#allocation2 + $0xe6] sm:$0xff] %vm17750_vm13, %v6614_v18  ;;  %vm17754_vm13 = vmmov %vm17726_vm7 }
 0x733   : > { %v6471_v56 = vpop.permute.xlu1 %6470  ;;  %v6774_v4 = vld [vmem:[#allocation2 + $0xd7] sm:$0xff] }
 0x734   : > { %6552 = vst.msk [vmem:[#allocation2 + $0xef] sm:$0xff] %vm17751_vm14, %v6471_v56  ;;  %v6328_v62 = vpop.permute.xlu0 %6327  ;;  %12070 = vmatprep.mubr.msk.f32.mxu1 %vm17741_vm3, %v6774_v4  ;;  %vm17755_vm14 = vmmov %vm17743_vm5 }
 0x735   : > { %6408 = vst.msk [vmem:[#allocation2 + $0xf8] sm:$0xff] %vm17742_vm0, %v6328_v62 }
 0x737   : > { %v6616_v31 = vpop.permute.xlu1 %6615 }
 0x738   : > { %6697 = vst.msk [vmem:[#allocation2 + $0xee] sm:$0xff] %vm17726_vm7, %v6616_v31  ;;  %v6473_v60 = vpop.permute.xlu0 %6472  ;;  %v6775_v39 = vld [vmem:[#allocation2 + $0xdf] sm:$0xff] }
 0x739   : > { %6553 = vst.msk [vmem:[#allocation2 + $0xf7] sm:$0xff] %vm17743_vm5, %v6473_v60  ;;  %12071 = vmatmul.mubr.msk.f32.gmra.mrb[96].mxu1 %vm17752_vm6, %v6775_v39  ;;  %vm17756_vm6 = vmmov %vm17741_vm3  ;;  %v6706_v39 = vld [vmem:[#allocation2 + $0x5] sm:$0xff] }
 0x73b   : > { %v6330_v17 = vpop.permute.xlu1 %6329 }
 0x73c   : > { %6409 = vst.msk [vmem:[#allocation2 + $0x100] sm:$0xff] %vm17753_vm9, %v6330_v17  ;;  %v6618_v14 = vpop.permute.xlu0 %6617  ;;  %vm17757_vm9 = vmmov %vm17742_vm0  ;;  %v10554_v17 = vld [vmem:[%s17001_s4 + $0x90] sm:$0xff] }
 0x73d   : > { %6698 = vst.msk [vmem:[#allocation2 + $0xf6] sm:$0xff] %vm17754_vm13, %v6618_v14  ;;  %vm17758_vm13 = vmmov %vm17726_vm7  ;;  %v10555_v14 = vld [vmem:[%s17001_s4 + $0x98] sm:$0xff] }
 0x73f   : > { %v6475_v10 = vpop.permute.xlu1 %6474  ;;  %v6776_v58 = vld [vmem:[#allocation2 + $0xe7] sm:$0xff] }
 0x740   : > { %6554 = vst.msk [vmem:[#allocation2 + $0xff] sm:$0xff] %vm17755_vm14, %v6475_v10  ;;  %v6332_v42 = vpop.permute.xlu0 %6331  ;;  %12073 = vmatprep.mubr.msk.f32.mxu1 %vm17741_vm3, %v6776_v58  ;;  %vm17759_vm14 = vmmov %vm17743_vm5  ;;  %v6707_v10 = vld [vmem:[#allocation2 + $0xd] sm:$0xff]  ;;  %v12640_v58 = vpack.c.bf16 %v10555_v14, %v10554_v17  ;;  %v6732_v17 = vld [vmem:[#allocation2 + $0xd5] sm:$0xff] }
 0x741   : > { %6410 = vst.msk [vmem:[#allocation2 + $0x108] sm:$0xff] %vm17742_vm0, %v6332_v42  ;;  %v10556_v42 = vld [vmem:[%s17001_s4 + $0xa0] sm:$0xff] }
 0x742   : > { %v6733_v14 = vld [vmem:[#allocation2 + $0xdd] sm:$0xff] }
 0x743   : > { %v6620_v34 = vpop.permute.xlu1 %6619 }
 0x744   : > { %6699 = vst.msk [vmem:[#allocation2 + $0xfe] sm:$0xff] %vm17726_vm7, %v6620_v34  ;;  %v6477_v2 = vpop.permute.xlu0 %6476  ;;  %v6777_v54 = vld [vmem:[#allocation2 + $0xef] sm:$0xff] }
 0x745   : > { %6555 = vst.msk [vmem:[#allocation2 + $0x107] sm:$0xff] %vm17743_vm5, %v6477_v2  ;;  %12074 = vmatmul.mubr.msk.f32.gmra.mrb[98].mxu1 %vm17756_vm6, %v6777_v54  ;;  %vm17760_vm6 = vmmov %vm17741_vm3  ;;  %v10557_v34 = vld [vmem:[%s17001_s4 + $0xa8] sm:$0xff]  ;;  %v6708_v2 = vld [vmem:[#allocation2 + $0x15] sm:$0xff] }
 0x746   : > { %v12644_v54 = vpack.c.bf16 %v10557_v34, %v10556_v42  ;;  %v6736_v42 = vld [vmem:[#allocation2 + $0xf5] sm:$0xff] }
 0x747   : > { %v6334_v26 = vpop.permute.xlu1 %6333 }
 0x748   : > { %6411 = vst.msk [vmem:[#allocation2 + $0x110] sm:$0xff] %vm17757_vm9, %v6334_v26  ;;  %v6622_v0 = vpop.permute.xlu0 %6621  ;;  %vm17761_vm9 = vmmov %vm17742_vm0  ;;  %v6709_v26 = vld [vmem:[#allocation2 + $0x1d] sm:$0xff] }
 0x749   : > { %6700 = vst.msk [vmem:[#allocation2 + $0x106] sm:$0xff] %vm17758_vm13, %v6622_v0  ;;  %vm17762_vm13 = vmmov %vm17726_vm7  ;;  %v10558_v0 = vld [vmem:[%s17001_s4 + $0xb0] sm:$0xff] }
 0x74b   : > { %v6479_v12 = vpop.permute.xlu1 %6478  ;;  %v6778_v45 = vld [vmem:[#allocation2 + $0xf7] sm:$0xff] }
 0x74c   : > { %6556 = vst.msk [vmem:[#allocation2 + $0x10f] sm:$0xff] %vm17759_vm14, %v6479_v12  ;;  %v6336_v48 = vpop.permute.xlu0 %6335  ;;  %12076 = vmatprep.mubr.msk.f32.mxu1 %vm17741_vm3, %v6778_v45  ;;  %vm17763_vm14 = vmmov %vm17743_vm5  ;;  %v10559_v12 = vld [vmem:[%s17001_s4 + $0xb8] sm:$0xf]  ;;  %v6710_v45 = vld [vmem:[#allocation2 + $0x25] sm:$0xff] }
 0x74d   : > { %6412 = vst.msk [vmem:[#allocation2 + $0x118] sm:$0xff] %vm17742_vm0, %v6336_v48  ;;  %v12648_v48 = vpack.c.bf16 %v10559_v12, %v10558_v0  ;;  %v6737_v34 = vld [vmem:[#allocation2 + $0xfd] sm:$0xff]  ;;  %v7507_v12 = vld [vmem:[#allocation2 + $0x29] sm:$0xff] }
 0x74f   : > { %v6624_v27 = vpop.permute.xlu1 %6623 }
 0x750   : > { %6701 = vst.msk [vmem:[#allocation2 + $0x10e] sm:$0xff] %vm17726_vm7, %v6624_v27  ;;  %v6481_v38 = vpop.permute.xlu0 %6480  ;;  %v6779_v37 = vld [vmem:[#allocation2 + $0xff] sm:$0xff]  ;;  %v6712_v27 = vld [vmem:[#allocation2 + $0x35] sm:$0xff] }
 0x751   : > { %6557 = vst.msk [vmem:[#allocation2 + $0x117] sm:$0xff] %vm17743_vm5, %v6481_v38  ;;  %12077 = vmatmul.mubr.msk.f32.gmra.mrb[100].mxu1 %vm17760_vm6, %v6779_v37  ;;  %vm17764_vm6 = vmmov %vm17741_vm3  ;;  %v6713_v38 = vld [vmem:[#allocation2 + $0x3d] sm:$0xff]  ;;  %v6714_v37 = vld [vmem:[#allocation2 + $0x45] sm:$0xff] }
 0x753   : > { %v6338_v6 = vpop.permute.xlu1 %6337 }
 0x754   : > { %6413 = vst.msk [vmem:[#allocation2 + $0x120] sm:$0xff] %vm17761_vm9, %v6338_v6  ;;  %v6626_v47 = vpop.permute.xlu0 %6625  ;;  %vm17765_vm9 = vmmov %vm17742_vm0  ;;  %v6715_v6 = vld [vmem:[#allocation2 + $0x4d] sm:$0xff] }
 0x755   : > { %6702 = vst.msk [vmem:[#allocation2 + $0x116] sm:$0xff] %vm17762_vm13, %v6626_v47  ;;  %vm17766_vm13 = vmmov %vm17726_vm7  ;;  %v6716_v47 = vld [vmem:[#allocation2 + $0x55] sm:$0xff] }
 0x757   : > { %v6483_v21 = vpop.permute.xlu1 %6482  ;;  %v6780_v44 = vld [vmem:[#allocation2 + $0x107] sm:$0xff] }
 0x758   : > { %6558 = vst.msk [vmem:[#allocation2 + $0x11f] sm:$0xff] %vm17763_vm14, %v6483_v21  ;;  %v6340_v43 = vpop.permute.xlu0 %6339  ;;  %12079 = vmatprep.mubr.msk.f32.mxu1 %vm17741_vm3, %v6780_v44  ;;  %vm17767_vm14 = vmmov %vm17741_vm3  ;;  %v6717_v21 = vld [vmem:[#allocation2 + $0x5d] sm:$0xff]  ;;  %v6718_v44 = vld [vmem:[#allocation2 + $0x65] sm:$0xff] }
 0x759   : > { %6414 = vst.msk [vmem:[#allocation2 + $0x128] sm:$0xff] %vm17742_vm0, %v6340_v43  ;;  %vm17768_vm3 = vmmov %vm17743_vm5  ;;  %v6719_v43 = vld [vmem:[#allocation2 + $0x6d] sm:$0xff] }
 0x75a   : > { %vm17769_vm0 = vmmov %vm17726_vm7 }
 0x75b   : > { %v6628_v19 = vpop.permute.xlu1 %6627 }
 0x75c   : > { %6703 = vst.msk [vmem:[#allocation2 + $0x11e] sm:$0xff] %vm17726_vm7, %v6628_v19  ;;  %v6485_v8 = vpop.permute.xlu0 %6484  ;;  %v6781_v22 = vld [vmem:[#allocation2 + $0x10f] sm:$0xff]  ;;  %vm17770_vm7 = vmmov %vm17764_vm6 }
 0x75d   : > { %6559 = vst.msk [vmem:[#allocation2 + $0x127] sm:$0xff] %vm17743_vm5, %v6485_v8  ;;  %12080 = vmatmul.mubr.msk.f32.gmra.mrb[102].mxu1 %vm17764_vm6, %v6781_v22  ;;  %vm17771_vm5 = vmmov %vm17764_vm6  ;;  %v6720_v19 = vld [vmem:[#allocation2 + $0x75] sm:$0xff]  ;;  %v6721_v8 = vld [vmem:[#allocation2 + $0x7d] sm:$0xff] }
 0x75e   : > { %vm17772_vm6 = vmmov %vm17771_vm5  ;;  %v6722_v22 = vld [vmem:[#allocation2 + $0x85] sm:$0xff] }
 0x75f   : > { %v6342_v29 = vpop.permute.xlu1 %6341 }
 0x760   : > { %6415 = vst.msk [vmem:[#allocation2 + $0x130] sm:$0xff] %vm17765_vm9, %v6342_v29  ;;  %v6630_v36 = vpop.permute.xlu0 %6629  ;;  %vm17773_vm9 = vmmov %vm17771_vm5  ;;  %v6723_v29 = vld [vmem:[#allocation2 + $0x8d] sm:$0xff] }
 0x761   : > { %6704 = vst.msk [vmem:[#allocation2 + $0x126] sm:$0xff] %vm17766_vm13, %v6630_v36  ;;  %vm17774_vm13 = vmmov %vm17771_vm5  ;;  %v6724_v36 = vld [vmem:[#allocation2 + $0x95] sm:$0xff] }
 0x763   : > { %v6632_v18 = vpop.permute.xlu1 %6631  ;;  %v6782_v56 = vld [vmem:[#allocation2 + $0x117] sm:$0xff] }
 0x764   : > { %v6487_v4 = vpop.permute.xlu0 %6486  ;;  %12082 = vmatprep.mubr.msk.f32.mxu1 %vm17767_vm14, %v6782_v56  ;;  %vm17775_vm14 = vmmov %vm17771_vm5  ;;  %v6726_v56 = vld [vmem:[#allocation2 + $0xa5] sm:$0xff]  ;;  %v6741_v0 = vld [vmem:[#allocation2 + $0x11d] sm:$0xff] }
 0x765   : > { %6560 = vst.msk [vmem:[#allocation2 + $0x12f] sm:$0xff] %vm17768_vm3, %v6487_v4  ;;  %vm17776_vm3 = vmmov %vm17771_vm5  ;;  %v6727_v4 = vld [vmem:[#allocation2 + $0xad] sm:$0xff] }
 0x766   : > { %6705 = vst.msk [vmem:[#allocation2 + $0x12e] sm:$0xff] %vm17769_vm0, %v6632_v18  ;;  %vm17777_vm0 = vmmov %vm17776_vm3  ;;  %v6725_v18 = vld [vmem:[#allocation2 + $0x9d] sm:$0xff] }
 0x768   : > { %v6783_v62 = vld [vmem:[#allocation2 + $0x11f] sm:$0xff] }
 0x769   : > { %12083 = vmatmul.mubr.msk.f32.gmra.mrb[104].mxu1 %vm17770_vm7, %v6783_v62  ;;  %vm17778_vm7 = vmmov %vm17777_vm0  ;;  %v6728_v62 = vld [vmem:[#allocation2 + $0xb5] sm:$0xff] }
 0x76d   : > { %v6784_v31 = vld [vmem:[#allocation2 + $0x127] sm:$0xff]  ;;  %v6785_v60 = vld [vmem:[#allocation2 + $0x12f] sm:$0xff] }
 0x76e   : > { %12085 = vmatprep.mubr.msk.f32.mxu1 %vm17771_vm5, %v6784_v31  ;;  %vm17779_vm5 = vmmov %vm17777_vm0  ;;  %v6729_v31 = vld [vmem:[#allocation2 + $0xbd] sm:$0xff] }
 0x76f   : > { %12086 = vmatmul.mubr.msk.f32.gmra.mrb[106].mxu1 %vm17772_vm6, %v6785_v60  ;;  %vm17780_vm6 = vmmov %vm17777_vm0  ;;  %v6730_v60 = vld [vmem:[#allocation2 + $0xc5] sm:$0xff] }
 0x770   : > { %12104 = vmatprep.mubr.msk.f32.mxu1 %vm17773_vm9, %v6706_v39  ;;  %vm17781_vm9 = vmmov %vm17777_vm0  ;;  %v6731_v39 = vld [vmem:[#allocation2 + $0xcd] sm:$0xff] }
 0x773   : > { %12105 = vmatmul.mubr.msk.f32.vlgmr.msra.gmra.mrb[72].mxu1 %vm17774_vm13, %v6707_v10  ;;  %vm17782_vm13 = vmmov %vm17777_vm0  ;;  %v6734_v10 = vld [vmem:[#allocation2 + $0xe5] sm:$0xff] }
 0x774   : > { %12107 = vmatprep.mubr.msk.f32.mxu1 %vm17775_vm14, %v6708_v2  ;;  %12639 = vmatpush3.bf16.msra.mxu1 %v16059_v23  ;;  %v6711_v23 = vld [vmem:[#allocation2 + $0x2d] sm:$0xff]  ;;  %vm17783_vm14 = vmmov %vm17777_vm0  ;;  %v6738_v2 = vld [vmem:[#allocation2 + $0x105] sm:$0xff] }
 0x775   : > { %12641 = vmatprep.subr.bf16.mxu1 %v12640_v58 }
 0x777   : > { %12108 = vmatmul.mubr.msk.f32.gmra.mrb[74].mxu1 %vm17776_vm3, %v6709_v26  ;;  %vm17784_vm3 = vmmov %vm17777_vm0  ;;  %v6740_v26 = vld [vmem:[#allocation2 + $0x115] sm:$0xff] }
 0x778   : > { %12110 = vmatprep.mubr.msk.f32.mxu1 %vm17777_vm0, %v6710_v45  ;;  %12643 = vmatpush3.bf16.msra.mxu1 %v12640_v58  ;;  %v6735_v58 = vld [vmem:[#allocation2 + $0xed] sm:$0xff] }
 0x779   : > { %12645 = vmatprep.subr.bf16.mxu1 %v12644_v54  ;;  %v7508_v45 = vld [vmem:[#allocation2 + $0x31] sm:$0xff] }
 0x77b   : > { %12111 = vmatmul.mubr.msk.f32.gmra.mrb[76].mxu1 %vm17778_vm7, %v6711_v23  ;;  %vm17785_vm7 = vmmov %vm17777_vm0  ;;  %v7510_v23 = vld [vmem:[#allocation2 + $0x41] sm:$0xff] }
 0x77c   : > { %12113 = vmatprep.mubr.msk.f32.mxu1 %vm17779_vm5, %v6712_v27  ;;  %12647 = vmatpush3.bf16.msra.mxu1 %v12644_v54  ;;  %vm17786_vm5 = vmmov %vm17777_vm0  ;;  %v6739_v54 = vld [vmem:[#allocation2 + $0x10d] sm:$0xff] }
 0x77d   : > { %12650 = vmatprep.subr.msk.bf16.mxu1 %vm13277_vm4, %v12648_v48  ;;  %v7511_v27 = vld [vmem:[#allocation2 + $0x49] sm:$0xff] }
 0x77f   : > { %12114 = vmatmul.mubr.msk.f32.gmra.mrb[78].mxu1 %vm17780_vm6, %v6713_v38  ;;  %vm17787_vm6 = vmmov %vm17777_vm0  ;;  %v7512_v38 = vld [vmem:[#allocation2 + $0x51] sm:$0xff] }
 0x780   : > { %12116 = vmatprep.mubr.msk.f32.mxu1 %vm17781_vm9, %v6714_v37  ;;  %12653 = vmatpush3.bf16.msk.msra.mxu1 %vm13277_vm4, %v12648_v48  ;;  %vm17788_vm9 = vmmov %vm17777_vm0  ;;  %v7509_v48 = vld [vmem:[#allocation2 + $0x39] sm:$0xff] }
 0x781   : > { %v7513_v37 = vld [vmem:[#allocation2 + $0x59] sm:$0xff] }
 0x783   : > { %12117 = vmatmul.mubr.msk.f32.gmra.mrb[80].mxu1 %vm17782_vm13, %v6715_v6  ;;  %vm17789_vm13 = vmmov %vm17777_vm0  ;;  %v7514_v6 = vld [vmem:[#allocation2 + $0x61] sm:$0xff] }
 0x784   : > { %12119 = vmatprep.mubr.msk.f32.mxu1 %vm17783_vm14, %v6716_v47  ;;  %vm17790_vm14 = vmmov %vm17777_vm0  ;;  %v7515_v47 = vld [vmem:[#allocation2 + $0x69] sm:$0xff] }
 0x787   : > { %12120 = vmatmul.mubr.msk.f32.gmra.mrb[82].mxu1 %vm17784_vm3, %v6717_v21  ;;  %vm17791_vm3 = vmmov %vm17777_vm0  ;;  %v7516_v21 = vld [vmem:[#allocation2 + $0x71] sm:$0xff] }
 0x788   : > { %12122 = vmatprep.mubr.msk.f32.mxu1 %vm17777_vm0, %v6718_v44  ;;  %v7517_v44 = vld [vmem:[#allocation2 + $0x79] sm:$0xff] }
 0x78b   : > { %12123 = vmatmul.mubr.msk.f32.gmra.mrb[84].mxu1 %vm17785_vm7, %v6719_v43  ;;  %vm17792_vm7 = vmmov %vm17777_vm0  ;;  %v7518_v43 = vld [vmem:[#allocation2 + $0x81] sm:$0xff] }
 0x78c   : > { %12125 = vmatprep.mubr.msk.f32.mxu1 %vm17786_vm5, %v6720_v19  ;;  %vm17793_vm5 = vmmov %vm17777_vm0  ;;  %v7519_v19 = vld [vmem:[#allocation2 + $0x89] sm:$0xff] }
 0x78f   : > { %12126 = vmatmul.mubr.msk.f32.gmra.mrb[86].mxu1 %vm17787_vm6, %v6721_v8  ;;  %vm17794_vm6 = vmmov %vm17777_vm0  ;;  %v7520_v8 = vld [vmem:[#allocation2 + $0x91] sm:$0xff] }
 0x790   : > { %12128 = vmatprep.mubr.msk.f32.mxu1 %vm17788_vm9, %v6722_v22  ;;  %vm17795_vm9 = vmmov %vm17777_vm0  ;;  %v7521_v22 = vld [vmem:[#allocation2 + $0x99] sm:$0xff] }
 0x793   : > { %12129 = vmatmul.mubr.msk.f32.gmra.mrb[88].mxu1 %vm17789_vm13, %v6723_v29  ;;  %vm17796_vm13 = vmmov %vm17777_vm0  ;;  %v7522_v29 = vld [vmem:[#allocation2 + $0xa1] sm:$0xff] }
 0x794   : > { %12131 = vmatprep.mubr.msk.f32.mxu1 %vm17790_vm14, %v6724_v36  ;;  %vm17797_vm14 = vmmov %vm17777_vm0  ;;  %v7523_v36 = vld [vmem:[#allocation2 + $0xa9] sm:$0xff] }
 0x797   : > { %12132 = vmatmul.mubr.msk.f32.gmra.mrb[90].mxu1 %vm17791_vm3, %v6725_v18  ;;  %vm17798_vm3 = vmmov %vm17777_vm0  ;;  %v7524_v18 = vld [vmem:[#allocation2 + $0xb1] sm:$0xff] }
 0x798   : > { %12134 = vmatprep.mubr.msk.f32.mxu1 %vm17777_vm0, %v6726_v56  ;;  %v7525_v56 = vld [vmem:[#allocation2 + $0xb9] sm:$0xff] }
 0x79b   : > { %12135 = vmatmul.mubr.msk.f32.gmra.mrb[92].mxu1 %vm17792_vm7, %v6727_v4  ;;  %vm17799_vm7 = vmmov %vm17777_vm0  ;;  %v7526_v4 = vld [vmem:[#allocation2 + $0xc1] sm:$0xff] }
 0x79c   : > { %12137 = vmatprep.mubr.msk.f32.mxu1 %vm17793_vm5, %v6728_v62  ;;  %vm17800_vm5 = vmmov %vm17777_vm0  ;;  %v7527_v62 = vld [vmem:[#allocation2 + $0xc9] sm:$0xff] }
 0x79f   : > { %12138 = vmatmul.mubr.msk.f32.gmra.mrb[94].mxu1 %vm17794_vm6, %v6729_v31  ;;  %vm17801_vm6 = vmmov %vm17777_vm0  ;;  %v7528_v31 = vld [vmem:[#allocation2 + $0xd1] sm:$0xff] }
 0x7a0   : > { %12140 = vmatprep.mubr.msk.f32.mxu1 %vm17795_vm9, %v6730_v60  ;;  %vm17802_vm9 = vmmov %vm17777_vm0  ;;  %v7529_v60 = vld [vmem:[#allocation2 + $0xd9] sm:$0xff] }
 0x7a3   : > { %12141 = vmatmul.mubr.msk.f32.gmra.mrb[96].mxu1 %vm17796_vm13, %v6731_v39  ;;  %vm17803_vm13 = vmmov %vm17777_vm0  ;;  %v7530_v39 = vld [vmem:[#allocation2 + $0xe1] sm:$0xff] }
 0x7a4   : > { %12143 = vmatprep.mubr.msk.f32.mxu1 %vm17797_vm14, %v6732_v17  ;;  %vm17804_vm14 = vmmov %vm17777_vm0  ;;  %v7531_v17 = vld [vmem:[#allocation2 + $0xe9] sm:$0xff] }
 0x7a7   : > { %12144 = vmatmul.mubr.msk.f32.gmra.mrb[98].mxu1 %vm17798_vm3, %v6733_v14  ;;  %vm17805_vm3 = vmmov %vm17777_vm0  ;;  %v7532_v14 = vld [vmem:[#allocation2 + $0xf1] sm:$0xff] }
 0x7a8   : > { %12146 = vmatprep.mubr.msk.f32.mxu1 %vm17777_vm0, %v6734_v10  ;;  %v7533_v10 = vld [vmem:[#allocation2 + $0xf9] sm:$0xff] }
 0x7ab   : > { %12147 = vmatmul.mubr.msk.f32.gmra.mrb[100].mxu1 %vm17799_vm7, %v6735_v58  ;;  %vm17806_vm7 = vmmov %vm17777_vm0  ;;  %v7534_v58 = vld [vmem:[#allocation2 + $0x101] sm:$0xff] }
 0x7ac   : > { %12149 = vmatprep.mubr.msk.f32.mxu1 %vm17800_vm5, %v6736_v42  ;;  %vm17807_vm5 = vmmov %vm17777_vm0  ;;  %v7535_v42 = vld [vmem:[#allocation2 + $0x109] sm:$0xff] }
 0x7af   : > { %12150 = vmatmul.mubr.msk.f32.gmra.mrb[102].mxu1 %vm17801_vm6, %v6737_v34  ;;  %vm17808_vm6 = vmmov %vm17777_vm0  ;;  %v7536_v34 = vld [vmem:[#allocation2 + $0x111] sm:$0xff] }
 0x7b0   : > { %12152 = vmatprep.mubr.msk.f32.mxu1 %vm17802_vm9, %v6738_v2  ;;  %vm17809_vm9 = vmmov %vm17777_vm0  ;;  %v7537_v2 = vld [vmem:[#allocation2 + $0x119] sm:$0xff] }
 0x7b3   : > { %12153 = vmatmul.mubr.msk.f32.gmra.mrb[104].mxu1 %vm17803_vm13, %v6739_v54  ;;  %vm17810_vm13 = vmmov %vm17777_vm0  ;;  %v7538_v54 = vld [vmem:[#allocation2 + $0x121] sm:$0xff] }
 0x7b4   : > { %12155 = vmatprep.mubr.msk.f32.mxu1 %vm17804_vm14, %v6740_v26  ;;  %vm17811_vm14 = vmmov %vm17777_vm0  ;;  %v7539_v26 = vld [vmem:[#allocation2 + $0x129] sm:$0xff] }
 0x7b7   : > { %12156 = vmatmul.mubr.msk.f32.gmra.mrb[106].mxu1 %vm17805_vm3, %v6741_v0  ;;  %vm17812_vm3 = vmmov %vm17777_vm0  ;;  %v7541_v0 = vld [vmem:[#allocation2 + $0x139] sm:$0xff] }
 0x7b8   : > { %12174 = vmatprep.mubr.msk.f32.mxu1 %vm17777_vm0, %v7507_v12  ;;  %v7540_v12 = vld [vmem:[#allocation2 + $0x131] sm:$0xff] }
 0x7bb   : > { %12175 = vmatmul.mubr.msk.f32.vlgmr.msra.gmra.mrb[72].mxu1 %vm17806_vm7, %v7508_v45  ;;  %vm17813_vm7 = vmmov %vm17777_vm0  ;;  %v7542_v45 = vld [vmem:[#allocation2 + $0x141] sm:$0xff] }
 0x7bc   : > { %12177 = vmatprep.mubr.msk.f32.mxu1 %vm17807_vm5, %v7509_v48  ;;  %vm17814_vm5 = vmmov %vm17777_vm0  ;;  %v16238_v48 = vld [vmem:[%s17003_s6 + $0x3] ss:$0 sm:$0xff] }
 0x7bf   : > { %12178 = vmatmul.mubr.msk.f32.gmra.mrb[74].mxu1 %vm17808_vm6, %v7510_v23  ;;  %vm17815_vm6 = vmmov %vm17777_vm0 }
 0x7c0   : > { %12180 = vmatprep.mubr.msk.f32.mxu1 %vm17809_vm9, %v7511_v27  ;;  %vm17816_vm9 = vmmov %vm17777_vm0 }
 0x7c3   : > { %12181 = vmatmul.mubr.msk.f32.gmra.mrb[76].mxu1 %vm17810_vm13, %v7512_v38  ;;  %vm17817_vm13 = vmmov %vm17777_vm0 }
 0x7c4   : > { %12183 = vmatprep.mubr.msk.f32.mxu1 %vm17811_vm14, %v7513_v37  ;;  %vm17818_vm14 = vmmov %vm17777_vm0 }
 0x7c7   : > { %12184 = vmatmul.mubr.msk.f32.gmra.mrb[78].mxu1 %vm17812_vm3, %v7514_v6  ;;  %vm17819_vm3 = vmmov %vm17777_vm0 }
 0x7c8   : > { %12186 = vmatprep.mubr.msk.f32.mxu1 %vm17777_vm0, %v7515_v47 }
 0x7cb   : > { %12187 = vmatmul.mubr.msk.f32.gmra.mrb[80].mxu1 %vm17813_vm7, %v7516_v21  ;;  %vm17820_vm7 = vmmov %vm17777_vm0 }
 0x7cc   : > { %12189 = vmatprep.mubr.msk.f32.mxu1 %vm17814_vm5, %v7517_v44  ;;  %vm17821_vm5 = vmmov %vm17777_vm0 }
 0x7cf   : > { %12190 = vmatmul.mubr.msk.f32.gmra.mrb[82].mxu1 %vm17815_vm6, %v7518_v43  ;;  %vm17822_vm6 = vmmov %vm17777_vm0 }
 0x7d0   : > { %12192 = vmatprep.mubr.msk.f32.mxu1 %vm17816_vm9, %v7519_v19  ;;  %vm17823_vm9 = vmmov %vm17777_vm0 }
 0x7d3   : > { %12193 = vmatmul.mubr.msk.f32.gmra.mrb[84].mxu1 %vm17817_vm13, %v7520_v8  ;;  %vm17824_vm13 = vmmov %vm17777_vm0 }
 0x7d4   : > { %12195 = vmatprep.mubr.msk.f32.mxu1 %vm17818_vm14, %v7521_v22  ;;  %vm17825_vm14 = vmmov %vm17777_vm0 }
 0x7d7   : > { %12196 = vmatmul.mubr.msk.f32.gmra.mrb[86].mxu1 %vm17819_vm3, %v7522_v29  ;;  %vm17826_vm3 = vmmov %vm17777_vm0 }
 0x7d8   : > { %12198 = vmatprep.mubr.msk.f32.mxu1 %vm17777_vm0, %v7523_v36 }
 0x7db   : > { %12199 = vmatmul.mubr.msk.f32.gmra.mrb[88].mxu1 %vm17820_vm7, %v7524_v18  ;;  %vm17827_vm7 = vmmov %vm17777_vm0 }
 0x7dc   : > { %12201 = vmatprep.mubr.msk.f32.mxu1 %vm17821_vm5, %v7525_v56  ;;  %vm17828_vm5 = vmmov %vm17777_vm0  ;;  %v10598_v56 = vld [vmem:[%s17002_s5 + $0x40] sm:$0xff] }
 0x7df   : > { %12202 = vmatmul.mubr.msk.f32.gmra.mrb[90].mxu1 %vm17822_vm6, %v7526_v4  ;;  %vm17829_vm6 = vmmov %vm17777_vm0 }
 0x7e0   : > { %12204 = vmatprep.mubr.msk.f32.mxu1 %vm17823_vm9, %v7527_v62  ;;  %vm17830_vm9 = vmmov %vm17777_vm0  ;;  %v12654_v62 = vpack.c.bf16 %v10599_v1, %v10598_v56 }
 0x7e2   : > { %12655 = vmatprep.subr.bf16.mxu0 %v12654_v62 }
 0x7e3   : > { %12205 = vmatmul.mubr.msk.f32.gmra.mrb[92].mxu1 %vm17824_vm13, %v7528_v31  ;;  %vm17831_vm13 = vmmov %vm17777_vm0  ;;  %12657 = vmatpush3.bf16.msra.mxu0 %v12654_v62 }
 0x7e4   : > { %12207 = vmatprep.mubr.msk.f32.mxu1 %vm17825_vm14, %v7529_v60  ;;  %vm17832_vm14 = vmmov %vm17777_vm0 }
 0x7e7   : > { %12208 = vmatmul.mubr.msk.f32.gmra.mrb[94].mxu1 %vm17826_vm3, %v7530_v39  ;;  %vm17833_vm3 = vmmov %vm17777_vm0 }
 0x7e8   : > { %12210 = vmatprep.mubr.msk.f32.mxu1 %vm17777_vm0, %v7531_v17 }
 0x7eb   : > { %12211 = vmatmul.mubr.msk.f32.gmra.mrb[96].mxu1 %vm17827_vm7, %v7532_v14  ;;  %vm17834_vm7 = vmmov %vm17777_vm0  ;;  %v10600_v14 = vld [vmem:[%s17002_s5 + $0x50] sm:$0xff] }
 0x7ec   : > { %12213 = vmatprep.mubr.msk.f32.mxu1 %vm17828_vm5, %v7533_v10  ;;  %vm17835_vm5 = vmmov %vm17777_vm0  ;;  %v12658_v10 = vpack.c.bf16 %v10601_v51, %v10600_v14 }
 0x7ee   : > { %12659 = vmatprep.subr.bf16.mxu0 %v12658_v10 }
 0x7ef   : > { %12214 = vmatmul.mubr.msk.f32.gmra.mrb[98].mxu1 %vm17829_vm6, %v7534_v58  ;;  %vm17836_vm6 = vmmov %vm17777_vm0  ;;  %12661 = vmatpush3.bf16.msra.mxu0 %v12658_v10 }
 0x7f0   : > { %12216 = vmatprep.mubr.msk.f32.mxu1 %vm17830_vm9, %v7535_v42 }
 0x7f3   : > { %12217 = vmatmul.mubr.msk.f32.gmra.mrb[100].mxu1 %vm17831_vm13, %v7536_v34 }
 0x7f4   : > { %12219 = vmatprep.mubr.msk.f32.mxu1 %vm17832_vm14, %v7537_v2 }
 0x7f7   : > { %12220 = vmatmul.mubr.msk.f32.gmra.mrb[102].mxu1 %vm17833_vm3, %v7538_v54 }
 0x7f8   : > { %12222 = vmatprep.mubr.msk.f32.mxu1 %vm17777_vm0, %v7539_v26  ;;  %v10602_v26 = vld [vmem:[%s17002_s5 + $0x60] sm:$0xff] }
 0x7fb   : > { %12223 = vmatmul.mubr.msk.f32.gmra.mrb[104].mxu1 %vm17834_vm7, %v7540_v12 }
 0x7fc   : > { %12225 = vmatprep.mubr.msk.f32.mxu1 %vm17835_vm5, %v7541_v0  ;;  %v10603_v0 = vld [vmem:[%s17002_s5 + $0x68] sm:$0xff] }
 0x7ff   : > { %12226 = vmatmul.mubr.msk.f32.gmra.mrb[106].mxu1 %vm17836_vm6, %v7542_v45 }
 0x88e   : > { %v12176_v23 = vpop.f32.mrb[72].mxu1 }
 0x88f   : > { %v7950_v27 = vadd.f32 %v12176_v23, %v16238_v48  ;;  %v7729_v38 = vpop.f32.mrb[73].mxu1  ;;  %v12662_v23 = vpack.c.bf16 %v10603_v0, %v10602_v26 }
 0x890   : > { %v7949_v37 = vadd.f32 %v16238_v48, %v7729_v38 }
 0x891   : > { %vm7986_vm9 = vcmp.ge.f32.partialorder %v7950_v27, 0.0  ;;  %v8022_v6 = vmul.f32 0.01, %v7950_v27  ;;  %12663 = vmatprep.subr.bf16.mxu0 %v12662_v23 }
 0x892   : > { %vm7985_vm13 = vcmp.ge.f32.partialorder %v7949_v37, 0.0  ;;  %v8021_v47 = vmul.f32 0.01, %v7949_v37  ;;  %v12179_v21 = vpop.f32.mrb[74].mxu1  ;;  %12665 = vmatpush3.bf16.msra.mxu0 %v12662_v23 }
 0x893   : > { %v7739_v44 = vpop.f32.mrb[75].mxu1  ;;  %v8058_v43 = vsel %vm7986_vm9, %v7950_v27, %v8022_v6  ;;  %v7952_v8 = vadd.f32 %v12179_v21, %v16238_v48  ;;  %v12666_v6 = vpack.c.bf16 %v10605_v57, %v10604_v55 }
 0x894   : > { %v8094_v19 = vsel %vm13652_vm10, %v8058_v43, 0.0  ;;  %v7951_v22 = vadd.f32 %v16238_v48, %v7739_v44  ;;  %v8057_v29 = vsel %vm7985_vm13, %v7949_v37, %v8021_v47 }
 0x895   : > { %8312 = vrot.lane.b32.xlu0 %v8094_v19, %s13119_s30  ;;  %8167 = vrot.lane.b32.xlu1 %v8094_v19, %s13120_s8  ;;  %v8093_v4 = vsel %vm13681_vm15, %v8057_v29, 0.0  ;;  %v8024_v31 = vmul.f32 0.01, %v7952_v8  ;;  %vm7988_vm10 = vcmp.ge.f32.partialorder %v7952_v8, 0.0 }
 0x896   : > { %v12182_v36 = vpop.f32.mrb[76].mxu1  ;;  %v8023_v60 = vmul.f32 0.01, %v7951_v22  ;;  %vm7987_vm14 = vcmp.ge.f32.partialorder %v7951_v22, 0.0  ;;  %12668 = vmatprep.subr.msk.bf16.mxu0 %vm13277_vm4, %v12666_v6 }
 0x897   : > { %v7749_v18 = vpop.f32.mrb[77].mxu1  ;;  %v8060_v42 = vsel %vm7988_vm10, %v7952_v8, %v8024_v31  ;;  %v7954_v47 = vadd.f32 %v12182_v36, %v16238_v48  ;;  %12671 = vmatpush3.bf16.msk.msra.mxu0 %vm13277_vm4, %v12666_v6  ;;  %vm17848_vm10 = vnez %v17166_v9 }
 0x898   : > { %v7953_v58 = vadd.f32 %v16238_v48, %v7749_v18  ;;  %v8059_v34 = vsel %vm7987_vm14, %v7951_v22, %v8023_v60  ;;  %v8096_v12 = vsel %vm13712_vm1, %v8060_v42, 0.0  ;;  %vm17849_vm14 = vnez %v17172_v5 }
 0x899   : > { %8457 = vrot.lane.b32.xlu1 %v8094_v19, %s13121_s12  ;;  %8165 = vrot.lane.b32.xlu0 %v8093_v4, %s13120_s8  ;;  %v8095_v45 = vsel %vm13777_vm8, %v8059_v34, 0.0  ;;  %v8026_v22 = vmul.f32 0.01, %v7954_v47  ;;  %vm7990_vm1 = vcmp.ge.f32.partialorder %v7954_v47, 0.0  ;;  %v17842_v19 = vld [vmem:[#allocation7_spill] sm:$0xff] }
 0x89a   : > { %v12185_v39 = vpop.f32.mrb[78].mxu1  ;;  %v8025_v27 = vmul.f32 0.01, %v7953_v58  ;;  %vm7989_vm15 = vcmp.ge.f32.partialorder %v7953_v58, 0.0  ;;  %vm17843_vm3 = vnez %v17842_v19 }
 0x89b   : > { %v7759_v17 = vpop.f32.mrb[79].mxu1  ;;  %v8062_v1 = vsel %vm7990_vm1, %v7954_v47, %v8026_v22 }
 0x89c   : > { %v8061_v21 = vsel %vm7989_vm15, %v7953_v58, %v8025_v27  ;;  %v7955_v29 = vadd.f32 %v16238_v48, %v7759_v17  ;;  %v8098_v60 = vsel %vm17441_vm2, %v8062_v1, 0.0  ;;  %v7956_v17 = vadd.f32 %v12185_v39, %v16238_v48 }
 0x89d   : > { %8310 = vrot.lane.b32.xlu1 %v8093_v4, %s13119_s30  ;;  %8455 = vrot.lane.b32.xlu0 %v8093_v4, %s13121_s12  ;;  %v8097_v8 = vsel %vm13815_vm12, %v8061_v21, 0.0 }
 0x89e   : > { %v16267_v2 = vpop.f32.mrb[80].mxu1  ;;  %v8027_v56 = vmul.f32 0.01, %v7955_v29  ;;  %vm7991_vm8 = vcmp.ge.f32.partialorder %v7955_v29, 0.0  ;;  %v8028_v34 = vmul.f32 0.01, %v7956_v17 }
 0x89f   : > { %v7769_v54 = vpop.f32.mrb[81].mxu1  ;;  %vm7992_vm12 = vcmp.ge.f32.partialorder %v7956_v17, 0.0  ;;  %v7958_v57 = vadd.f32 %v16267_v2, %v16238_v48 }
 0x8a0   : > { %v8063_v14 = vsel %vm7991_vm8, %v7955_v29, %v8027_v56  ;;  %v7957_v26 = vadd.f32 %v16238_v48, %v7769_v54  ;;  %v17840_v54 = vld [vmem:[#allocation6_spill] sm:$0xff]  ;;  %vm17850_vm8 = vnez %v17177_v28 }
 0x8a1   : > { %8171 = vrot.lane.b32.xlu1 %v8096_v12, %s13120_s8  ;;  %8169 = vrot.lane.b32.xlu0 %v8095_v45, %s13120_s8  ;;  %v8099_v42 = vsel %vm17642_vm11, %v8063_v14, 0.0  ;;  %vm17841_vm11 = vnez %v17840_v54  ;;  %v8030_v22 = vmul.f32 0.01, %v7958_v57  ;;  %vm7994_vm0 = vcmp.ge.f32.partialorder %v7958_v57, 0.0 }
 0x8a2   : > { %v16281_v38 = vpop.f32.mrb[82].mxu1  ;;  %vm7993_vm2 = vcmp.ge.f32.partialorder %v7957_v26, 0.0 }
 0x8a3   : > { %v7779_v37 = vpop.f32.mrb[83].mxu1  ;;  %v8066_v31 = vsel %vm7994_vm0, %v7958_v57, %v8030_v22  ;;  %v7960_v58 = vadd.f32 %v16281_v38, %v16238_v48  ;;  %vm17853_vm0 = vnez %v17187_v50 }
 0x8a4   : > { %v7959_v29 = vadd.f32 %v16238_v48, %v7779_v37  ;;  %v17844_v37 = vld [vmem:[#allocation8_spill] sm:$0xff] }
 0x8a5   : > { %8316 = vrot.lane.b32.xlu1 %v8096_v12, %s13119_s30  ;;  %8459 = vrot.lane.b32.xlu0 %v8095_v45, %s13121_s12  ;;  %vm17845_vm5 = vnez %v17844_v37  ;;  %v8032_v54 = vmul.f32 0.01, %v7960_v58  ;;  %vm7996_vm9 = vcmp.ge.f32.partialorder %v7960_v58, 0.0 }
 0x8a6   : > { %v16292_v44 = vpop.f32.mrb[84].mxu1  ;;  %v8031_v1 = vmul.f32 0.01, %v7959_v29  ;;  %vm7995_vm7 = vcmp.ge.f32.partialorder %v7959_v29, 0.0  ;;  %v8102_v14 = vsel %vm17845_vm5, %v8066_v31, 0.0 }
 0x8a7   : > { %v16296_v43 = vpop.f32.mrb[85].mxu1  ;;  %v8068_v19 = vsel %vm7996_vm9, %v7960_v58, %v8032_v54  ;;  %vm17855_vm9 = vnez %v17192_v13 }
 0x8a9   : > { %8461 = vrot.lane.b32.xlu1 %v8096_v12, %s13121_s12  ;;  %8173 = vrot.lane.b32.xlu0 %v8097_v8, %s13120_s8  ;;  %v8029_v12 = vmul.f32 0.01, %v7957_v26 }
 0x8aa   : > { %v16305_v36 = vpop.f32.mrb[86].mxu1 }
 0x8ab   : > { %v16307_v18 = vpop.f32.mrb[87].mxu1  ;;  %v8065_v6 = vsel %vm7993_vm2, %v7957_v26, %v8029_v12  ;;  %v17846_v12 = vld [vmem:[#allocation9_spill] sm:$0xff]  ;;  %v7964_v58 = vadd.f32 %v16305_v36, %v16238_v48 }
 0x8ac   : > { %vm17847_vm6 = vnez %v17846_v12 }
 0x8ad   : > { %8314 = vrot.lane.b32.xlu1 %v8095_v45, %s13119_s30  ;;  %8318 = vrot.lane.b32.xlu0 %v8097_v8, %s13119_s30  ;;  %v8064_v45 = vsel %vm7992_vm12, %v7956_v17, %v8028_v34  ;;  %vm17851_vm12 = vnez %v17181_v7  ;;  %v8036_v12 = vmul.f32 0.01, %v7964_v58  ;;  %vm8000_vm2 = vcmp.ge.f32.partialorder %v7964_v58, 0.0 }
 0x8ae   : > { %v16311_v4 = vpop.f32.mrb[88].mxu1  ;;  %v8100_v55 = vsel %vm17841_vm11, %v8064_v45, 0.0 }
 0x8af   : > { %v16313_v62 = vpop.f32.mrb[89].mxu1  ;;  %v8072_v36 = vsel %vm8000_vm2, %v7964_v58, %v8036_v12  ;;  %v7966_v54 = vadd.f32 %v16311_v4, %v16238_v48 }
 0x8b1   : > { %8175 = vrot.lane.b32.xlu1 %v8098_v60, %s13120_s8  ;;  %8463 = vrot.lane.b32.xlu0 %v8097_v8, %s13121_s12  ;;  %v8101_v8 = vsel %vm17843_vm3, %v8065_v6, 0.0  ;;  %vm17852_vm3 = vnez %v17184_v3 }
 0x8b2   : > { %v16320_v51 = vpop.f32.mrb[90].mxu1  ;;  %v8108_v7 = vsel %vm17852_vm3, %v8072_v36, 0.0  ;;  %vm17858_vm3 = vnez %v17462_v15 }
 0x8b3   : > { %v16322_v10 = vpop.f32.mrb[91].mxu1 }
 0x8b5   : > { %8320 = vrot.lane.b32.xlu1 %v8098_v60, %s13119_s30  ;;  %8177 = vrot.lane.b32.xlu0 %v8099_v42, %s13120_s8 }
 0x8b6   : > { %v16329_v39 = vpop.f32.mrb[92].mxu1 }
 0x8b7   : > { %v16331_v0 = vpop.f32.mrb[93].mxu1 }
 0x8b9   : > { %8465 = vrot.lane.b32.xlu1 %v8098_v60, %s13121_s12  ;;  %8322 = vrot.lane.b32.xlu0 %v8099_v42, %s13119_s30 }
 0x8ba   : > { %v16335_v23 = vpop.f32.mrb[94].mxu1 }
 0x8bb   : > { %v16337_v27 = vpop.f32.mrb[95].mxu1 }
 0x8bd   : > { %8179 = vrot.lane.b32.xlu1 %v8100_v55, %s13120_s8  ;;  %8467 = vrot.lane.b32.xlu0 %v8099_v42, %s13121_s12  ;;  %v8067_v42 = vsel %vm7995_vm7, %v7959_v29, %v8031_v1  ;;  %v7962_v29 = vadd.f32 %v16292_v44, %v16238_v48  ;;  %vm8002_vm7 = vcmp.ge.f32.partialorder %v7966_v54, 0.0 }
 0x8be   : > { %v16345_v47 = vpop.f32.mrb[96].mxu1  ;;  %v8103_v45 = vsel %vm17847_vm6, %v8067_v42, 0.0  ;;  %vm17854_vm6 = vnez %v17190_v35 }
 0x8bf   : > { %v16347_v21 = vpop.f32.mrb[97].mxu1  ;;  %v8034_v37 = vmul.f32 0.01, %v7962_v29  ;;  %vm7998_vm15 = vcmp.ge.f32.partialorder %v7962_v29, 0.0 }
 0x8c1   : > { %8324 = vrot.lane.b32.xlu1 %v8100_v55, %s13119_s30  ;;  %8181 = vrot.lane.b32.xlu0 %v8101_v8, %s13120_s8  ;;  %v8070_v44 = vsel %vm7998_vm15, %v7962_v29, %v8034_v37  ;;  %v7970_v37 = vadd.f32 %v16329_v39, %v16238_v48  ;;  %vm8273_vm15 = vcmask 425344  }
 0x8c2   : > { %v16354_v2 = vpop.f32.mrb[98].mxu1  ;;  %v8106_v5 = vsel %vm17850_vm8, %v8070_v44, 0.0 }
 0x8c3   : > { %v16356_v56 = vpop.f32.mrb[99].mxu1  ;;  %vm8006_vm8 = vcmp.ge.f32.partialorder %v7970_v37, 0.0 }
 0x8c5   : > { %8469 = vrot.lane.b32.xlu1 %v8100_v55, %s13121_s12  ;;  %8326 = vrot.lane.b32.xlu0 %v8101_v8, %s13119_s30  ;;  %v7961_v55 = vadd.f32 %v16238_v48, %v16296_v43  ;;  %v8104_v43 = vsel %vm17848_vm10, %v8068_v19, 0.0  ;;  %v7967_v19 = vadd.f32 %v16238_v48, %v16322_v10 }
 0x8c6   : > { %v16360_v60 = vpop.f32.mrb[100].mxu1 }
 0x8c7   : > { %v16362_v17 = vpop.f32.mrb[101].mxu1  ;;  %v8033_v6 = vmul.f32 0.01, %v7961_v55  ;;  %vm7997_vm13 = vcmp.ge.f32.partialorder %v7961_v55, 0.0  ;;  %v8039_v3 = vmul.f32 0.01, %v7967_v19 }
 0x8c8   : > { %vm8003_vm5 = vcmp.ge.f32.partialorder %v7967_v19, 0.0 }
 0x8c9   : > { %8183 = vrot.lane.b32.xlu1 %v8102_v14, %s13120_s8  ;;  %8471 = vrot.lane.b32.xlu0 %v8101_v8, %s13121_s12  ;;  %v8069_v1 = vsel %vm7997_vm13, %v7961_v55, %v8033_v6  ;;  %v8038_v6 = vmul.f32 0.01, %v7966_v54  ;;  %v8075_v10 = vsel %vm8003_vm5, %v7967_v19, %v8039_v3  ;;  %vm17860_vm5 = vcmask 490496  }
 0x8ca   : > { %v16370_v34 = vpop.f32.mrb[102].mxu1  ;;  %v8105_v31 = vsel %vm17849_vm14, %v8069_v1, 0.0  ;;  %v8111_v29 = vsel %vm17855_vm9, %v8075_v10, 0.0  ;;  %vm17856_vm14 = vnez %v17194_v61  ;;  %v7971_v61 = vadd.f32 %v16238_v48, %v16337_v27 }
 0x8cb   : > { %v16372_v26 = vpop.f32.mrb[103].mxu1  ;;  %v8074_v4 = vsel %vm8002_vm7, %v7966_v54, %v8038_v6  ;;  %vm17861_vm9 = vnez %v17215_v25 }
 0x8cc   : > { %v8110_v50 = vsel %vm17854_vm6, %v8074_v4, 0.0  ;;  %vm8007_vm2 = vcmp.ge.f32.partialorder %v7971_v61, 0.0 }
 0x8cd   : > { %8328 = vrot.lane.b32.xlu1 %v8102_v14, %s13119_s30  ;;  %8185 = vrot.lane.b32.xlu0 %v8103_v45, %s13120_s8 }
 0x8ce   : > { %v16380_v38 = vpop.f32.mrb[104].mxu1 }
 0x8cf   : > { %v16382_v57 = vpop.f32.mrb[105].mxu1 }
 0x8d1   : > { %8473 = vrot.lane.b32.xlu1 %v8102_v14, %s13121_s12  ;;  %8330 = vrot.lane.b32.xlu0 %v8103_v45, %s13119_s30  ;;  %v7963_v14 = vadd.f32 %v16238_v48, %v16307_v18 }
 0x8d2   : > { %v16386_v8 = vpop.f32.mrb[106].mxu1 }
 0x8d3   : > { %v16388_v22 = vpop.f32.mrb[107].mxu1  ;;  %v8035_v9 = vmul.f32 0.01, %v7963_v14  ;;  %vm7999_vm1 = vcmp.ge.f32.partialorder %v7963_v14, 0.0 }
 0x8d5   : > { %8187 = vrot.lane.b32.xlu1 %v8104_v43, %s13120_s8  ;;  %8475 = vrot.lane.b32.xlu0 %v8103_v45, %s13121_s12  ;;  %v8071_v18 = vsel %vm7999_vm1, %v7963_v14, %v8035_v9  ;;  %v7965_v45 = vadd.f32 %v16238_v48, %v16313_v62  ;;  %vm17857_vm1 = vnez %v17196_v41 }
 0x8d6   : > { %v8107_v42 = vsel %vm17851_vm12, %v8071_v18, 0.0  ;;  %vm8418_vm12 = vcmask 458144   ;;  %v8043_v18 = vmul.f32 0.01, %v7971_v61 }
 0x8d7   : > { %v8037_v28 = vmul.f32 0.01, %v7965_v45  ;;  %vm8001_vm11 = vcmp.ge.f32.partialorder %v7965_v45, 0.0 }
 0x8d9   : > { %8332 = vrot.lane.b32.xlu1 %v8104_v43, %s13119_s30  ;;  %8189 = vrot.lane.b32.xlu0 %v8105_v31, %s13120_s8  ;;  %v8073_v62 = vsel %vm8001_vm11, %v7965_v45, %v8037_v28  ;;  %vm8563_vm11 = vcmask 490944   ;;  %v7972_v45 = vadd.f32 %v16335_v23, %v16238_v48  ;;  %v8079_v28 = vsel %vm8007_vm2, %v7971_v61, %v8043_v18  ;;  %vm17865_vm2 = vmmov %vm17860_vm5 }
 0x8da   : > { %v8109_v55 = vsel %vm17853_vm0, %v8073_v62, 0.0  ;;  %vm17859_vm0 = vnez %v17464_v52  ;;  %v7973_v23 = vadd.f32 %v16238_v48, %v16347_v21  ;;  %v7976_v61 = vadd.f32 %v16354_v2, %v16238_v48 }
 0x8db   : > { %v8115_v15 = vsel %vm17859_vm0, %v8079_v28, 0.0  ;;  %v8044_v54 = vmul.f32 0.01, %v7972_v45  ;;  %vm8008_vm7 = vcmp.ge.f32.partialorder %v7972_v45, 0.0  ;;  %vm17867_vm0 = vnez %v17243_v16 }
 0x8dc   : > { %v8045_v19 = vmul.f32 0.01, %v7973_v23  ;;  %vm8009_vm6 = vcmp.ge.f32.partialorder %v7973_v23, 0.0 }
 0x8dd   : > { %8477 = vrot.lane.b32.xlu1 %v8104_v43, %s13121_s12  ;;  %8334 = vrot.lane.b32.xlu0 %v8105_v31, %s13119_s30  ;;  %v7968_v43 = vadd.f32 %v16320_v51, %v16238_v48  ;;  %v8080_v52 = vsel %vm8008_vm7, %v7972_v45, %v8044_v54  ;;  %vm8012_vm7 = vcmp.ge.f32.partialorder %v7976_v61, 0.0  ;;  %v8638_v54 = vld [vmem:[%s17002_s5 + $0x10] sm:$0xff] }
 0x8de   : > { %v8116_v21 = vsel %vm17861_vm9, %v8080_v52, 0.0  ;;  %vm17869_vm9 = vnez %v17255_v63 }
 0x8df   : > { %v8040_v1 = vmul.f32 0.01, %v7968_v43  ;;  %vm8004_vm13 = vcmp.ge.f32.partialorder %v7968_v43, 0.0 }
 0x8e1   : > { %8191 = vrot.lane.b32.xlu1 %v8106_v5, %s13120_s8  ;;  %8479 = vrot.lane.b32.xlu0 %v8105_v31, %s13121_s12  ;;  %v7969_v31 = vadd.f32 %v16238_v48, %v16331_v0  ;;  %v8076_v51 = vsel %vm8004_vm13, %v7968_v43, %v8040_v1  ;;  %v8081_v43 = vsel %vm8009_vm6, %v7973_v23, %v8045_v19  ;;  %vm17868_vm6 = vmmov %vm17865_vm2  ;;  %v8639_v23 = vld [vmem:[%s17002_s5 + $0x18] sm:$0xff] }
 0x8e2   : > { %v8112_v13 = vsel %vm17856_vm14, %v8076_v51, 0.0  ;;  %vm17862_vm13 = vnez %v17225_v53 }
 0x8e3   : > { %v8041_v35 = vmul.f32 0.01, %v7969_v31  ;;  %vm8005_vm10 = vcmp.ge.f32.partialorder %v7969_v31, 0.0  ;;  %v8117_v25 = vsel %vm17862_vm13, %v8081_v43, 0.0  ;;  %vm17870_vm13 = vmmov %vm17865_vm2 }
 0x8e5   : > { %8336 = vrot.lane.b32.xlu1 %v8106_v5, %s13119_s30  ;;  %8193 = vrot.lane.b32.xlu0 %v8107_v42, %s13120_s8  ;;  %v8077_v0 = vsel %vm8005_vm10, %v7969_v31, %v8041_v35  ;;  %v8637_v31 = vld [vmem:[%s17002_s5 + $0x8] sm:$0xff]  ;;  %v7975_v35 = vadd.f32 %v16238_v48, %v16356_v56 }
 0x8e6   : > { %v8113_v44 = vsel %vm17857_vm1, %v8077_v0, 0.0  ;;  %vm17863_vm1 = vnez %v17235_v40  ;;  %v8048_v40 = vmul.f32 0.01, %v7976_v61 }
 0x8e7   : > { %v8047_v0 = vmul.f32 0.01, %v7975_v35  ;;  %vm8011_vm14 = vcmp.ge.f32.partialorder %v7975_v35, 0.0 }
 0x8e8   : > { %v8084_v45 = vsel %vm8012_vm7, %v7976_v61, %v8048_v40  ;;  %v7982_v61 = vadd.f32 %v16380_v38, %v16238_v48  ;;  %v7983_v38 = vadd.f32 %v16238_v48, %v16388_v22 }
 0x8e9   : > { %8481 = vrot.lane.b32.xlu1 %v8106_v5, %s13121_s12  ;;  %8338 = vrot.lane.b32.xlu0 %v8107_v42, %s13119_s30  ;;  %v8042_v5 = vmul.f32 0.01, %v7970_v37 }
 0x8ea   : > { %v8054_v40 = vmul.f32 0.01, %v7982_v61 }
 0x8eb   : > { %v8078_v41 = vsel %vm8006_vm8, %v7970_v37, %v8042_v5  ;;  %vm17864_vm8 = vmmov %vm17860_vm5 }
 0x8ec   : > { %v8114_v12 = vsel %vm17858_vm3, %v8078_v41, 0.0  ;;  %vm17866_vm3 = vmmov %vm17865_vm2 }
 0x8ed   : > { %8195 = vrot.lane.b32.xlu1 %v8108_v7, %s13120_s8  ;;  %8483 = vrot.lane.b32.xlu0 %v8107_v42, %s13121_s12 }
 0x8f1   : > { %8340 = vrot.lane.b32.xlu1 %v8108_v7, %s13119_s30  ;;  %8197 = vrot.lane.b32.xlu0 %v8109_v55, %s13120_s8 }
 0x8f5   : > { %8485 = vrot.lane.b32.xlu1 %v8108_v7, %s13121_s12  ;;  %8342 = vrot.lane.b32.xlu0 %v8109_v55, %s13119_s30 }
 0x8f9   : > { %8199 = vrot.lane.b32.xlu1 %v8110_v50, %s13120_s8  ;;  %8487 = vrot.lane.b32.xlu0 %v8109_v55, %s13121_s12 }
 0x8fd   : > { %8344 = vrot.lane.b32.xlu1 %v8110_v50, %s13119_s30  ;;  %8201 = vrot.lane.b32.xlu0 %v8111_v29, %s13120_s8 }
 0x901   : > { %8489 = vrot.lane.b32.xlu1 %v8110_v50, %s13121_s12  ;;  %8346 = vrot.lane.b32.xlu0 %v8111_v29, %s13119_s30  ;;  %v7974_v50 = vadd.f32 %v16345_v47, %v16238_v48  ;;  %v8636_v47 = vld [vmem:[%s17002_s5] sm:$0xff] }
 0x902   : > { %v12672_v51 = vpack.c.bf16 %v8637_v31, %v8636_v47 }
 0x903   : > { %v8046_v1 = vmul.f32 0.01, %v7974_v50  ;;  %vm8010_vm10 = vcmp.ge.f32.partialorder %v7974_v50, 0.0 }
 0x904   : > { %12673 = vmatprep.subr.bf16.mxu0 %v12672_v51 }
 0x905   : > { %8203 = vrot.lane.b32.xlu1 %v8112_v13, %s13120_s8  ;;  %8491 = vrot.lane.b32.xlu0 %v8111_v29, %s13121_s12  ;;  %v8082_v53 = vsel %vm8010_vm10, %v7974_v50, %v8046_v1  ;;  %vm17871_vm10 = vnez %v17264_v49  ;;  %v7980_v1 = vadd.f32 %v16370_v34, %v16238_v48  ;;  %v8640_v34 = vld [vmem:[%s17002_s5 + $0x20] sm:$0xff] }
 0x907   : > { %v8313_v14 = vpop.permute.xlu0 %8312  ;;  %v8168_v9 = vpop.permute.xlu1 %8167  ;;  %vm8016_vm7 = vcmp.ge.f32.partialorder %v7980_v1, 0.0 }
 0x908   : > { %8275 = vst.msk [vmem:[#allocation2 + $0x20] sm:$0xff] %vm8273_vm15, %v8168_v9 }
 0x909   : > { %8348 = vrot.lane.b32.xlu1 %v8112_v13, %s13119_s30  ;;  %8205 = vrot.lane.b32.xlu0 %v8113_v44, %s13120_s8 }
 0x90b   : > { %v8458_v39 = vpop.permute.xlu1 %8457  ;;  %v8166_v58 = vpop.permute.xlu0 %8165 }
 0x90c   : > { %8274 = vst.msk [vmem:[#allocation2 + $0x18] sm:$0xff] %vm8273_vm15, %v8166_v58 }
 0x90d   : > { %8493 = vrot.lane.b32.xlu1 %v8112_v13, %s13121_s12  ;;  %8350 = vrot.lane.b32.xlu0 %v8113_v44, %s13119_s30  ;;  %8420 = vst.msk [vmem:[#allocation2 + $0x1f] sm:$0xff] %vm8418_vm12, %v8313_v14 }
 0x90f   : > { %v8311_v27 = vpop.permute.xlu1 %8310  ;;  %v8456_v42 = vpop.permute.xlu0 %8455 }
 0x910   : > { %8419 = vst.msk [vmem:[#allocation2 + $0x17] sm:$0xff] %vm8418_vm12, %v8311_v27  ;;  %v7977_v27 = vadd.f32 %v16238_v48, %v16362_v17  ;;  %v8120_v17 = vsel %vm17869_vm9, %v8084_v45, 0.0  ;;  %vm17876_vm9 = vnez %v17294_v33 }
 0x911   : > { %8207 = vrot.lane.b32.xlu1 %v8114_v12, %s13120_s8  ;;  %8495 = vrot.lane.b32.xlu0 %v8113_v44, %s13121_s12  ;;  %8564 = vst.msk [vmem:[#allocation2 + $0x16] sm:$0xff] %vm8563_vm11, %v8456_v42  ;;  %8565 = vst.msk [vmem:[#allocation2 + $0x1e] sm:$0xff] %vm8563_vm11, %v8458_v39  ;;  %v8118_v44 = vsel %vm17863_vm1, %v8082_v53, 0.0  ;;  %v8083_v39 = vsel %vm8011_vm14, %v7975_v35, %v8047_v0 }
 0x912   : > { %v8119_v2 = vsel %vm17867_vm0, %v8083_v39, 0.0  ;;  %v8049_v28 = vmul.f32 0.01, %v7977_v27  ;;  %vm17874_vm0 = vnez %v17284_v24 }
 0x913   : > { %v8172_v36 = vpop.permute.xlu1 %8171  ;;  %v8170_v7 = vpop.permute.xlu0 %8169 }
 0x914   : > { %8277 = vst.msk [vmem:[#allocation2 + $0x30] sm:$0xff] %vm8273_vm15, %v8172_v36  ;;  %8276 = vst.msk [vmem:[#allocation2 + $0x28] sm:$0xff] %vm8273_vm15, %v8170_v7 }
 0x915   : > { %8352 = vrot.lane.b32.xlu1 %v8114_v12, %s13119_s30  ;;  %8209 = vrot.lane.b32.xlu0 %v8115_v15, %s13120_s8 }
 0x917   : > { %v8317_v62 = vpop.permute.xlu1 %8316  ;;  %v8460_v55 = vpop.permute.xlu0 %8459 }
 0x918   : > { %8422 = vst.msk [vmem:[#allocation2 + $0x2f] sm:$0xff] %vm8418_vm12, %v8317_v62  ;;  %v8644_v6 = vld [vmem:[#allocation2 + $0x17] sm:$0xff] }
 0x919   : > { %12244 = vmatprep.mubr.msk.f32.mxu0 %vm17860_vm5, %v8644_v6  ;;  %8497 = vrot.lane.b32.xlu1 %v8114_v12, %s13121_s12  ;;  %vm8013_vm5 = vcmp.ge.f32.partialorder %v7977_v27, 0.0 }
 0x91a   : > { %8354 = vrot.lane.b32.xlu0 %v8115_v15, %s13119_s30  ;;  %v8085_v62 = vsel %vm8013_vm5, %v7977_v27, %v8049_v28 }
 0x91b   : > { %v8462_v3 = vpop.permute.xlu1 %8461  ;;  %v8174_v4 = vpop.permute.xlu0 %8173  ;;  %v8121_v19 = vsel %vm17871_vm10, %v8085_v62, 0.0  ;;  %vm17878_vm10 = vnez %v17302_v11 }
 0x91c   : > { %8278 = vst.msk [vmem:[#allocation2 + $0x38] sm:$0xff] %vm8273_vm15, %v8174_v4 }
 0x91d   : > { %8211 = vrot.lane.b32.xlu1 %v8116_v21, %s13120_s8 }
 0x91e   : > { %8499 = vrot.lane.b32.xlu0 %v8115_v15, %s13121_s12  ;;  %v7978_v15 = vadd.f32 %v16360_v60, %v16238_v48 }
 0x91f   : > { %v8315_v10 = vpop.permute.xlu1 %8314  ;;  %v8319_v29 = vpop.permute.xlu0 %8318 }
 0x920   : > { %8421 = vst.msk [vmem:[#allocation2 + $0x27] sm:$0xff] %vm8418_vm12, %v8315_v10  ;;  %8423 = vst.msk [vmem:[#allocation2 + $0x37] sm:$0xff] %vm8418_vm12, %v8319_v29  ;;  %v8050_v60 = vmul.f32 0.01, %v7978_v15  ;;  %vm8014_vm14 = vcmp.ge.f32.partialorder %v7978_v15, 0.0 }
 0x921   : > { %8566 = vst.msk [vmem:[#allocation2 + $0x26] sm:$0xff] %vm8563_vm11, %v8460_v55  ;;  %8567 = vst.msk [vmem:[#allocation2 + $0x2e] sm:$0xff] %vm8563_vm11, %v8462_v3  ;;  %8356 = vrot.lane.b32.xlu1 %v8116_v21, %s13119_s30  ;;  %v12676_v55 = vpack.c.bf16 %v8639_v23, %v8638_v54  ;;  %v7979_v3 = vadd.f32 %v16238_v48, %v16372_v26 }
 0x922   : > { %8213 = vrot.lane.b32.xlu0 %v8117_v25, %s13120_s8  ;;  %v8086_v50 = vsel %vm8014_vm14, %v7978_v15, %v8050_v60  ;;  %vm8018_vm14 = vcmp.ge.f32.partialorder %v7982_v61, 0.0 }
 0x923   : > { %v8176_v13 = vpop.permute.xlu1 %8175  ;;  %v8464_v37 = vpop.permute.xlu0 %8463  ;;  %v8051_v43 = vmul.f32 0.01, %v7979_v3  ;;  %vm8015_vm1 = vcmp.ge.f32.partialorder %v7979_v3, 0.0 }
 0x924   : > { %8279 = vst.msk [vmem:[#allocation2 + $0x40] sm:$0xff] %vm8273_vm15, %v8176_v13  ;;  %v8641_v13 = vld [vmem:[%s17002_s5 + $0x28] sm:$0xff] }
 0x925   : > { %8568 = vst.msk [vmem:[#allocation2 + $0x36] sm:$0xff] %vm8563_vm11, %v8464_v37  ;;  %8501 = vrot.lane.b32.xlu1 %v8116_v21, %s13121_s12  ;;  %v7981_v37 = vadd.f32 %v16238_v48, %v16382_v57  ;;  %v12680_v53 = vpack.c.bf16 %v8641_v13, %v8640_v34 }
 0x926   : > { %8358 = vrot.lane.b32.xlu0 %v8117_v25, %s13119_s30 }
 0x927   : > { %v8321_v14 = vpop.permute.xlu1 %8320  ;;  %v8178_v9 = vpop.permute.xlu0 %8177  ;;  %vm8017_vm5 = vcmp.ge.f32.partialorder %v7981_v37, 0.0 }
 0x928   : > { %8424 = vst.msk [vmem:[#allocation2 + $0x3f] sm:$0xff] %vm8418_vm12, %v8321_v14  ;;  %v8645_v56 = vld [vmem:[#allocation2 + $0x1f] sm:$0xff]  ;;  %v8646_v5 = vld [vmem:[#allocation2 + $0x27] sm:$0xff] }
 0x929   : > { %8280 = vst.msk [vmem:[#allocation2 + $0x48] sm:$0xff] %vm8273_vm15, %v8178_v9  ;;  %12245 = vmatmul.mubr.msk.f32.vlgmr.msra.gmra.mrb[72].mxu0 %vm17864_vm8, %v8645_v56  ;;  %8215 = vrot.lane.b32.xlu1 %v8118_v44, %s13120_s8  ;;  %vm17872_vm8 = vmmov %vm17865_vm2  ;;  %v8053_v9 = vmul.f32 0.01, %v7981_v37 }
 0x92a   : > { %8503 = vrot.lane.b32.xlu0 %v8117_v25, %s13121_s12  ;;  %12247 = vmatprep.mubr.msk.f32.mxu0 %vm17865_vm2, %v8646_v5  ;;  %vm17873_vm2 = vnez %v17275_v59  ;;  %v8087_v25 = vsel %vm8015_vm1, %v7979_v3, %v8051_v43  ;;  %vm8019_vm1 = vcmp.ge.f32.partialorder %v7983_v38, 0.0  ;;  %v10681_v43 = vld [vmem:[%s17002_s5 + $0x88] sm:$0xff] }
 0x92b   : > { %v8466_v58 = vpop.permute.xlu1 %8465  ;;  %v8323_v18 = vpop.permute.xlu0 %8322  ;;  %12675 = vmatpush3.bf16.msra.mxu0 %v12672_v51  ;;  %v8122_v26 = vsel %vm17873_vm2, %v8086_v50, 0.0  ;;  %v8052_v51 = vmul.f32 0.01, %v7980_v1  ;;  %v8123_v59 = vsel %vm17874_vm0, %v8087_v25, 0.0  ;;  %v8089_v39 = vsel %vm8017_vm5, %v7981_v37, %v8053_v9  ;;  %vm17882_vm5 = vmmov %vm17866_vm3  ;;  %v10680_v50 = vld [vmem:[%s17002_s5 + $0x80] sm:$0xff] }
 0x92c   : > { %v8647_v41 = vld [vmem:[#allocation2 + $0x2f] sm:$0xff]  ;;  %8569 = vst.msk [vmem:[#allocation2 + $0x3e] sm:$0xff] %vm8563_vm11, %v8466_v58  ;;  %12677 = vmatprep.subr.bf16.mxu0 %v12676_v55  ;;  %v8125_v33 = vsel %vm17878_vm10, %v8089_v39, 0.0  ;;  %vm17880_vm2 = vnez %v17309_v32  ;;  %vm17881_vm0 = vnez %v17314_v46  ;;  %vm17886_vm10 = vmmov %vm17866_vm3 }
 0x92d   : > { %8425 = vst.msk [vmem:[#allocation2 + $0x47] sm:$0xff] %vm8418_vm12, %v8323_v18  ;;  %12248 = vmatmul.mubr.msk.f32.gmra.mrb[74].mxu0 %vm17866_vm3, %v8647_v41  ;;  %8360 = vrot.lane.b32.xlu1 %v8118_v44, %s13119_s30  ;;  %v8088_v24 = vsel %vm8016_vm7, %v7980_v1, %v8052_v51 }
 0x92e   : > { %8217 = vrot.lane.b32.xlu0 %v8119_v2, %s13120_s8  ;;  %v8124_v5 = vsel %vm17876_vm9, %v8088_v24, 0.0  ;;  %vm17884_vm9 = vmmov %vm17866_vm3 }
 0x92f   : > { %v8180_v42 = vpop.permute.xlu1 %8179  ;;  %v8468_v12 = vpop.permute.xlu0 %8467  ;;  %12679 = vmatpush3.bf16.msra.mxu0 %v12676_v55 }
 0x930   : > { %8281 = vst.msk [vmem:[#allocation2 + $0x50] sm:$0xff] %vm8273_vm15, %v8180_v42  ;;  %12681 = vmatprep.subr.bf16.mxu0 %v12680_v53  ;;  %v8090_v42 = vsel %vm8018_vm14, %v7982_v61, %v8054_v40  ;;  %vm17887_vm14 = vmmov %vm17866_vm3 }
 0x931   : > { %8570 = vst.msk [vmem:[#allocation2 + $0x46] sm:$0xff] %vm8563_vm11, %v8468_v12  ;;  %8505 = vrot.lane.b32.xlu1 %v8118_v44, %s13121_s12  ;;  %v8055_v12 = vmul.f32 0.01, %v7983_v38  ;;  %v8126_v22 = vsel %vm17880_vm2, %v8090_v42, 0.0 }
 0x932   : > { %8362 = vrot.lane.b32.xlu0 %v8119_v2, %s13119_s30 }
 0x933   : > { %v8325_v16 = vpop.permute.xlu1 %8324  ;;  %v8182_v36 = vpop.permute.xlu0 %8181  ;;  %v8648_v7 = vld [vmem:[#allocation2 + $0x37] sm:$0xff]  ;;  %12683 = vmatpush3.bf16.msra.mxu0 %v12680_v53 }
 0x934   : > { %8426 = vst.msk [vmem:[#allocation2 + $0x4f] sm:$0xff] %vm8418_vm12, %v8325_v16  ;;  %12250 = vmatprep.mubr.msk.f32.mxu0 %vm17868_vm6, %v8648_v7  ;;  %vm17875_vm6 = vmmov %vm17866_vm3  ;;  %v7984_v16 = vadd.f32 %v16386_v8, %v16238_v48  ;;  %v8643_v7 = vld [vmem:[%s17002_s5 + $0x38] sm:$0xf] }
 0x935   : > { %8282 = vst.msk [vmem:[#allocation2 + $0x58] sm:$0xff] %vm8273_vm15, %v8182_v36  ;;  %8219 = vrot.lane.b32.xlu1 %v8120_v17, %s13120_s8  ;;  %v8642_v36 = vld [vmem:[%s17002_s5 + $0x30] sm:$0xff] }
 0x936   : > { %8507 = vrot.lane.b32.xlu0 %v8119_v2, %s13121_s12  ;;  %v12684_v15 = vpack.c.bf16 %v8643_v7, %v8642_v36  ;;  %v8056_v48 = vmul.f32 0.01, %v7984_v16  ;;  %vm8020_vm7 = vcmp.ge.f32.partialorder %v7984_v16, 0.0 }
 0x937   : > { %v8470_v6 = vpop.permute.xlu1 %8469  ;;  %v8327_v63 = vpop.permute.xlu0 %8326 }
 0x938   : > { %v8649_v52 = vld [vmem:[#allocation2 + $0x3f] sm:$0xff]  ;;  %8571 = vst.msk [vmem:[#allocation2 + $0x4e] sm:$0xff] %vm8563_vm11, %v8470_v6  ;;  %12686 = vmatprep.subr.msk.bf16.mxu0 %vm13277_vm4, %v12684_v15  ;;  %v8092_v6 = vsel %vm8020_vm7, %v7984_v16, %v8056_v48 }
 0x939   : > { %8427 = vst.msk [vmem:[#allocation2 + $0x57] sm:$0xff] %vm8418_vm12, %v8327_v63  ;;  %12251 = vmatmul.mubr.msk.f32.gmra.mrb[76].mxu0 %vm17870_vm13, %v8649_v52  ;;  %8364 = vrot.lane.b32.xlu1 %v8120_v17, %s13119_s30  ;;  %vm17877_vm13 = vmmov %vm17866_vm3 }
 0x93a   : > { %8221 = vrot.lane.b32.xlu0 %v8121_v19, %s13120_s8  ;;  %12689 = vmatpush3.bf16.msk.msra.mxu0 %vm13277_vm4, %v12684_v15 }
 0x93b   : > { %v8184_v4 = vpop.permute.xlu1 %8183  ;;  %v8472_v21 = vpop.permute.xlu0 %8471 }
 0x93c   : > { %8283 = vst.msk [vmem:[#allocation2 + $0x60] sm:$0xff] %vm8273_vm15, %v8184_v4 }
 0x93d   : > { %8572 = vst.msk [vmem:[#allocation2 + $0x56] sm:$0xff] %vm8563_vm11, %v8472_v21  ;;  %8509 = vrot.lane.b32.xlu1 %v8120_v17, %s13121_s12  ;;  %v8091_v17 = vsel %vm8019_vm1, %v7983_v38, %v8055_v12  ;;  %vm17888_vm1 = vmmov %vm17866_vm3 }
 0x93e   : > { %8366 = vrot.lane.b32.xlu0 %v8121_v19, %s13119_s30  ;;  %v8127_v8 = vsel %vm17881_vm0, %v8091_v17, 0.0  ;;  %vm17890_vm2 = vmmov %vm17888_vm1 }
 0x93f   : > { %v8329_v49 = vpop.permute.xlu1 %8328  ;;  %v8186_v10 = vpop.permute.xlu0 %8185  ;;  %v8650_v29 = vld [vmem:[#allocation2 + $0x47] sm:$0xff]  ;;  %vm17892_vm0 = vmmov %vm17888_vm1 }
 0x940   : > { %8428 = vst.msk [vmem:[#allocation2 + $0x5f] sm:$0xff] %vm8418_vm12, %v8329_v49  ;;  %12253 = vmatprep.mubr.msk.f32.mxu0 %vm17872_vm8, %v8650_v29  ;;  %vm17879_vm8 = vmmov %vm17866_vm3  ;;  %v16662_v49 = vpack.c.bf16 %v10681_v43, %v10680_v50 }
 0x941   : > { %8284 = vst.msk [vmem:[#allocation2 + $0x68] sm:$0xff] %vm8273_vm15, %v8186_v10  ;;  %8223 = vrot.lane.b32.xlu1 %v8122_v26, %s13120_s8  ;;  %vm17893_vm7 = vmmov %vm17892_vm0 }
 0x942   : > { %8511 = vrot.lane.b32.xlu0 %v8121_v19, %s13121_s12  ;;  %12691 = vmatprep.subr.bf16.mxu0 %v16662_v49 }
 0x943   : > { %v8474_v47 = vpop.permute.xlu1 %8473  ;;  %v8331_v31 = vpop.permute.xlu0 %8330 }
 0x944   : > { %v8651_v35 = vld [vmem:[#allocation2 + $0x4f] sm:$0xff]  ;;  %8573 = vst.msk [vmem:[#allocation2 + $0x5e] sm:$0xff] %vm8563_vm11, %v8474_v47 }
 0x945   : > { %8429 = vst.msk [vmem:[#allocation2 + $0x67] sm:$0xff] %vm8418_vm12, %v8331_v31  ;;  %12254 = vmatmul.mubr.msk.f32.gmra.mrb[78].mxu0 %vm17866_vm3, %v8651_v35  ;;  %8368 = vrot.lane.b32.xlu1 %v8122_v26, %s13119_s30 }
 0x946   : > { %8225 = vrot.lane.b32.xlu0 %v8123_v59, %s13120_s8 }
 0x947   : > { %v8188_v0 = vpop.permute.xlu1 %8187  ;;  %v8476_v14 = vpop.permute.xlu0 %8475 }
 0x948   : > { %8285 = vst.msk [vmem:[#allocation2 + $0x70] sm:$0xff] %vm8273_vm15, %v8188_v0 }
 0x949   : > { %8574 = vst.msk [vmem:[#allocation2 + $0x66] sm:$0xff] %vm8563_vm11, %v8476_v14  ;;  %8513 = vrot.lane.b32.xlu1 %v8122_v26, %s13121_s12 }
 0x94a   : > { %8370 = vrot.lane.b32.xlu0 %v8123_v59, %s13119_s30 }
 0x94b   : > { %v8333_v56 = vpop.permute.xlu1 %8332  ;;  %v8190_v57 = vpop.permute.xlu0 %8189  ;;  %v8652_v44 = vld [vmem:[#allocation2 + $0x57] sm:$0xff] }
 0x94c   : > { %8430 = vst.msk [vmem:[#allocation2 + $0x6f] sm:$0xff] %vm8418_vm12, %v8333_v56  ;;  %12256 = vmatprep.mubr.msk.f32.mxu0 %vm17875_vm6, %v8652_v44  ;;  %vm17883_vm6 = vnez %v17321_v30 }
 0x94d   : > { %8286 = vst.msk [vmem:[#allocation2 + $0x78] sm:$0xff] %vm8273_vm15, %v8190_v57  ;;  %8227 = vrot.lane.b32.xlu1 %v8124_v5, %s13120_s8  ;;  %v8128_v60 = vsel %vm17883_vm6, %v8092_v6, 0.0  ;;  %vm17895_vm6 = vmmov %vm17892_vm0 }
 0x94e   : > { %8515 = vrot.lane.b32.xlu0 %v8123_v59, %s13121_s12 }
 0x94f   : > { %v8478_v58 = vpop.permute.xlu1 %8477  ;;  %v8335_v18 = vpop.permute.xlu0 %8334 }
 0x950   : > { %v8653_v41 = vld [vmem:[#allocation2 + $0x5f] sm:$0xff]  ;;  %8575 = vst.msk [vmem:[#allocation2 + $0x6e] sm:$0xff] %vm8563_vm11, %v8478_v58 }
 0x951   : > { %8431 = vst.msk [vmem:[#allocation2 + $0x77] sm:$0xff] %vm8418_vm12, %v8335_v18  ;;  %12257 = vmatmul.mubr.msk.f32.gmra.mrb[80].mxu0 %vm17877_vm13, %v8653_v41  ;;  %8372 = vrot.lane.b32.xlu1 %v8124_v5, %s13119_s30  ;;  %vm17885_vm13 = vmmov %vm17866_vm3 }
 0x952   : > { %8229 = vrot.lane.b32.xlu0 %v8125_v33, %s13120_s8 }
 0x953   : > { %v8192_v2 = vpop.permute.xlu1 %8191  ;;  %v8480_v27 = vpop.permute.xlu0 %8479 }
 0x954   : > { %8287 = vst.msk [vmem:[#allocation2 + $0x80] sm:$0xff] %vm8273_vm15, %v8192_v2 }
 0x955   : > { %8576 = vst.msk [vmem:[#allocation2 + $0x76] sm:$0xff] %vm8563_vm11, %v8480_v27  ;;  %8517 = vrot.lane.b32.xlu1 %v8124_v5, %s13121_s12 }
 0x956   : > { %8374 = vrot.lane.b32.xlu0 %v8125_v33, %s13119_s30 }
 0x957   : > { %v8337_v11 = vpop.permute.xlu1 %8336  ;;  %v8194_v45 = vpop.permute.xlu0 %8193  ;;  %v8654_v28 = vld [vmem:[#allocation2 + $0x67] sm:$0xff] }
 0x958   : > { %8432 = vst.msk [vmem:[#allocation2 + $0x7f] sm:$0xff] %vm8418_vm12, %v8337_v11  ;;  %12259 = vmatprep.mubr.msk.f32.mxu0 %vm17879_vm8, %v8654_v28  ;;  %vm17889_vm8 = vmmov %vm17888_vm1 }
 0x959   : > { %8288 = vst.msk [vmem:[#allocation2 + $0x88] sm:$0xff] %vm8273_vm15, %v8194_v45  ;;  %8231 = vrot.lane.b32.xlu1 %v8126_v22, %s13120_s8 }
 0x95a   : > { %8519 = vrot.lane.b32.xlu0 %v8125_v33, %s13121_s12 }
 0x95b   : > { %v8482_v54 = vpop.permute.xlu1 %8481  ;;  %v8339_v32 = vpop.permute.xlu0 %8338 }
 0x95c   : > { %v8655_v23 = vld [vmem:[#allocation2 + $0x6f] sm:$0xff]  ;;  %8577 = vst.msk [vmem:[#allocation2 + $0x7e] sm:$0xff] %vm8563_vm11, %v8482_v54 }
 0x95d   : > { %8433 = vst.msk [vmem:[#allocation2 + $0x87] sm:$0xff] %vm8418_vm12, %v8339_v32  ;;  %12260 = vmatmul.mubr.msk.f32.gmra.mrb[82].mxu0 %vm17866_vm3, %v8655_v23  ;;  %8376 = vrot.lane.b32.xlu1 %v8126_v22, %s13119_s30  ;;  %vm17891_vm3 = vmmov %vm17888_vm1 }
 0x95e   : > { %8233 = vrot.lane.b32.xlu0 %v8127_v8, %s13120_s8 }
 0x95f   : > { %v8196_v62 = vpop.permute.xlu1 %8195  ;;  %v8484_v55 = vpop.permute.xlu0 %8483 }
 0x960   : > { %8289 = vst.msk [vmem:[#allocation2 + $0x90] sm:$0xff] %vm8273_vm15, %v8196_v62 }
 0x961   : > { %8578 = vst.msk [vmem:[#allocation2 + $0x86] sm:$0xff] %vm8563_vm11, %v8484_v55  ;;  %8521 = vrot.lane.b32.xlu1 %v8126_v22, %s13121_s12 }
 0x962   : > { %8378 = vrot.lane.b32.xlu0 %v8127_v8, %s13119_s30 }
 0x963   : > { %v8341_v63 = vpop.permute.xlu1 %8340  ;;  %v8198_v46 = vpop.permute.xlu0 %8197  ;;  %v8656_v52 = vld [vmem:[#allocation2 + $0x77] sm:$0xff] }
 0x964   : > { %8434 = vst.msk [vmem:[#allocation2 + $0x8f] sm:$0xff] %vm8418_vm12, %v8341_v63  ;;  %12262 = vmatprep.mubr.msk.f32.mxu0 %vm17882_vm5, %v8656_v52  ;;  %vm17894_vm5 = vmmov %vm17892_vm0  ;;  %v8615_v20 = vld [vmem:[#allocation2 + $0x7d] sm:$0xff] }
 0x965   : > { %8290 = vst.msk [vmem:[#allocation2 + $0x98] sm:$0xff] %vm8273_vm15, %v8198_v46  ;;  %8235 = vrot.lane.b32.xlu1 %v8128_v60, %s13120_s8 }
 0x966   : > { %8523 = vrot.lane.b32.xlu0 %v8127_v8, %s13121_s12 }
 0x967   : > { %v8486_v19 = vpop.permute.xlu1 %8485  ;;  %v8343_v3 = vpop.permute.xlu0 %8342 }
 0x968   : > { %v8657_v4 = vld [vmem:[#allocation2 + $0x7f] sm:$0xff]  ;;  %8579 = vst.msk [vmem:[#allocation2 + $0x8e] sm:$0xff] %vm8563_vm11, %v8486_v19 }
 0x969   : > { %8435 = vst.msk [vmem:[#allocation2 + $0x97] sm:$0xff] %vm8418_vm12, %v8343_v3  ;;  %12263 = vmatmul.mubr.msk.f32.gmra.mrb[84].mxu0 %vm17884_vm9, %v8657_v4  ;;  %8525 = vrot.lane.b32.xlu1 %v8128_v60, %s13121_s12  ;;  %vm17896_vm9 = vmmov %vm17892_vm0 }
 0x96a   : > { %8380 = vrot.lane.b32.xlu0 %v8128_v60, %s13119_s30 }
 0x96b   : > { %v8200_v21 = vpop.permute.xlu1 %8199  ;;  %v8488_v30 = vpop.permute.xlu0 %8487 }
 0x96c   : > { %8291 = vst.msk [vmem:[#allocation2 + $0xa0] sm:$0xff] %vm8273_vm15, %v8200_v21 }
 0x96d   : > { %8580 = vst.msk [vmem:[#allocation2 + $0x96] sm:$0xff] %vm8563_vm11, %v8488_v30 }
 0x96f   : > { %v8345_v10 = vpop.permute.xlu1 %8344  ;;  %v8202_v29 = vpop.permute.xlu0 %8201  ;;  %v8658_v26 = vld [vmem:[#allocation2 + $0x87] sm:$0xff] }
 0x970   : > { %8436 = vst.msk [vmem:[#allocation2 + $0x9f] sm:$0xff] %vm8418_vm12, %v8345_v10  ;;  %12265 = vmatprep.mubr.msk.f32.mxu0 %vm17885_vm13, %v8658_v26  ;;  %vm17897_vm13 = vmmov %vm17892_vm0 }
 0x971   : > { %8292 = vst.msk [vmem:[#allocation2 + $0xa8] sm:$0xff] %vm8273_vm15, %v8202_v29 }
 0x973   : > { %v8490_v1 = vpop.permute.xlu1 %8489  ;;  %v8347_v25 = vpop.permute.xlu0 %8346 }
 0x974   : > { %v8659_v47 = vld [vmem:[#allocation2 + $0x8f] sm:$0xff]  ;;  %8581 = vst.msk [vmem:[#allocation2 + $0x9e] sm:$0xff] %vm8563_vm11, %v8490_v1 }
 0x975   : > { %8437 = vst.msk [vmem:[#allocation2 + $0xa7] sm:$0xff] %vm8418_vm12, %v8347_v25  ;;  %12266 = vmatmul.mubr.msk.f32.gmra.mrb[86].mxu0 %vm17886_vm10, %v8659_v47  ;;  %vm17898_vm10 = vmmov %vm17892_vm0 }
 0x977   : > { %v8204_v31 = vpop.permute.xlu1 %8203  ;;  %v8492_v35 = vpop.permute.xlu0 %8491 }
 0x978   : > { %8293 = vst.msk [vmem:[#allocation2 + $0xb0] sm:$0xff] %vm8273_vm15, %v8204_v31 }
 0x979   : > { %8582 = vst.msk [vmem:[#allocation2 + $0xa6] sm:$0xff] %vm8563_vm11, %v8492_v35 }
 0x97b   : > { %v8349_v51 = vpop.permute.xlu1 %8348  ;;  %v8206_v59 = vpop.permute.xlu0 %8205  ;;  %v8660_v34 = vld [vmem:[#allocation2 + $0x97] sm:$0xff] }
 0x97c   : > { %8438 = vst.msk [vmem:[#allocation2 + $0xaf] sm:$0xff] %vm8418_vm12, %v8349_v51  ;;  %12268 = vmatprep.mubr.msk.f32.mxu0 %vm17887_vm14, %v8660_v34  ;;  %vm17899_vm14 = vmmov %vm17892_vm0 }
 0x97d   : > { %8294 = vst.msk [vmem:[#allocation2 + $0xb8] sm:$0xff] %vm8273_vm15, %v8206_v59 }
 0x97f   : > { %v8494_v13 = vpop.permute.xlu1 %8493  ;;  %v8351_v37 = vpop.permute.xlu0 %8350 }
 0x980   : > { %v8661_v53 = vld [vmem:[#allocation2 + $0x9f] sm:$0xff]  ;;  %8583 = vst.msk [vmem:[#allocation2 + $0xae] sm:$0xff] %vm8563_vm11, %v8494_v13 }
 0x981   : > { %8439 = vst.msk [vmem:[#allocation2 + $0xb7] sm:$0xff] %vm8418_vm12, %v8351_v37  ;;  %12269 = vmatmul.mubr.msk.f32.gmra.mrb[88].mxu0 %vm17888_vm1, %v8661_v53  ;;  %vm17900_vm1 = vmmov %vm17892_vm0 }
 0x983   : > { %v8208_v0 = vpop.permute.xlu1 %8207  ;;  %v8496_v14 = vpop.permute.xlu0 %8495 }
 0x984   : > { %8295 = vst.msk [vmem:[#allocation2 + $0xc0] sm:$0xff] %vm8273_vm15, %v8208_v0 }
 0x985   : > { %8584 = vst.msk [vmem:[#allocation2 + $0xb6] sm:$0xff] %vm8563_vm11, %v8496_v14 }
 0x987   : > { %v8353_v24 = vpop.permute.xlu1 %8352  ;;  %v8210_v9 = vpop.permute.xlu0 %8209  ;;  %v8662_v56 = vld [vmem:[#allocation2 + $0xa7] sm:$0xff] }
 0x988   : > { %8440 = vst.msk [vmem:[#allocation2 + $0xbf] sm:$0xff] %vm8418_vm12, %v8353_v24  ;;  %12271 = vmatprep.mubr.msk.f32.mxu0 %vm17889_vm8, %v8662_v56  ;;  %vm17901_vm8 = vmmov %vm17892_vm0  ;;  %v8600_v24 = vld [vmem:[#allocation2 + $0x5] sm:$0xff]  ;;  %v10683_v56 = vld [vmem:[%s17002_s5 + $0x98] sm:$0xff] }
 0x989   : > { %8296 = vst.msk [vmem:[#allocation2 + $0xc8] sm:$0xff] %vm8273_vm15, %v8210_v9  ;;  %v10682_v9 = vld [vmem:[%s17002_s5 + $0x90] sm:$0xff] }
 0x98b   : > { %v8498_v57 = vpop.permute.xlu1 %8497 }
 0x98c   : > { %v8663_v44 = vld [vmem:[#allocation2 + $0xaf] sm:$0xff]  ;;  %8585 = vst.msk [vmem:[#allocation2 + $0xbe] sm:$0xff] %vm8563_vm11, %v8498_v57  ;;  %v8355_v5 = vpop.permute.xlu0 %8354 }
 0x98d   : > { %12272 = vmatmul.mubr.msk.f32.gmra.mrb[90].mxu0 %vm17890_vm2, %v8663_v44  ;;  %8441 = vst.msk [vmem:[#allocation2 + $0xc7] sm:$0xff] %vm8418_vm12, %v8355_v5  ;;  %vm17902_vm2 = vmmov %vm17892_vm0  ;;  %v8601_v57 = vld [vmem:[#allocation2 + $0xd] sm:$0xff]  ;;  %v12694_v44 = vpack.c.bf16 %v10683_v56, %v10682_v9  ;;  %v10684_v5 = vld [vmem:[%s17002_s5 + $0xa0] sm:$0xff] }
 0x98f   : > { %v8212_v61 = vpop.permute.xlu1 %8211 }
 0x990   : > { %8297 = vst.msk [vmem:[#allocation2 + $0xd0] sm:$0xff] %vm8273_vm15, %v8212_v61  ;;  %v8500_v39 = vpop.permute.xlu0 %8499  ;;  %v10685_v61 = vld [vmem:[%s17002_s5 + $0xa8] sm:$0xff] }
 0x991   : > { %8586 = vst.msk [vmem:[#allocation2 + $0xc6] sm:$0xff] %vm8563_vm11, %v8500_v39  ;;  %v8602_v39 = vld [vmem:[#allocation2 + $0x15] sm:$0xff] }
 0x993   : > { %v8357_v58 = vpop.permute.xlu1 %8356  ;;  %v8664_v18 = vld [vmem:[#allocation2 + $0xb7] sm:$0xff] }
 0x994   : > { %8442 = vst.msk [vmem:[#allocation2 + $0xcf] sm:$0xff] %vm8418_vm12, %v8357_v58  ;;  %v8214_v41 = vpop.permute.xlu0 %8213  ;;  %12274 = vmatprep.mubr.msk.f32.mxu0 %vm17891_vm3, %v8664_v18  ;;  %vm17903_vm3 = vmmov %vm17892_vm0  ;;  %v12698_v58 = vpack.c.bf16 %v10685_v61, %v10684_v5  ;;  %v8603_v18 = vld [vmem:[#allocation2 + $0x1d] sm:$0xff] }
 0x995   : > { %8298 = vst.msk [vmem:[#allocation2 + $0xd8] sm:$0xff] %vm8273_vm15, %v8214_v41  ;;  %v10686_v41 = vld [vmem:[%s17002_s5 + $0xb0] sm:$0xff] }
 0x997   : > { %v8502_v40 = vpop.permute.xlu1 %8501 }
 0x998   : > { %8587 = vst.msk [vmem:[#allocation2 + $0xce] sm:$0xff] %vm8563_vm11, %v8502_v40  ;;  %v8359_v33 = vpop.permute.xlu0 %8358  ;;  %v8665_v38 = vld [vmem:[#allocation2 + $0xbf] sm:$0xff]  ;;  %v10687_v40 = vld [vmem:[%s17002_s5 + $0xb8] sm:$0xf] }
 0x999   : > { %8443 = vst.msk [vmem:[#allocation2 + $0xd7] sm:$0xff] %vm8418_vm12, %v8359_v33  ;;  %12275 = vmatmul.mubr.msk.f32.gmra.mrb[92].mxu0 %vm17892_vm0, %v8665_v38  ;;  %v8604_v33 = vld [vmem:[#allocation2 + $0x25] sm:$0xff]  ;;  %v12702_v38 = vpack.c.bf16 %v10687_v40, %v10686_v41 }
 0x99b   : > { %v8216_v2 = vpop.permute.xlu1 %8215 }
 0x99c   : > { %8299 = vst.msk [vmem:[#allocation2 + $0xe0] sm:$0xff] %vm8273_vm15, %v8216_v2  ;;  %v8504_v27 = vpop.permute.xlu0 %8503  ;;  %v8606_v2 = vld [vmem:[#allocation2 + $0x35] sm:$0xff] }
 0x99d   : > { %8588 = vst.msk [vmem:[#allocation2 + $0xd6] sm:$0xff] %vm8563_vm11, %v8504_v27  ;;  %v8607_v27 = vld [vmem:[#allocation2 + $0x3d] sm:$0xff] }
 0x99f   : > { %v8361_v42 = vpop.permute.xlu1 %8360  ;;  %v8666_v12 = vld [vmem:[#allocation2 + $0xc7] sm:$0xff] }
 0x9a0   : > { %8444 = vst.msk [vmem:[#allocation2 + $0xdf] sm:$0xff] %vm8418_vm12, %v8361_v42  ;;  %v8218_v11 = vpop.permute.xlu0 %8217  ;;  %12277 = vmatprep.mubr.msk.f32.mxu0 %vm17893_vm7, %v8666_v12  ;;  %vm17904_vm7 = vmmov %vm17892_vm0  ;;  %v8608_v42 = vld [vmem:[#allocation2 + $0x45] sm:$0xff]  ;;  %v8609_v12 = vld [vmem:[#allocation2 + $0x4d] sm:$0xff] }
 0x9a1   : > { %8300 = vst.msk [vmem:[#allocation2 + $0xe8] sm:$0xff] %vm8273_vm15, %v8218_v11  ;;  %v8610_v11 = vld [vmem:[#allocation2 + $0x55] sm:$0xff]  ;;  %v9421_v9 = vld [vmem:[#allocation2 + $0xc9] sm:$0xff] }
 0x9a3   : > { %v8506_v45 = vpop.permute.xlu1 %8505 }
 0x9a4   : > { %8589 = vst.msk [vmem:[#allocation2 + $0xde] sm:$0xff] %vm8563_vm11, %v8506_v45  ;;  %v8363_v28 = vpop.permute.xlu0 %8362  ;;  %v8667_v22 = vld [vmem:[#allocation2 + $0xcf] sm:$0xff]  ;;  %v8611_v45 = vld [vmem:[#allocation2 + $0x5d] sm:$0xff] }
 0x9a5   : > { %8445 = vst.msk [vmem:[#allocation2 + $0xe7] sm:$0xff] %vm8418_vm12, %v8363_v28  ;;  %12278 = vmatmul.mubr.msk.f32.gmra.mrb[94].mxu0 %vm17894_vm5, %v8667_v22  ;;  %vm17908_vm5 = vmmov %vm17892_vm0  ;;  %v8612_v28 = vld [vmem:[#allocation2 + $0x65] sm:$0xff]  ;;  %v8613_v22 = vld [vmem:[#allocation2 + $0x6d] sm:$0xff] }
 0x9a6   : > { %v9422_v56 = vld [vmem:[#allocation2 + $0xd1] sm:$0xff] }
 0x9a7   : > { %v8220_v16 = vpop.permute.xlu1 %8219 }
 0x9a8   : > { %8301 = vst.msk [vmem:[#allocation2 + $0xf0] sm:$0xff] %vm8273_vm15, %v8220_v16  ;;  %v8508_v36 = vpop.permute.xlu0 %8507  ;;  %v8614_v16 = vld [vmem:[#allocation2 + $0x75] sm:$0xff] }
 0x9a9   : > { %8590 = vst.msk [vmem:[#allocation2 + $0xe6] sm:$0xff] %vm8563_vm11, %v8508_v36  ;;  %v8616_v36 = vld [vmem:[#allocation2 + $0x85] sm:$0xff] }
 0x9ab   : > { %v8365_v7 = vpop.permute.xlu1 %8364  ;;  %v8668_v17 = vld [vmem:[#allocation2 + $0xd7] sm:$0xff] }
 0x9ac   : > { %8446 = vst.msk [vmem:[#allocation2 + $0xef] sm:$0xff] %vm8418_vm12, %v8365_v7  ;;  %v8222_v15 = vpop.permute.xlu0 %8221  ;;  %12280 = vmatprep.mubr.msk.f32.mxu0 %vm17895_vm6, %v8668_v17  ;;  %vm17909_vm6 = vmmov %vm17892_vm0  ;;  %v8617_v7 = vld [vmem:[#allocation2 + $0x8d] sm:$0xff]  ;;  %v8618_v17 = vld [vmem:[#allocation2 + $0x95] sm:$0xff] }
 0x9ad   : > { %8302 = vst.msk [vmem:[#allocation2 + $0xf8] sm:$0xff] %vm8273_vm15, %v8222_v15  ;;  %v8619_v15 = vld [vmem:[#allocation2 + $0x9d] sm:$0xff] }
 0x9af   : > { %v8510_v54 = vpop.permute.xlu1 %8509 }
 0x9b0   : > { %8591 = vst.msk [vmem:[#allocation2 + $0xee] sm:$0xff] %vm8563_vm11, %v8510_v54  ;;  %v8367_v32 = vpop.permute.xlu0 %8366  ;;  %v8669_v23 = vld [vmem:[#allocation2 + $0xdf] sm:$0xff] }
 0x9b1   : > { %8447 = vst.msk [vmem:[#allocation2 + $0xf7] sm:$0xff] %vm8418_vm12, %v8367_v32  ;;  %12281 = vmatmul.mubr.msk.f32.gmra.mrb[96].mxu0 %vm17896_vm9, %v8669_v23  ;;  %vm17910_vm9 = vmmov %vm17892_vm0  ;;  %v8620_v54 = vld [vmem:[#allocation2 + $0xa5] sm:$0xff]  ;;  %v8621_v32 = vld [vmem:[#allocation2 + $0xad] sm:$0xff] }
 0x9b2   : > { %v8622_v23 = vld [vmem:[#allocation2 + $0xb5] sm:$0xff] }
 0x9b3   : > { %v8224_v48 = vpop.permute.xlu1 %8223 }
 0x9b4   : > { %8303 = vst.msk [vmem:[#allocation2 + $0x100] sm:$0xff] %vm8273_vm15, %v8224_v48  ;;  %v8512_v8 = vpop.permute.xlu0 %8511  ;;  %v8623_v48 = vld [vmem:[#allocation2 + $0xbd] sm:$0xff] }
 0x9b5   : > { %8592 = vst.msk [vmem:[#allocation2 + $0xf6] sm:$0xff] %vm8563_vm11, %v8512_v8  ;;  %v8624_v8 = vld [vmem:[#allocation2 + $0xc5] sm:$0xff] }
 0x9b7   : > { %v8369_v62 = vpop.permute.xlu1 %8368  ;;  %v8670_v55 = vld [vmem:[#allocation2 + $0xe7] sm:$0xff] }
 0x9b8   : > { %8448 = vst.msk [vmem:[#allocation2 + $0xff] sm:$0xff] %vm8418_vm12, %v8369_v62  ;;  %v8226_v6 = vpop.permute.xlu0 %8225  ;;  %12283 = vmatprep.mubr.msk.f32.mxu0 %vm17897_vm13, %v8670_v55  ;;  %vm17911_vm13 = vmmov %vm17892_vm0  ;;  %v8625_v62 = vld [vmem:[#allocation2 + $0xcd] sm:$0xff]  ;;  %v8626_v55 = vld [vmem:[#allocation2 + $0xd5] sm:$0xff] }
 0x9b9   : > { %8304 = vst.msk [vmem:[#allocation2 + $0x108] sm:$0xff] %vm8273_vm15, %v8226_v6  ;;  %v8627_v6 = vld [vmem:[#allocation2 + $0xdd] sm:$0xff]  ;;  %v9425_v5 = vld [vmem:[#allocation2 + $0xe9] sm:$0xff] }
 0x9bb   : > { %v8514_v63 = vpop.permute.xlu1 %8513 }
 0x9bc   : > { %8593 = vst.msk [vmem:[#allocation2 + $0xfe] sm:$0xff] %vm8563_vm11, %v8514_v63  ;;  %v8371_v46 = vpop.permute.xlu0 %8370  ;;  %v8671_v52 = vld [vmem:[#allocation2 + $0xef] sm:$0xff]  ;;  %v8628_v63 = vld [vmem:[#allocation2 + $0xe5] sm:$0xff] }
 0x9bd   : > { %8449 = vst.msk [vmem:[#allocation2 + $0x107] sm:$0xff] %vm8418_vm12, %v8371_v46  ;;  %12284 = vmatmul.mubr.msk.f32.gmra.mrb[98].mxu0 %vm17898_vm10, %v8671_v52  ;;  %vm17912_vm10 = vmmov %vm17892_vm0  ;;  %v8629_v46 = vld [vmem:[#allocation2 + $0xed] sm:$0xff]  ;;  %v8630_v52 = vld [vmem:[#allocation2 + $0xf5] sm:$0xff] }
 0x9be   : > { %v9426_v61 = vld [vmem:[#allocation2 + $0xf1] sm:$0xff] }
 0x9bf   : > { %v8228_v60 = vpop.permute.xlu1 %8227 }
 0x9c0   : > { %8305 = vst.msk [vmem:[#allocation2 + $0x110] sm:$0xff] %vm8273_vm15, %v8228_v60  ;;  %v8516_v19 = vpop.permute.xlu0 %8515 }
 0x9c1   : > { %8594 = vst.msk [vmem:[#allocation2 + $0x106] sm:$0xff] %vm8563_vm11, %v8516_v19 }
 0x9c3   : > { %v8373_v3 = vpop.permute.xlu1 %8372  ;;  %v8672_v4 = vld [vmem:[#allocation2 + $0xf7] sm:$0xff] }
 0x9c4   : > { %8450 = vst.msk [vmem:[#allocation2 + $0x10f] sm:$0xff] %vm8418_vm12, %v8373_v3  ;;  %v8230_v21 = vpop.permute.xlu0 %8229  ;;  %12286 = vmatprep.mubr.msk.f32.mxu0 %vm17899_vm14, %v8672_v4  ;;  %vm17913_vm14 = vmmov %vm17892_vm0  ;;  %v8631_v60 = vld [vmem:[#allocation2 + $0xfd] sm:$0xff] }
 0x9c5   : > { %8306 = vst.msk [vmem:[#allocation2 + $0x118] sm:$0xff] %vm8273_vm15, %v8230_v21 }
 0x9c7   : > { %v8518_v30 = vpop.permute.xlu1 %8517 }
 0x9c8   : > { %8595 = vst.msk [vmem:[#allocation2 + $0x10e] sm:$0xff] %vm8563_vm11, %v8518_v30  ;;  %v8375_v50 = vpop.permute.xlu0 %8374  ;;  %v8673_v43 = vld [vmem:[#allocation2 + $0xff] sm:$0xff]  ;;  %v9401_v30 = vld [vmem:[#allocation2 + $0x29] sm:$0xff] }
 0x9c9   : > { %8451 = vst.msk [vmem:[#allocation2 + $0x117] sm:$0xff] %vm8418_vm12, %v8375_v50  ;;  %12287 = vmatmul.mubr.msk.f32.gmra.mrb[100].mxu0 %vm17900_vm1, %v8673_v43  ;;  %vm17914_vm1 = vmmov %vm17892_vm0  ;;  %v8632_v19 = vld [vmem:[#allocation2 + $0x105] sm:$0xff]  ;;  %v9402_v50 = vld [vmem:[#allocation2 + $0x31] sm:$0xff] }
 0x9ca   : > { %v9403_v43 = vld [vmem:[#allocation2 + $0x39] sm:$0xff] }
 0x9cb   : > { %v8232_v10 = vpop.permute.xlu1 %8231 }
 0x9cc   : > { %8307 = vst.msk [vmem:[#allocation2 + $0x120] sm:$0xff] %vm8273_vm15, %v8232_v10  ;;  %v8520_v29 = vpop.permute.xlu0 %8519  ;;  %v9404_v10 = vld [vmem:[#allocation2 + $0x41] sm:$0xff] }
 0x9cd   : > { %8596 = vst.msk [vmem:[#allocation2 + $0x116] sm:$0xff] %vm8563_vm11, %v8520_v29  ;;  %v9405_v29 = vld [vmem:[#allocation2 + $0x49] sm:$0xff] }
 0x9cf   : > { %v8377_v26 = vpop.permute.xlu1 %8376  ;;  %v8674_v1 = vld [vmem:[#allocation2 + $0x107] sm:$0xff] }
 0x9d0   : > { %8452 = vst.msk [vmem:[#allocation2 + $0x11f] sm:$0xff] %vm8418_vm12, %v8377_v26  ;;  %v8234_v25 = vpop.permute.xlu0 %8233  ;;  %12289 = vmatprep.mubr.msk.f32.mxu0 %vm17901_vm8, %v8674_v1  ;;  %vm17915_vm8 = vmmov %vm17892_vm0  ;;  %v8633_v3 = vld [vmem:[#allocation2 + $0x10d] sm:$0xff]  ;;  %v9407_v1 = vld [vmem:[#allocation2 + $0x59] sm:$0xff] }
 0x9d1   : > { %8308 = vst.msk [vmem:[#allocation2 + $0x128] sm:$0xff] %vm8273_vm15, %v8234_v25  ;;  %v9406_v26 = vld [vmem:[#allocation2 + $0x51] sm:$0xff]  ;;  %v9408_v25 = vld [vmem:[#allocation2 + $0x61] sm:$0xff] }
 0x9d3   : > { %v8522_v47 = vpop.permute.xlu1 %8521 }
 0x9d4   : > { %8597 = vst.msk [vmem:[#allocation2 + $0x11e] sm:$0xff] %vm8563_vm11, %v8522_v47  ;;  %v8379_v31 = vpop.permute.xlu0 %8378  ;;  %v8675_v35 = vld [vmem:[#allocation2 + $0x10f] sm:$0xff] }
 0x9d5   : > { %8453 = vst.msk [vmem:[#allocation2 + $0x127] sm:$0xff] %vm8418_vm12, %v8379_v31  ;;  %12290 = vmatmul.mubr.msk.f32.gmra.mrb[102].mxu0 %vm17902_vm2, %v8675_v35  ;;  %vm17916_vm2 = vmmov %vm17892_vm0  ;;  %v8634_v4 = vld [vmem:[#allocation2 + $0x115] sm:$0xff]  ;;  %v9409_v47 = vld [vmem:[#allocation2 + $0x69] sm:$0xff] }
 0x9d6   : > { %v9410_v31 = vld [vmem:[#allocation2 + $0x71] sm:$0xff]  ;;  %v9411_v35 = vld [vmem:[#allocation2 + $0x79] sm:$0xff] }
 0x9d7   : > { %v8236_v51 = vpop.permute.xlu1 %8235  ;;  %v9430_v41 = vld [vmem:[#allocation2 + $0x111] sm:$0xff] }
 0x9d8   : > { %8309 = vst.msk [vmem:[#allocation2 + $0x130] sm:$0xff] %vm8273_vm15, %v8236_v51  ;;  %v8524_v59 = vpop.permute.xlu0 %8523  ;;  %vm17905_vm15 = vmmov %vm17892_vm0  ;;  %v9412_v51 = vld [vmem:[#allocation2 + $0x81] sm:$0xff] }
 0x9d9   : > { %8598 = vst.msk [vmem:[#allocation2 + $0x126] sm:$0xff] %vm8563_vm11, %v8524_v59  ;;  %v9413_v59 = vld [vmem:[#allocation2 + $0x89] sm:$0xff] }
 0x9db   : > { %v8526_v34 = vpop.permute.xlu1 %8525  ;;  %v8676_v13 = vld [vmem:[#allocation2 + $0x117] sm:$0xff] }
 0x9dc   : > { %v8381_v37 = vpop.permute.xlu0 %8380  ;;  %12292 = vmatprep.mubr.msk.f32.mxu0 %vm17903_vm3, %v8676_v13  ;;  %vm17917_vm3 = vmmov %vm17892_vm0  ;;  %v8635_v21 = vld [vmem:[#allocation2 + $0x11d] sm:$0xff] }
 0x9dd   : > { %8454 = vst.msk [vmem:[#allocation2 + $0x12f] sm:$0xff] %vm8418_vm12, %v8381_v37  ;;  %vm17906_vm12 = vmmov %vm17892_vm0  ;;  %v9415_v13 = vld [vmem:[#allocation2 + $0x99] sm:$0xff]  ;;  %v9416_v37 = vld [vmem:[#allocation2 + $0xa1] sm:$0xff] }
 0x9de   : > { %8599 = vst.msk [vmem:[#allocation2 + $0x12e] sm:$0xff] %vm8563_vm11, %v8526_v34  ;;  %vm17907_vm11 = vmmov %vm17892_vm0  ;;  %v9414_v34 = vld [vmem:[#allocation2 + $0x91] sm:$0xff]  ;;  %v9431_v40 = vld [vmem:[#allocation2 + $0x119] sm:$0xff] }
 0x9e0   : > { %v8677_v53 = vld [vmem:[#allocation2 + $0x11f] sm:$0xff] }
 0x9e1   : > { %12293 = vmatmul.mubr.msk.f32.gmra.mrb[104].mxu0 %vm17892_vm0, %v8677_v53  ;;  %v9417_v53 = vld [vmem:[#allocation2 + $0xa9] sm:$0xff] }
 0x9e5   : > { %v8678_v0 = vld [vmem:[#allocation2 + $0x127] sm:$0xff]  ;;  %v8679_v14 = vld [vmem:[#allocation2 + $0x12f] sm:$0xff] }
 0x9e6   : > { %12295 = vmatprep.mubr.msk.f32.mxu0 %vm17904_vm7, %v8678_v0  ;;  %vm17918_vm7 = vmmov %vm17892_vm0  ;;  %v9418_v0 = vld [vmem:[#allocation2 + $0xb1] sm:$0xff] }
 0x9e7   : > { %12296 = vmatmul.mubr.msk.f32.gmra.mrb[106].mxu0 %vm17905_vm15, %v8679_v14  ;;  %vm17919_vm15 = vmmov %vm17892_vm0  ;;  %v9419_v14 = vld [vmem:[#allocation2 + $0xb9] sm:$0xff] }
 0x9e8   : > { %12314 = vmatprep.mubr.msk.f32.mxu0 %vm17906_vm12, %v8600_v24  ;;  %vm17921_vm12 = vmmov %vm17892_vm0  ;;  %v9420_v24 = vld [vmem:[#allocation2 + $0xc1] sm:$0xff] }
 0x9eb   : > { %12315 = vmatmul.mubr.msk.f32.vlgmr.msra.gmra.mrb[72].mxu0 %vm17907_vm11, %v8601_v57  ;;  %vm17922_vm11 = vmmov %vm17892_vm0  ;;  %v9423_v57 = vld [vmem:[#allocation2 + $0xd9] sm:$0xff] }
 0x9ec   : > { %12317 = vmatprep.mubr.msk.f32.mxu0 %vm17908_vm5, %v8602_v39  ;;  %12693 = vmatpush3.bf16.msra.mxu0 %v16662_v49  ;;  %v8605_v49 = vld [vmem:[#allocation2 + $0x2d] sm:$0xff]  ;;  %vm17923_vm5 = vmmov %vm17892_vm0  ;;  %v9427_v39 = vld [vmem:[#allocation2 + $0xf9] sm:$0xff] }
 0x9ed   : > { %12695 = vmatprep.subr.bf16.mxu0 %v12694_v44 }
 0x9ef   : > { %12318 = vmatmul.mubr.msk.f32.gmra.mrb[74].mxu0 %vm17909_vm6, %v8603_v18  ;;  %vm17924_vm6 = vmmov %vm17892_vm0  ;;  %v9429_v18 = vld [vmem:[#allocation2 + $0x109] sm:$0xff] }
 0x9f0   : > { %12320 = vmatprep.mubr.msk.f32.mxu0 %vm17910_vm9, %v8604_v33  ;;  %12697 = vmatpush3.bf16.msra.mxu0 %v12694_v44  ;;  %vm17925_vm9 = vmmov %vm17892_vm0  ;;  %v9424_v44 = vld [vmem:[#allocation2 + $0xe1] sm:$0xff] }
 0x9f1   : > { %12699 = vmatprep.subr.bf16.mxu0 %v12698_v58  ;;  %v9432_v33 = vld [vmem:[#allocation2 + $0x121] sm:$0xff] }
 0x9f3   : > { %12321 = vmatmul.mubr.msk.f32.gmra.mrb[76].mxu0 %vm17911_vm13, %v8605_v49  ;;  %vm17926_vm13 = vmmov %vm17892_vm0  ;;  %v9435_v49 = vld [vmem:[#allocation2 + $0x139] sm:$0xff] }
 0x9f4   : > { %12323 = vmatprep.mubr.msk.f32.mxu0 %vm17912_vm10, %v8606_v2  ;;  %12701 = vmatpush3.bf16.msra.mxu0 %v12698_v58  ;;  %vm17927_vm10 = vmmov %vm17892_vm0  ;;  %v9428_v58 = vld [vmem:[#allocation2 + $0x101] sm:$0xff]  ;;  %v9434_v2 = vld [vmem:[#allocation2 + $0x131] sm:$0xff] }
 0x9f5   : > { %12704 = vmatprep.subr.msk.bf16.mxu0 %vm13277_vm4, %v12702_v38 }
 0x9f7   : > { %12324 = vmatmul.mubr.msk.f32.gmra.mrb[78].mxu0 %vm17913_vm14, %v8607_v27  ;;  %vm17928_vm14 = vmmov %vm17892_vm0  ;;  %v9436_v27 = vld [vmem:[#allocation2 + $0x141] sm:$0xff] }
 0x9f8   : > { %12326 = vmatprep.mubr.msk.f32.mxu0 %vm17914_vm1, %v8608_v42  ;;  %12707 = vmatpush3.bf16.msk.msra.mxu0 %vm13277_vm4, %v12702_v38  ;;  %vm17920_vm4 = vmmov %vm17892_vm0  ;;  %v9433_v38 = vld [vmem:[#allocation2 + $0x129] sm:$0xff]  ;;  %v16843_v42 = vld [vmem:[%s17003_s6 + $0x4] ss:$0 sm:$0xff] }
 0x9f9   : > { %vm17929_vm1 = vmmov %vm17892_vm0 }
 0x9fb   : > { %12327 = vmatmul.mubr.msk.f32.gmra.mrb[80].mxu0 %vm17915_vm8, %v8609_v12  ;;  %vm17930_vm8 = vmmov %vm17892_vm0 }
 0x9fc   : > { %12329 = vmatprep.mubr.msk.f32.mxu0 %vm17916_vm2, %v8610_v11  ;;  %vm17931_vm2 = vmmov %vm17892_vm0 }
 0x9ff   : > { %12330 = vmatmul.mubr.msk.f32.gmra.mrb[82].mxu0 %vm17917_vm3, %v8611_v45  ;;  %vm17932_vm3 = vmmov %vm17892_vm0 }
 0xa00   : > { %12332 = vmatprep.mubr.msk.f32.mxu0 %vm17892_vm0, %v8612_v28  ;;  %v9880_v28 = vld [vmem:[%s13284_s9 + $0x20] sm:$0xff] }
 0xa03   : > { %12333 = vmatmul.mubr.msk.f32.gmra.mrb[84].mxu0 %vm17918_vm7, %v8613_v22  ;;  %vm17933_vm7 = vmmov %vm17892_vm0 }
 0xa04   : > { %12335 = vmatprep.mubr.msk.f32.mxu0 %vm17919_vm15, %v8614_v16  ;;  %vm17934_vm15 = vmmov %vm17892_vm0 }
 0xa07   : > { %12336 = vmatmul.mubr.msk.f32.gmra.mrb[86].mxu0 %vm17920_vm4, %v8615_v20  ;;  %vm17935_vm4 = vmmov %vm17892_vm0  ;;  %v9879_v20 = vld [vmem:[%s13284_s9 + $0x18] sm:$0xff] }
 0xa08   : > { %12338 = vmatprep.mubr.msk.f32.mxu0 %vm17921_vm12, %v8616_v36  ;;  %vm17936_vm12 = vmmov %vm17892_vm0 }
 0xa0b   : > { %12339 = vmatmul.mubr.msk.f32.gmra.mrb[88].mxu0 %vm17922_vm11, %v8617_v7  ;;  %vm17937_vm11 = vmmov %vm17892_vm0 }
 0xa0c   : > { %12341 = vmatprep.mubr.msk.f32.mxu0 %vm17923_vm5, %v8618_v17  ;;  %vm17938_vm5 = vmmov %vm17892_vm0 }
 0xa0f   : > { %12342 = vmatmul.mubr.msk.f32.gmra.mrb[90].mxu0 %vm17924_vm6, %v8619_v15  ;;  %vm17939_vm6 = vmmov %vm17892_vm0 }
 0xa10   : > { %12344 = vmatprep.mubr.msk.f32.mxu0 %vm17925_vm9, %v8620_v54  ;;  %vm17940_vm9 = vmmov %vm17892_vm0 }
 0xa13   : > { %12345 = vmatmul.mubr.msk.f32.gmra.mrb[92].mxu0 %vm17926_vm13, %v8621_v32  ;;  %vm17941_vm13 = vmmov %vm17892_vm0 }
 0xa14   : > { %12347 = vmatprep.mubr.msk.f32.mxu0 %vm17927_vm10, %v8622_v23  ;;  %vm17942_vm10 = vmmov %vm17892_vm0  ;;  %v9882_v23 = vld [vmem:[%s13284_s9 + $0x30] sm:$0xff] }
 0xa17   : > { %12348 = vmatmul.mubr.msk.f32.gmra.mrb[94].mxu0 %vm17928_vm14, %v8623_v48  ;;  %vm17943_vm14 = vmmov %vm17892_vm0 }
 0xa18   : > { %12350 = vmatprep.mubr.msk.f32.mxu0 %vm17929_vm1, %v8624_v8  ;;  %vm17944_vm1 = vmmov %vm17892_vm0 }
 0xa1b   : > { %12351 = vmatmul.mubr.msk.f32.gmra.mrb[96].mxu0 %vm17930_vm8, %v8625_v62  ;;  %vm17945_vm8 = vmmov %vm17892_vm0  ;;  %v9881_v62 = vld [vmem:[%s13284_s9 + $0x28] sm:$0xff] }
 0xa1c   : > { %12353 = vmatprep.mubr.msk.f32.mxu0 %vm17931_vm2, %v8626_v55  ;;  %vm17946_vm2 = vmmov %vm17892_vm0 }
 0xa1f   : > { %12354 = vmatmul.mubr.msk.f32.gmra.mrb[98].mxu0 %vm17932_vm3, %v8627_v6  ;;  %vm17947_vm3 = vmmov %vm17892_vm0 }
 0xa20   : > { %12356 = vmatprep.mubr.msk.f32.mxu0 %vm17892_vm0, %v8628_v63 }
 0xa23   : > { %12357 = vmatmul.mubr.msk.f32.gmra.mrb[100].mxu0 %vm17933_vm7, %v8629_v46  ;;  %vm17948_vm7 = vmmov %vm17892_vm0 }
 0xa24   : > { %12359 = vmatprep.mubr.msk.f32.mxu0 %vm17934_vm15, %v8630_v52  ;;  %vm17949_vm15 = vmmov %vm17892_vm0 }
 0xa27   : > { %12360 = vmatmul.mubr.msk.f32.gmra.mrb[102].mxu0 %vm17935_vm4, %v8631_v60  ;;  %vm17950_vm4 = vmmov %vm17892_vm0 }
 0xa28   : > { %12362 = vmatprep.mubr.msk.f32.mxu0 %vm17936_vm12, %v8632_v19  ;;  %vm17951_vm12 = vmmov %vm17892_vm0  ;;  %v9884_v19 = vld [vmem:[%s13284_s9 + $0x40] sm:$0xff] }
 0xa2b   : > { %12363 = vmatmul.mubr.msk.f32.gmra.mrb[104].mxu0 %vm17937_vm11, %v8633_v3  ;;  %vm17952_vm11 = vmmov %vm17892_vm0 }
 0xa2c   : > { %12365 = vmatprep.mubr.msk.f32.mxu0 %vm17938_vm5, %v8634_v4  ;;  %vm17953_vm5 = vmmov %vm17892_vm0 }
 0xa2f   : > { %12366 = vmatmul.mubr.msk.f32.gmra.mrb[106].mxu0 %vm17939_vm6, %v8635_v21  ;;  %vm17954_vm6 = vmmov %vm17892_vm0  ;;  %v9883_v21 = vld [vmem:[%s13284_s9 + $0x38] sm:$0xff] }
 0xa30   : > { %12384 = vmatprep.mubr.msk.f32.mxu0 %vm17940_vm9, %v9401_v30  ;;  %vm17955_vm9 = vmmov %vm17892_vm0 }
 0xa33   : > { %12385 = vmatmul.mubr.msk.f32.vlgmr.msra.gmra.mrb[72].mxu0 %vm17941_vm13, %v9402_v50  ;;  %vm17956_vm13 = vmmov %vm17892_vm0 }
 0xa34   : > { %12387 = vmatprep.mubr.msk.f32.mxu0 %vm17942_vm10, %v9403_v43  ;;  %vm17957_vm10 = vmmov %vm17892_vm0 }
 0xa37   : > { %12388 = vmatmul.mubr.msk.f32.gmra.mrb[74].mxu0 %vm17943_vm14, %v9404_v10  ;;  %vm17958_vm14 = vmmov %vm17892_vm0 }
 0xa38   : > { %12390 = vmatprep.mubr.msk.f32.mxu0 %vm17944_vm1, %v9405_v29  ;;  %vm17959_vm1 = vmmov %vm17892_vm0 }
 0xa3b   : > { %12391 = vmatmul.mubr.msk.f32.gmra.mrb[76].mxu0 %vm17945_vm8, %v9406_v26  ;;  %vm17960_vm8 = vmmov %vm17892_vm0 }
 0xa3c   : > { %12393 = vmatprep.mubr.msk.f32.mxu0 %vm17946_vm2, %v9407_v1  ;;  %vm17961_vm2 = vmmov %vm17892_vm0  ;;  %v9886_v1 = vld [vmem:[%s13284_s9 + $0x50] sm:$0xff] }
 0xa3f   : > { %12394 = vmatmul.mubr.msk.f32.gmra.mrb[78].mxu0 %vm17947_vm3, %v9408_v25  ;;  %vm17962_vm3 = vmmov %vm17892_vm0 }
 0xa40   : > { %12396 = vmatprep.mubr.msk.f32.mxu0 %vm17892_vm0, %v9409_v47 }
 0xa43   : > { %12397 = vmatmul.mubr.msk.f32.gmra.mrb[80].mxu0 %vm17948_vm7, %v9410_v31  ;;  %vm17963_vm7 = vmmov %vm17892_vm0  ;;  %v9885_v31 = vld [vmem:[%s13284_s9 + $0x48] sm:$0xff] }
 0xa44   : > { %12399 = vmatprep.mubr.msk.f32.mxu0 %vm17949_vm15, %v9411_v35  ;;  %vm17964_vm15 = vmmov %vm17892_vm0 }
 0xa47   : > { %12400 = vmatmul.mubr.msk.f32.gmra.mrb[82].mxu0 %vm17950_vm4, %v9412_v51  ;;  %vm17965_vm4 = vmmov %vm17892_vm0 }
 0xa48   : > { %12402 = vmatprep.mubr.msk.f32.mxu0 %vm17951_vm12, %v9413_v59  ;;  %vm17966_vm12 = vmmov %vm17892_vm0 }
 0xa4b   : > { %12403 = vmatmul.mubr.msk.f32.gmra.mrb[84].mxu0 %vm17952_vm11, %v9414_v34  ;;  %vm17967_vm11 = vmmov %vm17892_vm0 }
 0xa4c   : > { %12405 = vmatprep.mubr.msk.f32.mxu0 %vm17953_vm5, %v9415_v13  ;;  %vm17968_vm5 = vmmov %vm17892_vm0 }
 0xa4f   : > { %12406 = vmatmul.mubr.msk.f32.gmra.mrb[86].mxu0 %vm17954_vm6, %v9416_v37  ;;  %vm17969_vm6 = vmmov %vm17892_vm0 }
 0xa50   : > { %12408 = vmatprep.mubr.msk.f32.mxu0 %vm17955_vm9, %v9417_v53  ;;  %vm17970_vm9 = vmmov %vm17892_vm0  ;;  %v9888_v53 = vld [vmem:[%s13284_s9 + $0x60] sm:$0xff] }
 0xa53   : > { %12409 = vmatmul.mubr.msk.f32.gmra.mrb[88].mxu0 %vm17956_vm13, %v9418_v0  ;;  %vm17971_vm13 = vmmov %vm17892_vm0 }
 0xa54   : > { %12411 = vmatprep.mubr.msk.f32.mxu0 %vm17957_vm10, %v9419_v14  ;;  %vm17972_vm10 = vmmov %vm17892_vm0 }
 0xa57   : > { %12412 = vmatmul.mubr.msk.f32.gmra.mrb[90].mxu0 %vm17958_vm14, %v9420_v24  ;;  %vm17973_vm14 = vmmov %vm17892_vm0  ;;  %v9887_v24 = vld [vmem:[%s13284_s9 + $0x58] sm:$0xff] }
 0xa58   : > { %12414 = vmatprep.mubr.msk.f32.mxu0 %vm17959_vm1, %v9421_v9  ;;  %vm9987_vm1 = vcmask 31744  }
 0xa5b   : > { %12415 = vmatmul.mubr.msk.f32.gmra.mrb[92].mxu0 %vm17960_vm8, %v9422_v56 }
 0xa5c   : > { %12417 = vmatprep.mubr.msk.f32.mxu0 %vm17961_vm2, %v9423_v57 }
 0xa5f   : > { %12418 = vmatmul.mubr.msk.f32.gmra.mrb[94].mxu0 %vm17962_vm3, %v9424_v44 }
 0xa60   : > { %12420 = vmatprep.mubr.msk.f32.mxu0 %vm17892_vm0, %v9425_v5 }
 0xa63   : > { %12421 = vmatmul.mubr.msk.f32.gmra.mrb[96].mxu0 %vm17963_vm7, %v9426_v61 }
 0xa64   : > { %12423 = vmatprep.mubr.msk.f32.mxu0 %vm17964_vm15, %v9427_v39  ;;  %v9890_v39 = vld [vmem:[%s13284_s9 + $0x70] sm:$0xff] }
 0xa67   : > { %12424 = vmatmul.mubr.msk.f32.gmra.mrb[98].mxu0 %vm17965_vm4, %v9428_v58 }
 0xa68   : > { %12426 = vmatprep.mubr.msk.f32.mxu0 %vm17966_vm12, %v9429_v18 }
 0xa6b   : > { %12427 = vmatmul.mubr.msk.f32.gmra.mrb[100].mxu0 %vm17967_vm11, %v9430_v41  ;;  %v9889_v41 = vld [vmem:[%s13284_s9 + $0x68] sm:$0xff] }
 0xa6c   : > { %12429 = vmatprep.mubr.msk.f32.mxu0 %vm17968_vm5, %v9431_v40 }
 0xa6f   : > { %12430 = vmatmul.mubr.msk.f32.gmra.mrb[102].mxu0 %vm17969_vm6, %v9432_v33 }
 0xa70   : > { %12432 = vmatprep.mubr.msk.f32.mxu0 %vm17970_vm9, %v9433_v38 }
 0xa73   : > { %12433 = vmatmul.mubr.msk.f32.gmra.mrb[104].mxu0 %vm17971_vm13, %v9434_v2 }
 0xa74   : > { %12435 = vmatprep.mubr.msk.f32.mxu0 %vm17972_vm10, %v9435_v49 }
 0xa77   : > { %12436 = vmatmul.mubr.msk.f32.gmra.mrb[106].mxu0 %vm17973_vm14, %v9436_v27 }
 0xb06   : > { %v12386_v12 = vpop.f32.mrb[72].mxu0 }
 0xb07   : > { %v9844_v11 = vadd.f32 %v12386_v12, %v16843_v42  ;;  %v9623_v45 = vpop.f32.mrb[73].mxu0  ;;  %v9892_v12 = vld [vmem:[%s13284_s9 + $0x80] sm:$0xff] }
 0xb08   : > { %v9843_v22 = vadd.f32 %v16843_v42, %v9623_v45 }
 0xb09   : > { %v9916_v16 = vmul.f32 0.2, %v9844_v11 }
 0xb0a   : > { %v9915_v36 = vmul.f32 0.2, %v9843_v22  ;;  %v12389_v7 = vpop.f32.mrb[74].mxu0 }
 0xb0b   : > { %v9952_v17 = vadd.f32 %v9916_v16, %v9880_v28  ;;  %v9846_v15 = vadd.f32 %v12389_v7, %v16843_v42  ;;  %v9633_v54 = vpop.f32.mrb[75].mxu0  ;;  %v9891_v28 = vld [vmem:[%s13284_s9 + $0x78] sm:$0xff] }
 0xb0c   : > { %v9951_v32 = vadd.f32 %v9915_v36, %v9879_v20  ;;  %v9845_v48 = vadd.f32 %v16843_v42, %v9633_v54 }
 0xb0d   : > { %9989 = vst.msk [vmem:[%s16852_s29 + $0x8] sm:$0xff] %vm9987_vm1, %v9952_v17  ;;  %v9918_v8 = vmul.f32 0.2, %v9846_v15  ;;  %v9894_v15 = vld [vmem:[%s13284_s9 + $0x90] sm:$0xff] }
 0xb0e   : > { %9988 = vst.msk [vmem:[%s16852_s29] sm:$0xff] %vm9987_vm1, %v9951_v32  ;;  %v9917_v55 = vmul.f32 0.2, %v9845_v48  ;;  %v12392_v6 = vpop.f32.mrb[76].mxu0 }
 0xb0f   : > { %v9954_v63 = vadd.f32 %v9918_v8, %v9882_v23  ;;  %v9848_v46 = vadd.f32 %v12392_v6, %v16843_v42  ;;  %v9643_v52 = vpop.f32.mrb[77].mxu0  ;;  %v9893_v23 = vld [vmem:[%s13284_s9 + $0x88] sm:$0xff] }
 0xb10   : > { %v9953_v60 = vadd.f32 %v9917_v55, %v9881_v62  ;;  %v9847_v3 = vadd.f32 %v16843_v42, %v9643_v52 }
 0xb11   : > { %9991 = vst.msk [vmem:[%s16852_s29 + $0x18] sm:$0xff] %vm9987_vm1, %v9954_v63  ;;  %v9920_v4 = vmul.f32 0.2, %v9848_v46  ;;  %v9896_v46 = vld [vmem:[%s13284_s9 + $0xa0] sm:$0xff] }
 0xb12   : > { %9990 = vst.msk [vmem:[%s16852_s29 + $0x10] sm:$0xff] %vm9987_vm1, %v9953_v60  ;;  %v9919_v30 = vmul.f32 0.2, %v9847_v3  ;;  %v12395_v50 = vpop.f32.mrb[78].mxu0 }
 0xb13   : > { %v9956_v43 = vadd.f32 %v9920_v4, %v9884_v19  ;;  %v9850_v10 = vadd.f32 %v12395_v50, %v16843_v42  ;;  %v9653_v29 = vpop.f32.mrb[79].mxu0  ;;  %v9895_v19 = vld [vmem:[%s13284_s9 + $0x98] sm:$0xff] }
 0xb14   : > { %v9955_v26 = vadd.f32 %v9919_v30, %v9883_v21  ;;  %v9849_v25 = vadd.f32 %v16843_v42, %v9653_v29 }
 0xb15   : > { %9993 = vst.msk [vmem:[%s16852_s29 + $0x28] sm:$0xff] %vm9987_vm1, %v9956_v43  ;;  %v9922_v47 = vmul.f32 0.2, %v9850_v10  ;;  %v9898_v10 = vld [vmem:[%s13284_s9 + $0xb0] sm:$0xff] }
 0xb16   : > { %9992 = vst.msk [vmem:[%s16852_s29 + $0x20] sm:$0xff] %vm9987_vm1, %v9955_v26  ;;  %v9921_v35 = vmul.f32 0.2, %v9849_v25  ;;  %v12398_v51 = vpop.f32.mrb[80].mxu0 }
 0xb17   : > { %v9958_v59 = vadd.f32 %v9922_v47, %v9886_v1  ;;  %v9852_v34 = vadd.f32 %v12398_v51, %v16843_v42  ;;  %v9663_v13 = vpop.f32.mrb[81].mxu0  ;;  %v9897_v1 = vld [vmem:[%s13284_s9 + $0xa8] sm:$0xff] }
 0xb18   : > { %v9957_v37 = vadd.f32 %v9921_v35, %v9885_v31  ;;  %v9851_v0 = vadd.f32 %v16843_v42, %v9663_v13 }
 0xb19   : > { %9995 = vst.msk [vmem:[%s16852_s29 + $0x38] sm:$0xff] %vm9987_vm1, %v9958_v59  ;;  %v9924_v14 = vmul.f32 0.2, %v9852_v34  ;;  %v9900_v34 = vld [vmem:[%s13284_s9 + $0xc0] sm:$0xff] }
 0xb1a   : > { %9994 = vst.msk [vmem:[%s16852_s29 + $0x30] sm:$0xff] %vm9987_vm1, %v9957_v37  ;;  %v9923_v9 = vmul.f32 0.2, %v9851_v0  ;;  %v12401_v56 = vpop.f32.mrb[82].mxu0 }
 0xb1b   : > { %v9960_v57 = vadd.f32 %v9924_v14, %v9888_v53  ;;  %v9854_v44 = vadd.f32 %v12401_v56, %v16843_v42  ;;  %v9673_v5 = vpop.f32.mrb[83].mxu0  ;;  %v9899_v53 = vld [vmem:[%s13284_s9 + $0xb8] sm:$0xff] }
 0xb1c   : > { %v9959_v61 = vadd.f32 %v9923_v9, %v9887_v24  ;;  %v9853_v58 = vadd.f32 %v16843_v42, %v9673_v5 }
 0xb1d   : > { %9997 = vst.msk [vmem:[%s16852_s29 + $0x48] sm:$0xff] %vm9987_vm1, %v9960_v57  ;;  %v9926_v18 = vmul.f32 0.2, %v9854_v44  ;;  %v9902_v44 = vld [vmem:[%s13284_s9 + $0xd0] sm:$0xff] }
 0xb1e   : > { %9996 = vst.msk [vmem:[%s16852_s29 + $0x40] sm:$0xff] %vm9987_vm1, %v9959_v61  ;;  %v9925_v40 = vmul.f32 0.2, %v9853_v58  ;;  %v12404_v33 = vpop.f32.mrb[84].mxu0 }
 0xb1f   : > { %v9962_v38 = vadd.f32 %v9926_v18, %v9890_v39  ;;  %v9856_v49 = vadd.f32 %v12404_v33, %v16843_v42  ;;  %v9683_v2 = vpop.f32.mrb[85].mxu0  ;;  %v9901_v39 = vld [vmem:[%s13284_s9 + $0xc8] sm:$0xff] }
 0xb20   : > { %v9961_v27 = vadd.f32 %v9925_v40, %v9889_v41  ;;  %v9855_v11 = vadd.f32 %v16843_v42, %v9683_v2 }
 0xb21   : > { %9999 = vst.msk [vmem:[%s16852_s29 + $0x58] sm:$0xff] %vm9987_vm1, %v9962_v38  ;;  %v9928_v45 = vmul.f32 0.2, %v9856_v49  ;;  %v9904_v49 = vld [vmem:[%s13284_s9 + $0xe0] sm:$0xff] }
 0xb22   : > { %9998 = vst.msk [vmem:[%s16852_s29 + $0x50] sm:$0xff] %vm9987_vm1, %v9961_v27  ;;  %v9927_v22 = vmul.f32 0.2, %v9855_v11  ;;  %v12407_v16 = vpop.f32.mrb[86].mxu0 }
 0xb23   : > { %v9964_v20 = vadd.f32 %v9928_v45, %v9892_v12  ;;  %v9858_v36 = vadd.f32 %v12407_v16, %v16843_v42  ;;  %v9693_v7 = vpop.f32.mrb[87].mxu0  ;;  %v9903_v12 = vld [vmem:[%s13284_s9 + $0xd8] sm:$0xff] }
 0xb24   : > { %v9963_v17 = vadd.f32 %v9927_v22, %v9891_v28  ;;  %v9857_v54 = vadd.f32 %v16843_v42, %v9693_v7 }
 0xb25   : > { %10001 = vst.msk [vmem:[%s16852_s29 + $0x68] sm:$0xff] %vm9987_vm1, %v9964_v20  ;;  %v9930_v32 = vmul.f32 0.2, %v9858_v36  ;;  %v9906_v36 = vld [vmem:[%s13284_s9 + $0xf0] sm:$0xff] }
 0xb26   : > { %10000 = vst.msk [vmem:[%s16852_s29 + $0x60] sm:$0xff] %vm9987_vm1, %v9963_v17  ;;  %v9929_v48 = vmul.f32 0.2, %v9857_v54  ;;  %v12410_v8 = vpop.f32.mrb[88].mxu0 }
 0xb27   : > { %v9966_v62 = vadd.f32 %v9930_v32, %v9894_v15  ;;  %v9860_v55 = vadd.f32 %v12410_v8, %v16843_v42  ;;  %v9703_v6 = vpop.f32.mrb[89].mxu0  ;;  %v9905_v15 = vld [vmem:[%s13284_s9 + $0xe8] sm:$0xff] }
 0xb28   : > { %v9965_v63 = vadd.f32 %v9929_v48, %v9893_v23  ;;  %v9859_v52 = vadd.f32 %v16843_v42, %v9703_v6 }
 0xb29   : > { %10003 = vst.msk [vmem:[%s16852_s29 + $0x78] sm:$0xff] %vm9987_vm1, %v9966_v62  ;;  %v9932_v60 = vmul.f32 0.2, %v9860_v55  ;;  %v9908_v55 = vld [vmem:[%s13284_s9 + $0x100] sm:$0xff] }
 0xb2a   : > { %10002 = vst.msk [vmem:[%s16852_s29 + $0x70] sm:$0xff] %vm9987_vm1, %v9965_v63  ;;  %v9931_v3 = vmul.f32 0.2, %v9859_v52  ;;  %v12413_v4 = vpop.f32.mrb[90].mxu0 }
 0xb2b   : > { %v9968_v21 = vadd.f32 %v9932_v60, %v9896_v46  ;;  %v9862_v30 = vadd.f32 %v12413_v4, %v16843_v42  ;;  %v9713_v50 = vpop.f32.mrb[91].mxu0  ;;  %v9907_v46 = vld [vmem:[%s13284_s9 + $0xf8] sm:$0xff] }
 0xb2c   : > { %v9967_v43 = vadd.f32 %v9931_v3, %v9895_v19  ;;  %v9861_v29 = vadd.f32 %v16843_v42, %v9713_v50 }
 0xb2d   : > { %10005 = vst.msk [vmem:[%s16852_s29 + $0x88] sm:$0xff] %vm9987_vm1, %v9968_v21  ;;  %v9934_v26 = vmul.f32 0.2, %v9862_v30  ;;  %v9910_v30 = vld [vmem:[%s13284_s9 + $0x110] sm:$0xff] }
 0xb2e   : > { %10004 = vst.msk [vmem:[%s16852_s29 + $0x80] sm:$0xff] %vm9987_vm1, %v9967_v43  ;;  %v9933_v25 = vmul.f32 0.2, %v9861_v29  ;;  %v12416_v47 = vpop.f32.mrb[92].mxu0 }
 0xb2f   : > { %v9970_v31 = vadd.f32 %v9934_v26, %v9898_v10  ;;  %v9864_v35 = vadd.f32 %v12416_v47, %v16843_v42  ;;  %v9723_v51 = vpop.f32.mrb[93].mxu0  ;;  %v9909_v10 = vld [vmem:[%s13284_s9 + $0x108] sm:$0xff] }
 0xb30   : > { %v9969_v59 = vadd.f32 %v9933_v25, %v9897_v1  ;;  %v9863_v13 = vadd.f32 %v16843_v42, %v9723_v51 }
 0xb31   : > { %10007 = vst.msk [vmem:[%s16852_s29 + $0x98] sm:$0xff] %vm9987_vm1, %v9970_v31  ;;  %v9936_v37 = vmul.f32 0.2, %v9864_v35  ;;  %v9912_v35 = vld [vmem:[%s13284_s9 + $0x120] sm:$0xff] }
 0xb32   : > { %10006 = vst.msk [vmem:[%s16852_s29 + $0x90] sm:$0xff] %vm9987_vm1, %v9969_v59  ;;  %v9935_v0 = vmul.f32 0.2, %v9863_v13  ;;  %v12419_v14 = vpop.f32.mrb[94].mxu0 }
 0xb33   : > { %v9972_v24 = vadd.f32 %v9936_v37, %v9900_v34  ;;  %v9866_v9 = vadd.f32 %v12419_v14, %v16843_v42  ;;  %v9733_v56 = vpop.f32.mrb[95].mxu0  ;;  %v9911_v34 = vld [vmem:[%s13284_s9 + $0x118] sm:$0xff] }
 0xb34   : > { %v9971_v57 = vadd.f32 %v9935_v0, %v9899_v53  ;;  %v9865_v5 = vadd.f32 %v16843_v42, %v9733_v56 }
 0xb35   : > { %10009 = vst.msk [vmem:[%s16852_s29 + $0xa8] sm:$0xff] %vm9987_vm1, %v9972_v24  ;;  %v9938_v61 = vmul.f32 0.2, %v9866_v9  ;;  %v9914_v9 = vld [vmem:[%s13284_s9 + $0x130] sm:$0xff] }
 0xb36   : > { %10008 = vst.msk [vmem:[%s16852_s29 + $0xa0] sm:$0xff] %vm9987_vm1, %v9971_v57  ;;  %v9937_v58 = vmul.f32 0.2, %v9865_v5  ;;  %v12422_v18 = vpop.f32.mrb[96].mxu0 }
 0xb37   : > { %v9974_v41 = vadd.f32 %v9938_v61, %v9902_v44  ;;  %v9868_v40 = vadd.f32 %v12422_v18, %v16843_v42  ;;  %v9743_v33 = vpop.f32.mrb[97].mxu0  ;;  %v9913_v44 = vld [vmem:[%s13284_s9 + $0x128] sm:$0xff] }
 0xb38   : > { %v9973_v38 = vadd.f32 %v9937_v58, %v9901_v39  ;;  %v9867_v2 = vadd.f32 %v16843_v42, %v9743_v33 }
 0xb39   : > { %10011 = vst.msk [vmem:[%s16852_s29 + $0xb8] sm:$0xff] %vm9987_vm1, %v9974_v41  ;;  %v9940_v27 = vmul.f32 0.2, %v9868_v40 }
 0xb3a   : > { %10010 = vst.msk [vmem:[%s16852_s29 + $0xb0] sm:$0xff] %vm9987_vm1, %v9973_v38  ;;  %v9939_v11 = vmul.f32 0.2, %v9867_v2  ;;  %v12425_v45 = vpop.f32.mrb[98].mxu0 }
 0xb3b   : > { %v9976_v28 = vadd.f32 %v9940_v27, %v9904_v49  ;;  %v9870_v22 = vadd.f32 %v12425_v45, %v16843_v42  ;;  %v9753_v16 = vpop.f32.mrb[99].mxu0 }
 0xb3c   : > { %v9975_v20 = vadd.f32 %v9939_v11, %v9903_v12  ;;  %v9869_v7 = vadd.f32 %v16843_v42, %v9753_v16 }
 0xb3d   : > { %10013 = vst.msk [vmem:[%s16852_s29 + $0xc8] sm:$0xff] %vm9987_vm1, %v9976_v28  ;;  %v9942_v17 = vmul.f32 0.2, %v9870_v22 }
 0xb3e   : > { %10012 = vst.msk [vmem:[%s16852_s29 + $0xc0] sm:$0xff] %vm9987_vm1, %v9975_v20  ;;  %v9941_v54 = vmul.f32 0.2, %v9869_v7  ;;  %v12428_v32 = vpop.f32.mrb[100].mxu0 }
 0xb3f   : > { %v9978_v23 = vadd.f32 %v9942_v17, %v9906_v36  ;;  %v9872_v48 = vadd.f32 %v12428_v32, %v16843_v42  ;;  %v9763_v8 = vpop.f32.mrb[101].mxu0 }
 0xb40   : > { %v9977_v62 = vadd.f32 %v9941_v54, %v9905_v15  ;;  %v9871_v6 = vadd.f32 %v16843_v42, %v9763_v8 }
 0xb41   : > { %10015 = vst.msk [vmem:[%s16852_s29 + $0xd8] sm:$0xff] %vm9987_vm1, %v9978_v23  ;;  %v9944_v63 = vmul.f32 0.2, %v9872_v48 }
 0xb42   : > { %10014 = vst.msk [vmem:[%s16852_s29 + $0xd0] sm:$0xff] %vm9987_vm1, %v9977_v62  ;;  %v9943_v52 = vmul.f32 0.2, %v9871_v6  ;;  %v12431_v60 = vpop.f32.mrb[102].mxu0 }
 0xb43   : > { %v9980_v19 = vadd.f32 %v9944_v63, %v9908_v55  ;;  %v9874_v3 = vadd.f32 %v12431_v60, %v16843_v42  ;;  %v9773_v4 = vpop.f32.mrb[103].mxu0 }
 0xb44   : > { %v9979_v21 = vadd.f32 %v9943_v52, %v9907_v46  ;;  %v9873_v50 = vadd.f32 %v16843_v42, %v9773_v4 }
 0xb45   : > { %10017 = vst.msk [vmem:[%s16852_s29 + $0xe8] sm:$0xff] %vm9987_vm1, %v9980_v19  ;;  %v9946_v43 = vmul.f32 0.2, %v9874_v3 }
 0xb46   : > { %10016 = vst.msk [vmem:[%s16852_s29 + $0xe0] sm:$0xff] %vm9987_vm1, %v9979_v21  ;;  %v9945_v29 = vmul.f32 0.2, %v9873_v50  ;;  %v12434_v26 = vpop.f32.mrb[104].mxu0 }
 0xb47   : > { %v9982_v1 = vadd.f32 %v9946_v43, %v9910_v30  ;;  %v9876_v25 = vadd.f32 %v12434_v26, %v16843_v42  ;;  %v9783_v47 = vpop.f32.mrb[105].mxu0 }
 0xb48   : > { %v9981_v31 = vadd.f32 %v9945_v29, %v9909_v10  ;;  %v9875_v51 = vadd.f32 %v16843_v42, %v9783_v47 }
 0xb49   : > { %10019 = vst.msk [vmem:[%s16852_s29 + $0xf8] sm:$0xff] %vm9987_vm1, %v9982_v1  ;;  %v9948_v59 = vmul.f32 0.2, %v9876_v25 }
 0xb4a   : > { %10018 = vst.msk [vmem:[%s16852_s29 + $0xf0] sm:$0xff] %vm9987_vm1, %v9981_v31  ;;  %v9947_v13 = vmul.f32 0.2, %v9875_v51  ;;  %v12437_v37 = vpop.f32.mrb[106].mxu0 }
 0xb4b   : > { %v9984_v53 = vadd.f32 %v9948_v59, %v9912_v35  ;;  %v9878_v0 = vadd.f32 %v12437_v37, %v16843_v42  ;;  %v9793_v14 = vpop.f32.mrb[107].mxu0 }
 0xb4c   : > { %v9983_v24 = vadd.f32 %v9947_v13, %v9911_v34  ;;  %v9877_v56 = vadd.f32 %v16843_v42, %v9793_v14 }
 0xb4d   : > { %10021 = vst.msk [vmem:[%s16852_s29 + $0x108] sm:$0xff] %vm9987_vm1, %v9984_v53  ;;  %v9950_v57 = vmul.f32 0.2, %v9878_v0 }
 0xb4e   : > { %10020 = vst.msk [vmem:[%s16852_s29 + $0x100] sm:$0xff] %vm9987_vm1, %v9983_v24  ;;  %v9949_v5 = vmul.f32 0.2, %v9877_v56 }
 0xb4f   : > { %v9986_v61 = vadd.f32 %v9950_v57, %v9914_v9 }
 0xb50   : > { %v9985_v39 = vadd.f32 %v9949_v5, %v9913_v44 }
 0xb51   : > { %10023 = vst.msk [vmem:[%s16852_s29 + $0x118] sm:$0xff] %vm9987_vm1, %v9986_v61 }
 0xb52   : > { %10022 = vst.msk [vmem:[%s16852_s29 + $0x110] sm:$0xff] %vm9987_vm1, %v9985_v39 }
 0xb53 PF: > { %s17_s24 = sadd.s32 1, %s13106_s24  }
 0xb54   : > { %p14_p5 = scmp.ge.s32.totalorder %s17_s24, 4  }
 0xb56   :  { %16 = sbr.rel (!%p14_p5) target bundleno = 1 (0x1), region = 88 }

</bundles_post_ra>
